<compile_context>
chip_gen: v7x
topology: tpu7x:2x2x1
jax: 0.10.0
libtpu: 0.0.40
codegen_flags: <defaults>
</compile_context>

<pallas_src>
import functools

import numpy as np

import jax
import jax.numpy as jnp
from jax.experimental import pallas as pl
from jax.experimental.pallas import tpu as pltpu


# ----------------------------------------------------------------------------
# Precomputed 0/1 selection constants (shift / pool / pool+flatten matrices).
# They depend only on (batch, H, W) and are cached on device.
# ----------------------------------------------------------------------------
def _shift_mats(B, H, W):
    """3x3/pad=1 tap-selection matrices, tap order (dy, dx) dy-major."""
    N = B * H * W
    m = np.zeros((9, N, N), np.float32)
    t = 0
    for dy in (-1, 0, 1):
        for dx in (-1, 0, 1):
            for b in range(B):
                for y in range(H):
                    ys = y + dy
                    if not (0 <= ys < H):
                        continue
                    for x in range(W):
                        xs = x + dx
                        if 0 <= xs < W:
                            m[t, b * H * W + y * W + x,
                              b * H * W + ys * W + xs] = 1.0
            t += 1
    return m


def _pool_mats(B, H, W):
    """2x2/stride-2 pool as 4 row-selection matrices (compact raster output)."""
    Ho, Wo = H // 2, W // 2
    Ni, No = B * H * W, B * Ho * Wo
    m = np.zeros((4, No, Ni), np.float32)
    for o, (oy, ox) in enumerate(((0, 0), (0, 1), (1, 0), (1, 1))):
        for b in range(B):
            for y in range(Ho):
                for x in range(Wo):
                    m[o, b * Ho * Wo + y * Wo + x,
                      b * H * W + (2 * y + oy) * W + (2 * x + ox)] = 1.0
    return m


def _pool_flatten_mats(B, H, W):
    """2x2 pool fused with NHWC flatten: entry [s*4+o, b, :] selects, for batch
    row b, the input row feeding flattened spatial position s / pool corner o."""
    Ho, Wo = H // 2, W // 2
    Ni = B * H * W
    S = Ho * Wo
    m = np.zeros((S * 4, B, Ni), np.float32)
    for s in range(S):
        y, x = divmod(s, Wo)
        for o, (oy, ox) in enumerate(((0, 0), (0, 1), (1, 0), (1, 1))):
            for b in range(B):
                m[s * 4 + o, b,
                  b * H * W + (2 * y + oy) * W + (2 * x + ox)] = 1.0
    return m


@functools.lru_cache(maxsize=8)
def _spatial_constants(B, H, W):
    shift2 = _shift_mats(B, H, W)                    # (9, N1, N1)
    pool1 = _pool_mats(B, H, W)                      # (4, N2, N1)
    shift3 = _shift_mats(B, H // 2, W // 2)          # (9, N2, N2)
    pool2 = _pool_flatten_mats(B, H // 2, W // 2)    # (S*4, B, N2)
    return tuple(jnp.asarray(a) for a in (shift2, pool1, shift3, pool2))


# ----------------------------------------------------------------------------
# The single fused Pallas kernel.
# Grid: (nk,) over the fc1-out / fc2-in 4096 dim ("arbitrary": fc2 reduction).
# ----------------------------------------------------------------------------
def _fused_forward_kernel(
    w_fc1_ref, b_fc1_ref, w_fc2_ref,                   # blocked along grid axis
    x_ref, w1_ref, b1_ref, shift2_ref, w2_ref, b2_ref,
    pool1_ref, shift3_ref, w3_ref, b3_ref, pool2_ref,
    cls_ref, w_cls_ref, b_fc2_ref, w34_ref, b34_ref,   # whole-array residents
    pred_ref, relcon_ref,                              # outputs
    hflat_ref, acc_ref):                               # VMEM scratch
    f32 = jnp.float32
    bf16 = jnp.bfloat16
    N1 = x_ref.shape[0]
    C1 = w1_ref.shape[1]
    C2 = w2_ref.shape[1]
    C3 = w3_ref.shape[1]
    N2 = shift3_ref.shape[2]
    S, B, _ = hflat_ref.shape
    k = pl.program_id(0)

    # -------- conv stack: runs once, result stays resident in VMEM scratch ---
    @pl.when(k == 0)
    def _conv_stack():
        # conv1_1 / conv1_2 fused as one block-diagonal 1x1 conv + tanh.
        a1 = jnp.tanh(
            jnp.dot(x_ref[...], w1_ref[...], preferred_element_type=f32)
            + b1_ref[...])                                       # (N1, C1)

        # conv2_1 (3x3, pad=1): 9 shift-select matmuls; zero padding is baked
        # into all-zero rows of the shift matrices.
        acc2 = jnp.zeros((N1, C2), f32)
        for t in range(9):
            tap = jnp.dot(shift2_ref[t], a1, preferred_element_type=f32)
            acc2 += jnp.dot(tap, w2_ref[t * C1:(t + 1) * C1, :],
                            preferred_element_type=f32)
        a2 = jnp.maximum(acc2 + b2_ref[...], 0.0)                # (N1, C2)

        # maxpool 2x2/2: elementwise max of 4 row-select matmuls.
        p1 = jnp.dot(pool1_ref[0], a2, preferred_element_type=f32)
        for o in range(1, 4):
            p1 = jnp.maximum(
                p1, jnp.dot(pool1_ref[o], a2, preferred_element_type=f32))

        # conv3_1 (3x3, pad=1) + relu.
        acc3 = jnp.zeros((N2, C3), f32)
        for t in range(9):
            tap = jnp.dot(shift3_ref[t], p1, preferred_element_type=f32)
            acc3 += jnp.dot(tap, w3_ref[t * C2:(t + 1) * C2, :],
                            preferred_element_type=f32)
        a3 = jnp.maximum(acc3 + b3_ref[...], 0.0)                # (N2, C3)

        # maxpool 2x2/2 fused with the NHWC flatten: piece `s` holds the C3
        # channels of flattened spatial position `s` for every batch row.
        for s in range(S):
            piece = jnp.dot(pool2_ref[s * 4], a3, preferred_element_type=f32)
            for o in range(1, 4):
                piece = jnp.maximum(
                    piece,
                    jnp.dot(pool2_ref[s * 4 + o], a3,
                            preferred_element_type=f32))
            hflat_ref[s] = piece                                 # (B, C3)

        acc_ref[...] = jnp.zeros_like(acc_ref)

    # -------- fc1 K-chunk (relu) + partial fc2 accumulation (bf16 weights) ---
    TK = w_fc1_ref.shape[1]
    acc1 = jnp.zeros((B, TK), f32)
    for s in range(S):
        acc1 += jnp.dot(hflat_ref[s].astype(bf16),
                        w_fc1_ref[s * C3:(s + 1) * C3, :],
                        preferred_element_type=f32)
    h1 = jnp.maximum(acc1 + b_fc1_ref[...], 0.0)
    # TODO(synk): dropout1 / dropout2 (p=0.5) are identity (eval-mode semantics).
    acc_ref[...] += jnp.dot(h1.astype(bf16), w_fc2_ref[...],
                            preferred_element_type=f32)

    # -------- epilogue: class one-hots, fc2 bias/relu, fused fc3+fc4 heads ---
    @pl.when(k == pl.num_programs(0) - 1)
    def _epilogue():
        # one-hot @ tail rows of fc2's weight == the class contribution; no
        # 4096+2*NC concat is ever materialized.
        cls_add = jnp.dot(cls_ref[...], w_cls_ref[...],
                          preferred_element_type=f32)
        pred = jnp.maximum(acc_ref[...] + b_fc2_ref[...] + cls_add, 0.0)
        pred_ref[...] = pred
        # fc3 / fc4 packed into one lane-dense (512, 128) matmul.
        relcon_ref[...] = (jnp.dot(pred, w34_ref[...],
                                   preferred_element_type=f32)
                           + b34_ref[...])


@jax.jit
def _forward_core(params, consts, x2d, cls_oh):
    shift2, pool1, shift3, pool2 = consts
    f32 = jnp.float32
    Bt = cls_oh.shape[0]
    N1, C0 = x2d.shape
    S = pool2.shape[0] // 4
    C3 = params['w3'].shape[1]
    Kflat, H1 = params['w_fc1'].shape
    F2 = params['w_fc2'].shape[1]
    P = params['w34'].shape[1]
    assert Kflat == S * C3

    TK = min(1024, H1)          # 256-multiple K tile (v6e/v7x MXU width)
    assert H1 % TK == 0
    nk = H1 // TK

    def const_spec(shape):
        if len(shape) == 2:
            return pl.BlockSpec(shape, lambda k: (0, 0))
        return pl.BlockSpec(shape, lambda k: (0, 0, 0))

    grid_spec = pltpu.PrefetchScalarGridSpec(
        num_scalar_prefetch=0,
        grid=(nk,),
        in_specs=[
            pl.BlockSpec((Kflat, TK), lambda k: (0, k)),   # w_fc1 (bf16)
            pl.BlockSpec((1, TK), lambda k: (0, k)),       # b_fc1
            pl.BlockSpec((TK, F2), lambda k: (k, 0)),      # w_fc2 (bf16)
            const_spec((N1, C0)),                          # x2d
            const_spec(params['w1'].shape),
            const_spec(params['b1'].shape),
            const_spec(shift2.shape),
            const_spec(params['w2'].shape),
            const_spec(params['b2'].shape),
            const_spec(pool1.shape),
            const_spec(shift3.shape),
            const_spec(params['w3'].shape),
            const_spec(params['b3'].shape),
            const_spec(pool2.shape),
            const_spec(cls_oh.shape),
            const_spec(params['w_cls'].shape),
            const_spec(params['b_fc2'].shape),
            const_spec(params['w34'].shape),
            const_spec(params['b34'].shape),
        ],
        out_specs=[
            pl.BlockSpec((Bt, F2), lambda k: (0, 0)),      # pred
            pl.BlockSpec((Bt, P), lambda k: (0, 0)),       # [relation | conn]
        ],
        scratch_shapes=[
            pltpu.VMEM((S, Bt, C3), f32),                  # flattened conv out
            pltpu.VMEM((Bt, F2), f32),                     # fc2 accumulator
        ],
    )

    pred_all, relcon = pl.pallas_call(
        _fused_forward_kernel,
        out_shape=(jax.ShapeDtypeStruct((Bt, F2), f32),
                   jax.ShapeDtypeStruct((Bt, P), f32)),
        grid_spec=grid_spec,
        compiler_params=pltpu.CompilerParams(
            dimension_semantics=("arbitrary",)),
    )(params['w_fc1'], params['b_fc1'], params['w_fc2'],
      x2d, params['w1'], params['b1'], shift2,
      params['w2'], params['b2'], pool1, shift3,
      params['w3'], params['b3'], pool2,
      cls_oh, params['w_cls'], params['b_fc2'],
      params['w34'], params['b34'])
    return pred_all, relcon


# ----------------------------------------------------------------------------
# Parameter setup and the public module.
# ----------------------------------------------------------------------------
def _init_linear(key, fan_in, fan_out):
    kw, kb = jax.random.split(key)
    bound = 1.0 / (fan_in ** 0.5)
    w = jax.random.uniform(kw, (fan_in, fan_out), jnp.float32, -bound, bound)
    b = jax.random.uniform(kb, (1, fan_out), jnp.float32, -bound, bound)
    return w, b


class FlatRelationClassifierPallas:
    """Pallas re-implementation of FlatRelationClassifier.forward (non-'vg')."""

    def __init__(self, key, input_dim=8, output_dim=16, feature_size=8,
                 num_classes=10, num_super_classes=4):
        assert feature_size % 4 == 0
        self.num_classes = num_classes
        self.num_super_classes = num_super_classes
        self.output_dim = output_dim
        D = input_dim
        C0h = 2 * D + 1
        S = (feature_size // 4) ** 2
        fc1_in = 8 * D * S
        f32 = jnp.float32
        keys = jax.random.split(key, 8)

        # conv1_1 / conv1_2 fused into a single block-diagonal 1x1-conv matrix.
        w11, b11 = _init_linear(keys[0], C0h, D)
        w12, b12 = _init_linear(keys[1], C0h, D)
        w1 = jnp.zeros((2 * C0h, 2 * D), f32)
        w1 = w1.at[:C0h, :D].set(w11).at[C0h:, D:].set(w12)
        b1 = jnp.concatenate([b11, b12], axis=1)

        # 3x3 convs stored as im2col matmul matrices, rows ordered (kh, kw, cin).
        # (Real PyTorch weights: w[(kh*3+kw)*cin + ci, co] = torch_w[co, ci, kh, kw].)
        w2, b2 = _init_linear(keys[2], 9 * 2 * D, 4 * D)
        w3, b3 = _init_linear(keys[3], 9 * 4 * D, 8 * D)

        # fc1 rows are in NHWC flatten order (y, x, c) so no runtime transpose
        # is needed. (Real PyTorch weights would be row-permuted once here.)
        w_fc1, b_fc1 = _init_linear(keys[4], fc1_in, 4096)

        # fc2 split into the 4096-wide main block and the 2*num_classes
        # class-row block (one-hot @ class rows is added in the kernel epilogue).
        w_fc2_full, b_fc2 = _init_linear(keys[5], 4096 + 2 * num_classes, 512)
        w_fc2 = w_fc2_full[:4096]
        w_cls = w_fc2_full[4096:]

        # fc3 / fc4 packed side by side, lane-padded to a multiple of 128 so the
        # head output store is a single unmasked, lane-dense write.
        w_fc3, b_fc3 = _init_linear(keys[6], 512, output_dim)
        w_fc4, b_fc4 = _init_linear(keys[7], 512, 1)
        P = max(128, pl.cdiv(output_dim + 1, 128) * 128)
        w34 = jnp.zeros((512, P), f32)
        w34 = w34.at[:, :output_dim].set(w_fc3)
        w34 = w34.at[:, output_dim:output_dim + 1].set(w_fc4)
        b34 = jnp.zeros((1, P), f32)
        b34 = b34.at[:, :output_dim].set(b_fc3)
        b34 = b34.at[:, output_dim:output_dim + 1].set(b_fc4)

        self.params = dict(
            w1=w1, b1=b1, w2=w2, b2=b2, w3=w3, b3=b3,
            w_fc1=w_fc1.astype(jnp.bfloat16), b_fc1=b_fc1,        # bf16: BW bound
            w_fc2=w_fc2.astype(jnp.bfloat16), w_cls=w_cls, b_fc2=b_fc2,
            w34=w34, b34=b34)

    def forward(self, h_sub, h_obj, c1, c2, s1=None, s2=None, rank=None,
                h_sub_aug=None, h_obj_aug=None, one_hot=True):
        if s1 is not None:
            # TODO(synk): 'vg' super-class branch relies on process_super_class,
            # which is not defined in the reference source.
            raise NotImplementedError("super-class ('vg') path not implemented")

        B = h_sub.shape[0]
        has_aug = h_sub_aug is not None
        if has_aug:
            # main + aug share all weights: stack along batch so one fused
            # kernel launch (and one weight stream) serves both paths.
            h_sub = jnp.concatenate([h_sub, h_sub_aug], axis=0)
            h_obj = jnp.concatenate([h_obj, h_obj_aug], axis=0)

        Bt, _, H, W = h_sub.shape
        x = jnp.concatenate([h_sub, h_obj], axis=1)        # NCHW channel concat
        x2d = jnp.transpose(x, (0, 2, 3, 1)).reshape(Bt * H * W, -1)

        nc = self.num_classes
        cls_oh = jnp.concatenate(
            [jax.nn.one_hot(c1, nc, dtype=jnp.float32),
             jax.nn.one_hot(c2, nc, dtype=jnp.float32)], axis=1)
        if has_aug:
            cls_oh = jnp.concatenate([cls_oh, cls_oh], axis=0)

        consts = _spatial_constants(Bt, H, W)
        pred_all, relcon = _forward_core(self.params, consts, x2d, cls_oh)

        out = self.output_dim
        relation = relcon[:B, :out]
        connectivity = relcon[:B, out:out + 1]
        pred = pred_all[:B]
        pred_aug = pred_all[B:] if has_aug else None
        return relation, connectivity, pred, pred_aug


# ----------------------------------------------------------------------------
# Pure-JAX reference (mirrors the kernel's bf16 casts) for a numeric check.
# ----------------------------------------------------------------------------
def _reference_forward(params, h_sub, h_obj, c1, c2, num_classes, output_dim):
    f32, bf16 = jnp.float32, jnp.bfloat16

    def conv3x3(x, w, b):
        B, H, W, C = x.shape
        xp = jnp.pad(x, ((0, 0), (1, 1), (1, 1), (0, 0)))
        cols = jnp.concatenate(
            [xp[:, dy:dy + H, dx:dx + W, :]
             for dy in range(3) for dx in range(3)], axis=-1)
        y = jnp.dot(cols.reshape(-1, 9 * C), w, preferred_element_type=f32) + b
        return y.reshape(B, H, W, -1)

    def pool(x):
        B, H, W, C = x.shape
        return x.reshape(B, H // 2, 2, W // 2, 2, C).max(axis=(2, 4))

    hs = jnp.transpose(h_sub, (0, 2, 3, 1))
    ho = jnp.transpose(h_obj, (0, 2, 3, 1))
    x = jnp.concatenate([hs, ho], axis=-1)
    B, H, W, C0 = x.shape
    a1 = jnp.tanh(jnp.dot(x.reshape(-1, C0), params['w1'],
                          preferred_element_type=f32) + params['b1'])
    a1 = a1.reshape(B, H, W, -1)
    a2 = pool(jax.nn.relu(conv3x3(a1, params['w2'], params['b2'])))
    a3 = pool(jax.nn.relu(conv3x3(a2, params['w3'], params['b3'])))
    hflat = a3.reshape(B, -1)                              # NHWC flatten order
    h1 = jax.nn.relu(jnp.dot(hflat.astype(bf16), params['w_fc1'],
                             preferred_element_type=f32) + params['b_fc1'])
    cls_oh = jnp.concatenate(
        [jax.nn.one_hot(c1, num_classes, dtype=f32),
         jax.nn.one_hot(c2, num_classes, dtype=f32)], axis=1)
    pred = jax.nn.relu(jnp.dot(h1.astype(bf16), params['w_fc2'],
                               preferred_element_type=f32)
                       + jnp.dot(cls_oh, params['w_cls'],
                                 preferred_element_type=f32)
                       + params['b_fc2'])
    rc = jnp.dot(pred, params['w34'], preferred_element_type=f32) + params['b34']
    return rc[:, :output_dim], rc[:, output_dim:output_dim + 1], pred


# ----------------------------------------------------------------------------
# Demo
# ----------------------------------------------------------------------------
if __name__ == "__main__":
    key = jax.random.PRNGKey(0)
    k_model, k_sub, k_obj, k_c1, k_c2 = jax.random.split(key, 5)

    B = 2       # batch
    D = 8       # input_dim (small)
    F = 8       # feature_size (small)
    OUT = 16    # output_dim
    NC = 10     # num_classes

    model = FlatRelationClassifierPallas(
        k_model, input_dim=D, output_dim=OUT, feature_size=F,
        num_classes=NC, num_super_classes=4)

    h_sub = jax.random.normal(k_sub, (B, 2 * D + 1, F, F), jnp.float32)  # NCHW
    h_obj = jax.random.normal(k_obj, (B, 2 * D + 1, F, F), jnp.float32)  # NCHW
    c1 = jax.random.randint(k_c1, (B,), 0, NC)
    c2 = jax.random.randint(k_c2, (B,), 0, NC)

    relation, connectivity, pred, pred_aug = model.forward(h_sub, h_obj, c1, c2)
    jax.block_until_ready((relation, connectivity, pred))

    assert relation.shape == (B, OUT)
    assert connectivity.shape == (B, 1)
    assert pred.shape == (B, 512)
    assert pred_aug is None

    # Numerical sanity check against a pure-JAX reference (same bf16 casts).
    rel_ref, conn_ref, pred_ref = _reference_forward(
        model.params, h_sub, h_obj, c1, c2, NC, OUT)
    np.testing.assert_allclose(np.asarray(pred), np.asarray(pred_ref),
                               rtol=2e-2, atol=2e-3)
    np.testing.assert_allclose(np.asarray(relation), np.asarray(rel_ref),
                               rtol=2e-2, atol=2e-3)
    np.testing.assert_allclose(np.asarray(connectivity), np.asarray(conn_ref),
                               rtol=2e-2, atol=2e-3)

    print("KERNEL_OK")
</pallas_src>

<mosaic_0001>
module attributes {stable_mosaic.version = 11 : i64} {
  func.func @_fused_forward_kernel(%arg0: i32, %arg1: memref<256x1024xbf16, #tpu.memory_space<vmem>>, %arg2: memref<1x1024xf32, #tpu.memory_space<vmem>>, %arg3: memref<1024x512xbf16, #tpu.memory_space<vmem>>, %arg4: memref<128x34xf32, #tpu.memory_space<vmem>>, %arg5: memref<34x16xf32, #tpu.memory_space<vmem>>, %arg6: memref<1x16xf32, #tpu.memory_space<vmem>>, %arg7: memref<9x128x128xf32, #tpu.memory_space<vmem>>, %arg8: memref<144x32xf32, #tpu.memory_space<vmem>>, %arg9: memref<1x32xf32, #tpu.memory_space<vmem>>, %arg10: memref<4x32x128xf32, #tpu.memory_space<vmem>>, %arg11: memref<9x32x32xf32, #tpu.memory_space<vmem>>, %arg12: memref<288x64xf32, #tpu.memory_space<vmem>>, %arg13: memref<1x64xf32, #tpu.memory_space<vmem>>, %arg14: memref<16x2x32xf32, #tpu.memory_space<vmem>>, %arg15: memref<2x20xf32, #tpu.memory_space<vmem>>, %arg16: memref<20x512xf32, #tpu.memory_space<vmem>>, %arg17: memref<1x512xf32, #tpu.memory_space<vmem>>, %arg18: memref<512x128xf32, #tpu.memory_space<vmem>>, %arg19: memref<1x128xf32, #tpu.memory_space<vmem>>, %arg20: memref<2x512xf32, #tpu.memory_space<vmem>>, %arg21: memref<2x128xf32, #tpu.memory_space<vmem>>, %arg22: memref<4x2x64xf32, #tpu.memory_space<vmem>>, %arg23: memref<2x512xf32, #tpu.memory_space<vmem>>) attributes {dimension_semantics = [#tpu.dimension_semantics<arbitrary>], iteration_bounds = array<i64: 4>, scalar_prefetch = 0 : i64, scratch_operands = 2 : i64, tpu.core_type = #tpu.core_type<tc>, window_params = [{transform_indices = @transform_0, window_bounds = array<i64: 256, 1024>}, {transform_indices = @transform_1, window_bounds = array<i64: 1, 1024>}, {transform_indices = @transform_2, window_bounds = array<i64: 1024, 512>}, {pipeline_mode = #tpu.pipeline_mode<synchronous>, transform_indices = @transform_3, window_bounds = array<i64: 128, 34>}, {pipeline_mode = #tpu.pipeline_mode<synchronous>, transform_indices = @transform_4, window_bounds = array<i64: 34, 16>}, {pipeline_mode = #tpu.pipeline_mode<synchronous>, transform_indices = @transform_5, window_bounds = array<i64: 1, 16>}, {pipeline_mode = #tpu.pipeline_mode<synchronous>, transform_indices = @transform_6, window_bounds = array<i64: 9, 128, 128>}, {pipeline_mode = #tpu.pipeline_mode<synchronous>, transform_indices = @transform_7, window_bounds = array<i64: 144, 32>}, {pipeline_mode = #tpu.pipeline_mode<synchronous>, transform_indices = @transform_8, window_bounds = array<i64: 1, 32>}, {pipeline_mode = #tpu.pipeline_mode<synchronous>, transform_indices = @transform_9, window_bounds = array<i64: 4, 32, 128>}, {pipeline_mode = #tpu.pipeline_mode<synchronous>, transform_indices = @transform_10, window_bounds = array<i64: 9, 32, 32>}, {pipeline_mode = #tpu.pipeline_mode<synchronous>, transform_indices = @transform_11, window_bounds = array<i64: 288, 64>}, {pipeline_mode = #tpu.pipeline_mode<synchronous>, transform_indices = @transform_12, window_bounds = array<i64: 1, 64>}, {pipeline_mode = #tpu.pipeline_mode<synchronous>, transform_indices = @transform_13, window_bounds = array<i64: 16, 2, 32>}, {pipeline_mode = #tpu.pipeline_mode<synchronous>, transform_indices = @transform_14, window_bounds = array<i64: 2, 20>}, {pipeline_mode = #tpu.pipeline_mode<synchronous>, transform_indices = @transform_15, window_bounds = array<i64: 20, 512>}, {pipeline_mode = #tpu.pipeline_mode<synchronous>, transform_indices = @transform_16, window_bounds = array<i64: 1, 512>}, {pipeline_mode = #tpu.pipeline_mode<synchronous>, transform_indices = @transform_17, window_bounds = array<i64: 512, 128>}, {pipeline_mode = #tpu.pipeline_mode<synchronous>, transform_indices = @transform_18, window_bounds = array<i64: 1, 128>}, {pipeline_mode = #tpu.pipeline_mode<synchronous>, transform_indices = @transform_19, window_bounds = array<i64: 2, 512>}, {pipeline_mode = #tpu.pipeline_mode<synchronous>, transform_indices = @transform_20, window_bounds = array<i64: 2, 128>}]} {
    %c0_i32 = arith.constant 0 : i32
    %0 = arith.cmpi eq, %arg0, %c0_i32 : i32
    %1 = arith.extui %0 : i1 to i32
    %c0_i32_0 = arith.constant 0 : i32
    %2 = arith.cmpi ne, %1, %c0_i32_0 : i32
    scf.if %2 {
      %c0_29 = arith.constant 0 : index
      %c0_30 = arith.constant 0 : index
      %42 = vector.load %arg4[%c0_29, %c0_30] : memref<128x34xf32, #tpu.memory_space<vmem>>, vector<128x34xf32>
      %c0_31 = arith.constant 0 : index
      %c0_32 = arith.constant 0 : index
      %43 = vector.load %arg5[%c0_31, %c0_32] : memref<34x16xf32, #tpu.memory_space<vmem>>, vector<34x16xf32>
      %cst_33 = arith.constant dense<0.000000e+00> : vector<128x16xf32>
      %44 = tpu.matmul %42, %43, %cst_33 {dimension_numbers = #tpu.dot_dimension_numbers<[1], [0], [0], [1], [0, 0, 1, 1], [], []>} : vector<128x34xf32>, vector<34x16xf32>, vector<128x16xf32> -> vector<128x16xf32>
      %c0_34 = arith.constant 0 : index
      %c0_35 = arith.constant 0 : index
      %45 = vector.load %arg6[%c0_34, %c0_35] : memref<1x16xf32, #tpu.memory_space<vmem>>, vector<1x16xf32>
      %46 = vector.broadcast %45 : vector<1x16xf32> to vector<128x16xf32>
      %47 = arith.addf %44, %46 : vector<128x16xf32>
      %48 = math.tanh %47 : vector<128x16xf32>
      %cst_36 = arith.constant 0.000000e+00 : f32
      %49 = vector.broadcast %cst_36 : f32 to vector<128x32xf32>
      %c0_37 = arith.constant 0 : index
      %c0_38 = arith.constant 0 : index
      %c0_39 = arith.constant 0 : index
      %50 = vector.load %arg7[%c0_37, %c0_38, %c0_39] : memref<9x128x128xf32, #tpu.memory_space<vmem>>, vector<1x128x128xf32>
      %51 = vector.shape_cast %50 : vector<1x128x128xf32> to vector<128x128xf32>
      %cst_40 = arith.constant dense<0.000000e+00> : vector<128x16xf32>
      %52 = tpu.matmul %51, %48, %cst_40 {dimension_numbers = #tpu.dot_dimension_numbers<[1], [0], [0], [1], [0, 0, 1, 1], [], []>} : vector<128x128xf32>, vector<128x16xf32>, vector<128x16xf32> -> vector<128x16xf32>
      %c0_41 = arith.constant 0 : index
      %c0_42 = arith.constant 0 : index
      %53 = vector.load %arg8[%c0_41, %c0_42] : memref<144x32xf32, #tpu.memory_space<vmem>>, vector<16x32xf32>
      %cst_43 = arith.constant dense<0.000000e+00> : vector<128x32xf32>
      %54 = tpu.matmul %52, %53, %cst_43 {dimension_numbers = #tpu.dot_dimension_numbers<[1], [0], [0], [1], [0, 0, 1, 1], [], []>} : vector<128x16xf32>, vector<16x32xf32>, vector<128x32xf32> -> vector<128x32xf32>
      %55 = arith.addf %49, %54 : vector<128x32xf32>
      %c1_44 = arith.constant 1 : index
      %c0_45 = arith.constant 0 : index
      %c0_46 = arith.constant 0 : index
      %56 = vector.load %arg7[%c1_44, %c0_45, %c0_46] : memref<9x128x128xf32, #tpu.memory_space<vmem>>, vector<1x128x128xf32>
      %57 = vector.shape_cast %56 : vector<1x128x128xf32> to vector<128x128xf32>
      %cst_47 = arith.constant dense<0.000000e+00> : vector<128x16xf32>
      %58 = tpu.matmul %57, %48, %cst_47 {dimension_numbers = #tpu.dot_dimension_numbers<[1], [0], [0], [1], [0, 0, 1, 1], [], []>} : vector<128x128xf32>, vector<128x16xf32>, vector<128x16xf32> -> vector<128x16xf32>
      %c16 = arith.constant 16 : index
      %c0_48 = arith.constant 0 : index
      %59 = vector.load %arg8[%c16, %c0_48] : memref<144x32xf32, #tpu.memory_space<vmem>>, vector<16x32xf32>
      %cst_49 = arith.constant dense<0.000000e+00> : vector<128x32xf32>
      %60 = tpu.matmul %58, %59, %cst_49 {dimension_numbers = #tpu.dot_dimension_numbers<[1], [0], [0], [1], [0, 0, 1, 1], [], []>} : vector<128x16xf32>, vector<16x32xf32>, vector<128x32xf32> -> vector<128x32xf32>
      %61 = arith.addf %55, %60 : vector<128x32xf32>
      %c2_50 = arith.constant 2 : index
      %c0_51 = arith.constant 0 : index
      %c0_52 = arith.constant 0 : index
      %62 = vector.load %arg7[%c2_50, %c0_51, %c0_52] : memref<9x128x128xf32, #tpu.memory_space<vmem>>, vector<1x128x128xf32>
      %63 = vector.shape_cast %62 : vector<1x128x128xf32> to vector<128x128xf32>
      %cst_53 = arith.constant dense<0.000000e+00> : vector<128x16xf32>
      %64 = tpu.matmul %63, %48, %cst_53 {dimension_numbers = #tpu.dot_dimension_numbers<[1], [0], [0], [1], [0, 0, 1, 1], [], []>} : vector<128x128xf32>, vector<128x16xf32>, vector<128x16xf32> -> vector<128x16xf32>
      %c32 = arith.constant 32 : index
      %c0_54 = arith.constant 0 : index
      %65 = vector.load %arg8[%c32, %c0_54] : memref<144x32xf32, #tpu.memory_space<vmem>>, vector<16x32xf32>
      %cst_55 = arith.constant dense<0.000000e+00> : vector<128x32xf32>
      %66 = tpu.matmul %64, %65, %cst_55 {dimension_numbers = #tpu.dot_dimension_numbers<[1], [0], [0], [1], [0, 0, 1, 1], [], []>} : vector<128x16xf32>, vector<16x32xf32>, vector<128x32xf32> -> vector<128x32xf32>
      %67 = arith.addf %61, %66 : vector<128x32xf32>
      %c3_56 = arith.constant 3 : index
      %c0_57 = arith.constant 0 : index
      %c0_58 = arith.constant 0 : index
      %68 = vector.load %arg7[%c3_56, %c0_57, %c0_58] : memref<9x128x128xf32, #tpu.memory_space<vmem>>, vector<1x128x128xf32>
      %69 = vector.shape_cast %68 : vector<1x128x128xf32> to vector<128x128xf32>
      %cst_59 = arith.constant dense<0.000000e+00> : vector<128x16xf32>
      %70 = tpu.matmul %69, %48, %cst_59 {dimension_numbers = #tpu.dot_dimension_numbers<[1], [0], [0], [1], [0, 0, 1, 1], [], []>} : vector<128x128xf32>, vector<128x16xf32>, vector<128x16xf32> -> vector<128x16xf32>
      %c48 = arith.constant 48 : index
      %c0_60 = arith.constant 0 : index
      %71 = vector.load %arg8[%c48, %c0_60] : memref<144x32xf32, #tpu.memory_space<vmem>>, vector<16x32xf32>
      %cst_61 = arith.constant dense<0.000000e+00> : vector<128x32xf32>
      %72 = tpu.matmul %70, %71, %cst_61 {dimension_numbers = #tpu.dot_dimension_numbers<[1], [0], [0], [1], [0, 0, 1, 1], [], []>} : vector<128x16xf32>, vector<16x32xf32>, vector<128x32xf32> -> vector<128x32xf32>
      %73 = arith.addf %67, %72 : vector<128x32xf32>
      %c4 = arith.constant 4 : index
      %c0_62 = arith.constant 0 : index
      %c0_63 = arith.constant 0 : index
      %74 = vector.load %arg7[%c4, %c0_62, %c0_63] : memref<9x128x128xf32, #tpu.memory_space<vmem>>, vector<1x128x128xf32>
      %75 = vector.shape_cast %74 : vector<1x128x128xf32> to vector<128x128xf32>
      %cst_64 = arith.constant dense<0.000000e+00> : vector<128x16xf32>
      %76 = tpu.matmul %75, %48, %cst_64 {dimension_numbers = #tpu.dot_dimension_numbers<[1], [0], [0], [1], [0, 0, 1, 1], [], []>} : vector<128x128xf32>, vector<128x16xf32>, vector<128x16xf32> -> vector<128x16xf32>
      %c64_65 = arith.constant 64 : index
      %c0_66 = arith.constant 0 : index
      %77 = vector.load %arg8[%c64_65, %c0_66] : memref<144x32xf32, #tpu.memory_space<vmem>>, vector<16x32xf32>
      %cst_67 = arith.constant dense<0.000000e+00> : vector<128x32xf32>
      %78 = tpu.matmul %76, %77, %cst_67 {dimension_numbers = #tpu.dot_dimension_numbers<[1], [0], [0], [1], [0, 0, 1, 1], [], []>} : vector<128x16xf32>, vector<16x32xf32>, vector<128x32xf32> -> vector<128x32xf32>
      %79 = arith.addf %73, %78 : vector<128x32xf32>
      %c5 = arith.constant 5 : index
      %c0_68 = arith.constant 0 : index
      %c0_69 = arith.constant 0 : index
      %80 = vector.load %arg7[%c5, %c0_68, %c0_69] : memref<9x128x128xf32, #tpu.memory_space<vmem>>, vector<1x128x128xf32>
      %81 = vector.shape_cast %80 : vector<1x128x128xf32> to vector<128x128xf32>
      %cst_70 = arith.constant dense<0.000000e+00> : vector<128x16xf32>
      %82 = tpu.matmul %81, %48, %cst_70 {dimension_numbers = #tpu.dot_dimension_numbers<[1], [0], [0], [1], [0, 0, 1, 1], [], []>} : vector<128x128xf32>, vector<128x16xf32>, vector<128x16xf32> -> vector<128x16xf32>
      %c80 = arith.constant 80 : index
      %c0_71 = arith.constant 0 : index
      %83 = vector.load %arg8[%c80, %c0_71] : memref<144x32xf32, #tpu.memory_space<vmem>>, vector<16x32xf32>
      %cst_72 = arith.constant dense<0.000000e+00> : vector<128x32xf32>
      %84 = tpu.matmul %82, %83, %cst_72 {dimension_numbers = #tpu.dot_dimension_numbers<[1], [0], [0], [1], [0, 0, 1, 1], [], []>} : vector<128x16xf32>, vector<16x32xf32>, vector<128x32xf32> -> vector<128x32xf32>
      %85 = arith.addf %79, %84 : vector<128x32xf32>
      %c6 = arith.constant 6 : index
      %c0_73 = arith.constant 0 : index
      %c0_74 = arith.constant 0 : index
      %86 = vector.load %arg7[%c6, %c0_73, %c0_74] : memref<9x128x128xf32, #tpu.memory_space<vmem>>, vector<1x128x128xf32>
      %87 = vector.shape_cast %86 : vector<1x128x128xf32> to vector<128x128xf32>
      %cst_75 = arith.constant dense<0.000000e+00> : vector<128x16xf32>
      %88 = tpu.matmul %87, %48, %cst_75 {dimension_numbers = #tpu.dot_dimension_numbers<[1], [0], [0], [1], [0, 0, 1, 1], [], []>} : vector<128x128xf32>, vector<128x16xf32>, vector<128x16xf32> -> vector<128x16xf32>
      %c96 = arith.constant 96 : index
      %c0_76 = arith.constant 0 : index
      %89 = vector.load %arg8[%c96, %c0_76] : memref<144x32xf32, #tpu.memory_space<vmem>>, vector<16x32xf32>
      %cst_77 = arith.constant dense<0.000000e+00> : vector<128x32xf32>
      %90 = tpu.matmul %88, %89, %cst_77 {dimension_numbers = #tpu.dot_dimension_numbers<[1], [0], [0], [1], [0, 0, 1, 1], [], []>} : vector<128x16xf32>, vector<16x32xf32>, vector<128x32xf32> -> vector<128x32xf32>
      %91 = arith.addf %85, %90 : vector<128x32xf32>
      %c7 = arith.constant 7 : index
      %c0_78 = arith.constant 0 : index
      %c0_79 = arith.constant 0 : index
      %92 = vector.load %arg7[%c7, %c0_78, %c0_79] : memref<9x128x128xf32, #tpu.memory_space<vmem>>, vector<1x128x128xf32>
      %93 = vector.shape_cast %92 : vector<1x128x128xf32> to vector<128x128xf32>
      %cst_80 = arith.constant dense<0.000000e+00> : vector<128x16xf32>
      %94 = tpu.matmul %93, %48, %cst_80 {dimension_numbers = #tpu.dot_dimension_numbers<[1], [0], [0], [1], [0, 0, 1, 1], [], []>} : vector<128x128xf32>, vector<128x16xf32>, vector<128x16xf32> -> vector<128x16xf32>
      %c112 = arith.constant 112 : index
      %c0_81 = arith.constant 0 : index
      %95 = vector.load %arg8[%c112, %c0_81] : memref<144x32xf32, #tpu.memory_space<vmem>>, vector<16x32xf32>
      %cst_82 = arith.constant dense<0.000000e+00> : vector<128x32xf32>
      %96 = tpu.matmul %94, %95, %cst_82 {dimension_numbers = #tpu.dot_dimension_numbers<[1], [0], [0], [1], [0, 0, 1, 1], [], []>} : vector<128x16xf32>, vector<16x32xf32>, vector<128x32xf32> -> vector<128x32xf32>
      %97 = arith.addf %91, %96 : vector<128x32xf32>
      %c8 = arith.constant 8 : index
      %c0_83 = arith.constant 0 : index
      %c0_84 = arith.constant 0 : index
      %98 = vector.load %arg7[%c8, %c0_83, %c0_84] : memref<9x128x128xf32, #tpu.memory_space<vmem>>, vector<1x128x128xf32>
      %99 = vector.shape_cast %98 : vector<1x128x128xf32> to vector<128x128xf32>
      %cst_85 = arith.constant dense<0.000000e+00> : vector<128x16xf32>
      %100 = tpu.matmul %99, %48, %cst_85 {dimension_numbers = #tpu.dot_dimension_numbers<[1], [0], [0], [1], [0, 0, 1, 1], [], []>} : vector<128x128xf32>, vector<128x16xf32>, vector<128x16xf32> -> vector<128x16xf32>
      %c128_86 = arith.constant 128 : index
      %c0_87 = arith.constant 0 : index
      %101 = vector.load %arg8[%c128_86, %c0_87] : memref<144x32xf32, #tpu.memory_space<vmem>>, vector<16x32xf32>
      %cst_88 = arith.constant dense<0.000000e+00> : vector<128x32xf32>
      %102 = tpu.matmul %100, %101, %cst_88 {dimension_numbers = #tpu.dot_dimension_numbers<[1], [0], [0], [1], [0, 0, 1, 1], [], []>} : vector<128x16xf32>, vector<16x32xf32>, vector<128x32xf32> -> vector<128x32xf32>
      %103 = arith.addf %97, %102 : vector<128x32xf32>
      %c0_89 = arith.constant 0 : index
      %c0_90 = arith.constant 0 : index
      %104 = vector.load %arg9[%c0_89, %c0_90] : memref<1x32xf32, #tpu.memory_space<vmem>>, vector<1x32xf32>
      %105 = vector.broadcast %104 : vector<1x32xf32> to vector<128x32xf32>
      %106 = arith.addf %103, %105 : vector<128x32xf32>
      %cst_91 = arith.constant 0.000000e+00 : f32
      %107 = vector.broadcast %cst_91 : f32 to vector<128x32xf32>
      %108 = arith.maximumf %106, %107 : vector<128x32xf32>
      %c0_92 = arith.constant 0 : index
      %c0_93 = arith.constant 0 : index
      %c0_94 = arith.constant 0 : index
      %109 = vector.load %arg10[%c0_92, %c0_93, %c0_94] : memref<4x32x128xf32, #tpu.memory_space<vmem>>, vector<1x32x128xf32>
      %110 = vector.shape_cast %109 : vector<1x32x128xf32> to vector<32x128xf32>
      %cst_95 = arith.constant dense<0.000000e+00> : vector<32x32xf32>
      %111 = tpu.matmul %110, %108, %cst_95 {dimension_numbers = #tpu.dot_dimension_numbers<[1], [0], [0], [1], [0, 0, 1, 1], [], []>} : vector<32x128xf32>, vector<128x32xf32>, vector<32x32xf32> -> vector<32x32xf32>
      %c1_96 = arith.constant 1 : index
      %c0_97 = arith.constant 0 : index
      %c0_98 = arith.constant 0 : index
      %112 = vector.load %arg10[%c1_96, %c0_97, %c0_98] : memref<4x32x128xf32, #tpu.memory_space<vmem>>, vector<1x32x128xf32>
      %113 = vector.shape_cast %112 : vector<1x32x128xf32> to vector<32x128xf32>
      %cst_99 = arith.constant dense<0.000000e+00> : vector<32x32xf32>
      %114 = tpu.matmul %113, %108, %cst_99 {dimension_numbers = #tpu.dot_dimension_numbers<[1], [0], [0], [1], [0, 0, 1, 1], [], []>} : vector<32x128xf32>, vector<128x32xf32>, vector<32x32xf32> -> vector<32x32xf32>
      %115 = arith.maximumf %111, %114 : vector<32x32xf32>
      %c2_100 = arith.constant 2 : index
      %c0_101 = arith.constant 0 : index
      %c0_102 = arith.constant 0 : index
      %116 = vector.load %arg10[%c2_100, %c0_101, %c0_102] : memref<4x32x128xf32, #tpu.memory_space<vmem>>, vector<1x32x128xf32>
      %117 = vector.shape_cast %116 : vector<1x32x128xf32> to vector<32x128xf32>
      %cst_103 = arith.constant dense<0.000000e+00> : vector<32x32xf32>
      %118 = tpu.matmul %117, %108, %cst_103 {dimension_numbers = #tpu.dot_dimension_numbers<[1], [0], [0], [1], [0, 0, 1, 1], [], []>} : vector<32x128xf32>, vector<128x32xf32>, vector<32x32xf32> -> vector<32x32xf32>
      %119 = arith.maximumf %115, %118 : vector<32x32xf32>
      %c3_104 = arith.constant 3 : index
      %c0_105 = arith.constant 0 : index
      %c0_106 = arith.constant 0 : index
      %120 = vector.load %arg10[%c3_104, %c0_105, %c0_106] : memref<4x32x128xf32, #tpu.memory_space<vmem>>, vector<1x32x128xf32>
      %121 = vector.shape_cast %120 : vector<1x32x128xf32> to vector<32x128xf32>
      %cst_107 = arith.constant dense<0.000000e+00> : vector<32x32xf32>
      %122 = tpu.matmul %121, %108, %cst_107 {dimension_numbers = #tpu.dot_dimension_numbers<[1], [0], [0], [1], [0, 0, 1, 1], [], []>} : vector<32x128xf32>, vector<128x32xf32>, vector<32x32xf32> -> vector<32x32xf32>
      %123 = arith.maximumf %119, %122 : vector<32x32xf32>
      %cst_108 = arith.constant 0.000000e+00 : f32
      %124 = vector.broadcast %cst_108 : f32 to vector<32x64xf32>
      %c0_109 = arith.constant 0 : index
      %c0_110 = arith.constant 0 : index
      %c0_111 = arith.constant 0 : index
      %125 = vector.load %arg11[%c0_109, %c0_110, %c0_111] : memref<9x32x32xf32, #tpu.memory_space<vmem>>, vector<1x32x32xf32>
      %126 = vector.shape_cast %125 : vector<1x32x32xf32> to vector<32x32xf32>
      %cst_112 = arith.constant dense<0.000000e+00> : vector<32x32xf32>
      %127 = tpu.matmul %126, %123, %cst_112 {dimension_numbers = #tpu.dot_dimension_numbers<[1], [0], [0], [1], [0, 0, 1, 1], [], []>} : vector<32x32xf32>, vector<32x32xf32>, vector<32x32xf32> -> vector<32x32xf32>
      %c0_113 = arith.constant 0 : index
      %c0_114 = arith.constant 0 : index
      %128 = vector.load %arg12[%c0_113, %c0_114] : memref<288x64xf32, #tpu.memory_space<vmem>>, vector<32x64xf32>
      %cst_115 = arith.constant dense<0.000000e+00> : vector<32x64xf32>
      %129 = tpu.matmul %127, %128, %cst_115 {dimension_numbers = #tpu.dot_dimension_numbers<[1], [0], [0], [1], [0, 0, 1, 1], [], []>} : vector<32x32xf32>, vector<32x64xf32>, vector<32x64xf32> -> vector<32x64xf32>
      %130 = arith.addf %124, %129 : vector<32x64xf32>
      %c1_116 = arith.constant 1 : index
      %c0_117 = arith.constant 0 : index
      %c0_118 = arith.constant 0 : index
      %131 = vector.load %arg11[%c1_116, %c0_117, %c0_118] : memref<9x32x32xf32, #tpu.memory_space<vmem>>, vector<1x32x32xf32>
      %132 = vector.shape_cast %131 : vector<1x32x32xf32> to vector<32x32xf32>
      %cst_119 = arith.constant dense<0.000000e+00> : vector<32x32xf32>
      %133 = tpu.matmul %132, %123, %cst_119 {dimension_numbers = #tpu.dot_dimension_numbers<[1], [0], [0], [1], [0, 0, 1, 1], [], []>} : vector<32x32xf32>, vector<32x32xf32>, vector<32x32xf32> -> vector<32x32xf32>
      %c32_120 = arith.constant 32 : index
      %c0_121 = arith.constant 0 : index
      %134 = vector.load %arg12[%c32_120, %c0_121] : memref<288x64xf32, #tpu.memory_space<vmem>>, vector<32x64xf32>
      %cst_122 = arith.constant dense<0.000000e+00> : vector<32x64xf32>
      %135 = tpu.matmul %133, %134, %cst_122 {dimension_numbers = #tpu.dot_dimension_numbers<[1], [0], [0], [1], [0, 0, 1, 1], [], []>} : vector<32x32xf32>, vector<32x64xf32>, vector<32x64xf32> -> vector<32x64xf32>
      %136 = arith.addf %130, %135 : vector<32x64xf32>
      %c2_123 = arith.constant 2 : index
      %c0_124 = arith.constant 0 : index
      %c0_125 = arith.constant 0 : index
      %137 = vector.load %arg11[%c2_123, %c0_124, %c0_125] : memref<9x32x32xf32, #tpu.memory_space<vmem>>, vector<1x32x32xf32>
      %138 = vector.shape_cast %137 : vector<1x32x32xf32> to vector<32x32xf32>
      %cst_126 = arith.constant dense<0.000000e+00> : vector<32x32xf32>
      %139 = tpu.matmul %138, %123, %cst_126 {dimension_numbers = #tpu.dot_dimension_numbers<[1], [0], [0], [1], [0, 0, 1, 1], [], []>} : vector<32x32xf32>, vector<32x32xf32>, vector<32x32xf32> -> vector<32x32xf32>
      %c64_127 = arith.constant 64 : index
      %c0_128 = arith.constant 0 : index
      %140 = vector.load %arg12[%c64_127, %c0_128] : memref<288x64xf32, #tpu.memory_space<vmem>>, vector<32x64xf32>
      %cst_129 = arith.constant dense<0.000000e+00> : vector<32x64xf32>
      %141 = tpu.matmul %139, %140, %cst_129 {dimension_numbers = #tpu.dot_dimension_numbers<[1], [0], [0], [1], [0, 0, 1, 1], [], []>} : vector<32x32xf32>, vector<32x64xf32>, vector<32x64xf32> -> vector<32x64xf32>
      %142 = arith.addf %136, %141 : vector<32x64xf32>
      %c3_130 = arith.constant 3 : index
      %c0_131 = arith.constant 0 : index
      %c0_132 = arith.constant 0 : index
      %143 = vector.load %arg11[%c3_130, %c0_131, %c0_132] : memref<9x32x32xf32, #tpu.memory_space<vmem>>, vector<1x32x32xf32>
      %144 = vector.shape_cast %143 : vector<1x32x32xf32> to vector<32x32xf32>
      %cst_133 = arith.constant dense<0.000000e+00> : vector<32x32xf32>
      %145 = tpu.matmul %144, %123, %cst_133 {dimension_numbers = #tpu.dot_dimension_numbers<[1], [0], [0], [1], [0, 0, 1, 1], [], []>} : vector<32x32xf32>, vector<32x32xf32>, vector<32x32xf32> -> vector<32x32xf32>
      %c96_134 = arith.constant 96 : index
      %c0_135 = arith.constant 0 : index
      %146 = vector.load %arg12[%c96_134, %c0_135] : memref<288x64xf32, #tpu.memory_space<vmem>>, vector<32x64xf32>
      %cst_136 = arith.constant dense<0.000000e+00> : vector<32x64xf32>
      %147 = tpu.matmul %145, %146, %cst_136 {dimension_numbers = #tpu.dot_dimension_numbers<[1], [0], [0], [1], [0, 0, 1, 1], [], []>} : vector<32x32xf32>, vector<32x64xf32>, vector<32x64xf32> -> vector<32x64xf32>
      %148 = arith.addf %142, %147 : vector<32x64xf32>
      %c4_137 = arith.constant 4 : index
      %c0_138 = arith.constant 0 : index
      %c0_139 = arith.constant 0 : index
      %149 = vector.load %arg11[%c4_137, %c0_138, %c0_139] : memref<9x32x32xf32, #tpu.memory_space<vmem>>, vector<1x32x32xf32>
      %150 = vector.shape_cast %149 : vector<1x32x32xf32> to vector<32x32xf32>
      %cst_140 = arith.constant dense<0.000000e+00> : vector<32x32xf32>
      %151 = tpu.matmul %150, %123, %cst_140 {dimension_numbers = #tpu.dot_dimension_numbers<[1], [0], [0], [1], [0, 0, 1, 1], [], []>} : vector<32x32xf32>, vector<32x32xf32>, vector<32x32xf32> -> vector<32x32xf32>
      %c128_141 = arith.constant 128 : index
      %c0_142 = arith.constant 0 : index
      %152 = vector.load %arg12[%c128_141, %c0_142] : memref<288x64xf32, #tpu.memory_space<vmem>>, vector<32x64xf32>
      %cst_143 = arith.constant dense<0.000000e+00> : vector<32x64xf32>
      %153 = tpu.matmul %151, %152, %cst_143 {dimension_numbers = #tpu.dot_dimension_numbers<[1], [0], [0], [1], [0, 0, 1, 1], [], []>} : vector<32x32xf32>, vector<32x64xf32>, vector<32x64xf32> -> vector<32x64xf32>
      %154 = arith.addf %148, %153 : vector<32x64xf32>
      %c5_144 = arith.constant 5 : index
      %c0_145 = arith.constant 0 : index
      %c0_146 = arith.constant 0 : index
      %155 = vector.load %arg11[%c5_144, %c0_145, %c0_146] : memref<9x32x32xf32, #tpu.memory_space<vmem>>, vector<1x32x32xf32>
      %156 = vector.shape_cast %155 : vector<1x32x32xf32> to vector<32x32xf32>
      %cst_147 = arith.constant dense<0.000000e+00> : vector<32x32xf32>
      %157 = tpu.matmul %156, %123, %cst_147 {dimension_numbers = #tpu.dot_dimension_numbers<[1], [0], [0], [1], [0, 0, 1, 1], [], []>} : vector<32x32xf32>, vector<32x32xf32>, vector<32x32xf32> -> vector<32x32xf32>
      %c160 = arith.constant 160 : index
      %c0_148 = arith.constant 0 : index
      %158 = vector.load %arg12[%c160, %c0_148] : memref<288x64xf32, #tpu.memory_space<vmem>>, vector<32x64xf32>
      %cst_149 = arith.constant dense<0.000000e+00> : vector<32x64xf32>
      %159 = tpu.matmul %157, %158, %cst_149 {dimension_numbers = #tpu.dot_dimension_numbers<[1], [0], [0], [1], [0, 0, 1, 1], [], []>} : vector<32x32xf32>, vector<32x64xf32>, vector<32x64xf32> -> vector<32x64xf32>
      %160 = arith.addf %154, %159 : vector<32x64xf32>
      %c6_150 = arith.constant 6 : index
      %c0_151 = arith.constant 0 : index
      %c0_152 = arith.constant 0 : index
      %161 = vector.load %arg11[%c6_150, %c0_151, %c0_152] : memref<9x32x32xf32, #tpu.memory_space<vmem>>, vector<1x32x32xf32>
      %162 = vector.shape_cast %161 : vector<1x32x32xf32> to vector<32x32xf32>
      %cst_153 = arith.constant dense<0.000000e+00> : vector<32x32xf32>
      %163 = tpu.matmul %162, %123, %cst_153 {dimension_numbers = #tpu.dot_dimension_numbers<[1], [0], [0], [1], [0, 0, 1, 1], [], []>} : vector<32x32xf32>, vector<32x32xf32>, vector<32x32xf32> -> vector<32x32xf32>
      %c192_154 = arith.constant 192 : index
      %c0_155 = arith.constant 0 : index
      %164 = vector.load %arg12[%c192_154, %c0_155] : memref<288x64xf32, #tpu.memory_space<vmem>>, vector<32x64xf32>
      %cst_156 = arith.constant dense<0.000000e+00> : vector<32x64xf32>
      %165 = tpu.matmul %163, %164, %cst_156 {dimension_numbers = #tpu.dot_dimension_numbers<[1], [0], [0], [1], [0, 0, 1, 1], [], []>} : vector<32x32xf32>, vector<32x64xf32>, vector<32x64xf32> -> vector<32x64xf32>
      %166 = arith.addf %160, %165 : vector<32x64xf32>
      %c7_157 = arith.constant 7 : index
      %c0_158 = arith.constant 0 : index
      %c0_159 = arith.constant 0 : index
      %167 = vector.load %arg11[%c7_157, %c0_158, %c0_159] : memref<9x32x32xf32, #tpu.memory_space<vmem>>, vector<1x32x32xf32>
      %168 = vector.shape_cast %167 : vector<1x32x32xf32> to vector<32x32xf32>
      %cst_160 = arith.constant dense<0.000000e+00> : vector<32x32xf32>
      %169 = tpu.matmul %168, %123, %cst_160 {dimension_numbers = #tpu.dot_dimension_numbers<[1], [0], [0], [1], [0, 0, 1, 1], [], []>} : vector<32x32xf32>, vector<32x32xf32>, vector<32x32xf32> -> vector<32x32xf32>
      %c224 = arith.constant 224 : index
      %c0_161 = arith.constant 0 : index
      %170 = vector.load %arg12[%c224, %c0_161] : memref<288x64xf32, #tpu.memory_space<vmem>>, vector<32x64xf32>
      %cst_162 = arith.constant dense<0.000000e+00> : vector<32x64xf32>
      %171 = tpu.matmul %169, %170, %cst_162 {dimension_numbers = #tpu.dot_dimension_numbers<[1], [0], [0], [1], [0, 0, 1, 1], [], []>} : vector<32x32xf32>, vector<32x64xf32>, vector<32x64xf32> -> vector<32x64xf32>
      %172 = arith.addf %166, %171 : vector<32x64xf32>
      %c8_163 = arith.constant 8 : index
      %c0_164 = arith.constant 0 : index
      %c0_165 = arith.constant 0 : index
      %173 = vector.load %arg11[%c8_163, %c0_164, %c0_165] : memref<9x32x32xf32, #tpu.memory_space<vmem>>, vector<1x32x32xf32>
      %174 = vector.shape_cast %173 : vector<1x32x32xf32> to vector<32x32xf32>
      %cst_166 = arith.constant dense<0.000000e+00> : vector<32x32xf32>
      %175 = tpu.matmul %174, %123, %cst_166 {dimension_numbers = #tpu.dot_dimension_numbers<[1], [0], [0], [1], [0, 0, 1, 1], [], []>} : vector<32x32xf32>, vector<32x32xf32>, vector<32x32xf32> -> vector<32x32xf32>
      %c256 = arith.constant 256 : index
      %c0_167 = arith.constant 0 : index
      %176 = vector.load %arg12[%c256, %c0_167] : memref<288x64xf32, #tpu.memory_space<vmem>>, vector<32x64xf32>
      %cst_168 = arith.constant dense<0.000000e+00> : vector<32x64xf32>
      %177 = tpu.matmul %175, %176, %cst_168 {dimension_numbers = #tpu.dot_dimension_numbers<[1], [0], [0], [1], [0, 0, 1, 1], [], []>} : vector<32x32xf32>, vector<32x64xf32>, vector<32x64xf32> -> vector<32x64xf32>
      %178 = arith.addf %172, %177 : vector<32x64xf32>
      %c0_169 = arith.constant 0 : index
      %c0_170 = arith.constant 0 : index
      %179 = vector.load %arg13[%c0_169, %c0_170] : memref<1x64xf32, #tpu.memory_space<vmem>>, vector<1x64xf32>
      %180 = vector.broadcast %179 : vector<1x64xf32> to vector<32x64xf32>
      %181 = arith.addf %178, %180 : vector<32x64xf32>
      %cst_171 = arith.constant 0.000000e+00 : f32
      %182 = vector.broadcast %cst_171 : f32 to vector<32x64xf32>
      %183 = arith.maximumf %181, %182 : vector<32x64xf32>
      %c0_172 = arith.constant 0 : index
      %c0_173 = arith.constant 0 : index
      %c0_174 = arith.constant 0 : index
      %184 = vector.load %arg14[%c0_172, %c0_173, %c0_174] : memref<16x2x32xf32, #tpu.memory_space<vmem>>, vector<1x2x32xf32>
      %185 = vector.shape_cast %184 : vector<1x2x32xf32> to vector<2x32xf32>
      %cst_175 = arith.constant dense<0.000000e+00> : vector<2x64xf32>
      %186 = tpu.matmul %185, %183, %cst_175 {dimension_numbers = #tpu.dot_dimension_numbers<[1], [0], [0], [1], [0, 0, 1, 1], [], []>} : vector<2x32xf32>, vector<32x64xf32>, vector<2x64xf32> -> vector<2x64xf32>
      %c1_176 = arith.constant 1 : index
      %c0_177 = arith.constant 0 : index
      %c0_178 = arith.constant 0 : index
      %187 = vector.load %arg14[%c1_176, %c0_177, %c0_178] : memref<16x2x32xf32, #tpu.memory_space<vmem>>, vector<1x2x32xf32>
      %188 = vector.shape_cast %187 : vector<1x2x32xf32> to vector<2x32xf32>
      %cst_179 = arith.constant dense<0.000000e+00> : vector<2x64xf32>
      %189 = tpu.matmul %188, %183, %cst_179 {dimension_numbers = #tpu.dot_dimension_numbers<[1], [0], [0], [1], [0, 0, 1, 1], [], []>} : vector<2x32xf32>, vector<32x64xf32>, vector<2x64xf32> -> vector<2x64xf32>
      %190 = arith.maximumf %186, %189 : vector<2x64xf32>
      %c2_180 = arith.constant 2 : index
      %c0_181 = arith.constant 0 : index
      %c0_182 = arith.constant 0 : index
      %191 = vector.load %arg14[%c2_180, %c0_181, %c0_182] : memref<16x2x32xf32, #tpu.memory_space<vmem>>, vector<1x2x32xf32>
      %192 = vector.shape_cast %191 : vector<1x2x32xf32> to vector<2x32xf32>
      %cst_183 = arith.constant dense<0.000000e+00> : vector<2x64xf32>
      %193 = tpu.matmul %192, %183, %cst_183 {dimension_numbers = #tpu.dot_dimension_numbers<[1], [0], [0], [1], [0, 0, 1, 1], [], []>} : vector<2x32xf32>, vector<32x64xf32>, vector<2x64xf32> -> vector<2x64xf32>
      %194 = arith.maximumf %190, %193 : vector<2x64xf32>
      %c3_184 = arith.constant 3 : index
      %c0_185 = arith.constant 0 : index
      %c0_186 = arith.constant 0 : index
      %195 = vector.load %arg14[%c3_184, %c0_185, %c0_186] : memref<16x2x32xf32, #tpu.memory_space<vmem>>, vector<1x2x32xf32>
      %196 = vector.shape_cast %195 : vector<1x2x32xf32> to vector<2x32xf32>
      %cst_187 = arith.constant dense<0.000000e+00> : vector<2x64xf32>
      %197 = tpu.matmul %196, %183, %cst_187 {dimension_numbers = #tpu.dot_dimension_numbers<[1], [0], [0], [1], [0, 0, 1, 1], [], []>} : vector<2x32xf32>, vector<32x64xf32>, vector<2x64xf32> -> vector<2x64xf32>
      %198 = arith.maximumf %194, %197 : vector<2x64xf32>
      %c0_188 = arith.constant 0 : index
      %c0_189 = arith.constant 0 : index
      %c0_190 = arith.constant 0 : index
      %199 = vector.load %arg22[%c0_188, %c0_189, %c0_190] : memref<4x2x64xf32, #tpu.memory_space<vmem>>, vector<1x2x64xf32>
      %200 = vector.shape_cast %199 : vector<1x2x64xf32> to vector<2x64xf32>
      %201 = vector.shape_cast %198 : vector<2x64xf32> to vector<1x2x64xf32>
      tpu.vector_store %arg22[%c0_188, %c0_189, %c0_190], %201 {strides = array<i32>} : memref<4x2x64xf32, #tpu.memory_space<vmem>>, vector<1x2x64xf32>,
      %c4_191 = arith.constant 4 : index
      %c0_192 = arith.constant 0 : index
      %c0_193 = arith.constant 0 : index
      %202 = vector.load %arg14[%c4_191, %c0_192, %c0_193] : memref<16x2x32xf32, #tpu.memory_space<vmem>>, vector<1x2x32xf32>
      %203 = vector.shape_cast %202 : vector<1x2x32xf32> to vector<2x32xf32>
      %cst_194 = arith.constant dense<0.000000e+00> : vector<2x64xf32>
      %204 = tpu.matmul %203, %183, %cst_194 {dimension_numbers = #tpu.dot_dimension_numbers<[1], [0], [0], [1], [0, 0, 1, 1], [], []>} : vector<2x32xf32>, vector<32x64xf32>, vector<2x64xf32> -> vector<2x64xf32>
      %c5_195 = arith.constant 5 : index
      %c0_196 = arith.constant 0 : index
      %c0_197 = arith.constant 0 : index
      %205 = vector.load %arg14[%c5_195, %c0_196, %c0_197] : memref<16x2x32xf32, #tpu.memory_space<vmem>>, vector<1x2x32xf32>
      %206 = vector.shape_cast %205 : vector<1x2x32xf32> to vector<2x32xf32>
      %cst_198 = arith.constant dense<0.000000e+00> : vector<2x64xf32>
      %207 = tpu.matmul %206, %183, %cst_198 {dimension_numbers = #tpu.dot_dimension_numbers<[1], [0], [0], [1], [0, 0, 1, 1], [], []>} : vector<2x32xf32>, vector<32x64xf32>, vector<2x64xf32> -> vector<2x64xf32>
      %208 = arith.maximumf %204, %207 : vector<2x64xf32>
      %c6_199 = arith.constant 6 : index
      %c0_200 = arith.constant 0 : index
      %c0_201 = arith.constant 0 : index
      %209 = vector.load %arg14[%c6_199, %c0_200, %c0_201] : memref<16x2x32xf32, #tpu.memory_space<vmem>>, vector<1x2x32xf32>
      %210 = vector.shape_cast %209 : vector<1x2x32xf32> to vector<2x32xf32>
      %cst_202 = arith.constant dense<0.000000e+00> : vector<2x64xf32>
      %211 = tpu.matmul %210, %183, %cst_202 {dimension_numbers = #tpu.dot_dimension_numbers<[1], [0], [0], [1], [0, 0, 1, 1], [], []>} : vector<2x32xf32>, vector<32x64xf32>, vector<2x64xf32> -> vector<2x64xf32>
      %212 = arith.maximumf %208, %211 : vector<2x64xf32>
      %c7_203 = arith.constant 7 : index
      %c0_204 = arith.constant 0 : index
      %c0_205 = arith.constant 0 : index
      %213 = vector.load %arg14[%c7_203, %c0_204, %c0_205] : memref<16x2x32xf32, #tpu.memory_space<vmem>>, vector<1x2x32xf32>
      %214 = vector.shape_cast %213 : vector<1x2x32xf32> to vector<2x32xf32>
      %cst_206 = arith.constant dense<0.000000e+00> : vector<2x64xf32>
      %215 = tpu.matmul %214, %183, %cst_206 {dimension_numbers = #tpu.dot_dimension_numbers<[1], [0], [0], [1], [0, 0, 1, 1], [], []>} : vector<2x32xf32>, vector<32x64xf32>, vector<2x64xf32> -> vector<2x64xf32>
      %216 = arith.maximumf %212, %215 : vector<2x64xf32>
      %c1_207 = arith.constant 1 : index
      %c0_208 = arith.constant 0 : index
      %c0_209 = arith.constant 0 : index
      %217 = vector.load %arg22[%c1_207, %c0_208, %c0_209] : memref<4x2x64xf32, #tpu.memory_space<vmem>>, vector<1x2x64xf32>
      %218 = vector.shape_cast %217 : vector<1x2x64xf32> to vector<2x64xf32>
      %219 = vector.shape_cast %216 : vector<2x64xf32> to vector<1x2x64xf32>
      tpu.vector_store %arg22[%c1_207, %c0_208, %c0_209], %219 {strides = array<i32>} : memref<4x2x64xf32, #tpu.memory_space<vmem>>, vector<1x2x64xf32>,
      %c8_210 = arith.constant 8 : index
      %c0_211 = arith.constant 0 : index
      %c0_212 = arith.constant 0 : index
      %220 = vector.load %arg14[%c8_210, %c0_211, %c0_212] : memref<16x2x32xf32, #tpu.memory_space<vmem>>, vector<1x2x32xf32>
      %221 = vector.shape_cast %220 : vector<1x2x32xf32> to vector<2x32xf32>
      %cst_213 = arith.constant dense<0.000000e+00> : vector<2x64xf32>
      %222 = tpu.matmul %221, %183, %cst_213 {dimension_numbers = #tpu.dot_dimension_numbers<[1], [0], [0], [1], [0, 0, 1, 1], [], []>} : vector<2x32xf32>, vector<32x64xf32>, vector<2x64xf32> -> vector<2x64xf32>
      %c9 = arith.constant 9 : index
      %c0_214 = arith.constant 0 : index
      %c0_215 = arith.constant 0 : index
      %223 = vector.load %arg14[%c9, %c0_214, %c0_215] : memref<16x2x32xf32, #tpu.memory_space<vmem>>, vector<1x2x32xf32>
      %224 = vector.shape_cast %223 : vector<1x2x32xf32> to vector<2x32xf32>
      %cst_216 = arith.constant dense<0.000000e+00> : vector<2x64xf32>
      %225 = tpu.matmul %224, %183, %cst_216 {dimension_numbers = #tpu.dot_dimension_numbers<[1], [0], [0], [1], [0, 0, 1, 1], [], []>} : vector<2x32xf32>, vector<32x64xf32>, vector<2x64xf32> -> vector<2x64xf32>
      %226 = arith.maximumf %222, %225 : vector<2x64xf32>
      %c10 = arith.constant 10 : index
      %c0_217 = arith.constant 0 : index
      %c0_218 = arith.constant 0 : index
      %227 = vector.load %arg14[%c10, %c0_217, %c0_218] : memref<16x2x32xf32, #tpu.memory_space<vmem>>, vector<1x2x32xf32>
      %228 = vector.shape_cast %227 : vector<1x2x32xf32> to vector<2x32xf32>
      %cst_219 = arith.constant dense<0.000000e+00> : vector<2x64xf32>
      %229 = tpu.matmul %228, %183, %cst_219 {dimension_numbers = #tpu.dot_dimension_numbers<[1], [0], [0], [1], [0, 0, 1, 1], [], []>} : vector<2x32xf32>, vector<32x64xf32>, vector<2x64xf32> -> vector<2x64xf32>
      %230 = arith.maximumf %226, %229 : vector<2x64xf32>
      %c11 = arith.constant 11 : index
      %c0_220 = arith.constant 0 : index
      %c0_221 = arith.constant 0 : index
      %231 = vector.load %arg14[%c11, %c0_220, %c0_221] : memref<16x2x32xf32, #tpu.memory_space<vmem>>, vector<1x2x32xf32>
      %232 = vector.shape_cast %231 : vector<1x2x32xf32> to vector<2x32xf32>
      %cst_222 = arith.constant dense<0.000000e+00> : vector<2x64xf32>
      %233 = tpu.matmul %232, %183, %cst_222 {dimension_numbers = #tpu.dot_dimension_numbers<[1], [0], [0], [1], [0, 0, 1, 1], [], []>} : vector<2x32xf32>, vector<32x64xf32>, vector<2x64xf32> -> vector<2x64xf32>
      %234 = arith.maximumf %230, %233 : vector<2x64xf32>
      %c2_223 = arith.constant 2 : index
      %c0_224 = arith.constant 0 : index
      %c0_225 = arith.constant 0 : index
      %235 = vector.load %arg22[%c2_223, %c0_224, %c0_225] : memref<4x2x64xf32, #tpu.memory_space<vmem>>, vector<1x2x64xf32>
      %236 = vector.shape_cast %235 : vector<1x2x64xf32> to vector<2x64xf32>
      %237 = vector.shape_cast %234 : vector<2x64xf32> to vector<1x2x64xf32>
      tpu.vector_store %arg22[%c2_223, %c0_224, %c0_225], %237 {strides = array<i32>} : memref<4x2x64xf32, #tpu.memory_space<vmem>>, vector<1x2x64xf32>,
      %c12 = arith.constant 12 : index
      %c0_226 = arith.constant 0 : index
      %c0_227 = arith.constant 0 : index
      %238 = vector.load %arg14[%c12, %c0_226, %c0_227] : memref<16x2x32xf32, #tpu.memory_space<vmem>>, vector<1x2x32xf32>
      %239 = vector.shape_cast %238 : vector<1x2x32xf32> to vector<2x32xf32>
      %cst_228 = arith.constant dense<0.000000e+00> : vector<2x64xf32>
      %240 = tpu.matmul %239, %183, %cst_228 {dimension_numbers = #tpu.dot_dimension_numbers<[1], [0], [0], [1], [0, 0, 1, 1], [], []>} : vector<2x32xf32>, vector<32x64xf32>, vector<2x64xf32> -> vector<2x64xf32>
      %c13 = arith.constant 13 : index
      %c0_229 = arith.constant 0 : index
      %c0_230 = arith.constant 0 : index
      %241 = vector.load %arg14[%c13, %c0_229, %c0_230] : memref<16x2x32xf32, #tpu.memory_space<vmem>>, vector<1x2x32xf32>
      %242 = vector.shape_cast %241 : vector<1x2x32xf32> to vector<2x32xf32>
      %cst_231 = arith.constant dense<0.000000e+00> : vector<2x64xf32>
      %243 = tpu.matmul %242, %183, %cst_231 {dimension_numbers = #tpu.dot_dimension_numbers<[1], [0], [0], [1], [0, 0, 1, 1], [], []>} : vector<2x32xf32>, vector<32x64xf32>, vector<2x64xf32> -> vector<2x64xf32>
      %244 = arith.maximumf %240, %243 : vector<2x64xf32>
      %c14 = arith.constant 14 : index
      %c0_232 = arith.constant 0 : index
      %c0_233 = arith.constant 0 : index
      %245 = vector.load %arg14[%c14, %c0_232, %c0_233] : memref<16x2x32xf32, #tpu.memory_space<vmem>>, vector<1x2x32xf32>
      %246 = vector.shape_cast %245 : vector<1x2x32xf32> to vector<2x32xf32>
      %cst_234 = arith.constant dense<0.000000e+00> : vector<2x64xf32>
      %247 = tpu.matmul %246, %183, %cst_234 {dimension_numbers = #tpu.dot_dimension_numbers<[1], [0], [0], [1], [0, 0, 1, 1], [], []>} : vector<2x32xf32>, vector<32x64xf32>, vector<2x64xf32> -> vector<2x64xf32>
      %248 = arith.maximumf %244, %247 : vector<2x64xf32>
      %c15 = arith.constant 15 : index
      %c0_235 = arith.constant 0 : index
      %c0_236 = arith.constant 0 : index
      %249 = vector.load %arg14[%c15, %c0_235, %c0_236] : memref<16x2x32xf32, #tpu.memory_space<vmem>>, vector<1x2x32xf32>
      %250 = vector.shape_cast %249 : vector<1x2x32xf32> to vector<2x32xf32>
      %cst_237 = arith.constant dense<0.000000e+00> : vector<2x64xf32>
      %251 = tpu.matmul %250, %183, %cst_237 {dimension_numbers = #tpu.dot_dimension_numbers<[1], [0], [0], [1], [0, 0, 1, 1], [], []>} : vector<2x32xf32>, vector<32x64xf32>, vector<2x64xf32> -> vector<2x64xf32>
      %252 = arith.maximumf %248, %251 : vector<2x64xf32>
      %c3_238 = arith.constant 3 : index
      %c0_239 = arith.constant 0 : index
      %c0_240 = arith.constant 0 : index
      %253 = vector.load %arg22[%c3_238, %c0_239, %c0_240] : memref<4x2x64xf32, #tpu.memory_space<vmem>>, vector<1x2x64xf32>
      %254 = vector.shape_cast %253 : vector<1x2x64xf32> to vector<2x64xf32>
      %255 = vector.shape_cast %252 : vector<2x64xf32> to vector<1x2x64xf32>
      tpu.vector_store %arg22[%c3_238, %c0_239, %c0_240], %255 {strides = array<i32>} : memref<4x2x64xf32, #tpu.memory_space<vmem>>, vector<1x2x64xf32>,
      %cst_241 = arith.constant 0.000000e+00 : f32
      %256 = vector.broadcast %cst_241 : f32 to vector<2x512xf32>
      %c0_242 = arith.constant 0 : index
      %c0_243 = arith.constant 0 : index
      %257 = vector.load %arg23[%c0_242, %c0_243] : memref<2x512xf32, #tpu.memory_space<vmem>>, vector<2x512xf32>
      tpu.vector_store %arg23[%c0_242, %c0_243], %256 {strides = array<i32>} : memref<2x512xf32, #tpu.memory_space<vmem>>, vector<2x512xf32>,
    } else {
    }
    %cst = arith.constant 0.000000e+00 : f32
    %3 = vector.broadcast %cst : f32 to vector<2x1024xf32>
    %c0 = arith.constant 0 : index
    %c0_1 = arith.constant 0 : index
    %c0_2 = arith.constant 0 : index
    %4 = vector.load %arg22[%c0, %c0_1, %c0_2] : memref<4x2x64xf32, #tpu.memory_space<vmem>>, vector<1x2x64xf32>
    %5 = vector.shape_cast %4 : vector<1x2x64xf32> to vector<2x64xf32>
    %6 = arith.truncf %5 : vector<2x64xf32> to vector<2x64xbf16>
    %c0_3 = arith.constant 0 : index
    %c0_4 = arith.constant 0 : index
    %7 = vector.load %arg1[%c0_3, %c0_4] : memref<256x1024xbf16, #tpu.memory_space<vmem>>, vector<64x1024xbf16>
    %cst_5 = arith.constant dense<0.000000e+00> : vector<2x1024xf32>
    %8 = tpu.matmul %6, %7, %cst_5 {dimension_numbers = #tpu.dot_dimension_numbers<[1], [0], [0], [1], [0, 0, 1, 1], [], []>} : vector<2x64xbf16>, vector<64x1024xbf16>, vector<2x1024xf32> -> vector<2x1024xf32>
    %9 = arith.addf %3, %8 : vector<2x1024xf32>
    %c1 = arith.constant 1 : index
    %c0_6 = arith.constant 0 : index
    %c0_7 = arith.constant 0 : index
    %10 = vector.load %arg22[%c1, %c0_6, %c0_7] : memref<4x2x64xf32, #tpu.memory_space<vmem>>, vector<1x2x64xf32>
    %11 = vector.shape_cast %10 : vector<1x2x64xf32> to vector<2x64xf32>
    %12 = arith.truncf %11 : vector<2x64xf32> to vector<2x64xbf16>
    %c64 = arith.constant 64 : index
    %c0_8 = arith.constant 0 : index
    %13 = vector.load %arg1[%c64, %c0_8] : memref<256x1024xbf16, #tpu.memory_space<vmem>>, vector<64x1024xbf16>
    %cst_9 = arith.constant dense<0.000000e+00> : vector<2x1024xf32>
    %14 = tpu.matmul %12, %13, %cst_9 {dimension_numbers = #tpu.dot_dimension_numbers<[1], [0], [0], [1], [0, 0, 1, 1], [], []>} : vector<2x64xbf16>, vector<64x1024xbf16>, vector<2x1024xf32> -> vector<2x1024xf32>
    %15 = arith.addf %9, %14 : vector<2x1024xf32>
    %c2 = arith.constant 2 : index
    %c0_10 = arith.constant 0 : index
    %c0_11 = arith.constant 0 : index
    %16 = vector.load %arg22[%c2, %c0_10, %c0_11] : memref<4x2x64xf32, #tpu.memory_space<vmem>>, vector<1x2x64xf32>
    %17 = vector.shape_cast %16 : vector<1x2x64xf32> to vector<2x64xf32>
    %18 = arith.truncf %17 : vector<2x64xf32> to vector<2x64xbf16>
    %c128 = arith.constant 128 : index
    %c0_12 = arith.constant 0 : index
    %19 = vector.load %arg1[%c128, %c0_12] : memref<256x1024xbf16, #tpu.memory_space<vmem>>, vector<64x1024xbf16>
    %cst_13 = arith.constant dense<0.000000e+00> : vector<2x1024xf32>
    %20 = tpu.matmul %18, %19, %cst_13 {dimension_numbers = #tpu.dot_dimension_numbers<[1], [0], [0], [1], [0, 0, 1, 1], [], []>} : vector<2x64xbf16>, vector<64x1024xbf16>, vector<2x1024xf32> -> vector<2x1024xf32>
    %21 = arith.addf %15, %20 : vector<2x1024xf32>
    %c3 = arith.constant 3 : index
    %c0_14 = arith.constant 0 : index
    %c0_15 = arith.constant 0 : index
    %22 = vector.load %arg22[%c3, %c0_14, %c0_15] : memref<4x2x64xf32, #tpu.memory_space<vmem>>, vector<1x2x64xf32>
    %23 = vector.shape_cast %22 : vector<1x2x64xf32> to vector<2x64xf32>
    %24 = arith.truncf %23 : vector<2x64xf32> to vector<2x64xbf16>
    %c192 = arith.constant 192 : index
    %c0_16 = arith.constant 0 : index
    %25 = vector.load %arg1[%c192, %c0_16] : memref<256x1024xbf16, #tpu.memory_space<vmem>>, vector<64x1024xbf16>
    %cst_17 = arith.constant dense<0.000000e+00> : vector<2x1024xf32>
    %26 = tpu.matmul %24, %25, %cst_17 {dimension_numbers = #tpu.dot_dimension_numbers<[1], [0], [0], [1], [0, 0, 1, 1], [], []>} : vector<2x64xbf16>, vector<64x1024xbf16>, vector<2x1024xf32> -> vector<2x1024xf32>
    %27 = arith.addf %21, %26 : vector<2x1024xf32>
    %c0_18 = arith.constant 0 : index
    %c0_19 = arith.constant 0 : index
    %28 = vector.load %arg2[%c0_18, %c0_19] : memref<1x1024xf32, #tpu.memory_space<vmem>>, vector<1x1024xf32>
    %29 = vector.broadcast %28 : vector<1x1024xf32> to vector<2x1024xf32>
    %30 = arith.addf %27, %29 : vector<2x1024xf32>
    %cst_20 = arith.constant 0.000000e+00 : f32
    %31 = vector.broadcast %cst_20 : f32 to vector<2x1024xf32>
    %32 = arith.maximumf %30, %31 : vector<2x1024xf32>
    %c0_21 = arith.constant 0 : index
    %c0_22 = arith.constant 0 : index
    %33 = vector.load %arg23[%c0_21, %c0_22] : memref<2x512xf32, #tpu.memory_space<vmem>>, vector<2x512xf32>
    %34 = arith.truncf %32 : vector<2x1024xf32> to vector<2x1024xbf16>
    %c0_23 = arith.constant 0 : index
    %c0_24 = arith.constant 0 : index
    %35 = vector.load %arg3[%c0_23, %c0_24] : memref<1024x512xbf16, #tpu.memory_space<vmem>>, vector<1024x512xbf16>
    %cst_25 = arith.constant dense<0.000000e+00> : vector<2x512xf32>
    %36 = tpu.matmul %34, %35, %cst_25 {dimension_numbers = #tpu.dot_dimension_numbers<[1], [0], [0], [1], [0, 0, 1, 1], [], []>} : vector<2x1024xbf16>, vector<1024x512xbf16>, vector<2x512xf32> -> vector<2x512xf32>
    %37 = arith.addf %33, %36 : vector<2x512xf32>
    %c0_26 = arith.constant 0 : index
    %c0_27 = arith.constant 0 : index
    %38 = vector.load %arg23[%c0_26, %c0_27] : memref<2x512xf32, #tpu.memory_space<vmem>>, vector<2x512xf32>
    tpu.vector_store %arg23[%c0_26, %c0_27], %37 {strides = array<i32>} : memref<2x512xf32, #tpu.memory_space<vmem>>, vector<2x512xf32>,
    %c3_i32 = arith.constant 3 : i32
    %39 = arith.cmpi eq, %arg0, %c3_i32 : i32
    %40 = arith.extui %39 : i1 to i32
    %c0_i32_28 = arith.constant 0 : i32
    %41 = arith.cmpi ne, %40, %c0_i32_28 : i32
    scf.if %41 {
      %c0_29 = arith.constant 0 : index
      %c0_30 = arith.constant 0 : index
      %42 = vector.load %arg15[%c0_29, %c0_30] : memref<2x20xf32, #tpu.memory_space<vmem>>, vector<2x20xf32>
      %c0_31 = arith.constant 0 : index
      %c0_32 = arith.constant 0 : index
      %43 = vector.load %arg16[%c0_31, %c0_32] : memref<20x512xf32, #tpu.memory_space<vmem>>, vector<20x512xf32>
      %cst_33 = arith.constant dense<0.000000e+00> : vector<2x512xf32>
      %44 = tpu.matmul %42, %43, %cst_33 {dimension_numbers = #tpu.dot_dimension_numbers<[1], [0], [0], [1], [0, 0, 1, 1], [], []>} : vector<2x20xf32>, vector<20x512xf32>, vector<2x512xf32> -> vector<2x512xf32>
      %c0_34 = arith.constant 0 : index
      %c0_35 = arith.constant 0 : index
      %45 = vector.load %arg23[%c0_34, %c0_35] : memref<2x512xf32, #tpu.memory_space<vmem>>, vector<2x512xf32>
      %c0_36 = arith.constant 0 : index
      %c0_37 = arith.constant 0 : index
      %46 = vector.load %arg17[%c0_36, %c0_37] : memref<1x512xf32, #tpu.memory_space<vmem>>, vector<1x512xf32>
      %47 = vector.broadcast %46 : vector<1x512xf32> to vector<2x512xf32>
      %48 = arith.addf %45, %47 : vector<2x512xf32>
      %49 = arith.addf %48, %44 : vector<2x512xf32>
      %cst_38 = arith.constant 0.000000e+00 : f32
      %50 = vector.broadcast %cst_38 : f32 to vector<2x512xf32>
      %51 = arith.maximumf %49, %50 : vector<2x512xf32>
      %c0_39 = arith.constant 0 : index
      %c0_40 = arith.constant 0 : index
      %52 = vector.load %arg20[%c0_39, %c0_40] : memref<2x512xf32, #tpu.memory_space<vmem>>, vector<2x512xf32>
      tpu.vector_store %arg20[%c0_39, %c0_40], %51 {strides = array<i32>} : memref<2x512xf32, #tpu.memory_space<vmem>>, vector<2x512xf32>,
      %c0_41 = arith.constant 0 : index
      %c0_42 = arith.constant 0 : index
      %53 = vector.load %arg18[%c0_41, %c0_42] : memref<512x128xf32, #tpu.memory_space<vmem>>, vector<512x128xf32>
      %cst_43 = arith.constant dense<0.000000e+00> : vector<2x128xf32>
      %54 = tpu.matmul %51, %53, %cst_43 {dimension_numbers = #tpu.dot_dimension_numbers<[1], [0], [0], [1], [0, 0, 1, 1], [], []>} : vector<2x512xf32>, vector<512x128xf32>, vector<2x128xf32> -> vector<2x128xf32>
      %c0_44 = arith.constant 0 : index
      %c0_45 = arith.constant 0 : index
      %55 = vector.load %arg19[%c0_44, %c0_45] : memref<1x128xf32, #tpu.memory_space<vmem>>, vector<1x128xf32>
      %56 = vector.broadcast %55 : vector<1x128xf32> to vector<2x128xf32>
      %57 = arith.addf %54, %56 : vector<2x128xf32>
      %c0_46 = arith.constant 0 : index
      %c0_47 = arith.constant 0 : index
      %58 = vector.load %arg21[%c0_46, %c0_47] : memref<2x128xf32, #tpu.memory_space<vmem>>, vector<2x128xf32>
      tpu.vector_store %arg21[%c0_46, %c0_47], %57 {strides = array<i32>} : memref<2x128xf32, #tpu.memory_space<vmem>>, vector<2x128xf32>,
    } else {
    }
    return
  }
  func.func @transform_0(%arg0: i32) -> (i32, i32) {
    %c0_i32 = arith.constant 0 : i32
    %c0_i32_0 = arith.constant 0 : i32
    return %c0_i32, %arg0 : i32, i32
  }
  func.func @transform_1(%arg0: i32) -> (i32, i32) {
    %c0_i32 = arith.constant 0 : i32
    %c0_i32_0 = arith.constant 0 : i32
    return %c0_i32, %arg0 : i32, i32
  }
  func.func @transform_2(%arg0: i32) -> (i32, i32) {
    %c0_i32 = arith.constant 0 : i32
    %c0_i32_0 = arith.constant 0 : i32
    return %arg0, %c0_i32 : i32, i32
  }
  func.func @transform_3(%arg0: i32) -> (i32, i32) {
    %c0_i32 = arith.constant 0 : i32
    %c0_i32_0 = arith.constant 0 : i32
    %c0_i32_1 = arith.constant 0 : i32
    return %c0_i32, %c0_i32_0 : i32, i32
  }
  func.func @transform_4(%arg0: i32) -> (i32, i32) {
    %c0_i32 = arith.constant 0 : i32
    %c0_i32_0 = arith.constant 0 : i32
    %c0_i32_1 = arith.constant 0 : i32
    return %c0_i32, %c0_i32_0 : i32, i32
  }
  func.func @transform_5(%arg0: i32) -> (i32, i32) {
    %c0_i32 = arith.constant 0 : i32
    %c0_i32_0 = arith.constant 0 : i32
    %c0_i32_1 = arith.constant 0 : i32
    return %c0_i32, %c0_i32_0 : i32, i32
  }
  func.func @transform_6(%arg0: i32) -> (i32, i32, i32) {
    %c0_i32 = arith.constant 0 : i32
    %c0_i32_0 = arith.constant 0 : i32
    %c0_i32_1 = arith.constant 0 : i32
    %c0_i32_2 = arith.constant 0 : i32
    return %c0_i32, %c0_i32_0, %c0_i32_1 : i32, i32, i32
  }
  func.func @transform_7(%arg0: i32) -> (i32, i32) {
    %c0_i32 = arith.constant 0 : i32
    %c0_i32_0 = arith.constant 0 : i32
    %c0_i32_1 = arith.constant 0 : i32
    return %c0_i32, %c0_i32_0 : i32, i32
  }
  func.func @transform_8(%arg0: i32) -> (i32, i32) {
    %c0_i32 = arith.constant 0 : i32
    %c0_i32_0 = arith.constant 0 : i32
    %c0_i32_1 = arith.constant 0 : i32
    return %c0_i32, %c0_i32_0 : i32, i32
  }
  func.func @transform_9(%arg0: i32) -> (i32, i32, i32) {
    %c0_i32 = arith.constant 0 : i32
    %c0_i32_0 = arith.constant 0 : i32
    %c0_i32_1 = arith.constant 0 : i32
    %c0_i32_2 = arith.constant 0 : i32
    return %c0_i32, %c0_i32_0, %c0_i32_1 : i32, i32, i32
  }
  func.func @transform_10(%arg0: i32) -> (i32, i32, i32) {
    %c0_i32 = arith.constant 0 : i32
    %c0_i32_0 = arith.constant 0 : i32
    %c0_i32_1 = arith.constant 0 : i32
    %c0_i32_2 = arith.constant 0 : i32
    return %c0_i32, %c0_i32_0, %c0_i32_1 : i32, i32, i32
  }
  func.func @transform_11(%arg0: i32) -> (i32, i32) {
    %c0_i32 = arith.constant 0 : i32
    %c0_i32_0 = arith.constant 0 : i32
    %c0_i32_1 = arith.constant 0 : i32
    return %c0_i32, %c0_i32_0 : i32, i32
  }
  func.func @transform_12(%arg0: i32) -> (i32, i32) {
    %c0_i32 = arith.constant 0 : i32
    %c0_i32_0 = arith.constant 0 : i32
    %c0_i32_1 = arith.constant 0 : i32
    return %c0_i32, %c0_i32_0 : i32, i32
  }
  func.func @transform_13(%arg0: i32) -> (i32, i32, i32) {
    %c0_i32 = arith.constant 0 : i32
    %c0_i32_0 = arith.constant 0 : i32
    %c0_i32_1 = arith.constant 0 : i32
    %c0_i32_2 = arith.constant 0 : i32
    return %c0_i32, %c0_i32_0, %c0_i32_1 : i32, i32, i32
  }
  func.func @transform_14(%arg0: i32) -> (i32, i32) {
    %c0_i32 = arith.constant 0 : i32
    %c0_i32_0 = arith.constant 0 : i32
    %c0_i32_1 = arith.constant 0 : i32
    return %c0_i32, %c0_i32_0 : i32, i32
  }
  func.func @transform_15(%arg0: i32) -> (i32, i32) {
    %c0_i32 = arith.constant 0 : i32
    %c0_i32_0 = arith.constant 0 : i32
    %c0_i32_1 = arith.constant 0 : i32
    return %c0_i32, %c0_i32_0 : i32, i32
  }
  func.func @transform_16(%arg0: i32) -> (i32, i32) {
    %c0_i32 = arith.constant 0 : i32
    %c0_i32_0 = arith.constant 0 : i32
    %c0_i32_1 = arith.constant 0 : i32
    return %c0_i32, %c0_i32_0 : i32, i32
  }
  func.func @transform_17(%arg0: i32) -> (i32, i32) {
    %c0_i32 = arith.constant 0 : i32
    %c0_i32_0 = arith.constant 0 : i32
    %c0_i32_1 = arith.constant 0 : i32
    return %c0_i32, %c0_i32_0 : i32, i32
  }
  func.func @transform_18(%arg0: i32) -> (i32, i32) {
    %c0_i32 = arith.constant 0 : i32
    %c0_i32_0 = arith.constant 0 : i32
    %c0_i32_1 = arith.constant 0 : i32
    return %c0_i32, %c0_i32_0 : i32, i32
  }
  func.func @transform_19(%arg0: i32) -> (i32, i32) {
    %c0_i32 = arith.constant 0 : i32
    %c0_i32_0 = arith.constant 0 : i32
    %c0_i32_1 = arith.constant 0 : i32
    return %c0_i32, %c0_i32_0 : i32, i32
  }
  func.func @transform_20(%arg0: i32) -> (i32, i32) {
    %c0_i32 = arith.constant 0 : i32
    %c0_i32_0 = arith.constant 0 : i32
    %c0_i32_1 = arith.constant 0 : i32
    return %c0_i32, %c0_i32_0 : i32, i32
  }
}

</mosaic_0001>

<bundles_post_ra>
// kernel: _forward_core.1
= control target key start
LH: loop header
LB: loop body
LE: loop exit
PB: predicated region body
PF: predicated region fallthrough
CT: control target
= control target key end

     0   :  { %s19255_s0 = inlined_call_operand.hbm [shape: bf16[256,4096], index: 0, kind: input, shape index: {}]   ;;  %s19256_s1 = inlined_call_operand.hbm [shape: f32[1,4096], index: 1, kind: input, shape index: {}]   ;;  %s19257_s2 = inlined_call_operand.hbm [shape: bf16[4096,512], index: 2, kind: input, shape index: {}]   ;;  %s19258_s3 = inlined_call_operand.vmem [shape: f32[128,34], index: 3, kind: input, shape index: {}]   ;;  %s19259_s4 = inlined_call_operand.vmem [shape: f32[34,16], index: 4, kind: input, shape index: {}]   ;;  %s19260_s5 = inlined_call_operand.hbm [shape: f32[1,16], index: 5, kind: input, shape index: {}]   ;;  %s19261_s6 = inlined_call_operand.hbm [shape: f32[9,128,128], index: 6, kind: input, shape index: {}]   ;;  %s19262_s7 = inlined_call_operand.vmem [shape: f32[144,32], index: 7, kind: input, shape index: {}]   ;;  %s19263_s8 = inlined_call_operand.hbm [shape: f32[1,32], index: 8, kind: input, shape index: {}]   ;;  %s19264_s9 = inlined_call_operand.hbm [shape: f32[4,32,128], index: 9, kind: input, shape index: {}]   ;;  %s19265_s10 = inlined_call_operand.hbm [shape: f32[9,32,32], index: 10, kind: input, shape index: {}]   ;;  %s19266_s11 = inlined_call_operand.vmem [shape: f32[288,64], index: 11, kind: input, shape index: {}]   ;;  %s19267_s12 = inlined_call_operand.hbm [shape: f32[1,64], index: 12, kind: input, shape index: {}]   ;;  %s19268_s13 = inlined_call_operand.hbm [shape: f32[16,2,32], index: 13, kind: input, shape index: {}]   ;;  %s19269_s14 = inlined_call_operand.hbm [shape: f32[2,20], index: 14, kind: input, shape index: {}]   ;;  %s19270_s15 = inlined_call_operand.hbm [shape: f32[20,512], index: 15, kind: input, shape index: {}]   ;;  %s19271_s16 = inlined_call_operand.hbm [shape: f32[1,512], index: 16, kind: input, shape index: {}]   ;;  %s19272_s17 = inlined_call_operand.hbm [shape: f32[512,128], index: 17, kind: input, shape index: {}]   ;;  %s19273_s18 = inlined_call_operand.hbm [shape: f32[1,128], index: 18, kind: input, shape index: {}]   ;;  %s19274_s19 = inlined_call_operand.hbm [shape: f32[2,512], index: 19, kind: output, shape index: {0}]   ;;  %s19275_s20 = inlined_call_operand.hbm [shape: f32[2,128], index: 20, kind: output, shape index: {1}]  }
   0x1   :  { %19306 = sst [smem:[#allocation43_spill]] %s19255_s0 }
   0x2   :  { %19307 = sst [smem:[#allocation44_spill]] %s19256_s1 }
   0x3   :  { %19308 = sst [smem:[#allocation45_spill]] %s19257_s2 }
   0x4   :  { %19309 = sst [smem:[#allocation46_spill]] %s19258_s3 }
   0x5   :  { %19310 = sst [smem:[#allocation47_spill]] %s19259_s4 }
   0x6   :  { %19311 = sst [smem:[#allocation48_spill]] %s19260_s5 }
   0x7   :  { %19312 = sst [smem:[#allocation49_spill]] %s19262_s7 }
   0x8   :  { %19313 = sst [smem:[#allocation50_spill]] %s19263_s8 }
   0x9   :  { %19314 = sst [smem:[#allocation51_spill]] %s19265_s10 }
   0xa   :  { %19315 = sst [smem:[#allocation52_spill]] %s19266_s11 }
   0xb   :  { %19316 = sst [smem:[#allocation53_spill]] %s19268_s13 }
   0xc   :  { %19317 = sst [smem:[#allocation54_spill]] %s19270_s15 }
   0xd   :  { %19318 = sst [smem:[#allocation55_spill]] %s19272_s17 }
   0xe   :  { %19319 = sst [smem:[#allocation56_spill]] %s19273_s18 }
   0xf   :  { %19320 = sst [smem:[#allocation57_spill]] %s19274_s19 }
  0x10   :  { %19321 = sst [smem:[#allocation58_spill]] %s19275_s20 }
  0x11   :  { %26 = vsyncpa [#allocation5], 0 }
  0x12   :  { %28 = vsyncpa [#allocation5 + $0x1], 0 }
  0x13   :  { %29 = vsyncpa [#allocation8], 0 }
  0x14   :  { %31 = vsyncpa [#allocation8 + $0x1], 0 }
  0x15   :  { %32 = vsyncpa [#allocation11], 0 }
  0x16   :  { %33 = vsyncpa [#allocation14], 0 }
  0x17   :  { %34 = vsyncpa [#allocation17], 0 }
  0x18   :  { %35 = vsyncpa [#allocation20], 0 }
  0x19   :  { %36 = vsyncpa [#allocation23], 0 }
  0x1a   :  { %37 = vsyncpa [#allocation26], 0 }
  0x1b   :  { %38 = vsyncpa [#allocation6], 0 }
  0x1c   :  { %39 = vsyncpa [#allocation30], 0  ;;  %s17259_s1 = smov 0   ;;  %s17261_s22 = smov 0  }
  0x1d   :  { %s17263_s23 = smov 0   ;;  %s17265_s24 = smov 0  }
  0x1e LB: > { %s17123_s2 = smov [#allocation10]   ;;  %s17280_s3 = sadd.s32 4294967295, %s17121_s24   ;;  %s17121_s24 = sphi %s17265_s24, %s19377_s24   ;;  %s17117_s23 = sphi %s17263_s23, %s19376_s23   ;;  %s17113_s22 = sphi %s17261_s22, %s19375_s22   ;;  %s17109_s1 = sphi %s17259_s1, %s19374_s1  }
  0x1f   : > { %s525_s25 = sshll.u32 %s17123_s2, 4  ;;  %p12077_p0 = scmp.ge.s32.totalorder %s17121_s24, 1  ;;  %s526_s25 = int_to_ptr.vmem [resolvable:$true] %s525_s25 }
  0x20   : > { %p19284_p1 = scmp.eq.s32.totalorder %s17280_s3, 0  ;;  %p506_p2 = scmp.lt.s32.totalorder %s17121_s24, 5 }
  0x21   : > { %s17124_s27 = smov [#allocation13]   ;;  %s17125_s29 = smov [#allocation16]  }
  0x22   : > { %p17286_p4 = pnand %p12077_p0, %p506_p2  ;;  %s552_s28 = sshll.u32 %s17124_s27, 4  ;;  %s17292_s28 = int_to_ptr.vmem [resolvable:$true] %s552_s28 }
  0x23   : > { %s575_s30 = sshll.u32 %s17125_s29, 4  ;;  %s19325_s5 = sld [smem:[#allocation48_spill]]  ;;  %s17300_s30 = int_to_ptr.vmem [resolvable:$true] %s575_s30 }
  0x24   : > { %s19322_s26 = scalar_select %p17286_p4, 1, 0 }
  0x25   : > { %p16021_p5 = pneg %p17286_p4 }
  0x26   : > { %19323 = sst [smem:[#allocation41_spill]] %s19322_s26 }
  0x27   : > { %p17296_p6 = pnand %p16021_p5, %p19284_p1 }
  0x29   : > { %s19324_s4 = scalar_select %p17296_p6, 1, 0 }
  0x2a   : > { %s16573_s2 = scalar_lea.hbm %s19325_s5, 16  ;;  %p17310_p8 = pneg %p17296_p6 }
  0x2b   : > { %p16574_p7 = scmp.ne.s32.totalorder %s19325_s5, %s16573_s2  ;;  %p16580_p11 = scmp.lt.u32.totalorder %s16573_s2, %s19325_s5 }
  0x2c   : > { %s19326_s27 = scalar_select %p17310_p8, 1, 0 }
  0x2d   : > { %p16576_p9 = pnand %p17310_p8, %p16574_p7 }
  0x2f   : > { %p16577_p10 = pneg %p16576_p9 }
  0x31   : > { %p16582_p12 = pnand %p16580_p11, %p16577_p10 }
  0x33   : > { %16585 = shalt.err (!%p16582_p12)
}
  0x34   : > { %s16586_s0 = scalar_lea.vmem %s526_s25, 16  ;;  %s16593_s19 = scalar_lea.vmem %s526_s25, 32 }
  0x35   : > { %p16587_p13 = scmp.ne.s32.totalorder %s526_s25, %s16586_s0  ;;  %p16594_p5 = scmp.lt.s32.totalorder %s526_s25, %s526_s25 }
  0x36   : > { %p16595_p3 = scmp.lt.s32.totalorder %s16593_s19, %s16586_s0 }
  0x37   : > { %p16589_p0 = pnand %p16587_p13, %p17310_p8 }
  0x38   : > { %p16596_p1 = por %p16595_p3, %p16594_p5 }
  0x39   : > { %p16590_p2 = pneg %p16589_p0 }
  0x3b   : > { %p16597_p4 = pnand %p16596_p1, %p16590_p2 }
  0x3d   : > { %16600 = shalt.err (!%p16597_p4)
}
  0x3e   : > { %16024 = dma.hbm_to_vmem [thread:$0]  (!%p17296_p6), %s19325_s5, 16, %s526_s25, [#allocation11]  }
  0x3f   : > { %s19327_s8 = sld [smem:[#allocation50_spill]] }
  0x45   : > { %s16601_s29 = scalar_lea.hbm %s19327_s8, 16 }
  0x46   : > { %p16602_p7 = scmp.ne.s32.totalorder %s19327_s8, %s16601_s29  ;;  %p16608_p1 = scmp.lt.u32.totalorder %s16601_s29, %s19327_s8 }
  0x48   : > { %p16604_p9 = pnand %p16602_p7, %p17310_p8 }
  0x4a   : > { %p16605_p3 = pneg %p16604_p9 }
  0x4c   : > { %p16610_p4 = pnand %p16608_p1, %p16605_p3 }
  0x4e   : > { %16613 = shalt.err (!%p16610_p4)
}
  0x4f   : > { %s16614_s25 = scalar_lea.vmem %s17292_s28, 16  ;;  %s16621_s7 = scalar_lea.vmem %s17292_s28, 32 }
  0x50   : > { %p16615_p10 = scmp.ne.s32.totalorder %s17292_s28, %s16614_s25  ;;  %p16622_p13 = scmp.lt.s32.totalorder %s17292_s28, %s17292_s28 }
  0x51   : > { %p16623_p0 = scmp.lt.s32.totalorder %s16621_s7, %s16614_s25 }
  0x52   : > { %p16617_p11 = pnand %p16615_p10, %p17310_p8 }
  0x53   : > { %p16624_p2 = por %p16623_p0, %p16622_p13 }
  0x54   : > { %p16618_p12 = pneg %p16617_p11 }
  0x56   : > { %p16625_p5 = pnand %p16624_p2, %p16618_p12 }
  0x58   : > { %16628 = shalt.err (!%p16625_p5)
}
  0x59   : > { %16030 = dma.hbm_to_vmem [thread:$0]  (!%p17296_p6), %s19327_s8, 16, %s17292_s28, [#allocation14]  }
  0x5a   : > { %s19328_s10 = sld [smem:[#allocation51_spill]] }
  0x60   : > { %s16629_s2 = scalar_lea.hbm %s19328_s10, 4608 }
  0x61   : > { %p16630_p7 = scmp.ne.s32.totalorder %s19328_s10, %s16629_s2  ;;  %p16636_p1 = scmp.lt.u32.totalorder %s16629_s2, %s19328_s10 }
  0x63   : > { %p16632_p9 = pnand %p16630_p7, %p17310_p8 }
  0x65   : > { %p16633_p3 = pneg %p16632_p9 }
  0x67   : > { %p16638_p4 = pnand %p16636_p1, %p16633_p3 }
  0x69   : > { %16641 = shalt.err (!%p16638_p4)
}
  0x6a   : > { %s16642_s28 = scalar_lea.vmem %s17300_s30, 4608  ;;  %p16650_p13 = scmp.lt.s32.totalorder %s17300_s30, %s17300_s30 }
  0x6b   : > { %p16643_p10 = scmp.ne.s32.totalorder %s17300_s30, %s16642_s28  ;;  %p16651_p0 = scmp.lt.s32.totalorder %s16642_s28, %s16642_s28 }
  0x6d   : > { %p16645_p11 = pnand %p16643_p10, %p17310_p8  ;;  %p16652_p2 = por %p16651_p0, %p16650_p13 }
  0x6f   : > { %p16646_p12 = pneg %p16645_p11 }
  0x71   : > { %p16653_p5 = pnand %p16652_p2, %p16646_p12 }
  0x73   : > { %16656 = shalt.err (!%p16653_p5)
}
  0x74   : > { %s19288_s7 = smov 128   ;;  %s19290_s26 = smov 8  }
  0x75   : > { %16036 = dma.hbm_to_vmem [thread:$0]  (!%p17296_p6), %s19328_s10, 4608, %s17300_s30, [#allocation17], %s19288_s7, %s19288_s7, %s19290_s26  }
  0x76   : > { %s17128_s11 = smov [#allocation19]   ;;  %s19329_s13 = sld [smem:[#allocation53_spill]] }
  0x77   : > { %s602_s2 = sshll.u32 %s17128_s11, 4  ;;  %s603_s2 = int_to_ptr.vmem [resolvable:$true] %s602_s2 }
  0x7c   : > { %s16657_s19 = scalar_lea.hbm %s19329_s13, 512 }
  0x7d   : > { %p16658_p7 = scmp.ne.s32.totalorder %s19329_s13, %s16657_s19  ;;  %p16664_p1 = scmp.lt.u32.totalorder %s16657_s19, %s19329_s13 }
  0x7f   : > { %p16660_p9 = pnand %p16658_p7, %p17310_p8 }
  0x81   : > { %p16661_p3 = pneg %p16660_p9 }
  0x83   : > { %p16666_p4 = pnand %p16664_p1, %p16661_p3 }
  0x85   : > { %16669 = shalt.err (!%p16666_p4)
}
  0x86   : > { %s16670_s30 = scalar_lea.vmem %s603_s2, 512  ;;  %p16678_p13 = scmp.lt.s32.totalorder %s603_s2, %s603_s2 }
  0x87   : > { %p16671_p10 = scmp.ne.s32.totalorder %s603_s2, %s16670_s30  ;;  %p16679_p0 = scmp.lt.s32.totalorder %s16670_s30, %s16670_s30 }
  0x89   : > { %p16673_p11 = pnand %p16671_p10, %p17310_p8  ;;  %p16680_p2 = por %p16679_p0, %p16678_p13 }
  0x8b   : > { %p16674_p12 = pneg %p16673_p11 }
  0x8d   : > { %p16681_p5 = pnand %p16680_p2, %p16674_p12 }
  0x8f   : > { %16684 = shalt.err (!%p16681_p5)
}
  0x90   : > { %s19294_s20 = smov 32   ;;  %s17130_s21 = smov 2  }
  0x91   : > { %16042 = dma.hbm_to_vmem [thread:$0]  (!%p17296_p6), %s19329_s13, 512, %s603_s2, [#allocation20], %s19294_s20, %s19294_s20, %s17130_s21  }
  0x92   : > { %s17131_s11 = smov [#allocation22]   ;;  %s17132_s0 = smov [#allocation25]  }
  0x93   : > { %s626_s29 = sshll.u32 %s17131_s11, 4  ;;  %s650_s19 = sshll.u32 %s17132_s0, 4  ;;  %s627_s29 = int_to_ptr.vmem [resolvable:$true] %s626_s29  ;;  %s651_s19 = int_to_ptr.vmem [resolvable:$true] %s650_s19 }
  0x94   : > { %s19330_s15 = sld [smem:[#allocation54_spill]] }
  0x9a   : > { %s16685_s30 = scalar_lea.hbm %s19330_s15, 1536 }
  0x9b   : > { %p16686_p7 = scmp.ne.s32.totalorder %s19330_s15, %s16685_s30  ;;  %p16692_p1 = scmp.lt.u32.totalorder %s16685_s30, %s19330_s15 }
  0x9d   : > { %p16688_p9 = pnand %p16686_p7, %p17310_p8 }
  0x9f   : > { %p16689_p3 = pneg %p16688_p9 }
  0xa1   : > { %p16694_p4 = pnand %p16692_p1, %p16689_p3 }
  0xa3   : > { %16697 = shalt.err (!%p16694_p4)
}
  0xa4   : > { %s16698_s2 = scalar_lea.vmem %s627_s29, 1536  ;;  %p16706_p13 = scmp.lt.s32.totalorder %s627_s29, %s627_s29 }
  0xa5   : > { %p16699_p10 = scmp.ne.s32.totalorder %s627_s29, %s16698_s2  ;;  %p16707_p0 = scmp.lt.s32.totalorder %s16698_s2, %s16698_s2 }
  0xa7   : > { %p16701_p11 = pnand %p16699_p10, %p17310_p8  ;;  %p16708_p2 = por %p16707_p0, %p16706_p13 }
  0xa9   : > { %p16702_p12 = pneg %p16701_p11 }
  0xab   : > { %p16709_p5 = pnand %p16708_p2, %p16702_p12 }
  0xad   : > { %16712 = shalt.err (!%p16709_p5)
}
  0xae   : > { %s19293_s7 = smov 512   ;;  %s19331_s17 = sld [smem:[#allocation55_spill]] }
  0xaf   : > { %16048 = dma.hbm_to_vmem [thread:$0]  (!%p17296_p6), %s19330_s15, 1536, %s627_s29, [#allocation23], %s19293_s7, %s19293_s7, %s19294_s20  }
  0xb4   : > { %s16713_s5 = scalar_lea.hbm %s19331_s17, 8192 }
  0xb5   : > { %p16714_p7 = scmp.ne.s32.totalorder %s19331_s17, %s16713_s5  ;;  %p16720_p1 = scmp.lt.u32.totalorder %s16713_s5, %s19331_s17 }
  0xb7   : > { %p16716_p9 = pnand %p16714_p7, %p17310_p8 }
  0xb9   : > { %p16717_p3 = pneg %p16716_p9 }
  0xbb   : > { %p16722_p4 = pnand %p16720_p1, %p16717_p3 }
  0xbd   : > { %16725 = shalt.err (!%p16722_p4)
}
  0xbe   : > { %s16726_s28 = scalar_lea.vmem %s651_s19, 8192  ;;  %p16734_p13 = scmp.lt.s32.totalorder %s651_s19, %s651_s19 }
  0xbf   : > { %p16727_p10 = scmp.ne.s32.totalorder %s651_s19, %s16726_s28  ;;  %p16735_p0 = scmp.lt.s32.totalorder %s16726_s28, %s16726_s28 }
  0xc1   : > { %p16729_p11 = pnand %p16727_p10, %p17310_p8  ;;  %p16736_p2 = por %p16735_p0, %p16734_p13 }
  0xc3   : > { %p16730_p12 = pneg %p16729_p11 }
  0xc5   : > { %p16737_p5 = pnand %p16736_p2, %p16730_p12 }
  0xc7   : > { %16740 = shalt.err (!%p16737_p5)
}
  0xc8   : > { %s19332_s29 = smov 8   ;;  %s19333_s30 = smov 128  }
  0xc9   : > { %16054 = dma.hbm_to_vmem [thread:$0]  (!%p17296_p6), %s19331_s17, 8192, %s651_s19, [#allocation26], %s19333_s30, %s19333_s30, %s19332_s29  }
  0xca   : > { %s17439_s18 = sadd.s32 1, %s17121_s24   ;;  %s52_s21 = sadd.s32 1, %s17117_s23 }
  0xcb   : > { %s49_s26 = ssub.s32 %s17121_s24, %s17439_s18  ;;  %p59_p9 = scmp.ne.s32.totalorder %s17117_s23, %s17113_s22 }
  0xcc   : > { %p50_p7 = scmp.eq.s32.totalorder %s49_s26, 0  ;;  %p60_p3 = scmp.eq.s32.totalorder %s17121_s24, 0 }
  0xcd   : > { %p65_p1 = scmp.ne.s32.totalorder %s17113_s22, %s17109_s1  ;;  %p19335_p10 = scmp.eq.s32.totalorder %s17280_s3, 0 }
  0xce   : > { %s17450_s5 = scalar_select %p50_p7, %s17117_s23, %s52_s21  }
  0xcf   : > { %p61_p4 = por %p60_p3, %p59_p9  ;;  %p17454_p11 = por %p19335_p10, %p65_p1 }
  0xd0   : > { %19334 = sst [smem:[#allocation42_spill]] %s17450_s5  ;;  %p16080_p12 = scmp.lt.s32.totalorder %s17121_s24, 4 }
  0xd1   : > { %s19336_s8 = scalar_select %p17454_p11, 1, 0 }
  0xd2   : > { %s17460_s19 = sand.u32 1, %s17117_s23   ;;  %s696_s0 = sand.u32 1, %s17121_s24  }
  0xd3   : > { %p17464_p13 = pnand %p16080_p12, %p61_p4  ;;  %s12094_s1 = sshll.u32 %s17460_s19, 3 }
  0xd4   : > { %s12785_s28 = sshll.u32 %s17121_s24, 7  ;;  %s19338_s26 = sld [smem:[#allocation44_spill]] }
  0xd5   : > { %s19337_s25 = scalar_select %p17464_p13, 1, 0 }
  0xd6   : > { %s700_s7 = scalar_lea.vmem [#allocation7], %s12094_s1  ;;  %s17478_s13 = scalar_lea.sflag [#allocation8], %s696_s0 }
  0xd7   : > { %s708_s20 = sshll.u32 %s700_s7, 4  ;;  %p17484_p2 = pneg %p17464_p13  ;;  %s17475_s20 = int_to_ptr.vmem [resolvable:$true] %s708_s20 }
  0xd9   : > { %s19339_s17 = scalar_select %p17484_p2, 1, 0 }
  0xda   : > { %s17473_s21 = scalar_lea.hbm %s19338_s26, %s12785_s28  ;;  %s16746_s7 = scalar_lea.hbm %s19338_s26, 512 }
  0xdb   : > { %s16741_s15 = scalar_lea.hbm %s17473_s21, 128  ;;  %p16747_p9 = scmp.lt.u32.totalorder %s17473_s21, %s19338_s26 }
  0xdc   : > { %p16742_p0 = scmp.ne.s32.totalorder %s17473_s21, %s16741_s15  ;;  %p16748_p3 = scmp.lt.u32.totalorder %s16746_s7, %s16741_s15 }
  0xdd   : > { %p16750_p4 = scmp.lt.u32.totalorder %s16741_s15, %s17473_s21 }
  0xde   : > { %p16744_p5 = pnand %p17484_p2, %p16742_p0  ;;  %p16749_p1 = por %p16748_p3, %p16747_p9 }
  0xe0   : > { %p16745_p7 = pneg %p16744_p5  ;;  %p16751_p10 = por %p16750_p4, %p16749_p1 }
  0xe2   : > { %p16752_p12 = pnand %p16751_p10, %p16745_p7 }
  0xe4   : > { %16755 = shalt.err (!%p16752_p12)
}
  0xe5   : > { %s16756_s0 = scalar_lea.vmem %s17475_s20, 128  ;;  %s17134_s28 = smov [#allocation7]  }
  0xe6   : > { %p16757_p0 = scmp.ne.s32.totalorder %s17475_s20, %s16756_s0  ;;  %s16761_s2 = sshll.u32 %s17134_s28, 4  ;;  %s16762_s2 = int_to_ptr.vmem [resolvable:$false] %s16761_s2 }
  0xe7   : > { %s16763_s1 = scalar_lea.vmem %s16762_s2, 256  ;;  %p16764_p6 = scmp.lt.s32.totalorder %s17475_s20, %s16762_s2 }
  0xe8   : > { %p16759_p5 = pnand %p16757_p0, %p17484_p2  ;;  %p16765_p8 = scmp.lt.s32.totalorder %s16763_s1, %s16756_s0 }
  0xea   : > { %p16760_p11 = pneg %p16759_p5  ;;  %p16766_p9 = por %p16765_p8, %p16764_p6 }
  0xec   : > { %p16767_p3 = pnand %p16766_p9, %p16760_p11 }
  0xee   : > { %16770 = shalt.err (!%p16767_p3)
}
  0xef   : > { %16064 = dma.hbm_to_vmem [thread:$0]  (!%p17464_p13), %s17473_s21, 128, %s17475_s20, %s17478_s13  }
  0xf0   : > { %s17135_s15 = smov [#allocation12]   ;;  %s17136_s10 = smov [#allocation15]  }
  0xf1   : > { %s535_s7 = sshll.u32 %s17135_s15, 4  ;;  %s562_s11 = sshll.u32 %s17136_s10, 4  ;;  %s536_s7 = int_to_ptr.vmem [resolvable:$true] %s535_s7  ;;  %s17508_s11 = int_to_ptr.vmem [resolvable:$true] %s562_s11 }
  0xf2   : > { %s16771_s0 = scalar_lea.hbm %s19261_s6, 18432  ;;  %p19340_p8 = scmp.ne.s32.totalorder %s19326_s27, 0 }
  0xf3   : > { %p16772_p6 = scmp.ne.s32.totalorder %s19261_s6, %s16771_s0  ;;  %p16778_p1 = scmp.lt.u32.totalorder %s16771_s0, %s19261_s6 }
  0xf5   : > { %p16774_p11 = pnand %p16772_p6, %p19340_p8 }
  0xf7   : > { %p16775_p7 = pneg %p16774_p11 }
  0xf9   : > { %p16780_p4 = pnand %p16778_p1, %p16775_p7 }
  0xfb   : > { %16783 = shalt.err (!%p16780_p4)
}
  0xfc   : > { %s16784_s21 = scalar_lea.vmem %s536_s7, 18432  ;;  %p16792_p5 = scmp.lt.s32.totalorder %s536_s7, %s536_s7 }
  0xfd   : > { %p16785_p10 = scmp.ne.s32.totalorder %s536_s7, %s16784_s21  ;;  %p16793_p9 = scmp.lt.s32.totalorder %s16784_s21, %s16784_s21 }
  0xff   : > { %p16787_p12 = pnand %p16785_p10, %p19340_p8  ;;  %p16794_p3 = por %p16793_p9, %p16792_p5 }
 0x101   : > { %p16788_p0 = pneg %p16787_p12 }
 0x103   : > { %p16795_p13 = pnand %p16794_p3, %p16788_p0 }
 0x105   : > { %16798 = shalt.err (!%p16795_p13)
}
 0x106   : > { %p19341_p6 = scmp.ne.s32.totalorder %s19324_s4, 0  ;;  %s16799_s28 = scalar_lea.hbm %s19264_s9, 2048 }
 0x107   : > { %p16800_p11 = scmp.ne.s32.totalorder %s19264_s9, %s16799_s28  ;;  %p16806_p1 = scmp.lt.u32.totalorder %s16799_s28, %s19264_s9 }
 0x108   : > { %16027 = dma.hbm_to_vmem [thread:$0]  (!%p19341_p6), %s19261_s6, 18432, %s536_s7, [#allocation11], %s19333_s30, %s19333_s30, %s19332_s29  }
 0x109   : > { %p16802_p13 = pnand %p16800_p11, %p19340_p8 }
 0x10b   : > { %p16803_p7 = pneg %p16802_p13 }
 0x10d   : > { %p16808_p4 = pnand %p16806_p1, %p16803_p7 }
 0x10f   : > { %16811 = shalt.err (!%p16808_p4)
}
 0x110   : > { %s16812_s7 = scalar_lea.vmem %s17508_s11, 2048  ;;  %p16820_p5 = scmp.lt.s32.totalorder %s17508_s11, %s17508_s11 }
 0x111   : > { %p16813_p10 = scmp.ne.s32.totalorder %s17508_s11, %s16812_s7  ;;  %p16821_p9 = scmp.lt.s32.totalorder %s16812_s7, %s16812_s7 }
 0x113   : > { %p16815_p12 = pnand %p16813_p10, %p19340_p8  ;;  %p16822_p3 = por %p16821_p9, %p16820_p5 }
 0x115   : > { %p16816_p0 = pneg %p16815_p12 }
 0x117   : > { %p16823_p11 = pnand %p16822_p3, %p16816_p0 }
 0x119   : > { %16826 = shalt.err (!%p16823_p11)
}
 0x11a   : > { %16033 = dma.hbm_to_vmem [thread:$0]  (!%p19341_p6), %s19264_s9, 2048, %s17508_s11, [#allocation14], %s19333_s30, %s19333_s30, %s19332_s29  }
 0x11b   : > { %s17137_s26 = smov [#allocation18]   ;;  %s17138_s10 = smov [#allocation21]  }
 0x11c   : > { %s592_s15 = sshll.u32 %s17137_s26, 4  ;;  %s616_s28 = sshll.u32 %s17138_s10, 4  ;;  %s593_s15 = int_to_ptr.vmem [resolvable:$true] %s592_s15  ;;  %s17557_s28 = int_to_ptr.vmem [resolvable:$true] %s616_s28 }
 0x11d   : > { %s16827_s1 = scalar_lea.hbm %s19267_s12, 16 }
 0x11e   : > { %p16828_p13 = scmp.ne.s32.totalorder %s19267_s12, %s16827_s1  ;;  %p16834_p4 = scmp.lt.u32.totalorder %s16827_s1, %s19267_s12 }
 0x120   : > { %p16830_p7 = pnand %p16828_p13, %p19340_p8 }
 0x122   : > { %p16831_p1 = pneg %p16830_p7 }
 0x124   : > { %p16836_p10 = pnand %p16834_p4, %p16831_p1 }
 0x126   : > { %16839 = shalt.err (!%p16836_p10)
}
 0x127   : > { %s16840_s30 = scalar_lea.vmem %s593_s15, 16  ;;  %s16847_s11 = scalar_lea.vmem %s593_s15, 32 }
 0x128   : > { %p16841_p12 = scmp.ne.s32.totalorder %s593_s15, %s16840_s30  ;;  %p16848_p9 = scmp.lt.s32.totalorder %s593_s15, %s593_s15 }
 0x129   : > { %p16849_p3 = scmp.lt.s32.totalorder %s16847_s11, %s16840_s30 }
 0x12a   : > { %p16843_p0 = pnand %p16841_p12, %p19340_p8 }
 0x12b   : > { %p16850_p11 = por %p16849_p3, %p16848_p9 }
 0x12c   : > { %p16844_p5 = pneg %p16843_p0 }
 0x12e   : > { %p16851_p2 = pnand %p16850_p11, %p16844_p5 }
 0x130   : > { %16854 = shalt.err (!%p16851_p2)
}
 0x131   : > { %16039 = dma.hbm_to_vmem [thread:$0]  (!%p19341_p6), %s19267_s12, 16, %s593_s15, [#allocation17]  }
 0x132   : > { %s16855_s0 = scalar_lea.hbm %s19269_s14, 32 }
 0x133   : > { %p16856_p13 = scmp.ne.s32.totalorder %s19269_s14, %s16855_s0  ;;  %p16862_p2 = scmp.lt.u32.totalorder %s16855_s0, %s19269_s14 }
 0x135   : > { %p16858_p7 = pnand %p16856_p13, %p19340_p8 }
 0x137   : > { %p16859_p1 = pneg %p16858_p7 }
 0x139   : > { %p16864_p4 = pnand %p16862_p2, %p16859_p1 }
 0x13b   : > { %16867 = shalt.err (!%p16864_p4)
}
 0x13c   : > { %s16868_s15 = scalar_lea.vmem %s17557_s28, 32  ;;  %p16876_p5 = scmp.lt.s32.totalorder %s17557_s28, %s17557_s28 }
 0x13d   : > { %p16869_p10 = scmp.ne.s32.totalorder %s17557_s28, %s16868_s15  ;;  %p16877_p9 = scmp.lt.s32.totalorder %s16868_s15, %s16868_s15 }
 0x13f   : > { %p16871_p12 = pnand %p16869_p10, %p19340_p8  ;;  %p16878_p3 = por %p16877_p9, %p16876_p5 }
 0x141   : > { %p16872_p0 = pneg %p16871_p12 }
 0x143   : > { %p16879_p11 = pnand %p16878_p3, %p16872_p0 }
 0x145   : > { %16882 = shalt.err (!%p16879_p11)
}
 0x146   : > { %16045 = dma.hbm_to_vmem [thread:$0]  (!%p19341_p6), %s19269_s14, 32, %s17557_s28, [#allocation20]  }
 0x147   : > { %s17139_s11 = smov [#allocation24]   ;;  %s17140_s26 = smov [#allocation27]  }
 0x148   : > { %s640_s5 = sshll.u32 %s17139_s11, 4  ;;  %s664_s10 = sshll.u32 %s17140_s26, 4  ;;  %s641_s5 = int_to_ptr.vmem [resolvable:$true] %s640_s5  ;;  %s17600_s10 = int_to_ptr.vmem [resolvable:$true] %s664_s10 }
 0x149   : > { %s16883_s1 = scalar_lea.hbm %s19271_s16, 64 }
 0x14a   : > { %p16884_p13 = scmp.ne.s32.totalorder %s19271_s16, %s16883_s1  ;;  %p16890_p2 = scmp.lt.u32.totalorder %s16883_s1, %s19271_s16 }
 0x14c   : > { %p16886_p7 = pnand %p16884_p13, %p19340_p8 }
 0x14e   : > { %p16887_p1 = pneg %p16886_p7 }
 0x150   : > { %p16892_p4 = pnand %p16890_p2, %p16887_p1 }
 0x152   : > { %16895 = shalt.err (!%p16892_p4)
}
 0x153   : > { %s16896_s15 = scalar_lea.vmem %s641_s5, 64  ;;  %p16904_p5 = scmp.lt.s32.totalorder %s641_s5, %s641_s5 }
 0x154   : > { %p16897_p10 = scmp.ne.s32.totalorder %s641_s5, %s16896_s15  ;;  %p16905_p9 = scmp.lt.s32.totalorder %s16896_s15, %s16896_s15 }
 0x156   : > { %p16899_p12 = pnand %p16897_p10, %p19340_p8  ;;  %p16906_p3 = por %p16905_p9, %p16904_p5 }
 0x158   : > { %p16900_p0 = pneg %p16899_p12 }
 0x15a   : > { %p16907_p11 = pnand %p16906_p3, %p16900_p0 }
 0x15c   : > { %16910 = shalt.err (!%p16907_p11)
}
 0x15d   : > { %16051 = dma.hbm_to_vmem [thread:$0]  (!%p19341_p6), %s19271_s16, 64, %s641_s5, [#allocation23]  }
 0x15e   : > { %s19342_s2 = sld [smem:[#allocation56_spill]] }
 0x164   : > { %s16911_s0 = scalar_lea.hbm %s19342_s2, 16 }
 0x165   : > { %p16912_p13 = scmp.ne.s32.totalorder %s19342_s2, %s16911_s0  ;;  %p16918_p2 = scmp.lt.u32.totalorder %s16911_s0, %s19342_s2 }
 0x167   : > { %p16914_p7 = pnand %p16912_p13, %p19340_p8 }
 0x169   : > { %p16915_p1 = pneg %p16914_p7 }
 0x16b   : > { %p16920_p4 = pnand %p16918_p2, %p16915_p1 }
 0x16d   : > { %16923 = shalt.err (!%p16920_p4)
}
 0x16e   : > { %s16924_s5 = scalar_lea.vmem %s17600_s10, 16  ;;  %s16931_s28 = scalar_lea.vmem %s17600_s10, 32 }
 0x16f   : > { %p16925_p10 = scmp.ne.s32.totalorder %s17600_s10, %s16924_s5  ;;  %p16932_p5 = scmp.lt.s32.totalorder %s17600_s10, %s17600_s10 }
 0x170   : > { %p16933_p9 = scmp.lt.s32.totalorder %s16931_s28, %s16924_s5 }
 0x171   : > { %p16927_p12 = pnand %p16925_p10, %p19340_p8 }
 0x172   : > { %p16934_p3 = por %p16933_p9, %p16932_p5 }
 0x173   : > { %p16928_p0 = pneg %p16927_p12 }
 0x175   : > { %p16935_p11 = pnand %p16934_p3, %p16928_p0 }
 0x177   : > { %16938 = shalt.err (!%p16935_p11)
}
 0x178   : > { %16057 = dma.hbm_to_vmem [thread:$0]  (!%p19341_p6), %s19342_s2, 16, %s17600_s10, [#allocation26]  }
 0x179   : > { %s12784_s27 = sshll.u32 %s17121_s24, 9  ;;  %s19343_s30 = sshll.u32 %s17460_s19, 10 }
 0x17a   : > { %s679_s11 = scalar_lea.vmem [#allocation4], %s19343_s30  ;;  %s19344_s20 = sld [smem:[#allocation43_spill]] }
 0x17b   : > { %s686_s26 = sshll.u32 %s679_s11, 4  ;;  %s676_s4 = scalar_lea.sflag [#allocation5], %s17460_s19  ;;  %s17652_s26 = int_to_ptr.vmem [resolvable:$true] %s686_s26 }
 0x17c   : > { %p19345_p13 = scmp.ne.s32.totalorder %s19339_s17, 0 }
 0x180   : > { %s17650_s7 = scalar_lea.hbm %s19344_s20, %s12784_s27  ;;  %s16944_s28 = scalar_lea.hbm %s19344_s20, 65536 }
 0x181   : > { %s16939_s21 = scalar_lea.hbm %s17650_s7, 16384  ;;  %p16945_p1 = scmp.lt.u32.totalorder %s17650_s7, %s19344_s20 }
 0x182   : > { %p16940_p8 = scmp.ne.s32.totalorder %s17650_s7, %s16939_s21  ;;  %p16946_p2 = scmp.lt.u32.totalorder %s16944_s28, %s16939_s21 }
 0x183   : > { %p16948_p10 = scmp.lt.u32.totalorder %s16939_s21, %s17650_s7 }
 0x184   : > { %p16942_p6 = pnand %p16940_p8, %p19345_p13  ;;  %p16947_p4 = por %p16946_p2, %p16945_p1 }
 0x186   : > { %p16943_p7 = pneg %p16942_p6  ;;  %p16949_p12 = por %p16948_p10, %p16947_p4 }
 0x188   : > { %p16950_p0 = pnand %p16949_p12, %p16943_p7 }
 0x18a   : > { %16953 = shalt.err (!%p16950_p0)
}
 0x18b   : > { %s16954_s27 = scalar_lea.vmem %s17652_s26, 16384  ;;  %s17141_s30 = smov [#allocation4]  }
 0x18c   : > { %p16955_p5 = scmp.ne.s32.totalorder %s17652_s26, %s16954_s27  ;;  %s16959_s11 = sshll.u32 %s17141_s30, 4  ;;  %s16960_s11 = int_to_ptr.vmem [resolvable:$false] %s16959_s11 }
 0x18d   : > { %s16961_s0 = scalar_lea.vmem %s16960_s11, 32768  ;;  %p16962_p11 = scmp.lt.s32.totalorder %s17652_s26, %s16960_s11 }
 0x18e   : > { %p16957_p9 = pnand %p16955_p5, %p19345_p13  ;;  %p16963_p8 = scmp.lt.s32.totalorder %s16961_s0, %s16954_s27 }
 0x190   : > { %p16958_p3 = pneg %p16957_p9  ;;  %p16964_p6 = por %p16963_p8, %p16962_p11 }
 0x192   : > { %p16965_p1 = pnand %p16964_p6, %p16958_p3 }
 0x194   : > { %16968 = shalt.err (!%p16965_p1)
}
 0x195   : > { %s17142_s1 = smov 2048   ;;  %p19346_p7 = scmp.ne.s32.totalorder %s19337_s25, 0 }
 0x196   : > { %s19347_s21 = smov 32   ;;  %s19348_s10 = smov 512  }
 0x197   : > { %16061 = dma.hbm_to_vmem [thread:$0]  (!%p19346_p7), %s17650_s7, 16384, %s17652_s26, %s676_s4, %s17142_s1, %s19348_s10, %s19347_s21  }
 0x198   : > { %s12787_s5 = sshll.u32 %s17121_s24, 15  ;;  %s19349_s28 = sshll.u32 %s17460_s19, 11 }
 0x199   : > { %s719_s15 = scalar_lea.vmem [#allocation9], %s19349_s28  ;;  %s19350_s11 = sld [smem:[#allocation45_spill]] }
 0x19a   : > { %s727_s29 = sshll.u32 %s719_s15, 4  ;;  %s17688_s29 = int_to_ptr.vmem [resolvable:$true] %s727_s29 }
 0x19f   : > { %s17686_s0 = scalar_lea.hbm %s19350_s11, %s12787_s5  ;;  %s16974_s26 = scalar_lea.hbm %s19350_s11, 131072 }
 0x1a0   : > { %s16969_s2 = scalar_lea.hbm %s17686_s0, 32768  ;;  %p16975_p12 = scmp.lt.u32.totalorder %s17686_s0, %s19350_s11 }
 0x1a1   : > { %p16970_p2 = scmp.ne.s32.totalorder %s17686_s0, %s16969_s2  ;;  %p16976_p0 = scmp.lt.u32.totalorder %s16974_s26, %s16969_s2 }
 0x1a2   : > { %p16978_p9 = scmp.lt.u32.totalorder %s16969_s2, %s17686_s0 }
 0x1a3   : > { %p16972_p4 = pnand %p16970_p2, %p19345_p13  ;;  %p16977_p5 = por %p16976_p0, %p16975_p12 }
 0x1a5   : > { %p16973_p10 = pneg %p16972_p4  ;;  %p16979_p3 = por %p16978_p9, %p16977_p5 }
 0x1a7   : > { %p16980_p11 = pnand %p16979_p3, %p16973_p10 }
 0x1a9   : > { %16983 = shalt.err (!%p16980_p11)
}
 0x1aa   : > { %s16984_s1 = scalar_lea.vmem %s17688_s29, 32768  ;;  %s17143_s21 = smov [#allocation9]  }
 0x1ab   : > { %p16985_p8 = scmp.ne.s32.totalorder %s17688_s29, %s16984_s1  ;;  %s16989_s10 = sshll.u32 %s17143_s21, 4  ;;  %s16990_s10 = int_to_ptr.vmem [resolvable:$false] %s16989_s10 }
 0x1ac   : > { %s16991_s5 = scalar_lea.vmem %s16990_s10, 65536  ;;  %p16992_p2 = scmp.lt.s32.totalorder %s17688_s29, %s16990_s10 }
 0x1ad   : > { %p16987_p6 = pnand %p16985_p8, %p19345_p13  ;;  %p16993_p4 = scmp.lt.s32.totalorder %s16991_s5, %s16984_s1 }
 0x1af   : > { %p16988_p1 = pneg %p16987_p6  ;;  %p16994_p12 = por %p16993_p4, %p16992_p2 }
 0x1b1   : > { %p16995_p0 = pnand %p16994_p12, %p16988_p1 }
 0x1b3   : > { %16998 = shalt.err (!%p16995_p0)
}
 0x1b4   : > { %s17144_s2 = smov 256   ;;  %s17145_s28 = smov 16  }
 0x1b5   : > { %16067 = dma.hbm_to_vmem [thread:$0]  (!%p19346_p7), %s17686_s0, 32768, %s17688_s29, %s17478_s13, %s17144_s2, %s17144_s2, %s17145_s28  }
 0x1b6   : > { %s19351_s17 = sld [smem:[#allocation41_spill]] }
 0x1bc   : > { %p19352_p13 = scmp.ne.s32.totalorder %s19351_s17, 0 }
 0x1bd   : > { %s741_s15 = sand.u32 (!%p19352_p13), 1, %s17113_s22   ;;  %p19353_p10 = scmp.ne.s32.totalorder (!%p19352_p13), %s19336_s8, 0 }
 0x1be   : > { %739 = sbr.rel (%p19352_p13) target bundleno = 3612 (0xe1c), region = 96  ;;  %s12102_s27 = sshll.u32 (!%p19352_p13), %s741_s15, 10 }
 0x1bf   : > { %s742_s30 = scalar_lea.sflag (!%p19352_p13), [#allocation5], %s741_s15  ;;  %s17715_s24 = scalar_lea.vmem (!%p19352_p13), [#allocation4], %s12102_s27 }
 0x1c5   : > { %17068 = dma.done.wait (%p19353_p10), %s742_s30, 16384  }
 0x1c6   : > { %17070 = vsyncadd (%p19353_p10), %s742_s30, 4294950912  ;;  %s750_s19 = sand.u32 1, %s17280_s3   ;;  %s12103_s25 = sshll.u32 %s741_s15, 3 }
 0x1c7   : > { %s751_s13 = scalar_lea.sflag [#allocation8], %s750_s19  ;;  %s17722_s29 = scalar_lea.vmem [#allocation7], %s12103_s25 }
 0x1c8   : > { %17072 = dma.done.wait (%p19353_p10), %s751_s13, 32896  }
 0x1c9   : > { %17074 = vsyncadd (%p19353_p10), %s751_s13, 4294934400  ;;  %s12104_s0 = sshll.u32 %s741_s15, 11  ;;  %p19354_p7 = scmp.eq.s32.totalorder %s17280_s3, 0 }
 0x1ca   : > { %s17728_s26 = scalar_lea.vmem [#allocation9], %s12104_s0 }
 0x1cb   : > { %17076 = dma.done.wait (%p19354_p7), [#allocation11], 18448   ;;  %p19355_p5 = pmov %p19354_p7 }
 0x1cd   : > { %17078 = vsyncadd (%p19355_p5), [#allocation11], 4294948848  ;;  %p19356_p9 = pmov %p19355_p5 }
 0x1ce   : > { %p19357_p3 = pmov %p19355_p5 }
 0x1cf   : > { %17080 = dma.done.wait (%p19356_p9), [#allocation14], 2064  }
 0x1d0   : > { %17082 = vsyncadd (%p19357_p3), [#allocation14], 4294965232  ;;  %p19358_p11 = pmov %p19357_p3 }
 0x1d1   : > { %p19359_p8 = pmov %p19357_p3 }
 0x1d2   : > { %17084 = dma.done.wait (%p19358_p11), [#allocation17], 4624  }
 0x1d3   : > { %17086 = vsyncadd (%p19359_p8), [#allocation17], 4294962672  ;;  %p19360_p6 = pmov %p19357_p3 }
 0x1d4   : > { %p19361_p1 = pmov %p19357_p3 }
 0x1d5   : > { %17088 = dma.done.wait (%p19360_p6), [#allocation20], 544  }
 0x1d6   : > { %17090 = vsyncadd (%p19361_p1), [#allocation20], 4294966752  ;;  %p19362_p2 = pmov %p19361_p1 }
 0x1d7   : > { %p19363_p4 = pmov %p19361_p1 }
 0x1d8   : > { %17092 = dma.done.wait (%p19362_p2), [#allocation23], 1600  }
 0x1d9   : > { %17094 = vsyncadd (%p19363_p4), [#allocation23], 4294965696  ;;  %p19364_p12 = pmov %p19361_p1 }
 0x1da   : > { %p19365_p0 = pmov %p19361_p1 }
 0x1db   : > { %17096 = dma.done.wait (%p19364_p12), [#allocation26], 8208  }
 0x1dc   : > { %17098 = vsyncadd (%p19365_p0), [#allocation26], 4294959088  ;;  %p19366_p13 = scmp.ne.s32.totalorder %s17280_s3, 0 }
 0x1dd   : > { %s19367_s4 = sld [smem:[#allocation47_spill]] (!%p19366_p13)  ;;  %vm909_vm0 = vcmask (!%p19366_p13), 277504   ;;  %s19368_s27 = sld [smem:[#allocation46_spill]] (!%p19366_p13)  ;;  %vm958_vm1 = vcmask (!%p19366_p13), 1041408   ;;  %v1287_v23 = vld [vmem:[#allocation12 + $0x80] sm:$0xff] (!%p19366_p13)  ;;  %vm1450_vm2 = vcmask (!%p19366_p13), 130048  }
 0x1de   : > { %880 = sbr.rel (%p19366_p13) target bundleno = 2557 (0x9fd), region = 160  ;;  %v1123_v24 = vld [vmem:[#allocation12] sm:$0xff] (!%p19366_p13)  ;;  %v17835_v25 = vld [vmem:[#allocation10] ss:$0 sm:$0xff] (!%p19366_p13)  ;;  %s19369_s0 = sld [smem:[#allocation49_spill]] (!%p19366_p13)  ;;  %vm4862_vm3 = vcmask (!%p19366_p13), 261120  }
 0x1df   : > { %13699 = vmatprep.mubr.f32.mxu1 (!%p19366_p13), %v1123_v24  ;;  %v1291_v24 = vld [vmem:[#allocation12 + $0xa0] sm:$0xff] (!%p19366_p13)  ;;  %s19370_s17 = sld [smem:[#allocation52_spill]] (!%p19366_p13)  ;;  %vm17147_vm4 = vmmov (!%p19366_p13), 0   ;;  %vm7030_vm5 = vcmask (!%p19366_p13), 517120  }
 0x1e3   : > { %v897_v0 = vld [vmem:[%s19367_s4] sm:$0xff] (!%p19366_p13)  ;;  %v898_v1 = vld [vmem:[%s19367_s4 + $0x8] sm:$0xff] (!%p19366_p13)  ;;  %v899_v2 = vld [vmem:[%s19367_s4 + $0x10] sm:$0xff] (!%p19366_p13) }
 0x1e4   : > { %v15003_v3 = vpack.c.bf16 (!%p19366_p13), %v898_v1, %v897_v0  ;;  %v900_v4 = vld [vmem:[%s19367_s4 + $0x18] sm:$0xff] (!%p19366_p13)  ;;  %v881_v5 = vld [vmem:[%s19368_s27] sm:$0xff] (!%p19366_p13)  ;;  %v882_v8 = vld [vmem:[%s19368_s27 + $0x8] sm:$0xff] (!%p19366_p13) }
 0x1e5   : > { %v15007_v6 = vpack.c.bf16 %v900_v4, %v899_v2  ;;  %13643 = vmatprep.mubr.msk.f32.mxu0 %vm909_vm0, %v881_v5  ;;  %v901_v7 = vld [vmem:[%s19367_s4 + $0x20] sm:$0x3]  ;;  %v883_v9 = vld [vmem:[%s19368_s27 + $0x10] sm:$0xff]  ;;  %v884_v10 = vld [vmem:[%s19368_s27 + $0x18] sm:$0xff] }
 0x1e6   : > { %15004 = vmatprep.subr.bf16.mxu0 %v15003_v3  ;;  %v885_v11 = vld [vmem:[%s19368_s27 + $0x20] sm:$0xff]  ;;  %v886_v12 = vld [vmem:[%s19368_s27 + $0x28] sm:$0xff]  ;;  %v887_v13 = vld [vmem:[%s19368_s27 + $0x30] sm:$0xff] }
 0x1e7   : > { %15006 = vmatpush3.bf16.msra.mxu0 %v15003_v3  ;;  %v888_v14 = vld [vmem:[%s19368_s27 + $0x38] sm:$0xff]  ;;  %v889_v15 = vld [vmem:[%s19368_s27 + $0x40] sm:$0xff]  ;;  %v890_v16 = vld [vmem:[%s19368_s27 + $0x48] sm:$0xff] }
 0x1e8   : > { %15008 = vmatprep.subr.bf16.mxu0 %v15007_v6  ;;  %v891_v17 = vld [vmem:[%s19368_s27 + $0x50] sm:$0xff]  ;;  %v892_v18 = vld [vmem:[%s19368_s27 + $0x58] sm:$0xff]  ;;  %v893_v19 = vld [vmem:[%s19368_s27 + $0x60] sm:$0xff] }
 0x1e9   : > { %v894_v20 = vld [vmem:[%s19368_s27 + $0x68] sm:$0xff]  ;;  %v895_v21 = vld [vmem:[%s19368_s27 + $0x70] sm:$0xff]  ;;  %v896_v22 = vld [vmem:[%s19368_s27 + $0x78] sm:$0xff] }
 0x1eb   : > { %15010 = vmatpush3.bf16.msra.mxu0 %v15007_v6 }
 0x1ec   : > { %13641 = vmatprep.subr.msk.mxu0 %vm958_vm1, %v901_v7 }
 0x1ef   : > { %13642 = vmatpush3.msk.msra.mxu0 %vm958_vm1, %v901_v7 }
 0x1f0   : > { %13644 = vmatmul.mubr.msk.f32.vlgmr.msra.gmra.mrb[0].mxu0 %vm909_vm0, %v882_v8 }
 0x1f1   : > { %13646 = vmatprep.mubr.msk.f32.mxu0 %vm909_vm0, %v883_v9 }
 0x1f4   : > { %13647 = vmatmul.mubr.msk.f32.gmra.mrb[2].mxu0 %vm909_vm0, %v884_v10 }
 0x1f5   : > { %13649 = vmatprep.mubr.msk.f32.mxu0 %vm909_vm0, %v885_v11 }
 0x1f8   : > { %13650 = vmatmul.mubr.msk.f32.gmra.mrb[4].mxu0 %vm909_vm0, %v886_v12 }
 0x1f9   : > { %13652 = vmatprep.mubr.msk.f32.mxu0 %vm909_vm0, %v887_v13 }
 0x1fc   : > { %13653 = vmatmul.mubr.msk.f32.gmra.mrb[6].mxu0 %vm909_vm0, %v888_v14 }
 0x1fd   : > { %13655 = vmatprep.mubr.msk.f32.mxu0 %vm909_vm0, %v889_v15 }
 0x200   : > { %13656 = vmatmul.mubr.msk.f32.gmra.mrb[8].mxu0 %vm909_vm0, %v890_v16 }
 0x201   : > { %13658 = vmatprep.mubr.msk.f32.mxu0 %vm909_vm0, %v891_v17 }
 0x204   : > { %13659 = vmatmul.mubr.msk.f32.gmra.mrb[10].mxu0 %vm909_vm0, %v892_v18  ;;  %v1288_v18 = vld [vmem:[#allocation12 + $0x88] sm:$0xff] }
 0x205   : > { %13661 = vmatprep.mubr.msk.f32.mxu0 %vm909_vm0, %v893_v19  ;;  %v1124_v19 = vld [vmem:[#allocation12 + $0x8] sm:$0xff] }
 0x208   : > { %13662 = vmatmul.mubr.msk.f32.gmra.mrb[12].mxu0 %vm909_vm0, %v894_v20  ;;  %v1289_v20 = vld [vmem:[#allocation12 + $0x90] sm:$0xff] }
 0x209   : > { %13664 = vmatprep.mubr.msk.f32.mxu0 %vm909_vm0, %v895_v21  ;;  %v1125_v21 = vld [vmem:[#allocation12 + $0x10] sm:$0xff] }
 0x20c   : > { %13665 = vmatmul.mubr.msk.f32.gmra.mrb[14].mxu0 %vm909_vm0, %v896_v22  ;;  %v1290_v22 = vld [vmem:[#allocation12 + $0x98] sm:$0xff] }
 0x20d   : > { %13755 = vmatprep.mubr.f32.mxu0 %v1287_v23  ;;  %v1126_v23 = vld [vmem:[#allocation12 + $0x18] sm:$0xff] }
 0x2c3   : > { %v13645_v26 = vpop.f32.mrb[0].mxu0 }
 0x2c4   : > { %v1034_v27 = vadd.f32 %v13645_v26, %v17835_v25  ;;  %v1028_v28 = vpop.f32.mrb[1].mxu0  ;;  %v1292_v26 = vld [vmem:[#allocation12 + $0xa8] sm:$0xff] }
 0x2c5   : > { %v1029_v29 = vadd.f32 %v17835_v25, %v1028_v28  ;;  %v1293_v28 = vld [vmem:[#allocation12 + $0xb0] sm:$0xff] }
 0x2c6   : > { %16157 = vtanh.f32 %v1034_v27  ;;  %v1128_v27 = vld [vmem:[#allocation12 + $0x28] sm:$0xff] }
 0x2c7   : > { %16159 = vtanh.f32 %v1029_v29  ;;  %v13648_v30 = vpop.f32.mrb[2].mxu0  ;;  %v1129_v29 = vld [vmem:[#allocation12 + $0x30] sm:$0xff] }
 0x2c8   : > { %v1044_v31 = vadd.f32 %v13648_v30, %v17835_v25  ;;  %v1038_v32 = vpop.f32.mrb[3].mxu0  ;;  %v1294_v30 = vld [vmem:[#allocation12 + $0xb8] sm:$0xff] }
 0x2c9   : > { %v1039_v33 = vadd.f32 %v17835_v25, %v1038_v32  ;;  %v1295_v32 = vld [vmem:[#allocation12 + $0xc0] sm:$0xff] }
 0x2ca   : > { %16161 = vtanh.f32 %v1044_v31  ;;  %v1130_v31 = vld [vmem:[#allocation12 + $0x38] sm:$0xff] }
 0x2cb   : > { %16163 = vtanh.f32 %v1039_v33  ;;  %v13651_v34 = vpop.f32.mrb[4].mxu0  ;;  %v1131_v33 = vld [vmem:[#allocation12 + $0x40] sm:$0xff] }
 0x2cc   : > { %v1054_v35 = vadd.f32 %v13651_v34, %v17835_v25  ;;  %v1048_v36 = vpop.f32.mrb[5].mxu0  ;;  %v1296_v34 = vld [vmem:[#allocation12 + $0xc8] sm:$0xff] }
 0x2cd   : > { %v1049_v37 = vadd.f32 %v17835_v25, %v1048_v36  ;;  %v1297_v36 = vld [vmem:[#allocation12 + $0xd0] sm:$0xff] }
 0x2ce   : > { %16165 = vtanh.f32 %v1054_v35  ;;  %v1132_v35 = vld [vmem:[#allocation12 + $0x48] sm:$0xff] }
 0x2cf   : > { %16167 = vtanh.f32 %v1049_v37  ;;  %v13654_v38 = vpop.f32.mrb[6].mxu0  ;;  %v1133_v37 = vld [vmem:[#allocation12 + $0x50] sm:$0xff] }
 0x2d0   : > { %v16158_v39 = vpop.eup %16157  ;;  %v1064_v40 = vadd.f32 %v13654_v38, %v17835_v25  ;;  %v1058_v41 = vpop.f32.mrb[7].mxu0  ;;  %v1298_v38 = vld [vmem:[#allocation12 + $0xd8] sm:$0xff] }
 0x2d1   : > { %v16160_v42 = vpop.eup %16159  ;;  %v1059_v43 = vadd.f32 %v17835_v25, %v1058_v41  ;;  %v1135_v41 = vld [vmem:[#allocation12 + $0x60] sm:$0xff] }
 0x2d2   : > { %v17845_v44 = vpack.c.bf16 %v16158_v39, %v16160_v42  ;;  %16169 = vtanh.f32 %v1064_v40  ;;  %v1134_v39 = vld [vmem:[#allocation12 + $0x58] sm:$0xff]  ;;  %v1299_v40 = vld [vmem:[#allocation12 + $0xe0] sm:$0xff]  ;;  %v1300_v42 = vld [vmem:[#allocation12 + $0xe8] sm:$0xff] }
 0x2d3   : > { %16171 = vtanh.f32 %v1059_v43  ;;  %v13657_v45 = vpop.f32.mrb[8].mxu0  ;;  %v1136_v43 = vld [vmem:[#allocation12 + $0x68] sm:$0xff] }
 0x2d4   : > { %v16162_v46 = vpop.eup %16161  ;;  %v1074_v47 = vadd.f32 %v13657_v45, %v17835_v25  ;;  %v1068_v48 = vpop.f32.mrb[9].mxu0  ;;  %15012 = vmatprep.subr.bf16.mxu1 %v17845_v44  ;;  %15044 = vmatprep.subr.bf16.mxu0 %v17845_v44  ;;  %v1301_v45 = vld [vmem:[#allocation12 + $0xf0] sm:$0xff] }
 0x2d5   : > { %v16164_v49 = vpop.eup %16163  ;;  %v1069_v50 = vadd.f32 %v17835_v25, %v1068_v48  ;;  %15014 = vmatpush3.bf16.msra.mxu1 %v17845_v44  ;;  %15046 = vmatpush3.bf16.msra.mxu0 %v17845_v44  ;;  %v1138_v48 = vld [vmem:[#allocation12 + $0x78] sm:$0xff] }
 0x2d6   : > { %v17853_v51 = vpack.c.bf16 %v16162_v46, %v16164_v49  ;;  %16173 = vtanh.f32 %v1074_v47  ;;  %v1137_v46 = vld [vmem:[#allocation12 + $0x70] sm:$0xff]  ;;  %v1302_v47 = vld [vmem:[#allocation12 + $0xf8] sm:$0xff]  ;;  %v1838_v49 = vld [vmem:[#allocation12 + $0x100] sm:$0xff] }
 0x2d7   : > { %16175 = vtanh.f32 %v1069_v50  ;;  %v13660_v52 = vpop.f32.mrb[10].mxu0  ;;  %v1839_v50 = vld [vmem:[#allocation12 + $0x108] sm:$0xff] }
 0x2d8   : > { %v16166_v53 = vpop.eup %16165  ;;  %v1084_v54 = vadd.f32 %v13660_v52, %v17835_v25  ;;  %v1078_v55 = vpop.f32.mrb[11].mxu0  ;;  %15016 = vmatprep.subr.bf16.mxu1 %v17853_v51  ;;  %15048 = vmatprep.subr.bf16.mxu0 %v17853_v51  ;;  %v1840_v52 = vld [vmem:[#allocation12 + $0x110] sm:$0xff] }
 0x2d9   : > { %v16168_v56 = vpop.eup %16167  ;;  %v1079_v57 = vadd.f32 %v17835_v25, %v1078_v55  ;;  %15018 = vmatpush3.bf16.msra.mxu1 %v17853_v51  ;;  %15050 = vmatpush3.bf16.msra.mxu0 %v17853_v51  ;;  %v1843_v55 = vld [vmem:[#allocation12 + $0x128] sm:$0xff] }
 0x2da   : > { %v17861_v58 = vpack.c.bf16 %v16166_v53, %v16168_v56  ;;  %16177 = vtanh.f32 %v1084_v54  ;;  %v1841_v53 = vld [vmem:[#allocation12 + $0x118] sm:$0xff]  ;;  %v1842_v54 = vld [vmem:[#allocation12 + $0x120] sm:$0xff]  ;;  %v1844_v56 = vld [vmem:[#allocation12 + $0x130] sm:$0xff] }
 0x2db   : > { %16179 = vtanh.f32 %v1079_v57  ;;  %v13663_v59 = vpop.f32.mrb[12].mxu0  ;;  %v1845_v57 = vld [vmem:[#allocation12 + $0x138] sm:$0xff] }
 0x2dc   : > { %v16170_v60 = vpop.eup %16169  ;;  %v1094_v61 = vadd.f32 %v13663_v59, %v17835_v25  ;;  %v1088_v62 = vpop.f32.mrb[13].mxu0  ;;  %15020 = vmatprep.subr.bf16.mxu1 %v17861_v58  ;;  %15052 = vmatprep.subr.bf16.mxu0 %v17861_v58  ;;  %v1846_v59 = vld [vmem:[#allocation12 + $0x140] sm:$0xff] }
 0x2dd   : > { %v16172_v63 = vpop.eup %16171  ;;  %v1089_v0 = vadd.f32 %v17835_v25, %v1088_v62  ;;  %15022 = vmatpush3.bf16.msra.mxu1 %v17861_v58  ;;  %15054 = vmatpush3.bf16.msra.mxu0 %v17861_v58  ;;  %v1849_v62 = vld [vmem:[#allocation12 + $0x158] sm:$0xff] }
 0x2de   : > { %v17869_v1 = vpack.c.bf16 %v16170_v60, %v16172_v63  ;;  %16181 = vtanh.f32 %v1094_v61  ;;  %v1847_v60 = vld [vmem:[#allocation12 + $0x148] sm:$0xff]  ;;  %v1848_v61 = vld [vmem:[#allocation12 + $0x150] sm:$0xff]  ;;  %v1850_v63 = vld [vmem:[#allocation12 + $0x160] sm:$0xff] }
 0x2df   : > { %16183 = vtanh.f32 %v1089_v0  ;;  %v13666_v2 = vpop.f32.mrb[14].mxu0  ;;  %v1851_v0 = vld [vmem:[#allocation12 + $0x168] sm:$0xff] }
 0x2e0   : > { %v16174_v3 = vpop.eup %16173  ;;  %v1104_v4 = vadd.f32 %v13666_v2, %v17835_v25  ;;  %v1098_v5 = vpop.f32.mrb[15].mxu0  ;;  %15024 = vmatprep.subr.bf16.mxu1 %v17869_v1  ;;  %15056 = vmatprep.subr.bf16.mxu0 %v17869_v1  ;;  %v1448_v2 = vld [vmem:[%s19369_s0 + $0x10] sm:$0xff] }
 0x2e1   : > { %v16176_v6 = vpop.eup %16175  ;;  %v1099_v7 = vadd.f32 %v17835_v25, %v1098_v5  ;;  %15026 = vmatpush3.bf16.msra.mxu1 %v17869_v1  ;;  %15058 = vmatpush3.bf16.msra.mxu0 %v17869_v1  ;;  %v1127_v25 = vld [vmem:[#allocation12 + $0x20] sm:$0xff] }
 0x2e2   : > { %v17877_v8 = vpack.c.bf16 %v16174_v3, %v16176_v6  ;;  %16185 = vtanh.f32 %v1104_v4  ;;  %v1449_v3 = vld [vmem:[%s19369_s0 + $0x18] sm:$0xff] }
 0x2e3   : > { %16187 = vtanh.f32 %v1099_v7  ;;  %v1852_v4 = vld [vmem:[#allocation12 + $0x170] sm:$0xff]  ;;  %v15075_v5 = vpack.c.bf16 %v1449_v3, %v1448_v2  ;;  %v1853_v6 = vld [vmem:[#allocation12 + $0x178] sm:$0xff]  ;;  %v2211_v7 = vld [vmem:[#allocation12 + $0x180] sm:$0xff] }
 0x2e4   : > { %v16178_v9 = vpop.eup %16177  ;;  %15028 = vmatprep.subr.bf16.mxu1 %v17877_v8  ;;  %15060 = vmatprep.subr.bf16.mxu0 %v17877_v8  ;;  %v3330_v2 = vld [vmem:[#allocation12 + $0x300] sm:$0xff]  ;;  %v3331_v3 = vld [vmem:[#allocation12 + $0x308] sm:$0xff] }
 0x2e5   : > { %v16180_v10 = vpop.eup %16179  ;;  %15030 = vmatpush3.bf16.msra.mxu1 %v17877_v8  ;;  %15062 = vmatpush3.bf16.msra.mxu0 %v17877_v8 }
 0x2e6   : > { %v17883_v11 = vpack.c.bf16 %v16178_v9, %v16180_v10  ;;  %v2212_v9 = vld [vmem:[#allocation12 + $0x188] sm:$0xff]  ;;  %v2213_v10 = vld [vmem:[#allocation12 + $0x190] sm:$0xff] }
 0x2e8   : > { %v16182_v12 = vpop.eup %16181  ;;  %15032 = vmatprep.subr.bf16.mxu1 %v17883_v11  ;;  %15064 = vmatprep.subr.bf16.mxu0 %v17883_v11 }
 0x2e9   : > { %v16184_v13 = vpop.eup %16183  ;;  %15034 = vmatpush3.bf16.msra.mxu1 %v17883_v11  ;;  %15066 = vmatpush3.bf16.msra.mxu0 %v17883_v11 }
 0x2ea   : > { %v17889_v14 = vpack.c.bf16 %v16182_v12, %v16184_v13  ;;  %v2214_v12 = vld [vmem:[#allocation12 + $0x198] sm:$0xff]  ;;  %v2215_v13 = vld [vmem:[#allocation12 + $0x1a0] sm:$0xff] }
 0x2ec   : > { %v16186_v15 = vpop.eup %16185  ;;  %15036 = vmatprep.subr.bf16.mxu1 %v17889_v14  ;;  %15068 = vmatprep.subr.bf16.mxu0 %v17889_v14 }
 0x2ed   : > { %v16188_v16 = vpop.eup %16187  ;;  %15038 = vmatpush3.bf16.msra.mxu1 %v17889_v14  ;;  %15070 = vmatpush3.bf16.msra.mxu0 %v17889_v14 }
 0x2ee   : > { %v17895_v17 = vpack.c.bf16 %v16186_v15, %v16188_v16  ;;  %v2216_v15 = vld [vmem:[#allocation12 + $0x1a8] sm:$0xff]  ;;  %v2217_v16 = vld [vmem:[#allocation12 + $0x1b0] sm:$0xff] }
 0x2f0   : > { %15040 = vmatprep.subr.bf16.mxu1 %v17895_v17  ;;  %15072 = vmatprep.subr.bf16.mxu0 %v17895_v17 }
 0x2f1   : > { %15042 = vmatpush3.bf16.msra.mxu1 %v17895_v17  ;;  %15074 = vmatpush3.bf16.msra.mxu0 %v17895_v17 }
 0x2f2   : > { %15084 = vmatprep.subr.bf16.mxu0 %v17845_v44  ;;  %15076 = vmatprep.subr.bf16.mxu1 %v15075_v5 }
 0x2f4   : > { %13756 = vmatmul.mubr.f32.vlgmr.msra.gmra.mrb[16].mxu0 %v1288_v18  ;;  %13700 = vmatmul.mubr.f32.vlgmr.msra.gmra.mrb[0].mxu1 %v1124_v19  ;;  %v2218_v18 = vld [vmem:[#allocation12 + $0x1b8] sm:$0xff]  ;;  %v2219_v19 = vld [vmem:[#allocation12 + $0x1c0] sm:$0xff] }
 0x2f5   : > { %15086 = vmatpush3.bf16.msra.mxu0 %v17845_v44  ;;  %13758 = vmatprep.mubr.f32.mxu0 %v1289_v20  ;;  %v2220_v20 = vld [vmem:[#allocation12 + $0x1c8] sm:$0xff] }
 0x2f6   : > { %15088 = vmatprep.subr.bf16.mxu0 %v17853_v51  ;;  %13702 = vmatprep.mubr.f32.mxu1 %v1125_v21  ;;  %v2221_v21 = vld [vmem:[#allocation12 + $0x1d0] sm:$0xff] }
 0x2f7   : > { %15078 = vmatpush3.bf16.msra.mxu1 %v15075_v5  ;;  %v3333_v5 = vld [vmem:[#allocation12 + $0x318] sm:$0xff] }
 0x2f8   : > { %13759 = vmatmul.mubr.f32.gmra.mrb[18].mxu0 %v1290_v22  ;;  %13703 = vmatmul.mubr.f32.gmra.mrb[2].mxu1 %v1126_v23  ;;  %v2222_v22 = vld [vmem:[#allocation12 + $0x1d8] sm:$0xff]  ;;  %v2223_v23 = vld [vmem:[#allocation12 + $0x1e0] sm:$0xff] }
 0x2f9   : > { %15090 = vmatpush3.bf16.msra.mxu0 %v17853_v51  ;;  %13761 = vmatprep.mubr.f32.mxu0 %v1291_v24  ;;  %v2224_v24 = vld [vmem:[#allocation12 + $0x1e8] sm:$0xff] }
 0x2fa   : > { %15092 = vmatprep.subr.bf16.mxu0 %v17861_v58  ;;  %13705 = vmatprep.mubr.f32.mxu1 %v1127_v25  ;;  %v2225_v25 = vld [vmem:[#allocation12 + $0x1f0] sm:$0xff] }
 0x2fc   : > { %13762 = vmatmul.mubr.f32.gmra.mrb[20].mxu0 %v1292_v26  ;;  %13706 = vmatmul.mubr.f32.gmra.mrb[4].mxu1 %v1128_v27  ;;  %v1284_v26 = vld [vmem:[%s19369_s0] sm:$0xff]  ;;  %v1285_v27 = vld [vmem:[%s19369_s0 + $0x8] sm:$0xff] }
 0x2fd   : > { %15094 = vmatpush3.bf16.msra.mxu0 %v17861_v58  ;;  %13764 = vmatprep.mubr.f32.mxu0 %v1293_v28  ;;  %v17958_v28 = vpack.c.bf16 %v1285_v27, %v1284_v26  ;;  %v3707_v26 = vld [vmem:[#allocation12 + $0x3a0] sm:$0xff]  ;;  %v3708_v27 = vld [vmem:[#allocation12 + $0x3a8] sm:$0xff] }
 0x2fe   : > { %15096 = vmatprep.subr.bf16.mxu0 %v17869_v1  ;;  %13708 = vmatprep.mubr.f32.mxu1 %v1129_v29  ;;  %v2226_v29 = vld [vmem:[#allocation12 + $0x1f8] sm:$0xff] }
 0x2ff   : > { %15080 = vmatprep.subr.bf16.mxu1 %v17958_v28 }
 0x300   : > { %13765 = vmatmul.mubr.f32.gmra.mrb[22].mxu0 %v1294_v30  ;;  %13709 = vmatmul.mubr.f32.gmra.mrb[6].mxu1 %v1130_v31  ;;  %v2584_v30 = vld [vmem:[#allocation12 + $0x200] sm:$0xff]  ;;  %v2585_v31 = vld [vmem:[#allocation12 + $0x208] sm:$0xff] }
 0x301   : > { %15098 = vmatpush3.bf16.msra.mxu0 %v17869_v1  ;;  %13767 = vmatprep.mubr.f32.mxu0 %v1295_v32  ;;  %v2586_v32 = vld [vmem:[#allocation12 + $0x210] sm:$0xff] }
 0x302   : > { %15100 = vmatprep.subr.bf16.mxu0 %v17877_v8  ;;  %13711 = vmatprep.mubr.f32.mxu1 %v1131_v33  ;;  %v2587_v33 = vld [vmem:[#allocation12 + $0x218] sm:$0xff] }
 0x304   : > { %13768 = vmatmul.mubr.f32.gmra.mrb[24].mxu0 %v1296_v34  ;;  %13712 = vmatmul.mubr.f32.gmra.mrb[8].mxu1 %v1132_v35  ;;  %v2588_v34 = vld [vmem:[#allocation12 + $0x220] sm:$0xff]  ;;  %v2589_v35 = vld [vmem:[#allocation12 + $0x228] sm:$0xff] }
 0x305   : > { %15102 = vmatpush3.bf16.msra.mxu0 %v17877_v8  ;;  %13770 = vmatprep.mubr.f32.mxu0 %v1297_v36  ;;  %v2590_v36 = vld [vmem:[#allocation12 + $0x230] sm:$0xff] }
 0x306   : > { %15104 = vmatprep.subr.bf16.mxu0 %v17883_v11  ;;  %13714 = vmatprep.mubr.f32.mxu1 %v1133_v37  ;;  %v2591_v37 = vld [vmem:[#allocation12 + $0x238] sm:$0xff] }
 0x308   : > { %13771 = vmatmul.mubr.f32.gmra.mrb[26].mxu0 %v1298_v38  ;;  %13715 = vmatmul.mubr.f32.gmra.mrb[10].mxu1 %v1134_v39  ;;  %v2592_v38 = vld [vmem:[#allocation12 + $0x240] sm:$0xff]  ;;  %v2593_v39 = vld [vmem:[#allocation12 + $0x248] sm:$0xff] }
 0x309   : > { %15106 = vmatpush3.bf16.msra.mxu0 %v17883_v11  ;;  %13773 = vmatprep.mubr.f32.mxu0 %v1299_v40  ;;  %v2594_v40 = vld [vmem:[#allocation12 + $0x250] sm:$0xff] }
 0x30a   : > { %15108 = vmatprep.subr.bf16.mxu0 %v17889_v14  ;;  %13717 = vmatprep.mubr.f32.mxu1 %v1135_v41  ;;  %v2595_v41 = vld [vmem:[#allocation12 + $0x258] sm:$0xff] }
 0x30c   : > { %13774 = vmatmul.mubr.f32.gmra.mrb[28].mxu0 %v1300_v42  ;;  %13718 = vmatmul.mubr.f32.gmra.mrb[12].mxu1 %v1136_v43  ;;  %v2596_v42 = vld [vmem:[#allocation12 + $0x260] sm:$0xff]  ;;  %v2597_v43 = vld [vmem:[#allocation12 + $0x268] sm:$0xff] }
 0x30d   : > { %15110 = vmatpush3.bf16.msra.mxu0 %v17889_v14  ;;  %13776 = vmatprep.mubr.f32.mxu0 %v1301_v45  ;;  %v2598_v45 = vld [vmem:[#allocation12 + $0x270] sm:$0xff] }
 0x30e   : > { %15112 = vmatprep.subr.bf16.mxu0 %v17895_v17  ;;  %13720 = vmatprep.mubr.f32.mxu1 %v1137_v46  ;;  %v2599_v46 = vld [vmem:[#allocation12 + $0x278] sm:$0xff] }
 0x310   : > { %13777 = vmatmul.mubr.f32.gmra.mrb[30].mxu0 %v1302_v47  ;;  %13721 = vmatmul.mubr.f32.gmra.mrb[14].mxu1 %v1138_v48  ;;  %v2957_v47 = vld [vmem:[#allocation12 + $0x280] sm:$0xff]  ;;  %v2958_v48 = vld [vmem:[#allocation12 + $0x288] sm:$0xff] }
 0x311   : > { %15114 = vmatpush3.bf16.msra.mxu0 %v17895_v17  ;;  %13867 = vmatprep.mubr.f32.mxu0 %v1838_v49  ;;  %v2959_v49 = vld [vmem:[#allocation12 + $0x290] sm:$0xff] }
 0x312   : > { %15120 = vmatprep.subr.bf16.mxu0 %v17845_v44 }
 0x314   : > { %13868 = vmatmul.mubr.f32.vlgmr.msra.gmra.mrb[32].mxu0 %v1839_v50  ;;  %v2960_v50 = vld [vmem:[#allocation12 + $0x298] sm:$0xff] }
 0x315   : > { %15122 = vmatpush3.bf16.msra.mxu0 %v17845_v44  ;;  %13870 = vmatprep.mubr.f32.mxu0 %v1840_v52  ;;  %v2961_v52 = vld [vmem:[#allocation12 + $0x2a0] sm:$0xff] }
 0x316   : > { %15124 = vmatprep.subr.bf16.mxu0 %v17853_v51 }
 0x318   : > { %13871 = vmatmul.mubr.f32.gmra.mrb[34].mxu0 %v1841_v53  ;;  %v2962_v53 = vld [vmem:[#allocation12 + $0x2a8] sm:$0xff] }
 0x319   : > { %15126 = vmatpush3.bf16.msra.mxu0 %v17853_v51  ;;  %13873 = vmatprep.mubr.f32.mxu0 %v1842_v54  ;;  %v2963_v54 = vld [vmem:[#allocation12 + $0x2b0] sm:$0xff] }
 0x31a   : > { %15128 = vmatprep.subr.bf16.mxu0 %v17861_v58 }
 0x31c   : > { %13874 = vmatmul.mubr.f32.gmra.mrb[36].mxu0 %v1843_v55  ;;  %v2964_v55 = vld [vmem:[#allocation12 + $0x2b8] sm:$0xff] }
 0x31d   : > { %15130 = vmatpush3.bf16.msra.mxu0 %v17861_v58  ;;  %13876 = vmatprep.mubr.f32.mxu0 %v1844_v56  ;;  %v2965_v56 = vld [vmem:[#allocation12 + $0x2c0] sm:$0xff] }
 0x31e   : > { %15132 = vmatprep.subr.bf16.mxu0 %v17869_v1 }
 0x320   : > { %13877 = vmatmul.mubr.f32.gmra.mrb[38].mxu0 %v1845_v57  ;;  %v2966_v57 = vld [vmem:[#allocation12 + $0x2c8] sm:$0xff] }
 0x321   : > { %15134 = vmatpush3.bf16.msra.mxu0 %v17869_v1  ;;  %13879 = vmatprep.mubr.f32.mxu0 %v1846_v59  ;;  %v2967_v59 = vld [vmem:[#allocation12 + $0x2d0] sm:$0xff] }
 0x322   : > { %15136 = vmatprep.subr.bf16.mxu0 %v17877_v8 }
 0x324   : > { %13880 = vmatmul.mubr.f32.gmra.mrb[40].mxu0 %v1847_v60  ;;  %v2968_v60 = vld [vmem:[#allocation12 + $0x2d8] sm:$0xff] }
 0x325   : > { %15138 = vmatpush3.bf16.msra.mxu0 %v17877_v8  ;;  %13882 = vmatprep.mubr.f32.mxu0 %v1848_v61  ;;  %v2969_v61 = vld [vmem:[#allocation12 + $0x2e0] sm:$0xff] }
 0x326   : > { %15140 = vmatprep.subr.bf16.mxu0 %v17883_v11 }
 0x328   : > { %13883 = vmatmul.mubr.f32.gmra.mrb[42].mxu0 %v1849_v62  ;;  %v2970_v62 = vld [vmem:[#allocation12 + $0x2e8] sm:$0xff] }
 0x329   : > { %15142 = vmatpush3.bf16.msra.mxu0 %v17883_v11  ;;  %13885 = vmatprep.mubr.f32.mxu0 %v1850_v63  ;;  %v2971_v63 = vld [vmem:[#allocation12 + $0x2f0] sm:$0xff] }
 0x32a   : > { %15144 = vmatprep.subr.bf16.mxu0 %v17889_v14 }
 0x32c   : > { %13886 = vmatmul.mubr.f32.gmra.mrb[44].mxu0 %v1851_v0  ;;  %v2972_v0 = vld [vmem:[#allocation12 + $0x2f8] sm:$0xff] }
 0x32d   : > { %15146 = vmatpush3.bf16.msra.mxu0 %v17889_v14  ;;  %13888 = vmatprep.mubr.f32.mxu0 %v1852_v4  ;;  %v3332_v4 = vld [vmem:[#allocation12 + $0x310] sm:$0xff] }
 0x32e   : > { %15148 = vmatprep.subr.bf16.mxu0 %v17895_v17 }
 0x330   : > { %13889 = vmatmul.mubr.f32.gmra.mrb[46].mxu0 %v1853_v6  ;;  %v3334_v6 = vld [vmem:[#allocation12 + $0x320] sm:$0xff] }
 0x331   : > { %15150 = vmatpush3.bf16.msra.mxu0 %v17895_v17  ;;  %13951 = vmatprep.mubr.f32.mxu0 %v2211_v7  ;;  %v3335_v7 = vld [vmem:[#allocation12 + $0x328] sm:$0xff] }
 0x332   : > { %15156 = vmatprep.subr.bf16.mxu0 %v17845_v44 }
 0x334   : > { %13952 = vmatmul.mubr.f32.vlgmr.msra.gmra.mrb[48].mxu0 %v2212_v9  ;;  %v3336_v9 = vld [vmem:[#allocation12 + $0x330] sm:$0xff] }
 0x335   : > { %15158 = vmatpush3.bf16.msra.mxu0 %v17845_v44  ;;  %13954 = vmatprep.mubr.f32.mxu0 %v2213_v10  ;;  %v3337_v10 = vld [vmem:[#allocation12 + $0x338] sm:$0xff] }
 0x336   : > { %15160 = vmatprep.subr.bf16.mxu0 %v17853_v51 }
 0x338   : > { %13955 = vmatmul.mubr.f32.gmra.mrb[50].mxu0 %v2214_v12  ;;  %v3338_v12 = vld [vmem:[#allocation12 + $0x340] sm:$0xff] }
 0x339   : > { %15162 = vmatpush3.bf16.msra.mxu0 %v17853_v51  ;;  %13957 = vmatprep.mubr.f32.mxu0 %v2215_v13  ;;  %v3339_v13 = vld [vmem:[#allocation12 + $0x348] sm:$0xff] }
 0x33a   : > { %15164 = vmatprep.subr.bf16.mxu0 %v17861_v58 }
 0x33c   : > { %13958 = vmatmul.mubr.f32.gmra.mrb[52].mxu0 %v2216_v15  ;;  %v3340_v15 = vld [vmem:[#allocation12 + $0x350] sm:$0xff] }
 0x33d   : > { %15166 = vmatpush3.bf16.msra.mxu0 %v17861_v58  ;;  %13960 = vmatprep.mubr.f32.mxu0 %v2217_v16  ;;  %v3341_v16 = vld [vmem:[#allocation12 + $0x358] sm:$0xff] }
 0x33e   : > { %15168 = vmatprep.subr.bf16.mxu0 %v17869_v1 }
 0x340   : > { %13961 = vmatmul.mubr.f32.gmra.mrb[54].mxu0 %v2218_v18  ;;  %v3342_v18 = vld [vmem:[#allocation12 + $0x360] sm:$0xff] }
 0x341   : > { %15170 = vmatpush3.bf16.msra.mxu0 %v17869_v1  ;;  %13963 = vmatprep.mubr.f32.mxu0 %v2219_v19  ;;  %v3343_v19 = vld [vmem:[#allocation12 + $0x368] sm:$0xff] }
 0x342   : > { %15172 = vmatprep.subr.bf16.mxu0 %v17877_v8 }
 0x344   : > { %13964 = vmatmul.mubr.f32.gmra.mrb[56].mxu0 %v2220_v20  ;;  %v3344_v20 = vld [vmem:[#allocation12 + $0x370] sm:$0xff] }
 0x345   : > { %15174 = vmatpush3.bf16.msra.mxu0 %v17877_v8  ;;  %13966 = vmatprep.mubr.f32.mxu0 %v2221_v21  ;;  %v3345_v21 = vld [vmem:[#allocation12 + $0x378] sm:$0xff] }
 0x346   : > { %15176 = vmatprep.subr.bf16.mxu0 %v17883_v11 }
 0x348   : > { %13967 = vmatmul.mubr.f32.gmra.mrb[58].mxu0 %v2222_v22  ;;  %v3703_v22 = vld [vmem:[#allocation12 + $0x380] sm:$0xff] }
 0x349   : > { %15178 = vmatpush3.bf16.msra.mxu0 %v17883_v11  ;;  %13969 = vmatprep.mubr.f32.mxu0 %v2223_v23  ;;  %v3704_v23 = vld [vmem:[#allocation12 + $0x388] sm:$0xff] }
 0x34a   : > { %15180 = vmatprep.subr.bf16.mxu0 %v17889_v14 }
 0x34c   : > { %13970 = vmatmul.mubr.f32.gmra.mrb[60].mxu0 %v2224_v24  ;;  %v3705_v24 = vld [vmem:[#allocation12 + $0x390] sm:$0xff] }
 0x34d   : > { %15182 = vmatpush3.bf16.msra.mxu0 %v17889_v14  ;;  %13972 = vmatprep.mubr.f32.mxu0 %v2225_v25  ;;  %v3706_v25 = vld [vmem:[#allocation12 + $0x398] sm:$0xff] }
 0x34e   : > { %15184 = vmatprep.subr.bf16.mxu0 %v17895_v17 }
 0x350   : > { %13973 = vmatmul.mubr.f32.gmra.mrb[62].mxu0 %v2226_v29  ;;  %v3709_v29 = vld [vmem:[#allocation12 + $0x3b0] sm:$0xff] }
 0x351   : > { %15186 = vmatpush3.bf16.msra.mxu0 %v17895_v17  ;;  %14035 = vmatprep.mubr.f32.mxu0 %v2584_v30  ;;  %v3710_v30 = vld [vmem:[#allocation12 + $0x3b8] sm:$0xff] }
 0x352   : > { %15192 = vmatprep.subr.bf16.mxu0 %v17845_v44 }
 0x354   : > { %14036 = vmatmul.mubr.f32.vlgmr.msra.gmra.mrb[64].mxu0 %v2585_v31  ;;  %v3712_v31 = vld [vmem:[#allocation12 + $0x3c8] sm:$0xff] }
 0x355   : > { %15194 = vmatpush3.bf16.msra.mxu0 %v17845_v44  ;;  %14038 = vmatprep.mubr.f32.mxu0 %v2586_v32  ;;  %v3714_v32 = vld [vmem:[#allocation12 + $0x3d8] sm:$0xff] }
 0x356   : > { %15196 = vmatprep.subr.bf16.mxu0 %v17853_v51 }
 0x358   : > { %14039 = vmatmul.mubr.f32.gmra.mrb[66].mxu0 %v2587_v33  ;;  %v2000_v33 = vld [vmem:[%s19369_s0 + $0x28] sm:$0xff] }
 0x359   : > { %15198 = vmatpush3.bf16.msra.mxu0 %v17853_v51  ;;  %14041 = vmatprep.mubr.f32.mxu0 %v2588_v34 }
 0x35a   : > { %15200 = vmatprep.subr.bf16.mxu0 %v17861_v58 }
 0x35c   : > { %14042 = vmatmul.mubr.f32.gmra.mrb[68].mxu0 %v2589_v35 }
 0x35d   : > { %15202 = vmatpush3.bf16.msra.mxu0 %v17861_v58  ;;  %14044 = vmatprep.mubr.f32.mxu0 %v2590_v36 }
 0x35e   : > { %15204 = vmatprep.subr.bf16.mxu0 %v17869_v1 }
 0x360   : > { %14045 = vmatmul.mubr.f32.gmra.mrb[70].mxu0 %v2591_v37  ;;  %v3715_v37 = vld [vmem:[#allocation12 + $0x3e0] sm:$0xff] }
 0x361   : > { %15206 = vmatpush3.bf16.msra.mxu0 %v17869_v1  ;;  %14047 = vmatprep.mubr.f32.mxu0 %v2592_v38  ;;  %v3716_v38 = vld [vmem:[#allocation12 + $0x3e8] sm:$0xff] }
 0x362   : > { %15208 = vmatprep.subr.bf16.mxu0 %v17877_v8 }
 0x364   : > { %14048 = vmatmul.mubr.f32.gmra.mrb[72].mxu0 %v2593_v39 }
 0x365   : > { %15210 = vmatpush3.bf16.msra.mxu0 %v17877_v8  ;;  %14050 = vmatprep.mubr.f32.mxu0 %v2594_v40 }
 0x366   : > { %15212 = vmatprep.subr.bf16.mxu0 %v17883_v11 }
 0x368   : > { %14051 = vmatmul.mubr.f32.gmra.mrb[74].mxu0 %v2595_v41 }
 0x369   : > { %15214 = vmatpush3.bf16.msra.mxu0 %v17883_v11  ;;  %14053 = vmatprep.mubr.f32.mxu0 %v2596_v42 }
 0x36a   : > { %15216 = vmatprep.subr.bf16.mxu0 %v17889_v14 }
 0x36c   : > { %14054 = vmatmul.mubr.f32.gmra.mrb[76].mxu0 %v2597_v43  ;;  %v3717_v43 = vld [vmem:[#allocation12 + $0x3f0] sm:$0xff] }
 0x36d   : > { %15218 = vmatpush3.bf16.msra.mxu0 %v17889_v14  ;;  %14056 = vmatprep.mubr.f32.mxu0 %v2598_v45 }
 0x36e   : > { %15220 = vmatprep.subr.bf16.mxu0 %v17895_v17 }
 0x370   : > { %14057 = vmatmul.mubr.f32.gmra.mrb[78].mxu0 %v2599_v46  ;;  %v4076_v46 = vld [vmem:[#allocation12 + $0x400] sm:$0xff] }
 0x371   : > { %15222 = vmatpush3.bf16.msra.mxu0 %v17895_v17  ;;  %14119 = vmatprep.mubr.f32.mxu0 %v2957_v47 }
 0x372   : > { %15228 = vmatprep.subr.bf16.mxu0 %v17845_v44 }
 0x374   : > { %14120 = vmatmul.mubr.f32.vlgmr.msra.gmra.mrb[80].mxu0 %v2958_v48 }
 0x375   : > { %15230 = vmatpush3.bf16.msra.mxu0 %v17845_v44  ;;  %14122 = vmatprep.mubr.f32.mxu0 %v2959_v49  ;;  %v4077_v49 = vld [vmem:[#allocation12 + $0x408] sm:$0xff] }
 0x376   : > { %15232 = vmatprep.subr.bf16.mxu0 %v17853_v51 }
 0x378   : > { %14123 = vmatmul.mubr.f32.gmra.mrb[82].mxu0 %v2960_v50 }
 0x379   : > { %15234 = vmatpush3.bf16.msra.mxu0 %v17853_v51  ;;  %14125 = vmatprep.mubr.f32.mxu0 %v2961_v52 }
 0x37a   : > { %15236 = vmatprep.subr.bf16.mxu0 %v17861_v58 }
 0x37c   : > { %14126 = vmatmul.mubr.f32.gmra.mrb[84].mxu0 %v2962_v53 }
 0x37d   : > { %15238 = vmatpush3.bf16.msra.mxu0 %v17861_v58  ;;  %14128 = vmatprep.mubr.f32.mxu0 %v2963_v54 }
 0x37e   : > { %15240 = vmatprep.subr.bf16.mxu0 %v17869_v1 }
 0x380   : > { %14129 = vmatmul.mubr.f32.gmra.mrb[86].mxu0 %v2964_v55  ;;  %v4079_v55 = vld [vmem:[#allocation12 + $0x418] sm:$0xff] }
 0x381   : > { %15242 = vmatpush3.bf16.msra.mxu0 %v17869_v1  ;;  %14131 = vmatprep.mubr.f32.mxu0 %v2965_v56  ;;  %v4080_v56 = vld [vmem:[#allocation12 + $0x420] sm:$0xff] }
 0x382   : > { %15244 = vmatprep.subr.bf16.mxu0 %v17877_v8 }
 0x384   : > { %14132 = vmatmul.mubr.f32.gmra.mrb[88].mxu0 %v2966_v57 }
 0x385   : > { %15246 = vmatpush3.bf16.msra.mxu0 %v17877_v8  ;;  %14134 = vmatprep.mubr.f32.mxu0 %v2967_v59 }
 0x386   : > { %15248 = vmatprep.subr.bf16.mxu0 %v17883_v11 }
 0x388   : > { %14135 = vmatmul.mubr.f32.gmra.mrb[90].mxu0 %v2968_v60 }
 0x389   : > { %15250 = vmatpush3.bf16.msra.mxu0 %v17883_v11  ;;  %14137 = vmatprep.mubr.f32.mxu0 %v2969_v61  ;;  %v4081_v61 = vld [vmem:[#allocation12 + $0x428] sm:$0xff] }
 0x38a   : > { %15252 = vmatprep.subr.bf16.mxu0 %v17889_v14 }
 0x38c   : > { %14138 = vmatmul.mubr.f32.gmra.mrb[92].mxu0 %v2970_v62  ;;  %v4082_v62 = vld [vmem:[#allocation12 + $0x430] sm:$0xff] }
 0x38d   : > { %15254 = vmatpush3.bf16.msra.mxu0 %v17889_v14  ;;  %14140 = vmatprep.mubr.f32.mxu0 %v2971_v63 }
 0x38e   : > { %15256 = vmatprep.subr.bf16.mxu0 %v17895_v17 }
 0x390   : > { %14141 = vmatmul.mubr.f32.gmra.mrb[94].mxu0 %v2972_v0 }
 0x391   : > { %15258 = vmatpush3.bf16.msra.mxu0 %v17895_v17  ;;  %14203 = vmatprep.mubr.f32.mxu0 %v3330_v2 }
 0x392   : > { %15264 = vmatprep.subr.bf16.mxu0 %v17845_v44 }
 0x394   : > { %14204 = vmatmul.mubr.f32.vlgmr.msra.gmra.mrb[96].mxu0 %v3331_v3 }
 0x395   : > { %15266 = vmatpush3.bf16.msra.mxu0 %v17845_v44  ;;  %14206 = vmatprep.mubr.f32.mxu0 %v3332_v4  ;;  %v4083_v4 = vld [vmem:[#allocation12 + $0x438] sm:$0xff] }
 0x396   : > { %15268 = vmatprep.subr.bf16.mxu0 %v17853_v51 }
 0x398   : > { %14207 = vmatmul.mubr.f32.gmra.mrb[98].mxu0 %v3333_v5  ;;  %v4084_v5 = vld [vmem:[#allocation12 + $0x440] sm:$0xff] }
 0x399   : > { %15270 = vmatpush3.bf16.msra.mxu0 %v17853_v51  ;;  %14209 = vmatprep.mubr.f32.mxu0 %v3334_v6 }
 0x39a   : > { %15272 = vmatprep.subr.bf16.mxu0 %v17861_v58 }
 0x39c   : > { %14210 = vmatmul.mubr.f32.gmra.mrb[100].mxu0 %v3335_v7 }
 0x39d   : > { %15274 = vmatpush3.bf16.msra.mxu0 %v17861_v58  ;;  %14212 = vmatprep.mubr.f32.mxu0 %v3336_v9 }
 0x39e   : > { %15276 = vmatprep.subr.bf16.mxu0 %v17869_v1 }
 0x3a0   : > { %14213 = vmatmul.mubr.f32.gmra.mrb[102].mxu0 %v3337_v10 }
 0x3a1   : > { %15278 = vmatpush3.bf16.msra.mxu0 %v17869_v1  ;;  %14215 = vmatprep.mubr.f32.mxu0 %v3338_v12  ;;  %v4085_v12 = vld [vmem:[#allocation12 + $0x448] sm:$0xff] }
 0x3a2   : > { %15280 = vmatprep.subr.bf16.mxu0 %v17877_v8 }
 0x3a4   : > { %14216 = vmatmul.mubr.f32.gmra.mrb[104].mxu0 %v3339_v13  ;;  %v4086_v13 = vld [vmem:[#allocation12 + $0x450] sm:$0xff] }
 0x3a5   : > { %15282 = vmatpush3.bf16.msra.mxu0 %v17877_v8  ;;  %14218 = vmatprep.mubr.f32.mxu0 %v3340_v15 }
 0x3a6   : > { %15284 = vmatprep.subr.bf16.mxu0 %v17883_v11 }
 0x3a8   : > { %14219 = vmatmul.mubr.f32.gmra.mrb[106].mxu0 %v3341_v16 }
 0x3a9   : > { %15286 = vmatpush3.bf16.msra.mxu0 %v17883_v11  ;;  %14221 = vmatprep.mubr.f32.mxu0 %v3342_v18 }
 0x3aa   : > { %15288 = vmatprep.subr.bf16.mxu0 %v17889_v14 }
 0x3ac   : > { %14222 = vmatmul.mubr.f32.gmra.mrb[108].mxu0 %v3343_v19 }
 0x3ad   : > { %15290 = vmatpush3.bf16.msra.mxu0 %v17889_v14  ;;  %14224 = vmatprep.mubr.f32.mxu0 %v3344_v20  ;;  %v4087_v20 = vld [vmem:[#allocation12 + $0x458] sm:$0xff] }
 0x3ae   : > { %15292 = vmatprep.subr.bf16.mxu0 %v17895_v17 }
 0x3b0   : > { %14225 = vmatmul.mubr.f32.gmra.mrb[110].mxu0 %v3345_v21  ;;  %v2372_v21 = vld [vmem:[%s19369_s0 + $0x30] sm:$0xff] }
 0x3b1   : > { %15294 = vmatpush3.bf16.msra.mxu0 %v17895_v17  ;;  %14287 = vmatprep.mubr.f32.mxu0 %v3703_v22  ;;  %v2373_v22 = vld [vmem:[%s19369_s0 + $0x38] sm:$0xff] }
 0x3b2   : > { %15300 = vmatprep.subr.bf16.mxu0 %v17845_v44 }
 0x3b4   : > { %14288 = vmatmul.mubr.f32.vlgmr.msra.gmra.mrb[112].mxu0 %v3704_v23  ;;  %v4088_v23 = vld [vmem:[#allocation12 + $0x460] sm:$0xff] }
 0x3b5   : > { %15302 = vmatpush3.bf16.msra.mxu0 %v17845_v44  ;;  %14290 = vmatprep.mubr.f32.mxu0 %v3705_v24  ;;  %v3711_v44 = vld [vmem:[#allocation12 + $0x3c0] sm:$0xff] }
 0x3b6   : > { %15304 = vmatprep.subr.bf16.mxu0 %v17853_v51 }
 0x3b8   : > { %14291 = vmatmul.mubr.f32.gmra.mrb[114].mxu0 %v3706_v25 }
 0x3b9   : > { %15306 = vmatpush3.bf16.msra.mxu0 %v17853_v51  ;;  %14293 = vmatprep.mubr.f32.mxu0 %v3707_v26  ;;  %v3713_v51 = vld [vmem:[#allocation12 + $0x3d0] sm:$0xff]  ;;  %v15151_v26 = vpack.c.bf16 %v2373_v22, %v2372_v21 }
 0x3ba   : > { %15308 = vmatprep.subr.bf16.mxu0 %v17861_v58 }
 0x3bc   : > { %14294 = vmatmul.mubr.f32.gmra.mrb[116].mxu0 %v3708_v27  ;;  %v4089_v27 = vld [vmem:[#allocation12 + $0x468] sm:$0xff] }
 0x3bd   : > { %15310 = vmatpush3.bf16.msra.mxu0 %v17861_v58  ;;  %14296 = vmatprep.mubr.f32.mxu0 %v3709_v29  ;;  %v1999_v58 = vld [vmem:[%s19369_s0 + $0x20] sm:$0xff]  ;;  %v4090_v29 = vld [vmem:[#allocation12 + $0x470] sm:$0xff] }
 0x3be   : > { %15312 = vmatprep.subr.bf16.mxu0 %v17869_v1 }
 0x3c0   : > { %14297 = vmatmul.mubr.f32.gmra.mrb[118].mxu0 %v3710_v30 }
 0x3c1   : > { %15314 = vmatpush3.bf16.msra.mxu0 %v17869_v1  ;;  %14299 = vmatprep.mubr.f32.mxu0 %v3711_v44 }
 0x3c2   : > { %15316 = vmatprep.subr.bf16.mxu0 %v17877_v8 }
 0x3c4   : > { %14300 = vmatmul.mubr.f32.gmra.mrb[120].mxu0 %v3712_v31  ;;  %v4091_v31 = vld [vmem:[#allocation12 + $0x478] sm:$0xff] }
 0x3c5   : > { %15318 = vmatpush3.bf16.msra.mxu0 %v17877_v8  ;;  %14302 = vmatprep.mubr.f32.mxu0 %v3713_v51  ;;  %v18033_v8 = vpack.c.bf16 %v2000_v33, %v1999_v58 }
 0x3c6   : > { %15320 = vmatprep.subr.bf16.mxu0 %v17883_v11 }
 0x3c7   : > { %v13757_v1 = vpop.f32.mrb[16].mxu0  ;;  %v18029_v34 = vpop.f32.mrb[0].mxu1 }
 0x3c8   : > { %v1369_v35 = vpop.f32.mrb[17].mxu0  ;;  %v18031_v36 = vpop.f32.mrb[1].mxu1  ;;  %14303 = vmatmul.mubr.f32.gmra.mrb[122].mxu0 %v3714_v32 }
 0x3c9   : > { %13783 = vmatprep.mubr.msk.f32.mxu1 %vm1450_vm2, %v1369_v35  ;;  %15322 = vmatpush3.bf16.msra.mxu0 %v17883_v11  ;;  %v3718_v11 = vld [vmem:[#allocation12 + $0x3f8] sm:$0xff] }
 0x3ca   : > { %13784 = vmatmul.mubr.msk.f32.vlgmr.msra.gmra.mrb[16].mxu1 %vm1450_vm2, %v13757_v1  ;;  %15324 = vmatprep.subr.bf16.mxu0 %v17889_v14 }
 0x3cb   : > { %v13760_v39 = vpop.f32.mrb[18].mxu0  ;;  %15082 = vmatpush3.bf16.msra.mxu1 %v17958_v28  ;;  %v18040_v40 = vpop.f32.mrb[2].mxu1  ;;  %14305 = vmatprep.mubr.f32.mxu0 %v3715_v37 }
 0x3cc   : > { %v1379_v41 = vpop.f32.mrb[19].mxu0  ;;  %15116 = vmatprep.subr.bf16.mxu1 %v18033_v8  ;;  %v18043_v42 = vpop.f32.mrb[3].mxu1  ;;  %14306 = vmatmul.mubr.f32.gmra.mrb[124].mxu0 %v3716_v38 }
 0x3cd   : > { %13786 = vmatprep.mubr.msk.f32.mxu1 %vm1450_vm2, %v1379_v41  ;;  %15326 = vmatpush3.bf16.msra.mxu0 %v17889_v14  ;;  %v4078_v14 = vld [vmem:[#allocation12 + $0x410] sm:$0xff]  ;;  %v2746_v41 = vld [vmem:[%s19369_s0 + $0x48] sm:$0xff] }
 0x3ce   : > { %13787 = vmatmul.mubr.msk.f32.gmra.mrb[18].mxu1 %vm1450_vm2, %v13760_v39  ;;  %15328 = vmatprep.subr.bf16.mxu0 %v17895_v17 }
 0x3cf   : > { %v13763_v28 = vpop.f32.mrb[20].mxu0  ;;  %v18049_v45 = vpop.f32.mrb[4].mxu1  ;;  %14308 = vmatprep.mubr.f32.mxu0 %v3717_v43 }
 0x3d0   : > { %v1389_v47 = vpop.f32.mrb[21].mxu0  ;;  %v18051_v48 = vpop.f32.mrb[5].mxu1  ;;  %14309 = vmatmul.mubr.f32.gmra.mrb[126].mxu0 %v3718_v11 }
 0x3d1   : > { %13789 = vmatprep.mubr.msk.f32.mxu1 %vm1450_vm2, %v1389_v47  ;;  %15330 = vmatpush3.bf16.msra.mxu0 %v17895_v17 }
 0x3d2   : > { %13790 = vmatmul.mubr.msk.f32.gmra.mrb[20].mxu1 %vm1450_vm2, %v13763_v28  ;;  %14371 = vmatprep.mubr.f32.mxu0 %v4076_v46 }
 0x3d3   : > { %v13766_v50 = vpop.f32.mrb[22].mxu0  ;;  %v18056_v52 = vpop.f32.mrb[6].mxu1 }
 0x3d4   : > { %v1399_v53 = vpop.f32.mrb[23].mxu0  ;;  %v18058_v54 = vpop.f32.mrb[7].mxu1  ;;  %14372 = vmatmul.mubr.f32.vlgmr.msra.gmra.mrb[128].mxu0 %v4077_v49 }
 0x3d5   : > { %13792 = vmatprep.mubr.msk.f32.mxu1 %vm1450_vm2, %v1399_v53  ;;  %14374 = vmatprep.mubr.f32.mxu0 %v4078_v14 }
 0x3d6   : > { %13793 = vmatmul.mubr.msk.f32.gmra.mrb[22].mxu1 %vm1450_vm2, %v13766_v50 }
 0x3d7   : > { %v13769_v17 = vpop.f32.mrb[24].mxu0  ;;  %v18062_v57 = vpop.f32.mrb[8].mxu1 }
 0x3d8   : > { %v1409_v59 = vpop.f32.mrb[25].mxu0  ;;  %v18064_v60 = vpop.f32.mrb[9].mxu1  ;;  %14375 = vmatmul.mubr.f32.gmra.mrb[130].mxu0 %v4079_v55 }
 0x3d9   : > { %13795 = vmatprep.mubr.msk.f32.mxu1 %vm1450_vm2, %v1409_v59  ;;  %14377 = vmatprep.mubr.f32.mxu0 %v4080_v56  ;;  %v3119_v59 = vld [vmem:[%s19369_s0 + $0x58] sm:$0xff] }
 0x3da   : > { %13796 = vmatmul.mubr.msk.f32.gmra.mrb[24].mxu1 %vm1450_vm2, %v13769_v17 }
 0x3db   : > { %v13772_v63 = vpop.f32.mrb[26].mxu0  ;;  %v18068_v0 = vpop.f32.mrb[10].mxu1 }
 0x3dc   : > { %v1419_v2 = vpop.f32.mrb[27].mxu0  ;;  %v1255_v3 = vpop.f32.mrb[11].mxu1  ;;  %14378 = vmatmul.mubr.f32.gmra.mrb[132].mxu0 %v4081_v61 }
 0x3dd   : > { %13798 = vmatprep.mubr.msk.f32.mxu1 %vm1450_vm2, %v1419_v2  ;;  %14380 = vmatprep.mubr.f32.mxu0 %v4082_v62 }
 0x3de   : > { %13799 = vmatmul.mubr.msk.f32.gmra.mrb[26].mxu1 %vm1450_vm2, %v13772_v63 }
 0x3df   : > { %v13775_v6 = vpop.f32.mrb[28].mxu0  ;;  %v13719_v7 = vpop.f32.mrb[12].mxu1 }
 0x3e0   : > { %v1429_v9 = vpop.f32.mrb[29].mxu0  ;;  %v1265_v10 = vpop.f32.mrb[13].mxu1  ;;  %14381 = vmatmul.mubr.f32.gmra.mrb[134].mxu0 %v4083_v4 }
 0x3e1   : > { %13801 = vmatprep.mubr.msk.f32.mxu1 %vm1450_vm2, %v1429_v9  ;;  %14383 = vmatprep.mubr.f32.mxu0 %v4084_v5 }
 0x3e2   : > { %13802 = vmatmul.mubr.msk.f32.gmra.mrb[28].mxu1 %vm1450_vm2, %v13775_v6 }
 0x3e3   : > { %v13778_v15 = vpop.f32.mrb[30].mxu0  ;;  %v13722_v16 = vpop.f32.mrb[14].mxu1 }
 0x3e4   : > { %v1439_v18 = vpop.f32.mrb[31].mxu0  ;;  %v1275_v19 = vpop.f32.mrb[15].mxu1  ;;  %14384 = vmatmul.mubr.f32.gmra.mrb[136].mxu0 %v4085_v12 }
 0x3e5   : > { %13804 = vmatprep.mubr.msk.f32.mxu1 %vm1450_vm2, %v1439_v18  ;;  %14386 = vmatprep.mubr.f32.mxu0 %v4086_v13  ;;  %v3491_v18 = vld [vmem:[%s19369_s0 + $0x60] sm:$0xff] }
 0x3e6   : > { %13805 = vmatmul.mubr.msk.f32.gmra.mrb[30].mxu1 %vm1450_vm2, %v13778_v15 }
 0x3e7   : > { %13811 = vmatprep.mubr.msk.f32.mxu1 %vm1450_vm2, %v18031_v36  ;;  %v13869_v24 = vpop.f32.mrb[32].mxu0 }
 0x3e8   : > { %v1920_v25 = vpop.f32.mrb[33].mxu0  ;;  %14387 = vmatmul.mubr.f32.gmra.mrb[138].mxu0 %v4087_v20 }
 0x3e9   : > { %14389 = vmatprep.mubr.f32.mxu0 %v4088_v23 }
 0x3ea   : > { %13812 = vmatmul.mubr.msk.f32.vlgmr.msra.gmra.mrb[16].mxu1 %vm1450_vm2, %v18029_v34 }
 0x3eb   : > { %15118 = vmatpush3.bf16.msra.mxu1 %v18033_v8  ;;  %13814 = vmatprep.mubr.msk.f32.mxu1 %vm1450_vm2, %v18043_v42  ;;  %v13872_v30 = vpop.f32.mrb[34].mxu0 }
 0x3ec   : > { %15152 = vmatprep.subr.bf16.mxu1 %v15151_v26  ;;  %v1930_v44 = vpop.f32.mrb[35].mxu0  ;;  %14390 = vmatmul.mubr.f32.gmra.mrb[140].mxu0 %v4089_v27 }
 0x3ed   : > { %14392 = vmatprep.mubr.f32.mxu0 %v4090_v29 }
 0x3ee   : > { %13815 = vmatmul.mubr.msk.f32.gmra.mrb[18].mxu1 %vm1450_vm2, %v18040_v40  ;;  %v2745_v40 = vld [vmem:[%s19369_s0 + $0x40] sm:$0xff] }
 0x3ef   : > { %13817 = vmatprep.mubr.msk.f32.mxu1 %vm1450_vm2, %v18051_v48  ;;  %v13875_v51 = vpop.f32.mrb[36].mxu0  ;;  %v15187_v11 = vpack.c.bf16 %v2746_v41, %v2745_v40 }
 0x3f0   : > { %v1940_v32 = vpop.f32.mrb[37].mxu0  ;;  %14393 = vmatmul.mubr.f32.gmra.mrb[142].mxu0 %v4091_v31 }
 0x3f2   : > { %13818 = vmatmul.mubr.msk.f32.gmra.mrb[20].mxu1 %vm1450_vm2, %v18049_v45 }
 0x3f3   : > { %13820 = vmatprep.mubr.msk.f32.mxu1 %vm1450_vm2, %v18058_v54  ;;  %v13878_v58 = vpop.f32.mrb[38].mxu0 }
 0x3f4   : > { %v1950_v33 = vpop.f32.mrb[39].mxu0 }
 0x3f6   : > { %13821 = vmatmul.mubr.msk.f32.gmra.mrb[22].mxu1 %vm1450_vm2, %v18056_v52 }
 0x3f7   : > { %13823 = vmatprep.mubr.msk.f32.mxu1 %vm1450_vm2, %v18064_v60  ;;  %v13881_v1 = vpop.f32.mrb[40].mxu0 }
 0x3f8   : > { %v1960_v34 = vpop.f32.mrb[41].mxu0 }
 0x3fa   : > { %13824 = vmatmul.mubr.msk.f32.gmra.mrb[24].mxu1 %vm1450_vm2, %v18062_v57  ;;  %v3118_v57 = vld [vmem:[%s19369_s0 + $0x50] sm:$0xff] }
 0x3fb   : > { %13826 = vmatprep.mubr.msk.f32.mxu1 %vm1450_vm2, %v1255_v3  ;;  %v13884_v35 = vpop.f32.mrb[42].mxu0  ;;  %v15223_v62 = vpack.c.bf16 %v3119_v59, %v3118_v57 }
 0x3fc   : > { %v1970_v36 = vpop.f32.mrb[43].mxu0 }
 0x3fe   : > { %13827 = vmatmul.mubr.msk.f32.gmra.mrb[26].mxu1 %vm1450_vm2, %v18068_v0 }
 0x3ff   : > { %13829 = vmatprep.mubr.msk.f32.mxu1 %vm1450_vm2, %v1265_v10  ;;  %v13887_v8 = vpop.f32.mrb[44].mxu0 }
 0x400   : > { %v1980_v37 = vpop.f32.mrb[45].mxu0 }
 0x402   : > { %13830 = vmatmul.mubr.msk.f32.gmra.mrb[28].mxu1 %vm1450_vm2, %v13719_v7 }
 0x403   : > { %13832 = vmatprep.mubr.msk.f32.mxu1 %vm1450_vm2, %v1275_v19  ;;  %v13890_v38 = vpop.f32.mrb[46].mxu0  ;;  %v3492_v19 = vld [vmem:[%s19369_s0 + $0x68] sm:$0xff] }
 0x404   : > { %v1990_v39 = vpop.f32.mrb[47].mxu0  ;;  %v15259_v22 = vpack.c.bf16 %v3492_v19, %v3491_v18 }
 0x406   : > { %13833 = vmatmul.mubr.msk.f32.gmra.mrb[30].mxu1 %vm1450_vm2, %v13722_v16 }
 0x407   : > { %13895 = vmatprep.mubr.msk.f32.mxu1 %vm1450_vm2, %v1920_v25  ;;  %v13953_v42 = vpop.f32.mrb[48].mxu0 }
 0x408   : > { %v2293_v43 = vpop.f32.mrb[49].mxu0 }
 0x40a   : > { %13896 = vmatmul.mubr.msk.f32.vlgmr.msra.gmra.mrb[16].mxu1 %vm1450_vm2, %v13869_v24 }
 0x40b   : > { %15154 = vmatpush3.bf16.msra.mxu1 %v15151_v26  ;;  %13898 = vmatprep.mubr.msk.f32.mxu1 %vm1450_vm2, %v1930_v44  ;;  %v13956_v28 = vpop.f32.mrb[50].mxu0 }
 0x40c   : > { %15188 = vmatprep.subr.bf16.mxu1 %v15187_v11  ;;  %v2303_v45 = vpop.f32.mrb[51].mxu0 }
 0x40e   : > { %13899 = vmatmul.mubr.msk.f32.gmra.mrb[18].mxu1 %vm1450_vm2, %v13872_v30 }
 0x40f   : > { %13901 = vmatprep.mubr.msk.f32.mxu1 %vm1450_vm2, %v1940_v32  ;;  %v13959_v46 = vpop.f32.mrb[52].mxu0 }
 0x410   : > { %v2313_v47 = vpop.f32.mrb[53].mxu0 }
 0x412   : > { %13902 = vmatmul.mubr.msk.f32.gmra.mrb[20].mxu1 %vm1450_vm2, %v13875_v51 }
 0x413   : > { %13904 = vmatprep.mubr.msk.f32.mxu1 %vm1450_vm2, %v1950_v33  ;;  %v13962_v48 = vpop.f32.mrb[54].mxu0 }
 0x414   : > { %v2323_v49 = vpop.f32.mrb[55].mxu0 }
 0x416   : > { %13905 = vmatmul.mubr.msk.f32.gmra.mrb[22].mxu1 %vm1450_vm2, %v13878_v58 }
 0x417   : > { %13907 = vmatprep.mubr.msk.f32.mxu1 %vm1450_vm2, %v1960_v34  ;;  %v13965_v14 = vpop.f32.mrb[56].mxu0  ;;  %v3864_v34 = vld [vmem:[%s19369_s0 + $0x70] sm:$0xff] }
 0x418   : > { %v2333_v50 = vpop.f32.mrb[57].mxu0 }
 0x41a   : > { %13908 = vmatmul.mubr.msk.f32.gmra.mrb[24].mxu1 %vm1450_vm2, %v13881_v1 }
 0x41b   : > { %13910 = vmatprep.mubr.msk.f32.mxu1 %vm1450_vm2, %v1970_v36  ;;  %v13968_v52 = vpop.f32.mrb[58].mxu0 }
 0x41c   : > { %v2343_v53 = vpop.f32.mrb[59].mxu0 }
 0x41e   : > { %13911 = vmatmul.mubr.msk.f32.gmra.mrb[26].mxu1 %vm1450_vm2, %v13884_v35  ;;  %v3865_v35 = vld [vmem:[%s19369_s0 + $0x78] sm:$0xff] }
 0x41f   : > { %13913 = vmatprep.mubr.msk.f32.mxu1 %vm1450_vm2, %v1980_v37  ;;  %v13971_v54 = vpop.f32.mrb[60].mxu0  ;;  %v15295_v37 = vpack.c.bf16 %v3865_v35, %v3864_v34 }
 0x420   : > { %v2353_v55 = vpop.f32.mrb[61].mxu0 }
 0x422   : > { %13914 = vmatmul.mubr.msk.f32.gmra.mrb[28].mxu1 %vm1450_vm2, %v13887_v8 }
 0x423   : > { %13916 = vmatprep.mubr.msk.f32.mxu1 %vm1450_vm2, %v1990_v39  ;;  %v13974_v56 = vpop.f32.mrb[62].mxu0 }
 0x424   : > { %v2363_v17 = vpop.f32.mrb[63].mxu0 }
 0x426   : > { %13917 = vmatmul.mubr.msk.f32.gmra.mrb[30].mxu1 %vm1450_vm2, %v13890_v38 }
 0x427   : > { %13979 = vmatprep.mubr.msk.f32.mxu1 %vm1450_vm2, %v2293_v43  ;;  %v14037_v60 = vpop.f32.mrb[64].mxu0 }
 0x428   : > { %v2666_v61 = vpop.f32.mrb[65].mxu0 }
 0x42a   : > { %13980 = vmatmul.mubr.msk.f32.vlgmr.msra.gmra.mrb[16].mxu1 %vm1450_vm2, %v13953_v42 }
 0x42b   : > { %15190 = vmatpush3.bf16.msra.mxu1 %v15187_v11  ;;  %13982 = vmatprep.mubr.msk.f32.mxu1 %vm1450_vm2, %v2303_v45  ;;  %v14040_v63 = vpop.f32.mrb[66].mxu0 }
 0x42c   : > { %15224 = vmatprep.subr.bf16.mxu1 %v15223_v62  ;;  %v2676_v0 = vpop.f32.mrb[67].mxu0 }
 0x42e   : > { %13983 = vmatmul.mubr.msk.f32.gmra.mrb[18].mxu1 %vm1450_vm2, %v13956_v28 }
 0x42f   : > { %13985 = vmatprep.mubr.msk.f32.mxu1 %vm1450_vm2, %v2313_v47  ;;  %v14043_v2 = vpop.f32.mrb[68].mxu0 }
 0x430   : > { %v2686_v3 = vpop.f32.mrb[69].mxu0 }
 0x432   : > { %13986 = vmatmul.mubr.msk.f32.gmra.mrb[20].mxu1 %vm1450_vm2, %v13959_v46 }
 0x433   : > { %13988 = vmatprep.mubr.msk.f32.mxu1 %vm1450_vm2, %v2323_v49  ;;  %v14046_v4 = vpop.f32.mrb[70].mxu0 }
 0x434   : > { %v2696_v5 = vpop.f32.mrb[71].mxu0 }
 0x436   : > { %13989 = vmatmul.mubr.msk.f32.gmra.mrb[22].mxu1 %vm1450_vm2, %v13962_v48 }
 0x437   : > { %13991 = vmatprep.mubr.msk.f32.mxu1 %vm1450_vm2, %v2333_v50  ;;  %v14049_v6 = vpop.f32.mrb[72].mxu0  ;;  %v4237_v50 = vld [vmem:[%s19369_s0 + $0x80] sm:$0xff] }
 0x438   : > { %v2706_v7 = vpop.f32.mrb[73].mxu0 }
 0x43a   : > { %13992 = vmatmul.mubr.msk.f32.gmra.mrb[24].mxu1 %vm1450_vm2, %v13965_v14 }
 0x43b   : > { %13994 = vmatprep.mubr.msk.f32.mxu1 %vm1450_vm2, %v2343_v53  ;;  %v14052_v9 = vpop.f32.mrb[74].mxu0 }
 0x43c   : > { %v2716_v10 = vpop.f32.mrb[75].mxu0 }
 0x43e   : > { %13995 = vmatmul.mubr.msk.f32.gmra.mrb[26].mxu1 %vm1450_vm2, %v13968_v52  ;;  %v4238_v52 = vld [vmem:[%s19369_s0 + $0x88] sm:$0xff] }
 0x43f   : > { %13997 = vmatprep.mubr.msk.f32.mxu1 %vm1450_vm2, %v2353_v55  ;;  %v14055_v12 = vpop.f32.mrb[76].mxu0  ;;  %v15331_v55 = vpack.c.bf16 %v4238_v52, %v4237_v50 }
 0x440   : > { %v2726_v13 = vpop.f32.mrb[77].mxu0 }
 0x442   : > { %13998 = vmatmul.mubr.msk.f32.gmra.mrb[28].mxu1 %vm1450_vm2, %v13971_v54 }
 0x443   : > { %14000 = vmatprep.mubr.msk.f32.mxu1 %vm1450_vm2, %v2363_v17  ;;  %v14058_v15 = vpop.f32.mrb[78].mxu0 }
 0x444   : > { %v2736_v16 = vpop.f32.mrb[79].mxu0 }
 0x446   : > { %14001 = vmatmul.mubr.msk.f32.gmra.mrb[30].mxu1 %vm1450_vm2, %v13974_v56 }
 0x447   : > { %14063 = vmatprep.mubr.msk.f32.mxu1 %vm1450_vm2, %v2666_v61  ;;  %v14121_v20 = vpop.f32.mrb[80].mxu0 }
 0x448   : > { %v3039_v21 = vpop.f32.mrb[81].mxu0 }
 0x44a   : > { %14064 = vmatmul.mubr.msk.f32.vlgmr.msra.gmra.mrb[16].mxu1 %vm1450_vm2, %v14037_v60 }
 0x44b   : > { %15226 = vmatpush3.bf16.msra.mxu1 %v15223_v62  ;;  %14066 = vmatprep.mubr.msk.f32.mxu1 %vm1450_vm2, %v2676_v0  ;;  %v14124_v23 = vpop.f32.mrb[82].mxu0 }
 0x44c   : > { %15260 = vmatprep.subr.bf16.mxu1 %v15259_v22  ;;  %v3049_v24 = vpop.f32.mrb[83].mxu0 }
 0x44e   : > { %14067 = vmatmul.mubr.msk.f32.gmra.mrb[18].mxu1 %vm1450_vm2, %v14040_v63 }
 0x44f   : > { %14069 = vmatprep.mubr.msk.f32.mxu1 %vm1450_vm2, %v2686_v3  ;;  %v14127_v25 = vpop.f32.mrb[84].mxu0 }
 0x450   : > { %v3059_v26 = vpop.f32.mrb[85].mxu0 }
 0x452   : > { %14070 = vmatmul.mubr.msk.f32.gmra.mrb[20].mxu1 %vm1450_vm2, %v14043_v2 }
 0x453   : > { %14072 = vmatprep.mubr.msk.f32.mxu1 %vm1450_vm2, %v2696_v5  ;;  %v14130_v27 = vpop.f32.mrb[86].mxu0 }
 0x454   : > { %v3069_v29 = vpop.f32.mrb[87].mxu0 }
 0x456   : > { %14073 = vmatmul.mubr.msk.f32.gmra.mrb[22].mxu1 %vm1450_vm2, %v14046_v4 }
 0x457   : > { %14075 = vmatprep.mubr.msk.f32.mxu1 %vm1450_vm2, %v2706_v7  ;;  %v14133_v30 = vpop.f32.mrb[88].mxu0 }
 0x458   : > { %v3079_v44 = vpop.f32.mrb[89].mxu0 }
 0x45a   : > { %14076 = vmatmul.mubr.msk.f32.gmra.mrb[24].mxu1 %vm1450_vm2, %v14049_v6 }
 0x45b   : > { %14078 = vmatprep.mubr.msk.f32.mxu1 %vm1450_vm2, %v2716_v10  ;;  %v14136_v31 = vpop.f32.mrb[90].mxu0 }
 0x45c   : > { %v3089_v51 = vpop.f32.mrb[91].mxu0 }
 0x45e   : > { %14079 = vmatmul.mubr.msk.f32.gmra.mrb[26].mxu1 %vm1450_vm2, %v14052_v9 }
 0x45f   : > { %14081 = vmatprep.mubr.msk.f32.mxu1 %vm1450_vm2, %v2726_v13  ;;  %v14139_v32 = vpop.f32.mrb[92].mxu0 }
 0x460   : > { %v3099_v58 = vpop.f32.mrb[93].mxu0 }
 0x462   : > { %14082 = vmatmul.mubr.msk.f32.gmra.mrb[28].mxu1 %vm1450_vm2, %v14055_v12 }
 0x463   : > { %14084 = vmatprep.mubr.msk.f32.mxu1 %vm1450_vm2, %v2736_v16  ;;  %v14142_v33 = vpop.f32.mrb[94].mxu0 }
 0x464   : > { %v3109_v1 = vpop.f32.mrb[95].mxu0 }
 0x466   : > { %14085 = vmatmul.mubr.msk.f32.gmra.mrb[30].mxu1 %vm1450_vm2, %v14058_v15 }
 0x467   : > { %14147 = vmatprep.mubr.msk.f32.mxu1 %vm1450_vm2, %v3039_v21  ;;  %v14205_v36 = vpop.f32.mrb[96].mxu0 }
 0x468   : > { %v3412_v8 = vpop.f32.mrb[97].mxu0 }
 0x46a   : > { %14148 = vmatmul.mubr.msk.f32.vlgmr.msra.gmra.mrb[16].mxu1 %vm1450_vm2, %v14121_v20 }
 0x46b   : > { %15262 = vmatpush3.bf16.msra.mxu1 %v15259_v22  ;;  %14150 = vmatprep.mubr.msk.f32.mxu1 %vm1450_vm2, %v3049_v24  ;;  %v14208_v38 = vpop.f32.mrb[98].mxu0 }
 0x46c   : > { %15296 = vmatprep.subr.bf16.mxu1 %v15295_v37  ;;  %v3422_v39 = vpop.f32.mrb[99].mxu0 }
 0x46e   : > { %14151 = vmatmul.mubr.msk.f32.gmra.mrb[18].mxu1 %vm1450_vm2, %v14124_v23 }
 0x46f   : > { %14153 = vmatprep.mubr.msk.f32.mxu1 %vm1450_vm2, %v3059_v26  ;;  %v14211_v40 = vpop.f32.mrb[100].mxu0 }
 0x470   : > { %v3432_v41 = vpop.f32.mrb[101].mxu0 }
 0x472   : > { %14154 = vmatmul.mubr.msk.f32.gmra.mrb[20].mxu1 %vm1450_vm2, %v14127_v25 }
 0x473   : > { %14156 = vmatprep.mubr.msk.f32.mxu1 %vm1450_vm2, %v3069_v29  ;;  %v14214_v42 = vpop.f32.mrb[102].mxu0  ;;  %v4671_v29 = vld [vmem:[#allocation15 + $0x40] sm:$0xff] }
 0x474   : > { %v3442_v43 = vpop.f32.mrb[103].mxu0 }
 0x476   : > { %14157 = vmatmul.mubr.msk.f32.gmra.mrb[22].mxu1 %vm1450_vm2, %v14130_v27  ;;  %v4487_v27 = vld [vmem:[#allocation15] sm:$0xff] }
 0x477   : > { %14159 = vmatprep.mubr.msk.f32.mxu1 %vm1450_vm2, %v3079_v44  ;;  %v14217_v11 = vpop.f32.mrb[104].mxu0  ;;  %14455 = vmatprep.mubr.f32.mxu0 %v4487_v27  ;;  %v4674_v27 = vld [vmem:[#allocation15 + $0x58] sm:$0xff] }
 0x478   : > { %v3452_v28 = vpop.f32.mrb[105].mxu0 }
 0x47a   : > { %14160 = vmatmul.mubr.msk.f32.gmra.mrb[24].mxu1 %vm1450_vm2, %v14133_v30  ;;  %v18252_v30 = vld [vmem:[#allocation13] ss:$0 sm:$0xff] }
 0x47b   : > { %14162 = vmatprep.mubr.msk.f32.mxu1 %vm1450_vm2, %v3089_v51  ;;  %v14220_v45 = vpop.f32.mrb[106].mxu0 }
 0x47c   : > { %v3462_v46 = vpop.f32.mrb[107].mxu0 }
 0x47e   : > { %14163 = vmatmul.mubr.msk.f32.gmra.mrb[26].mxu1 %vm1450_vm2, %v14136_v31 }
 0x47f   : > { %14165 = vmatprep.mubr.msk.f32.mxu1 %vm1450_vm2, %v3099_v58  ;;  %v14223_v47 = vpop.f32.mrb[108].mxu0 }
 0x480   : > { %v3472_v48 = vpop.f32.mrb[109].mxu0 }
 0x482   : > { %14166 = vmatmul.mubr.msk.f32.gmra.mrb[28].mxu1 %vm1450_vm2, %v14139_v32 }
 0x483   : > { %14168 = vmatprep.mubr.msk.f32.mxu1 %vm1450_vm2, %v3109_v1  ;;  %v14226_v49 = vpop.f32.mrb[110].mxu0 }
 0x484   : > { %v3482_v14 = vpop.f32.mrb[111].mxu0 }
 0x486   : > { %14169 = vmatmul.mubr.msk.f32.gmra.mrb[30].mxu1 %vm1450_vm2, %v14142_v33 }
 0x487   : > { %14231 = vmatprep.mubr.msk.f32.mxu1 %vm1450_vm2, %v3412_v8  ;;  %v14289_v53 = vpop.f32.mrb[112].mxu0 }
 0x488   : > { %v3785_v54 = vpop.f32.mrb[113].mxu0 }
 0x48a   : > { %14232 = vmatmul.mubr.msk.f32.vlgmr.msra.gmra.mrb[16].mxu1 %vm1450_vm2, %v14205_v36 }
 0x48b   : > { %15298 = vmatpush3.bf16.msra.mxu1 %v15295_v37  ;;  %14234 = vmatprep.mubr.msk.f32.mxu1 %vm1450_vm2, %v3422_v39  ;;  %v14292_v56 = vpop.f32.mrb[114].mxu0 }
 0x48c   : > { %15332 = vmatprep.subr.bf16.mxu1 %v15331_v55  ;;  %v3795_v17 = vpop.f32.mrb[115].mxu0 }
 0x48e   : > { %14235 = vmatmul.mubr.msk.f32.gmra.mrb[18].mxu1 %vm1450_vm2, %v14208_v38 }
 0x48f   : > { %14237 = vmatprep.mubr.msk.f32.mxu1 %vm1450_vm2, %v3432_v41  ;;  %v14295_v57 = vpop.f32.mrb[116].mxu0 }
 0x490   : > { %v3805_v59 = vpop.f32.mrb[117].mxu0 }
 0x492   : > { %14238 = vmatmul.mubr.msk.f32.gmra.mrb[20].mxu1 %vm1450_vm2, %v14211_v40 }
 0x493   : > { %14240 = vmatprep.mubr.msk.f32.mxu1 %vm1450_vm2, %v3442_v43  ;;  %v14298_v60 = vpop.f32.mrb[118].mxu0 }
 0x494   : > { %v3815_v61 = vpop.f32.mrb[119].mxu0 }
 0x496   : > { %14241 = vmatmul.mubr.msk.f32.gmra.mrb[22].mxu1 %vm1450_vm2, %v14214_v42 }
 0x497   : > { %14243 = vmatprep.mubr.msk.f32.mxu1 %vm1450_vm2, %v3452_v28  ;;  %v14301_v62 = vpop.f32.mrb[120].mxu0 }
 0x498   : > { %v3825_v63 = vpop.f32.mrb[121].mxu0 }
 0x49a   : > { %14244 = vmatmul.mubr.msk.f32.gmra.mrb[24].mxu1 %vm1450_vm2, %v14217_v11 }
 0x49b   : > { %14246 = vmatprep.mubr.msk.f32.mxu1 %vm1450_vm2, %v3462_v46  ;;  %v14304_v0 = vpop.f32.mrb[122].mxu0 }
 0x49c   : > { %v3835_v2 = vpop.f32.mrb[123].mxu0 }
 0x49e   : > { %14247 = vmatmul.mubr.msk.f32.gmra.mrb[26].mxu1 %vm1450_vm2, %v14220_v45 }
 0x49f   : > { %14249 = vmatprep.mubr.msk.f32.mxu1 %vm1450_vm2, %v3472_v48  ;;  %v14307_v3 = vpop.f32.mrb[124].mxu0 }
 0x4a0   : > { %v3845_v4 = vpop.f32.mrb[125].mxu0 }
 0x4a2   : > { %14250 = vmatmul.mubr.msk.f32.gmra.mrb[28].mxu1 %vm1450_vm2, %v14223_v47 }
 0x4a3   : > { %14252 = vmatprep.mubr.msk.f32.mxu1 %vm1450_vm2, %v3482_v14  ;;  %v14310_v5 = vpop.f32.mrb[126].mxu0 }
 0x4a4   : > { %v3855_v6 = vpop.f32.mrb[127].mxu0 }
 0x4a6   : > { %14253 = vmatmul.mubr.msk.f32.gmra.mrb[30].mxu1 %vm1450_vm2, %v14226_v49 }
 0x4a7   : > { %14315 = vmatprep.mubr.msk.f32.mxu1 %vm1450_vm2, %v3785_v54  ;;  %v14373_v7 = vpop.f32.mrb[128].mxu0 }
 0x4a8   : > { %v4158_v9 = vpop.f32.mrb[129].mxu0 }
 0x4aa   : > { %14316 = vmatmul.mubr.msk.f32.vlgmr.msra.gmra.mrb[16].mxu1 %vm1450_vm2, %v14289_v53 }
 0x4ab   : > { %15334 = vmatpush3.bf16.msra.mxu1 %v15331_v55  ;;  %14318 = vmatprep.mubr.msk.f32.mxu1 %vm1450_vm2, %v3795_v17  ;;  %v14376_v10 = vpop.f32.mrb[130].mxu0 }
 0x4ac   : > { %v4168_v12 = vpop.f32.mrb[131].mxu0 }
 0x4ae   : > { %14319 = vmatmul.mubr.msk.f32.gmra.mrb[18].mxu1 %vm1450_vm2, %v14292_v56 }
 0x4af   : > { %14321 = vmatprep.mubr.msk.f32.mxu1 %vm1450_vm2, %v3805_v59  ;;  %v14379_v13 = vpop.f32.mrb[132].mxu0 }
 0x4b0   : > { %v4178_v15 = vpop.f32.mrb[133].mxu0 }
 0x4b2   : > { %14322 = vmatmul.mubr.msk.f32.gmra.mrb[20].mxu1 %vm1450_vm2, %v14295_v57 }
 0x4b3   : > { %14324 = vmatprep.mubr.msk.f32.mxu1 %vm1450_vm2, %v3815_v61  ;;  %v14382_v16 = vpop.f32.mrb[134].mxu0 }
 0x4b4   : > { %v4188_v18 = vpop.f32.mrb[135].mxu0 }
 0x4b6   : > { %14325 = vmatmul.mubr.msk.f32.gmra.mrb[22].mxu1 %vm1450_vm2, %v14298_v60 }
 0x4b7   : > { %14327 = vmatprep.mubr.msk.f32.mxu1 %vm1450_vm2, %v3825_v63  ;;  %v14385_v19 = vpop.f32.mrb[136].mxu0 }
 0x4b8   : > { %v4198_v20 = vpop.f32.mrb[137].mxu0 }
 0x4ba   : > { %14328 = vmatmul.mubr.msk.f32.gmra.mrb[24].mxu1 %vm1450_vm2, %v14301_v62 }
 0x4bb   : > { %14330 = vmatprep.mubr.msk.f32.mxu1 %vm1450_vm2, %v3835_v2  ;;  %v14388_v21 = vpop.f32.mrb[138].mxu0 }
 0x4bc   : > { %v4208_v22 = vpop.f32.mrb[139].mxu0 }
 0x4be   : > { %14331 = vmatmul.mubr.msk.f32.gmra.mrb[26].mxu1 %vm1450_vm2, %v14304_v0 }
 0x4bf   : > { %14333 = vmatprep.mubr.msk.f32.mxu1 %vm1450_vm2, %v3845_v4  ;;  %v14391_v23 = vpop.f32.mrb[140].mxu0 }
 0x4c0   : > { %v4218_v24 = vpop.f32.mrb[141].mxu0 }
 0x4c2   : > { %14334 = vmatmul.mubr.msk.f32.gmra.mrb[28].mxu1 %vm1450_vm2, %v14307_v3 }
 0x4c3   : > { %14336 = vmatprep.mubr.msk.f32.mxu1 %vm1450_vm2, %v3855_v6  ;;  %v14394_v25 = vpop.f32.mrb[142].mxu0 }
 0x4c4   : > { %v4228_v26 = vpop.f32.mrb[143].mxu0 }
 0x4c6   : > { %14337 = vmatmul.mubr.msk.f32.gmra.mrb[30].mxu1 %vm1450_vm2, %v14310_v5 }
 0x4c7   : > { %14399 = vmatprep.mubr.msk.f32.mxu1 %vm1450_vm2, %v4158_v9 }
 0x4ca   : > { %14400 = vmatmul.mubr.msk.f32.vlgmr.msra.gmra.mrb[16].mxu1 %vm1450_vm2, %v14373_v7 }
 0x4cb   : > { %14402 = vmatprep.mubr.msk.f32.mxu1 %vm1450_vm2, %v4168_v12 }
 0x4ce   : > { %14403 = vmatmul.mubr.msk.f32.gmra.mrb[18].mxu1 %vm1450_vm2, %v14376_v10 }
 0x4cf   : > { %14405 = vmatprep.mubr.msk.f32.mxu1 %vm1450_vm2, %v4178_v15 }
 0x4d2   : > { %14406 = vmatmul.mubr.msk.f32.gmra.mrb[20].mxu1 %vm1450_vm2, %v14379_v13 }
 0x4d3   : > { %14408 = vmatprep.mubr.msk.f32.mxu1 %vm1450_vm2, %v4188_v18 }
 0x4d6   : > { %14409 = vmatmul.mubr.msk.f32.gmra.mrb[22].mxu1 %vm1450_vm2, %v14382_v16 }
 0x4d7   : > { %14411 = vmatprep.mubr.msk.f32.mxu1 %vm1450_vm2, %v4198_v20 }
 0x4da   : > { %14412 = vmatmul.mubr.msk.f32.gmra.mrb[24].mxu1 %vm1450_vm2, %v14385_v19 }
 0x4db   : > { %14414 = vmatprep.mubr.msk.f32.mxu1 %vm1450_vm2, %v4208_v22  ;;  %v4488_v22 = vld [vmem:[#allocation15 + $0x8] sm:$0xff] }
 0x4de   : > { %14415 = vmatmul.mubr.msk.f32.gmra.mrb[26].mxu1 %vm1450_vm2, %v14388_v21 }
 0x4df   : > { %14417 = vmatprep.mubr.msk.f32.mxu1 %vm1450_vm2, %v4218_v24  ;;  %v4489_v24 = vld [vmem:[#allocation15 + $0x10] sm:$0xff] }
 0x4e2   : > { %14418 = vmatmul.mubr.msk.f32.gmra.mrb[28].mxu1 %vm1450_vm2, %v14391_v23  ;;  %v4672_v23 = vld [vmem:[#allocation15 + $0x48] sm:$0xff] }
 0x4e3   : > { %14420 = vmatprep.mubr.msk.f32.mxu1 %vm1450_vm2, %v4228_v26  ;;  %v4490_v26 = vld [vmem:[#allocation15 + $0x18] sm:$0xff] }
 0x4e6   : > { %14421 = vmatmul.mubr.msk.f32.gmra.mrb[30].mxu1 %vm1450_vm2, %v14394_v25  ;;  %v4673_v25 = vld [vmem:[#allocation15 + $0x50] sm:$0xff] }
 0x4e7   : > { %14531 = vmatprep.mubr.f32.mxu1 %v4671_v29  ;;  %v4577_v29 = vld [vmem:[#allocation15 + $0x20] sm:$0xff] }
 0x59d   : > { %v14401_v44 = vpop.f32.mrb[16].mxu1 }
 0x59e   : > { %v4456_v31 = vadd.f32 %v14401_v44, %v18252_v30  ;;  %v4353_v51 = vpop.f32.mrb[17].mxu1  ;;  %v4579_v44 = vld [vmem:[#allocation15 + $0x30] sm:$0xff] }
 0x59f   : > { %v4455_v32 = vadd.f32 %v18252_v30, %v4353_v51  ;;  %v4765_v51 = vld [vmem:[#allocation15 + $0x60] sm:$0xff] }
 0x5a0   : > { %v4472_v58 = vmax.f32 %v4456_v31, 0.0  ;;  %v4580_v31 = vld [vmem:[#allocation15 + $0x38] sm:$0xff] }
 0x5a1   : > { %v4471_v33 = vmax.f32 %v4455_v32, 0.0  ;;  %v14404_v1 = vpop.f32.mrb[18].mxu1  ;;  %v4766_v32 = vld [vmem:[#allocation15 + $0x68] sm:$0xff] }
 0x5a2   : > { %v4458_v34 = vadd.f32 %v14404_v1, %v18252_v30  ;;  %v4363_v35 = vpop.f32.mrb[19].mxu1  ;;  %v4858_v1 = vld [vmem:[#allocation16] sm:$0xff] }
 0x5a3   : > { %v18257_v36 = vpack.c.bf16 %v4472_v58, %v4471_v33  ;;  %v4457_v8 = vadd.f32 %v18252_v30, %v4363_v35  ;;  %v4767_v58 = vld [vmem:[#allocation15 + $0x70] sm:$0xff]  ;;  %v4768_v33 = vld [vmem:[#allocation15 + $0x78] sm:$0xff] }
 0x5a4   : > { %v4474_v37 = vmax.f32 %v4458_v34, 0.0 }
 0x5a5   : > { %v4473_v38 = vmax.f32 %v4457_v8, 0.0  ;;  %v14407_v39 = vpop.f32.mrb[20].mxu1  ;;  %15336 = vmatprep.subr.bf16.mxu0 %v18257_v36  ;;  %15400 = vmatprep.subr.bf16.mxu1 %v18257_v36 }
 0x5a6   : > { %v4460_v40 = vadd.f32 %v14407_v39, %v18252_v30  ;;  %v4373_v41 = vpop.f32.mrb[21].mxu1  ;;  %15338 = vmatpush3.bf16.msra.mxu0 %v18257_v36  ;;  %15402 = vmatpush3.bf16.msra.mxu1 %v18257_v36 }
 0x5a7   : > { %v18265_v42 = vpack.c.bf16 %v4474_v37, %v4473_v38  ;;  %v4459_v43 = vadd.f32 %v18252_v30, %v4373_v41 }
 0x5a8   : > { %v4476_v11 = vmax.f32 %v4460_v40, 0.0 }
 0x5a9   : > { %v4475_v28 = vmax.f32 %v4459_v43, 0.0  ;;  %v14410_v45 = vpop.f32.mrb[22].mxu1  ;;  %15340 = vmatprep.subr.bf16.mxu0 %v18265_v42  ;;  %15404 = vmatprep.subr.bf16.mxu1 %v18265_v42 }
 0x5aa   : > { %v4462_v46 = vadd.f32 %v14410_v45, %v18252_v30  ;;  %v4383_v47 = vpop.f32.mrb[23].mxu1  ;;  %15342 = vmatpush3.bf16.msra.mxu0 %v18265_v42  ;;  %15406 = vmatpush3.bf16.msra.mxu1 %v18265_v42 }
 0x5ab   : > { %v18273_v48 = vpack.c.bf16 %v4476_v11, %v4475_v28  ;;  %v4461_v49 = vadd.f32 %v18252_v30, %v4383_v47 }
 0x5ac   : > { %v4478_v14 = vmax.f32 %v4462_v46, 0.0 }
 0x5ad   : > { %v4477_v50 = vmax.f32 %v4461_v49, 0.0  ;;  %v14413_v52 = vpop.f32.mrb[24].mxu1  ;;  %15344 = vmatprep.subr.bf16.mxu0 %v18273_v48  ;;  %15408 = vmatprep.subr.bf16.mxu1 %v18273_v48 }
 0x5ae   : > { %v4464_v53 = vadd.f32 %v14413_v52, %v18252_v30  ;;  %v4393_v54 = vpop.f32.mrb[25].mxu1  ;;  %15346 = vmatpush3.bf16.msra.mxu0 %v18273_v48  ;;  %15410 = vmatpush3.bf16.msra.mxu1 %v18273_v48 }
 0x5af   : > { %v18281_v55 = vpack.c.bf16 %v4478_v14, %v4477_v50  ;;  %v4463_v56 = vadd.f32 %v18252_v30, %v4393_v54 }
 0x5b0   : > { %v4480_v17 = vmax.f32 %v4464_v53, 0.0 }
 0x5b1   : > { %v4479_v57 = vmax.f32 %v4463_v56, 0.0  ;;  %v14416_v59 = vpop.f32.mrb[26].mxu1  ;;  %15348 = vmatprep.subr.bf16.mxu0 %v18281_v55  ;;  %15412 = vmatprep.subr.bf16.mxu1 %v18281_v55 }
 0x5b2   : > { %v4466_v60 = vadd.f32 %v14416_v59, %v18252_v30  ;;  %v4403_v61 = vpop.f32.mrb[27].mxu1  ;;  %15350 = vmatpush3.bf16.msra.mxu0 %v18281_v55  ;;  %15414 = vmatpush3.bf16.msra.mxu1 %v18281_v55 }
 0x5b3   : > { %v18289_v62 = vpack.c.bf16 %v4480_v17, %v4479_v57  ;;  %v4465_v63 = vadd.f32 %v18252_v30, %v4403_v61 }
 0x5b4   : > { %v4482_v0 = vmax.f32 %v4466_v60, 0.0 }
 0x5b5   : > { %v4481_v2 = vmax.f32 %v4465_v63, 0.0  ;;  %v14419_v3 = vpop.f32.mrb[28].mxu1  ;;  %15352 = vmatprep.subr.bf16.mxu0 %v18289_v62  ;;  %15416 = vmatprep.subr.bf16.mxu1 %v18289_v62  ;;  %v4860_v63 = vld [vmem:[#allocation16 + $0x10] sm:$0xff] }
 0x5b6   : > { %v4468_v4 = vadd.f32 %v14419_v3, %v18252_v30  ;;  %v4413_v5 = vpop.f32.mrb[29].mxu1  ;;  %15354 = vmatpush3.bf16.msra.mxu0 %v18289_v62  ;;  %15418 = vmatpush3.bf16.msra.mxu1 %v18289_v62  ;;  %v4966_v3 = vld [vmem:[#allocation16 + $0x28] sm:$0xff] }
 0x5b7   : > { %v18297_v6 = vpack.c.bf16 %v4482_v0, %v4481_v2  ;;  %v4467_v7 = vadd.f32 %v18252_v30, %v4413_v5  ;;  %v4861_v0 = vld [vmem:[#allocation16 + $0x18] sm:$0xff]  ;;  %v4965_v2 = vld [vmem:[#allocation16 + $0x20] sm:$0xff] }
 0x5b8   : > { %v4484_v9 = vmax.f32 %v4468_v4, 0.0  ;;  %v4967_v4 = vld [vmem:[#allocation16 + $0x30] sm:$0xff]  ;;  %v4968_v5 = vld [vmem:[#allocation16 + $0x38] sm:$0xff] }
 0x5b9   : > { %v4483_v10 = vmax.f32 %v4467_v7, 0.0  ;;  %v14422_v12 = vpop.f32.mrb[30].mxu1  ;;  %15356 = vmatprep.subr.bf16.mxu0 %v18297_v6  ;;  %15420 = vmatprep.subr.bf16.mxu1 %v18297_v6  ;;  %v5266_v7 = vld [vmem:[#allocation16 + $0x48] sm:$0xff] }
 0x5ba   : > { %v4470_v13 = vadd.f32 %v14422_v12, %v18252_v30  ;;  %v4423_v15 = vpop.f32.mrb[31].mxu1  ;;  %15358 = vmatpush3.bf16.msra.mxu0 %v18297_v6  ;;  %15422 = vmatpush3.bf16.msra.mxu1 %v18297_v6  ;;  %v5472_v12 = vld [vmem:[#allocation16 + $0x60] sm:$0xff] }
 0x5bb   : > { %v18305_v16 = vpack.c.bf16 %v4484_v9, %v4483_v10  ;;  %v4469_v18 = vadd.f32 %v18252_v30, %v4423_v15  ;;  %v4578_v30 = vld [vmem:[#allocation15 + $0x28] sm:$0xff]  ;;  %v5267_v9 = vld [vmem:[#allocation16 + $0x50] sm:$0xff]  ;;  %v5268_v10 = vld [vmem:[#allocation16 + $0x58] sm:$0xff] }
 0x5bc   : > { %v4486_v19 = vmax.f32 %v4470_v13, 0.0  ;;  %v5473_v13 = vld [vmem:[#allocation16 + $0x68] sm:$0xff]  ;;  %v5474_v15 = vld [vmem:[#allocation16 + $0x70] sm:$0xff] }
 0x5bd   : > { %v4485_v20 = vmax.f32 %v4469_v18, 0.0  ;;  %15360 = vmatprep.subr.bf16.mxu0 %v18305_v16  ;;  %15424 = vmatprep.subr.bf16.mxu1 %v18305_v16  ;;  %v5679_v18 = vld [vmem:[#allocation16 + $0x80] sm:$0xff] }
 0x5be   : > { %15362 = vmatpush3.bf16.msra.mxu0 %v18305_v16  ;;  %15426 = vmatpush3.bf16.msra.mxu1 %v18305_v16 }
 0x5bf   : > { %v15363_v21 = vpack.c.bf16 %v4486_v19, %v4485_v20  ;;  %v5680_v19 = vld [vmem:[#allocation16 + $0x88] sm:$0xff]  ;;  %v5681_v20 = vld [vmem:[#allocation16 + $0x90] sm:$0xff] }
 0x5c1   : > { %15364 = vmatprep.subr.bf16.mxu0 %v15363_v21  ;;  %15428 = vmatprep.subr.bf16.mxu1 %v15363_v21 }
 0x5c2   : > { %15366 = vmatpush3.bf16.msra.mxu0 %v15363_v21  ;;  %15430 = vmatpush3.bf16.msra.mxu1 %v15363_v21 }
 0x5c3   : > { %15368 = vmatprep.subr.bf16.mxu0 %v18257_v36 }
 0x5c5   : > { %14456 = vmatmul.mubr.f32.vlgmr.msra.gmra.mrb[144].mxu0 %v4488_v22  ;;  %14532 = vmatmul.mubr.f32.vlgmr.msra.gmra.mrb[32].mxu1 %v4672_v23  ;;  %v5886_v22 = vld [vmem:[#allocation16 + $0xa0] sm:$0xff]  ;;  %v5887_v23 = vld [vmem:[#allocation16 + $0xa8] sm:$0xff] }
 0x5c6   : > { %15370 = vmatpush3.bf16.msra.mxu0 %v18257_v36  ;;  %14458 = vmatprep.mubr.f32.mxu0 %v4489_v24  ;;  %v5888_v24 = vld [vmem:[#allocation16 + $0xb0] sm:$0xff] }
 0x5c7   : > { %15372 = vmatprep.subr.bf16.mxu0 %v18265_v42  ;;  %14534 = vmatprep.mubr.f32.mxu1 %v4673_v25  ;;  %v5889_v25 = vld [vmem:[#allocation16 + $0xb8] sm:$0xff] }
 0x5c9   : > { %14459 = vmatmul.mubr.f32.gmra.mrb[146].mxu0 %v4490_v26  ;;  %14535 = vmatmul.mubr.f32.gmra.mrb[34].mxu1 %v4674_v27  ;;  %v6093_v26 = vld [vmem:[#allocation16 + $0xc0] sm:$0xff]  ;;  %v6094_v27 = vld [vmem:[#allocation16 + $0xc8] sm:$0xff] }
 0x5ca   : > { %15374 = vmatpush3.bf16.msra.mxu0 %v18265_v42  ;;  %14493 = vmatprep.mubr.f32.mxu0 %v4577_v29  ;;  %v6095_v29 = vld [vmem:[#allocation16 + $0xd0] sm:$0xff] }
 0x5cb   : > { %15376 = vmatprep.subr.bf16.mxu0 %v18273_v48  ;;  %14583 = vmatprep.mubr.msk.f32.mxu1 %vm4862_vm3, %v4858_v1  ;;  %v6509_v1 = vld [vmem:[#allocation16 + $0x110] sm:$0xff] }
 0x5ce   : > { %15378 = vmatpush3.bf16.msra.mxu0 %v18273_v48 }
 0x5cf   : > { %15380 = vmatprep.subr.bf16.mxu0 %v18281_v55 }
 0x5d2   : > { %15382 = vmatpush3.bf16.msra.mxu0 %v18281_v55 }
 0x5d3   : > { %15384 = vmatprep.subr.bf16.mxu0 %v18289_v62 }
 0x5d6   : > { %15386 = vmatpush3.bf16.msra.mxu0 %v18289_v62 }
 0x5d7   : > { %15388 = vmatprep.subr.bf16.mxu0 %v18297_v6 }
 0x5da   : > { %15390 = vmatpush3.bf16.msra.mxu0 %v18297_v6 }
 0x5db   : > { %15392 = vmatprep.subr.bf16.mxu0 %v18305_v16 }
 0x5de   : > { %15394 = vmatpush3.bf16.msra.mxu0 %v18305_v16 }
 0x5df   : > { %15396 = vmatprep.subr.bf16.mxu0 %v15363_v21 }
 0x5e2   : > { %15398 = vmatpush3.bf16.msra.mxu0 %v15363_v21 }
 0x5e3   : > { %15432 = vmatprep.subr.bf16.mxu0 %v18257_v36 }
 0x5e5   : > { %14494 = vmatmul.mubr.f32.vlgmr.msra.gmra.mrb[148].mxu0 %v4578_v30  ;;  %v6096_v30 = vld [vmem:[#allocation16 + $0xd8] sm:$0xff] }
 0x5e6   : > { %15434 = vmatpush3.bf16.msra.mxu0 %v18257_v36  ;;  %14496 = vmatprep.mubr.f32.mxu0 %v4579_v44  ;;  %v6300_v44 = vld [vmem:[#allocation16 + $0xe0] sm:$0xff] }
 0x5e7   : > { %15436 = vmatprep.subr.bf16.mxu0 %v18265_v42 }
 0x5e9   : > { %14497 = vmatmul.mubr.f32.gmra.mrb[150].mxu0 %v4580_v31  ;;  %v6301_v31 = vld [vmem:[#allocation16 + $0xe8] sm:$0xff] }
 0x5ea   : > { %15438 = vmatpush3.bf16.msra.mxu0 %v18265_v42  ;;  %14569 = vmatprep.mubr.f32.mxu0 %v4765_v51  ;;  %v6302_v51 = vld [vmem:[#allocation16 + $0xf0] sm:$0xff] }
 0x5eb   : > { %15440 = vmatprep.subr.bf16.mxu0 %v18273_v48 }
 0x5ee   : > { %15442 = vmatpush3.bf16.msra.mxu0 %v18273_v48 }
 0x5ef   : > { %15444 = vmatprep.subr.bf16.mxu0 %v18281_v55 }
 0x5f2   : > { %15446 = vmatpush3.bf16.msra.mxu0 %v18281_v55 }
 0x5f3   : > { %15448 = vmatprep.subr.bf16.mxu0 %v18289_v62 }
 0x5f6   : > { %15450 = vmatpush3.bf16.msra.mxu0 %v18289_v62  ;;  %v4859_v62 = vld [vmem:[#allocation16 + $0x8] sm:$0xff] }
 0x5f7   : > { %15452 = vmatprep.subr.bf16.mxu0 %v18297_v6 }
 0x5fa   : > { %15454 = vmatpush3.bf16.msra.mxu0 %v18297_v6  ;;  %v5265_v6 = vld [vmem:[#allocation16 + $0x40] sm:$0xff] }
 0x5fb   : > { %15456 = vmatprep.subr.bf16.mxu0 %v18305_v16 }
 0x5fe   : > { %15458 = vmatpush3.bf16.msra.mxu0 %v18305_v16  ;;  %v5475_v16 = vld [vmem:[#allocation16 + $0x78] sm:$0xff] }
 0x5ff   : > { %15460 = vmatprep.subr.bf16.mxu0 %v15363_v21 }
 0x602   : > { %15462 = vmatpush3.bf16.msra.mxu0 %v15363_v21  ;;  %v5682_v21 = vld [vmem:[#allocation16 + $0x98] sm:$0xff] }
 0x605   : > { %14570 = vmatmul.mubr.f32.vlgmr.msra.gmra.mrb[152].mxu0 %v4766_v32  ;;  %v6303_v32 = vld [vmem:[#allocation16 + $0xf8] sm:$0xff] }
 0x606   : > { %14572 = vmatprep.mubr.f32.mxu0 %v4767_v58  ;;  %v6507_v58 = vld [vmem:[#allocation16 + $0x100] sm:$0xff] }
 0x609   : > { %14573 = vmatmul.mubr.f32.gmra.mrb[154].mxu0 %v4768_v33  ;;  %v6508_v33 = vld [vmem:[#allocation16 + $0x108] sm:$0xff] }
 0x698   : > { %v14457_v34 = vpop.f32.mrb[144].mxu0  ;;  %v14533_v35 = vpop.f32.mrb[32].mxu1 }
 0x699   : > { %v4557_v36 = vpop.f32.mrb[145].mxu0  ;;  %v4741_v8 = vpop.f32.mrb[33].mxu1 }
 0x69c   : > { %v14460_v37 = vpop.f32.mrb[146].mxu0  ;;  %v14536_v38 = vpop.f32.mrb[34].mxu1 }
 0x69d   : > { %v4567_v39 = vpop.f32.mrb[147].mxu0  ;;  %v4751_v40 = vpop.f32.mrb[35].mxu1 }
 0x6b8   : > { %v14495_v41 = vpop.f32.mrb[148].mxu0 }
 0x6b9   : > { %v4667_v42 = vmax.f32 %v14457_v34, %v14495_v41  ;;  %v4647_v43 = vpop.f32.mrb[149].mxu0  ;;  %v6510_v34 = vld [vmem:[#allocation16 + $0x118] sm:$0xff]  ;;  %v4961_v41 = vld [vmem:[%s19370_s17 + $0x8] sm:$0xff] }
 0x6ba   : > { %v4666_v11 = vmax.f32 %v4557_v36, %v4647_v43  ;;  %v5067_v36 = vld [vmem:[%s19370_s17 + $0x28] sm:$0xff] }
 0x6bb   : > { %v4761_v28 = vmax.f32 %v4667_v42, %v14533_v35  ;;  %v5066_v35 = vld [vmem:[%s19370_s17 + $0x20] sm:$0xff] }
 0x6bc   : > { %v4760_v45 = vmax.f32 %v4666_v11, %v4741_v8  ;;  %v14498_v46 = vpop.f32.mrb[150].mxu0  ;;  %v15479_v8 = vpack.c.bf16 %v5067_v36, %v5066_v35  ;;  %v6197_v35 = vld [vmem:[%s19370_s17 + $0xd8] sm:$0xff] }
 0x6bd   : > { %v4669_v47 = vmax.f32 %v14460_v37, %v14498_v46  ;;  %v4657_v48 = vpop.f32.mrb[151].mxu0  ;;  %v5068_v37 = vld [vmem:[%s19370_s17 + $0x30] sm:$0xff] }
 0x6be   : > { %v4668_v49 = vmax.f32 %v4567_v39, %v4657_v48  ;;  %15480 = vmatprep.subr.bf16.mxu0 %v15479_v8  ;;  %v4962_v46 = vld [vmem:[%s19370_s17 + $0x10] sm:$0xff] }
 0x6bf   : > { %v4763_v14 = vmax.f32 %v4669_v47, %v14536_v38  ;;  %15482 = vmatpush3.bf16.msra.mxu0 %v15479_v8  ;;  %v5069_v38 = vld [vmem:[%s19370_s17 + $0x38] sm:$0xff] }
 0x6c0   : > { %v4762_v50 = vmax.f32 %v4668_v49, %v4751_v40  ;;  %v15483_v39 = vpack.c.bf16 %v5069_v38, %v5068_v37  ;;  %v4960_v40 = vld [vmem:[%s19370_s17] sm:$0xff]  ;;  %v4963_v47 = vld [vmem:[%s19370_s17 + $0x18] sm:$0xff] }
 0x6c1   : > { %v15487_v42 = vpack.c.bf16 %v4961_v41, %v4960_v40  ;;  %v6401_v38 = vld [vmem:[%s19370_s17 + $0xe0] sm:$0xff] }
 0x6c2   : > { %15484 = vmatprep.subr.bf16.mxu0 %v15483_v39 }
 0x6c3   : > { %15486 = vmatpush3.bf16.msra.mxu0 %v15483_v39  ;;  %v6402_v39 = vld [vmem:[%s19370_s17 + $0xe8] sm:$0xff] }
 0x6c4   : > { %15488 = vmatprep.subr.bf16.mxu0 %v15487_v42  ;;  %v15583_v41 = vpack.c.bf16 %v6402_v39, %v6401_v38 }
 0x6d8   : > { %v14571_v52 = vpop.f32.mrb[152].mxu0 }
 0x6d9   : > { %v4855_v53 = vmax.f32 %v4761_v28, %v14571_v52  ;;  %v4835_v54 = vpop.f32.mrb[153].mxu0  ;;  %v5367_v52 = vld [vmem:[%s19370_s17 + $0x48] sm:$0xff] }
 0x6da   : > { %v4854_v55 = vmax.f32 %v4760_v45, %v4835_v54 }
 0x6dc   : > { %v18341_v56 = vpack.c.bf16 %v4855_v53, %v4854_v55  ;;  %v14574_v17 = vpop.f32.mrb[154].mxu0 }
 0x6dd   : > { %v4857_v57 = vmax.f32 %v4763_v14, %v14574_v17  ;;  %v4845_v59 = vpop.f32.mrb[155].mxu0  ;;  %v15491_v14 = vpack.c.bf16 %v4963_v47, %v4962_v46  ;;  %v5369_v17 = vld [vmem:[%s19370_s17 + $0x58] sm:$0xff]  ;;  %v6608_v47 = vld [vmem:[%s19370_s17 + $0x100] sm:$0xff] }
 0x6de   : > { %v4856_v60 = vmax.f32 %v4762_v50, %v4845_v59  ;;  %15464 = vmatprep.subr.bf16.mxu1 %v18341_v56  ;;  %v5366_v50 = vld [vmem:[%s19370_s17 + $0x40] sm:$0xff] }
 0x6df   : > { %15466 = vmatpush3.bf16.msra.mxu1 %v18341_v56  ;;  %v15503_v55 = vpack.c.bf16 %v5367_v52, %v5366_v50  ;;  %v6610_v52 = vld [vmem:[%s19370_s17 + $0x110] sm:$0xff] }
 0x6e0   : > { %v18345_v61 = vpack.c.bf16 %v4857_v57, %v4856_v60 }
 0x6e2   : > { %15468 = vmatprep.subr.bf16.mxu1 %v18345_v61 }
 0x6e3   : > { %15470 = vmatpush3.bf16.msra.mxu1 %v18345_v61 }
 0x6e4   : > { %15472 = vmatprep.subr.bf16.mxu1 %v18341_v56 }
 0x6e6   : > { %14584 = vmatmul.mubr.msk.f32.vlgmr.msra.gmra.mrb[36].mxu1 %vm4862_vm3, %v4859_v62  ;;  %v5574_v62 = vld [vmem:[%s19370_s17 + $0x68] sm:$0xff] }
 0x6e7   : > { %15474 = vmatpush3.bf16.msra.mxu1 %v18341_v56  ;;  %14586 = vmatprep.mubr.msk.f32.mxu1 %vm4862_vm3, %v4860_v63 }
 0x6e8   : > { %15476 = vmatprep.subr.bf16.mxu1 %v18345_v61 }
 0x6ea   : > { %14587 = vmatmul.mubr.msk.f32.gmra.mrb[38].mxu1 %vm4862_vm3, %v4861_v0 }
 0x6eb   : > { %15478 = vmatpush3.bf16.msra.mxu1 %v18345_v61  ;;  %14597 = vmatprep.mubr.msk.f32.mxu1 %vm4862_vm3, %v4965_v2 }
 0x6ec   : > { %15496 = vmatprep.subr.bf16.mxu1 %v18341_v56 }
 0x6ee   : > { %14598 = vmatmul.mubr.msk.f32.vlgmr.msra.gmra.mrb[40].mxu1 %vm4862_vm3, %v4966_v3  ;;  %v5575_v3 = vld [vmem:[%s19370_s17 + $0x70] sm:$0xff] }
 0x6ef   : > { %15498 = vmatpush3.bf16.msra.mxu1 %v18341_v56  ;;  %14600 = vmatprep.mubr.msk.f32.mxu1 %vm4862_vm3, %v4967_v4  ;;  %v5576_v4 = vld [vmem:[%s19370_s17 + $0x78] sm:$0xff] }
 0x6f0   : > { %15500 = vmatprep.subr.bf16.mxu1 %v18345_v61 }
 0x6f2   : > { %14601 = vmatmul.mubr.msk.f32.gmra.mrb[42].mxu1 %vm4862_vm3, %v4968_v5 }
 0x6f3   : > { %15502 = vmatpush3.bf16.msra.mxu1 %v18345_v61  ;;  %14639 = vmatprep.mubr.msk.f32.mxu1 %vm4862_vm3, %v5265_v6  ;;  %v15523_v6 = vpack.c.bf16 %v5576_v4, %v5575_v3 }
 0x6f4   : > { %15512 = vmatprep.subr.bf16.mxu1 %v18341_v56 }
 0x6f6   : > { %14640 = vmatmul.mubr.msk.f32.vlgmr.msra.gmra.mrb[44].mxu1 %vm4862_vm3, %v5266_v7 }
 0x6f7   : > { %15514 = vmatpush3.bf16.msra.mxu1 %v18341_v56  ;;  %14642 = vmatprep.mubr.msk.f32.mxu1 %vm4862_vm3, %v5267_v9  ;;  %v5780_v9 = vld [vmem:[%s19370_s17 + $0x80] sm:$0xff] }
 0x6f8   : > { %15516 = vmatprep.subr.bf16.mxu1 %v18345_v61 }
 0x6fa   : > { %14643 = vmatmul.mubr.msk.f32.gmra.mrb[46].mxu1 %vm4862_vm3, %v5268_v10  ;;  %v5781_v10 = vld [vmem:[%s19370_s17 + $0x88] sm:$0xff] }
 0x6fb   : > { %15518 = vmatpush3.bf16.msra.mxu1 %v18345_v61  ;;  %14667 = vmatprep.mubr.msk.f32.mxu1 %vm4862_vm3, %v5472_v12 }
 0x6fc   : > { %15528 = vmatprep.subr.bf16.mxu1 %v18341_v56 }
 0x6fe   : > { %14668 = vmatmul.mubr.msk.f32.vlgmr.msra.gmra.mrb[48].mxu1 %vm4862_vm3, %v5473_v13  ;;  %v15535_v13 = vpack.c.bf16 %v5781_v10, %v5780_v9 }
 0x6ff   : > { %15530 = vmatpush3.bf16.msra.mxu1 %v18341_v56  ;;  %14670 = vmatprep.mubr.msk.f32.mxu1 %vm4862_vm3, %v5474_v15 }
 0x700   : > { %15532 = vmatprep.subr.bf16.mxu1 %v18345_v61 }
 0x702   : > { %14671 = vmatmul.mubr.msk.f32.gmra.mrb[50].mxu1 %vm4862_vm3, %v5475_v16  ;;  %v5782_v16 = vld [vmem:[%s19370_s17 + $0x90] sm:$0xff] }
 0x703   : > { %15534 = vmatpush3.bf16.msra.mxu1 %v18345_v61  ;;  %14695 = vmatprep.mubr.msk.f32.mxu1 %vm4862_vm3, %v5679_v18  ;;  %v5783_v18 = vld [vmem:[%s19370_s17 + $0x98] sm:$0xff] }
 0x704   : > { %15544 = vmatprep.subr.bf16.mxu1 %v18341_v56 }
 0x706   : > { %14696 = vmatmul.mubr.msk.f32.vlgmr.msra.gmra.mrb[52].mxu1 %vm4862_vm3, %v5680_v19 }
 0x707   : > { %15546 = vmatpush3.bf16.msra.mxu1 %v18341_v56  ;;  %14698 = vmatprep.mubr.msk.f32.mxu1 %vm4862_vm3, %v5681_v20  ;;  %v15539_v20 = vpack.c.bf16 %v5783_v18, %v5782_v16  ;;  %v6728_v16 = vld [vmem:[#allocation19] sm:$0x3]  ;;  %v6879_v18 = vld [vmem:[#allocation19 + $0x4] sm:$0x3] }
 0x708   : > { %15548 = vmatprep.subr.bf16.mxu1 %v18345_v61 }
 0x70a   : > { %14699 = vmatmul.mubr.msk.f32.gmra.mrb[54].mxu1 %vm4862_vm3, %v5682_v21 }
 0x70b   : > { %15550 = vmatpush3.bf16.msra.mxu1 %v18345_v61  ;;  %14723 = vmatprep.mubr.msk.f32.mxu1 %vm4862_vm3, %v5886_v22  ;;  %v5987_v22 = vld [vmem:[%s19370_s17 + $0xa0] sm:$0xff] }
 0x70c   : > { %15560 = vmatprep.subr.bf16.mxu1 %v18341_v56 }
 0x70e   : > { %14724 = vmatmul.mubr.msk.f32.vlgmr.msra.gmra.mrb[56].mxu1 %vm4862_vm3, %v5887_v23  ;;  %v5988_v23 = vld [vmem:[%s19370_s17 + $0xa8] sm:$0xff] }
 0x70f   : > { %15562 = vmatpush3.bf16.msra.mxu1 %v18341_v56  ;;  %14726 = vmatprep.mubr.msk.f32.mxu1 %vm4862_vm3, %v5888_v24 }
 0x710   : > { %15564 = vmatprep.subr.bf16.mxu1 %v18345_v61 }
 0x712   : > { %14727 = vmatmul.mubr.msk.f32.gmra.mrb[58].mxu1 %vm4862_vm3, %v5889_v25  ;;  %v15551_v25 = vpack.c.bf16 %v5988_v23, %v5987_v22  ;;  %v7184_v22 = vld [vmem:[#allocation19 + $0xc] sm:$0x3]  ;;  %v7108_v23 = vld [vmem:[#allocation19 + $0xa] sm:$0x3] }
 0x713   : > { %15566 = vmatpush3.bf16.msra.mxu1 %v18345_v61  ;;  %14751 = vmatprep.mubr.msk.f32.mxu1 %vm4862_vm3, %v6093_v26 }
 0x714   : > { %15576 = vmatprep.subr.bf16.mxu1 %v18341_v56 }
 0x716   : > { %14752 = vmatmul.mubr.msk.f32.vlgmr.msra.gmra.mrb[60].mxu1 %vm4862_vm3, %v6094_v27  ;;  %v5989_v27 = vld [vmem:[%s19370_s17 + $0xb0] sm:$0xff] }
 0x717   : > { %15578 = vmatpush3.bf16.msra.mxu1 %v18341_v56  ;;  %14754 = vmatprep.mubr.msk.f32.mxu1 %vm4862_vm3, %v6095_v29  ;;  %v5990_v29 = vld [vmem:[%s19370_s17 + $0xb8] sm:$0xff] }
 0x718   : > { %15580 = vmatprep.subr.bf16.mxu1 %v18345_v61 }
 0x71a   : > { %14755 = vmatmul.mubr.msk.f32.gmra.mrb[62].mxu1 %vm4862_vm3, %v6096_v30 }
 0x71b   : > { %15582 = vmatpush3.bf16.msra.mxu1 %v18345_v61  ;;  %14779 = vmatprep.mubr.msk.f32.mxu1 %vm4862_vm3, %v6300_v44  ;;  %v15555_v44 = vpack.c.bf16 %v5990_v29, %v5989_v27  ;;  %v7413_v27 = vld [vmem:[#allocation19 + $0x12] sm:$0x3]  ;;  %v7643_v29 = vld [vmem:[#allocation19 + $0x18] sm:$0x3] }
 0x71c   : > { %15592 = vmatprep.subr.bf16.mxu1 %v18341_v56 }
 0x71e   : > { %14780 = vmatmul.mubr.msk.f32.vlgmr.msra.gmra.mrb[64].mxu1 %vm4862_vm3, %v6301_v31 }
 0x71f   : > { %15594 = vmatpush3.bf16.msra.mxu1 %v18341_v56  ;;  %14782 = vmatprep.mubr.msk.f32.mxu1 %vm4862_vm3, %v6302_v51  ;;  %v5368_v56 = vld [vmem:[%s19370_s17 + $0x50] sm:$0xff]  ;;  %v6194_v51 = vld [vmem:[%s19370_s17 + $0xc0] sm:$0xff] }
 0x720   : > { %15596 = vmatprep.subr.bf16.mxu1 %v18345_v61  ;;  %v15507_v59 = vpack.c.bf16 %v5369_v17, %v5368_v56 }
 0x722   : > { %14783 = vmatmul.mubr.msk.f32.gmra.mrb[66].mxu1 %vm4862_vm3, %v6303_v32  ;;  %v6195_v32 = vld [vmem:[%s19370_s17 + $0xc8] sm:$0xff] }
 0x723   : > { %15598 = vmatpush3.bf16.msra.mxu1 %v18345_v61  ;;  %14807 = vmatprep.mubr.msk.f32.mxu1 %vm4862_vm3, %v6507_v58  ;;  %v5573_v61 = vld [vmem:[%s19370_s17 + $0x60] sm:$0xff] }
 0x724   : > { %v15519_v0 = vpack.c.bf16 %v5574_v62, %v5573_v61  ;;  %v12353_v61 = vld [vmem:[#allocation18] ss:$0 sm:$0xff] }
 0x726   : > { %14808 = vmatmul.mubr.msk.f32.vlgmr.msra.gmra.mrb[68].mxu1 %vm4862_vm3, %v6508_v33  ;;  %v15567_v33 = vpack.c.bf16 %v6195_v32, %v6194_v51  ;;  %v7870_v51 = vld [vmem:[#allocation19 + $0x1e] sm:$0x3] }
 0x727   : > { %14810 = vmatprep.mubr.msk.f32.mxu1 %vm4862_vm3, %v6509_v1 }
 0x72a   : > { %14811 = vmatmul.mubr.msk.f32.gmra.mrb[70].mxu1 %vm4862_vm3, %v6510_v34  ;;  %v6196_v34 = vld [vmem:[%s19370_s17 + $0xd0] sm:$0xff] }
 0x72b   : > { %v15571_v8 = vpack.c.bf16 %v6197_v35, %v6196_v34 }
 0x7b9   : > { %v14585_v43 = vpop.f32.mrb[36].mxu1 }
 0x7ba   : > { %v4941_v11 = vpop.f32.mrb[37].mxu1 }
 0x7bd   : > { %v14588_v28 = vpop.f32.mrb[38].mxu1 }
 0x7be   : > { %v4951_v45 = vpop.f32.mrb[39].mxu1 }
 0x7c1   : > { %v14599_v48 = vpop.f32.mrb[40].mxu1 }
 0x7c2   : > { %v5047_v49 = vpop.f32.mrb[41].mxu1 }
 0x7c3   : > { %14611 = vmatprep.mubr.msk.f32.mxu0 %vm4862_vm3, %v5047_v49 }
 0x7c4   : > { %14612 = vmatmul.mubr.msk.f32.vlgmr.msra.gmra.mrb[156].mxu0 %vm4862_vm3, %v14599_v48  ;;  %v6609_v48 = vld [vmem:[%s19370_s17 + $0x108] sm:$0xff] }
 0x7c5   : > { %v14602_v53 = vpop.f32.mrb[42].mxu1  ;;  %15490 = vmatpush3.bf16.msra.mxu0 %v15487_v42 }
 0x7c6   : > { %v5057_v54 = vpop.f32.mrb[43].mxu1  ;;  %15492 = vmatprep.subr.bf16.mxu0 %v15491_v14 }
 0x7c7   : > { %14614 = vmatprep.mubr.msk.f32.mxu0 %vm4862_vm3, %v5057_v54 }
 0x7c8   : > { %14615 = vmatmul.mubr.msk.f32.gmra.mrb[158].mxu0 %vm4862_vm3, %v14602_v53  ;;  %v6611_v53 = vld [vmem:[%s19370_s17 + $0x118] sm:$0xff] }
 0x7c9   : > { %15494 = vmatpush3.bf16.msra.mxu0 %v15491_v14  ;;  %14625 = vmatprep.mubr.msk.f32.mxu0 %vm4862_vm3, %v4941_v11  ;;  %v14641_v57 = vpop.f32.mrb[44].mxu1  ;;  %v6404_v11 = vld [vmem:[%s19370_s17 + $0xf8] sm:$0xff]  ;;  %v15599_v14 = vpack.c.bf16 %v6609_v48, %v6608_v47 }
 0x7ca   : > { %15504 = vmatprep.subr.bf16.mxu0 %v15503_v55  ;;  %v5347_v60 = vpop.f32.mrb[45].mxu1 }
 0x7cc   : > { %14626 = vmatmul.mubr.msk.f32.vlgmr.msra.gmra.mrb[156].mxu0 %vm4862_vm3, %v14585_v43  ;;  %v6403_v43 = vld [vmem:[%s19370_s17 + $0xf0] sm:$0xff] }
 0x7cd   : > { %14628 = vmatprep.mubr.msk.f32.mxu0 %vm4862_vm3, %v4951_v45  ;;  %15506 = vmatpush3.bf16.msra.mxu0 %v15503_v55  ;;  %v14644_v63 = vpop.f32.mrb[46].mxu1  ;;  %v15587_v45 = vpack.c.bf16 %v6404_v11, %v6403_v43  ;;  %v15603_v55 = vpack.c.bf16 %v6611_v53, %v6610_v52 }
 0x7ce   : > { %15508 = vmatprep.subr.bf16.mxu0 %v15507_v59  ;;  %v5357_v2 = vpop.f32.mrb[47].mxu1 }
 0x7d0   : > { %14629 = vmatmul.mubr.msk.f32.gmra.mrb[158].mxu0 %vm4862_vm3, %v14588_v28 }
 0x7d1   : > { %15510 = vmatpush3.bf16.msra.mxu0 %v15507_v59  ;;  %14653 = vmatprep.mubr.msk.f32.mxu0 %vm4862_vm3, %v5347_v60  ;;  %v14669_v5 = vpop.f32.mrb[48].mxu1  ;;  %v17146_v59 = vmov 0.0|0.0   ;;  %v17148_v60 = vmov 0.0  }
 0x7d2   : > { %15520 = vmatprep.subr.bf16.mxu0 %v15519_v0  ;;  %v5554_v7 = vpop.f32.mrb[49].mxu1  ;;  %15607 = vmatprep.subr.bf16.mxu1 %v17146_v59  ;;  %7947 = vst [vmem:[#allocation3] sm:$0xff] %v17148_v60 }
 0x7d3   : > { %14835 = vmatprep.mubr.msk.f32.mxu1 %vm17147_vm4, %v17148_v60 }
 0x7d4   : > { %14654 = vmatmul.mubr.msk.f32.vlgmr.msra.gmra.mrb[156].mxu0 %vm4862_vm3, %v14641_v57 }
 0x7d5   : > { %15522 = vmatpush3.bf16.msra.mxu0 %v15519_v0  ;;  %14656 = vmatprep.mubr.msk.f32.mxu0 %vm4862_vm3, %v5357_v2  ;;  %v14672_v12 = vpop.f32.mrb[50].mxu1 }
 0x7d6   : > { %15524 = vmatprep.subr.bf16.mxu0 %v15523_v6  ;;  %v5564_v15 = vpop.f32.mrb[51].mxu1 }
 0x7d8   : > { %14657 = vmatmul.mubr.msk.f32.gmra.mrb[158].mxu0 %vm4862_vm3, %v14644_v63 }
 0x7d9   : > { %15526 = vmatpush3.bf16.msra.mxu0 %v15523_v6  ;;  %14681 = vmatprep.mubr.msk.f32.mxu0 %vm4862_vm3, %v5554_v7  ;;  %v14697_v19 = vpop.f32.mrb[52].mxu1 }
 0x7da   : > { %15536 = vmatprep.subr.bf16.mxu0 %v15535_v13  ;;  %v5761_v21 = vpop.f32.mrb[53].mxu1 }
 0x7dc   : > { %14682 = vmatmul.mubr.msk.f32.vlgmr.msra.gmra.mrb[156].mxu0 %vm4862_vm3, %v14669_v5 }
 0x7dd   : > { %15538 = vmatpush3.bf16.msra.mxu0 %v15535_v13  ;;  %14684 = vmatprep.mubr.msk.f32.mxu0 %vm4862_vm3, %v5564_v15  ;;  %v14700_v24 = vpop.f32.mrb[54].mxu1 }
 0x7de   : > { %15540 = vmatprep.subr.bf16.mxu0 %v15539_v20  ;;  %v5771_v26 = vpop.f32.mrb[55].mxu1 }
 0x7e0   : > { %14685 = vmatmul.mubr.msk.f32.gmra.mrb[158].mxu0 %vm4862_vm3, %v14672_v12 }
 0x7e1   : > { %15542 = vmatpush3.bf16.msra.mxu0 %v15539_v20  ;;  %14709 = vmatprep.mubr.msk.f32.mxu0 %vm4862_vm3, %v5761_v21  ;;  %v14725_v30 = vpop.f32.mrb[56].mxu1  ;;  %v7033_v20 = vld [vmem:[#allocation19 + $0x8] sm:$0x3]  ;;  %v6955_v21 = vld [vmem:[#allocation19 + $0x6] sm:$0x3] }
 0x7e2   : > { %15552 = vmatprep.subr.bf16.mxu0 %v15551_v25  ;;  %v5968_v31 = vpop.f32.mrb[57].mxu1 }
 0x7e4   : > { %14710 = vmatmul.mubr.msk.f32.vlgmr.msra.gmra.mrb[156].mxu0 %vm4862_vm3, %v14697_v19  ;;  %v6803_v19 = vld [vmem:[#allocation19 + $0x2] sm:$0x3] }
 0x7e5   : > { %15554 = vmatpush3.bf16.msra.mxu0 %v15551_v25  ;;  %14712 = vmatprep.mubr.msk.f32.mxu0 %vm4862_vm3, %v5771_v26  ;;  %v14728_v58 = vpop.f32.mrb[58].mxu1  ;;  %v7260_v25 = vld [vmem:[#allocation19 + $0xe] sm:$0x3]  ;;  %v7489_v26 = vld [vmem:[#allocation19 + $0x14] sm:$0x3] }
 0x7e6   : > { %15556 = vmatprep.subr.bf16.mxu0 %v15555_v44  ;;  %v5978_v1 = vpop.f32.mrb[59].mxu1 }
 0x7e8   : > { %14713 = vmatmul.mubr.msk.f32.gmra.mrb[158].mxu0 %vm4862_vm3, %v14700_v24  ;;  %v7338_v24 = vld [vmem:[#allocation19 + $0x10] sm:$0x3] }
 0x7e9   : > { %15558 = vmatpush3.bf16.msra.mxu0 %v15555_v44  ;;  %14737 = vmatprep.mubr.msk.f32.mxu0 %vm4862_vm3, %v5968_v31  ;;  %v14753_v36 = vpop.f32.mrb[60].mxu1  ;;  %v7794_v44 = vld [vmem:[#allocation19 + $0x1c] sm:$0x3]  ;;  %v7718_v31 = vld [vmem:[#allocation19 + $0x1a] sm:$0x3] }
 0x7ea   : > { %15568 = vmatprep.subr.bf16.mxu0 %v15567_v33  ;;  %v6175_v37 = vpop.f32.mrb[61].mxu1 }
 0x7ec   : > { %14738 = vmatmul.mubr.msk.f32.vlgmr.msra.gmra.mrb[156].mxu0 %vm4862_vm3, %v14725_v30  ;;  %v7565_v30 = vld [vmem:[#allocation19 + $0x16] sm:$0x3] }
 0x7ed   : > { %15570 = vmatpush3.bf16.msra.mxu0 %v15567_v33  ;;  %14740 = vmatprep.mubr.msk.f32.mxu0 %vm4862_vm3, %v5978_v1  ;;  %v14756_v40 = vpop.f32.mrb[62].mxu1 }
 0x7ee   : > { %15572 = vmatprep.subr.bf16.mxu0 %v15571_v8  ;;  %v6185_v42 = vpop.f32.mrb[63].mxu1 }
 0x7f0   : > { %14741 = vmatmul.mubr.msk.f32.gmra.mrb[158].mxu0 %vm4862_vm3, %v14728_v58 }
 0x7f1   : > { %15574 = vmatpush3.bf16.msra.mxu0 %v15571_v8  ;;  %14765 = vmatprep.mubr.msk.f32.mxu0 %vm4862_vm3, %v6175_v37  ;;  %v14781_v28 = vpop.f32.mrb[64].mxu1 }
 0x7f2   : > { %15584 = vmatprep.subr.bf16.mxu0 %v15583_v41  ;;  %v6382_v46 = vpop.f32.mrb[65].mxu1 }
 0x7f4   : > { %14766 = vmatmul.mubr.msk.f32.vlgmr.msra.gmra.mrb[156].mxu0 %vm4862_vm3, %v14753_v36 }
 0x7f5   : > { %15586 = vmatpush3.bf16.msra.mxu0 %v15583_v41  ;;  %14768 = vmatprep.mubr.msk.f32.mxu0 %vm4862_vm3, %v6185_v42  ;;  %v14784_v49 = vpop.f32.mrb[66].mxu1 }
 0x7f6   : > { %15588 = vmatprep.subr.bf16.mxu0 %v15587_v45  ;;  %v6392_v50 = vpop.f32.mrb[67].mxu1 }
 0x7f8   : > { %14769 = vmatmul.mubr.msk.f32.gmra.mrb[158].mxu0 %vm4862_vm3, %v14756_v40 }
 0x7f9   : > { %15590 = vmatpush3.bf16.msra.mxu0 %v15587_v45  ;;  %14793 = vmatprep.mubr.msk.f32.mxu0 %vm4862_vm3, %v6382_v46  ;;  %v14809_v54 = vpop.f32.mrb[68].mxu1 }
 0x7fa   : > { %15600 = vmatprep.subr.bf16.mxu0 %v15599_v14  ;;  %v6589_v56 = vpop.f32.mrb[69].mxu1 }
 0x7fc   : > { %14794 = vmatmul.mubr.msk.f32.vlgmr.msra.gmra.mrb[156].mxu0 %vm4862_vm3, %v14781_v28 }
 0x7fd   : > { %15602 = vmatpush3.bf16.msra.mxu0 %v15599_v14  ;;  %14796 = vmatprep.mubr.msk.f32.mxu0 %vm4862_vm3, %v6392_v50  ;;  %v14812_v17 = vpop.f32.mrb[70].mxu1 }
 0x7fe   : > { %15604 = vmatprep.subr.bf16.mxu0 %v15603_v55  ;;  %v6599_v57 = vpop.f32.mrb[71].mxu1 }
 0x800   : > { %14797 = vmatmul.mubr.msk.f32.gmra.mrb[158].mxu0 %vm4862_vm3, %v14784_v49 }
 0x801   : > { %15606 = vmatpush3.bf16.msra.mxu0 %v15603_v55  ;;  %14821 = vmatprep.mubr.msk.f32.mxu0 %vm4862_vm3, %v6589_v56 }
 0x802   : > { %15619 = vmatprep.subr.bf16.mxu0 %v17146_v59 }
 0x804   : > { %14822 = vmatmul.mubr.msk.f32.vlgmr.msra.gmra.mrb[156].mxu0 %vm4862_vm3, %v14809_v54 }
 0x805   : > { %14824 = vmatprep.mubr.msk.f32.mxu0 %vm4862_vm3, %v6599_v57 }
 0x808   : > { %14825 = vmatmul.mubr.msk.f32.gmra.mrb[158].mxu0 %vm4862_vm3, %v14812_v17 }
 0x809   : > { %14857 = vmatprep.mubr.msk.f32.mxu0 %vm17147_vm4, %v17148_v60 }
 0x8d7   : > { %v14823_v62 = vpop.f32.mrb[156].mxu0 }
 0x8d8   : > { %v6721_v63 = vadd.f32 %v14823_v62, %v12353_v61  ;;  %v6690_v0 = vpop.f32.mrb[157].mxu0 }
 0x8d9   : > { %v6720_v2 = vadd.f32 %v12353_v61, %v6690_v0 }
 0x8da   : > { %v6725_v3 = vmax.f32 %v6721_v63, 0.0 }
 0x8db   : > { %v6724_v4 = vmax.f32 %v6720_v2, 0.0  ;;  %v14826_v5 = vpop.f32.mrb[158].mxu0 }
 0x8dc   : > { %v6723_v6 = vadd.f32 %v14826_v5, %v12353_v61  ;;  %v6700_v7 = vpop.f32.mrb[159].mxu0 }
 0x8dd   : > { %v18567_v9 = vpack.c.bf16 %v6725_v3, %v6724_v4  ;;  %v6722_v10 = vadd.f32 %v12353_v61, %v6700_v7 }
 0x8de   : > { %v6727_v12 = vmax.f32 %v6723_v6, 0.0 }
 0x8df   : > { %v6726_v13 = vmax.f32 %v6722_v10, 0.0  ;;  %15609 = vmatpush3.bf16.msra.mxu1 %v18567_v9  ;;  %15621 = vmatpush3.bf16.msra.mxu0 %v18567_v9 }
 0x8e0   : > { %15610 = vmatprep.subr.bf16.mxu1 %v17146_v59  ;;  %15622 = vmatprep.subr.bf16.mxu0 %v17146_v59 }
 0x8e1   : > { %v18573_v15 = vpack.c.bf16 %v6727_v12, %v6726_v13 }
 0x8e3   : > { %15612 = vmatpush3.bf16.msra.mxu1 %v18573_v15  ;;  %15624 = vmatpush3.bf16.msra.mxu0 %v18573_v15 }
 0x8e4   : > { %15613 = vmatprep.subr.bf16.mxu1 %v17146_v59  ;;  %15631 = vmatprep.subr.bf16.mxu0 %v17146_v59 }
 0x8e6   : > { %14836 = vmatmul.mubr.msk.f32.vlgmr.msra.gmra.mrb[72].mxu1 %vm4862_vm3, %v6728_v16  ;;  %14858 = vmatmul.mubr.msk.f32.vlgmr.msra.gmra.mrb[160].mxu0 %vm4862_vm3, %v6879_v18 }
 0x8e7   : > { %15615 = vmatpush3.bf16.msra.mxu1 %v18567_v9  ;;  %15633 = vmatpush3.bf16.msra.mxu0 %v18567_v9 }
 0x8e8   : > { %15616 = vmatprep.subr.bf16.mxu1 %v17146_v59  ;;  %15634 = vmatprep.subr.bf16.mxu0 %v17146_v59 }
 0x8e9   : > { %14846 = vmatprep.mubr.msk.f32.mxu1 %vm17147_vm4, %v17148_v60  ;;  %14879 = vmatprep.mubr.msk.f32.mxu0 %vm17147_vm4, %v17148_v60 }
 0x8eb   : > { %15618 = vmatpush3.bf16.msra.mxu1 %v18573_v15  ;;  %15636 = vmatpush3.bf16.msra.mxu0 %v18573_v15 }
 0x8ec   : > { %15625 = vmatprep.subr.bf16.mxu1 %v17146_v59  ;;  %15643 = vmatprep.subr.bf16.mxu0 %v17146_v59 }
 0x8ee   : > { %14847 = vmatmul.mubr.msk.f32.vlgmr.msra.gmra.mrb[74].mxu1 %vm4862_vm3, %v6803_v19  ;;  %14880 = vmatmul.mubr.msk.f32.vlgmr.msra.gmra.mrb[162].mxu0 %vm4862_vm3, %v7033_v20 }
 0x8ef   : > { %15627 = vmatpush3.bf16.msra.mxu1 %v18567_v9  ;;  %15645 = vmatpush3.bf16.msra.mxu0 %v18567_v9 }
 0x8f0   : > { %15628 = vmatprep.subr.bf16.mxu1 %v17146_v59  ;;  %15646 = vmatprep.subr.bf16.mxu0 %v17146_v59 }
 0x8f1   : > { %14868 = vmatprep.mubr.msk.f32.mxu1 %vm17147_vm4, %v17148_v60  ;;  %14901 = vmatprep.mubr.msk.f32.mxu0 %vm17147_vm4, %v17148_v60 }
 0x8f3   : > { %15630 = vmatpush3.bf16.msra.mxu1 %v18573_v15  ;;  %15648 = vmatpush3.bf16.msra.mxu0 %v18573_v15 }
 0x8f4   : > { %15637 = vmatprep.subr.bf16.mxu1 %v17146_v59  ;;  %15655 = vmatprep.subr.bf16.mxu0 %v17146_v59 }
 0x8f6   : > { %14869 = vmatmul.mubr.msk.f32.vlgmr.msra.gmra.mrb[76].mxu1 %vm4862_vm3, %v6955_v21  ;;  %14902 = vmatmul.mubr.msk.f32.vlgmr.msra.gmra.mrb[164].mxu0 %vm4862_vm3, %v7184_v22 }
 0x8f7   : > { %15639 = vmatpush3.bf16.msra.mxu1 %v18567_v9  ;;  %15657 = vmatpush3.bf16.msra.mxu0 %v18567_v9 }
 0x8f8   : > { %15640 = vmatprep.subr.bf16.mxu1 %v17146_v59  ;;  %15658 = vmatprep.subr.bf16.mxu0 %v17146_v59 }
 0x8f9   : > { %14890 = vmatprep.mubr.msk.f32.mxu1 %vm17147_vm4, %v17148_v60  ;;  %14923 = vmatprep.mubr.msk.f32.mxu0 %vm17147_vm4, %v17148_v60 }
 0x8fb   : > { %15642 = vmatpush3.bf16.msra.mxu1 %v18573_v15  ;;  %15660 = vmatpush3.bf16.msra.mxu0 %v18573_v15 }
 0x8fc   : > { %15649 = vmatprep.subr.bf16.mxu1 %v17146_v59  ;;  %15667 = vmatprep.subr.bf16.mxu0 %v17146_v59 }
 0x8fe   : > { %14891 = vmatmul.mubr.msk.f32.vlgmr.msra.gmra.mrb[78].mxu1 %vm4862_vm3, %v7108_v23  ;;  %14924 = vmatmul.mubr.msk.f32.vlgmr.msra.gmra.mrb[166].mxu0 %vm4862_vm3, %v7338_v24 }
 0x8ff   : > { %15651 = vmatpush3.bf16.msra.mxu1 %v18567_v9  ;;  %15669 = vmatpush3.bf16.msra.mxu0 %v18567_v9 }
 0x900   : > { %15652 = vmatprep.subr.bf16.mxu1 %v17146_v59  ;;  %15670 = vmatprep.subr.bf16.mxu0 %v17146_v59 }
 0x901   : > { %14912 = vmatprep.mubr.msk.f32.mxu1 %vm17147_vm4, %v17148_v60  ;;  %14945 = vmatprep.mubr.msk.f32.mxu0 %vm17147_vm4, %v17148_v60 }
 0x903   : > { %15654 = vmatpush3.bf16.msra.mxu1 %v18573_v15  ;;  %15672 = vmatpush3.bf16.msra.mxu0 %v18573_v15 }
 0x904   : > { %15661 = vmatprep.subr.bf16.mxu1 %v17146_v59  ;;  %15679 = vmatprep.subr.bf16.mxu0 %v17146_v59 }
 0x906   : > { %14913 = vmatmul.mubr.msk.f32.vlgmr.msra.gmra.mrb[80].mxu1 %vm4862_vm3, %v7260_v25  ;;  %14946 = vmatmul.mubr.msk.f32.vlgmr.msra.gmra.mrb[168].mxu0 %vm4862_vm3, %v7489_v26 }
 0x907   : > { %15663 = vmatpush3.bf16.msra.mxu1 %v18567_v9  ;;  %15681 = vmatpush3.bf16.msra.mxu0 %v18567_v9 }
 0x908   : > { %15664 = vmatprep.subr.bf16.mxu1 %v17146_v59  ;;  %15682 = vmatprep.subr.bf16.mxu0 %v17146_v59 }
 0x909   : > { %14934 = vmatprep.mubr.msk.f32.mxu1 %vm17147_vm4, %v17148_v60  ;;  %14967 = vmatprep.mubr.msk.f32.mxu0 %vm17147_vm4, %v17148_v60 }
 0x90b   : > { %15666 = vmatpush3.bf16.msra.mxu1 %v18573_v15  ;;  %15684 = vmatpush3.bf16.msra.mxu0 %v18573_v15 }
 0x90c   : > { %15673 = vmatprep.subr.bf16.mxu1 %v17146_v59  ;;  %15691 = vmatprep.subr.bf16.mxu0 %v17146_v59 }
 0x90e   : > { %14935 = vmatmul.mubr.msk.f32.vlgmr.msra.gmra.mrb[82].mxu1 %vm4862_vm3, %v7413_v27  ;;  %14968 = vmatmul.mubr.msk.f32.vlgmr.msra.gmra.mrb[170].mxu0 %vm4862_vm3, %v7643_v29 }
 0x90f   : > { %15675 = vmatpush3.bf16.msra.mxu1 %v18567_v9  ;;  %15693 = vmatpush3.bf16.msra.mxu0 %v18567_v9 }
 0x910   : > { %15676 = vmatprep.subr.bf16.mxu1 %v17146_v59  ;;  %15694 = vmatprep.subr.bf16.mxu0 %v17146_v59 }
 0x911   : > { %14956 = vmatprep.mubr.msk.f32.mxu1 %vm17147_vm4, %v17148_v60  ;;  %14989 = vmatprep.mubr.msk.f32.mxu0 %vm17147_vm4, %v17148_v60 }
 0x913   : > { %15678 = vmatpush3.bf16.msra.mxu1 %v18573_v15  ;;  %15696 = vmatpush3.bf16.msra.mxu0 %v18573_v15 }
 0x914   : > { %15685 = vmatprep.subr.bf16.mxu1 %v17146_v59 }
 0x916   : > { %14957 = vmatmul.mubr.msk.f32.vlgmr.msra.gmra.mrb[84].mxu1 %vm4862_vm3, %v7565_v30  ;;  %14990 = vmatmul.mubr.msk.f32.vlgmr.msra.gmra.mrb[172].mxu0 %vm4862_vm3, %v7794_v44 }
 0x917   : > { %15687 = vmatpush3.bf16.msra.mxu1 %v18567_v9  ;;  %14978 = vmatprep.mubr.msk.f32.mxu1 %vm17147_vm4, %v17148_v60 }
 0x918   : > { %15688 = vmatprep.subr.bf16.mxu1 %v17146_v59 }
 0x91b   : > { %15690 = vmatpush3.bf16.msra.mxu1 %v18573_v15 }
 0x91c   : > { %15697 = vmatprep.subr.bf16.mxu1 %v17146_v59 }
 0x91e   : > { %14979 = vmatmul.mubr.msk.f32.vlgmr.msra.gmra.mrb[86].mxu1 %vm4862_vm3, %v7718_v31 }
 0x91f   : > { %15699 = vmatpush3.bf16.msra.mxu1 %v18567_v9  ;;  %15000 = vmatprep.mubr.msk.f32.mxu1 %vm17147_vm4, %v17148_v60 }
 0x920   : > { %15700 = vmatprep.subr.bf16.mxu1 %v17146_v59 }
 0x923   : > { %15702 = vmatpush3.bf16.msra.mxu1 %v18573_v15 }
 0x926   : > { %15001 = vmatmul.mubr.msk.f32.vlgmr.msra.gmra.mrb[88].mxu1 %vm4862_vm3, %v7870_v51 }
 0x9b9   : > { %v6798_v32 = vpop.f32.mrb[72].mxu1  ;;  %v6949_v58 = vpop.f32.mrb[160].mxu0 }
 0x9ba   : > { %v14837_v33 = vpop.f32.mrb[73].mxu1  ;;  %v14859_v1 = vpop.f32.mrb[161].mxu0 }
 0x9c1   : > { %v6873_v34 = vpop.f32.mrb[74].mxu1  ;;  %v7103_v35 = vpop.f32.mrb[162].mxu0 }
 0x9c2   : > { %v6877_v36 = vmax.f32 %v6798_v32, %v6873_v34  ;;  %v14848_v8 = vpop.f32.mrb[75].mxu1  ;;  %v14881_v37 = vpop.f32.mrb[163].mxu0 }
 0x9c4   : > { %v6953_v38 = vmax.f32 %v6877_v36, %v6949_v58 }
 0x9c9   : > { %v7025_v39 = vpop.f32.mrb[76].mxu1  ;;  %v7254_v40 = vpop.f32.mrb[164].mxu0 }
 0x9ca   : > { %v7029_v41 = vmax.f32 %v6953_v38, %v7025_v39  ;;  %v14870_v42 = vpop.f32.mrb[77].mxu1  ;;  %v14903_v43 = vpop.f32.mrb[165].mxu0 }
 0x9cc   : > { %7031 = vst.msk [vmem:[#allocation2] sm:$0x3] %vm7030_vm5, %v7029_v41 }
 0x9d1   : > { %v7178_v11 = vpop.f32.mrb[78].mxu1  ;;  %v7408_v28 = vpop.f32.mrb[166].mxu0 }
 0x9d2   : > { %v7182_v45 = vmax.f32 %v7103_v35, %v7178_v11  ;;  %v14892_v46 = vpop.f32.mrb[79].mxu1  ;;  %v14925_v47 = vpop.f32.mrb[167].mxu0 }
 0x9d4   : > { %v7258_v48 = vmax.f32 %v7182_v45, %v7254_v40 }
 0x9d9   : > { %v7330_v49 = vpop.f32.mrb[80].mxu1  ;;  %v7559_v14 = vpop.f32.mrb[168].mxu0 }
 0x9da   : > { %v7334_v50 = vmax.f32 %v7258_v48, %v7330_v49  ;;  %v14914_v52 = vpop.f32.mrb[81].mxu1  ;;  %v14947_v53 = vpop.f32.mrb[169].mxu0 }
 0x9dc   : > { %7336 = vst.msk [vmem:[#allocation2 + $0x2] sm:$0x3] %vm7030_vm5, %v7334_v50 }
 0x9e1   : > { %v7483_v54 = vpop.f32.mrb[82].mxu1  ;;  %v7713_v55 = vpop.f32.mrb[170].mxu0 }
 0x9e2   : > { %v7487_v56 = vmax.f32 %v7408_v28, %v7483_v54  ;;  %v14936_v17 = vpop.f32.mrb[83].mxu1  ;;  %v14969_v57 = vpop.f32.mrb[171].mxu0 }
 0x9e4   : > { %v7563_v59 = vmax.f32 %v7487_v56, %v7559_v14 }
 0x9e9   : > { %v7635_v60 = vpop.f32.mrb[84].mxu1  ;;  %v7864_v61 = vpop.f32.mrb[172].mxu0 }
 0x9ea   : > { %v7639_v62 = vmax.f32 %v7563_v59, %v7635_v60  ;;  %v14958_v63 = vpop.f32.mrb[85].mxu1  ;;  %v14991_v0 = vpop.f32.mrb[173].mxu0 }
 0x9ec   : > { %7641 = vst.msk [vmem:[#allocation2 + $0x4] sm:$0x3] %vm7030_vm5, %v7639_v62 }
 0x9f1   : > { %v7788_v2 = vpop.f32.mrb[86].mxu1 }
 0x9f2   : > { %v7792_v3 = vmax.f32 %v7713_v55, %v7788_v2  ;;  %v14980_v4 = vpop.f32.mrb[87].mxu1 }
 0x9f4   : > { %v7868_v5 = vmax.f32 %v7792_v3, %v7864_v61 }
 0x9f9   : > { %v7940_v6 = vpop.f32.mrb[88].mxu1 }
 0x9fa   : > { %v7944_v7 = vmax.f32 %v7868_v5, %v7940_v6  ;;  %v15002_v9 = vpop.f32.mrb[89].mxu1 }
 0x9fc   : > { %7946 = vst.msk [vmem:[#allocation2 + $0x6] sm:$0x3] %vm7030_vm5, %v7944_v7 }
 0x9fd PF: > { %v7985_v10 = vld [vmem:[%s17715_s24 + $0x100] sm:$0xff]  ;;  %v7986_v13 = vld [vmem:[%s17715_s24 + $0x108] sm:$0xff]  ;;  %v17149_v21 = vmov 0   ;;  %v7987_v40 = vld [vmem:[%s17715_s24 + $0x110] sm:$0xff]  ;;  %vm8177_vm6 = vcmask 523264   ;;  %p12770_p10 = scmp.ne.s32.totalorder %s17280_s3, 3 }
 0x9fe   : > { %v7989_v12 = vld [vmem:[%s17715_s24 + $0x120] sm:$0xff]  ;;  %v7990_v16 = vld [vmem:[%s17715_s24 + $0x128] sm:$0xff]  ;;  %8213 = vmatprep.mubr.bf16.mxu0 %v17149_v21  ;;  %8254 = vmatprep.mubr.bf16.mxu1 %v17149_v21  ;;  %v7991_v41 = vld [vmem:[%s17715_s24 + $0x130] sm:$0xff]  ;;  %vm11388_vm7 = vcmask (!%p12770_p10), 1043456   ;;  %vm11384_vm8 = vcmask (!%p12770_p10), 162816  }
 0x9ff   : > { %v12371_v15 = vcombine.high %v7985_v10, %v7989_v12  ;;  %v12370_v18 = vcombine.low %v7985_v10, %v7989_v12  ;;  %v7993_v19 = vld [vmem:[%s17715_s24 + $0x140] sm:$0xff]  ;;  %v12373_v22 = vcombine.high %v7986_v13, %v7990_v16  ;;  %v12372_v23 = vcombine.low %v7986_v13, %v7990_v16  ;;  %v7994_v25 = vld [vmem:[%s17715_s24 + $0x148] sm:$0xff]  ;;  %v7988_v42 = vld [vmem:[%s17715_s24 + $0x118] sm:$0xff] }
 0xa00   : > { %v7997_v20 = vld [vmem:[%s17715_s24 + $0x160] sm:$0xff]  ;;  %v7998_v26 = vld [vmem:[%s17715_s24 + $0x168] sm:$0xff]  ;;  %v7992_v43 = vld [vmem:[%s17715_s24 + $0x138] sm:$0xff]  ;;  %v12375_v46 = vcombine.high %v7987_v40, %v7991_v41  ;;  %v12374_v53 = vcombine.low %v7987_v40, %v7991_v41 }
 0xa01   : > { %v12379_v24 = vcombine.high %v7993_v19, %v7997_v20  ;;  %v8001_v27 = vld [vmem:[%s17715_s24 + $0x180] sm:$0xff]  ;;  %8181 = vmatprep.subr.bf16.mxu0 %v12371_v15  ;;  %v12381_v29 = vcombine.high %v7994_v25, %v7998_v26  ;;  %v8002_v44 = vld [vmem:[%s17715_s24 + $0x188] sm:$0xff]  ;;  %8222 = vmatprep.subr.bf16.mxu1 %v12373_v22  ;;  %v12378_v51 = vcombine.low %v7993_v19, %v7997_v20  ;;  %v7983_v28 = vld [vmem:[#allocation2 + $0x2] sm:$0x3] }
 0xa02   : > { %v8005_v30 = vld [vmem:[%s17715_s24 + $0x1a0] sm:$0xff]  ;;  %v8006_v31 = vld [vmem:[%s17715_s24 + $0x1a8] sm:$0xff]  ;;  %8182 = vmatpush1.bf16.msra.mxu0 %v12370_v18  ;;  %8223 = vmatpush1.bf16.msra.mxu1 %v12372_v23  ;;  %v12380_v32 = vcombine.low %v7994_v25, %v7998_v26  ;;  %v12377_v47 = vcombine.high %v7988_v42, %v7992_v43  ;;  %v7995_v48 = vld [vmem:[%s17715_s24 + $0x150] sm:$0xff]  ;;  %v18705_v14 = vpack.c.bf16 %v7983_v28, %v7983_v28 }
 0xa03   : > { %8183 = vmatprep.subr.bf16.mxu0 %v12379_v24  ;;  %v12387_v58 = vcombine.high %v8001_v27, %v8005_v30  ;;  %8224 = vmatprep.subr.bf16.mxu1 %v12381_v29  ;;  %v12389_v33 = vcombine.high %v8002_v44, %v8006_v31  ;;  %v8009_v1 = vld [vmem:[%s17715_s24 + $0x1c0] sm:$0xff]  ;;  %v8010_v35 = vld [vmem:[%s17715_s24 + $0x1c8] sm:$0xff]  ;;  %v12386_v8 = vcombine.low %v8001_v27, %v8005_v30  ;;  %v7999_v49 = vld [vmem:[%s17715_s24 + $0x170] sm:$0xff] }
 0xa04   : > { %v8013_v34 = vld [vmem:[%s17715_s24 + $0x1e0] sm:$0xff]  ;;  %v8014_v36 = vld [vmem:[%s17715_s24 + $0x1e8] sm:$0xff]  ;;  %v12388_v37 = vcombine.low %v8002_v44, %v8006_v31  ;;  %v7996_v50 = vld [vmem:[%s17715_s24 + $0x158] sm:$0xff]  ;;  %v12376_v54 = vcombine.low %v7988_v42, %v7992_v43  ;;  %v12383_v55 = vcombine.high %v7995_v48, %v7999_v49  ;;  %v12382_v61 = vcombine.low %v7995_v48, %v7999_v49 }
 0xa05   : > { %v12395_v38 = vcombine.high %v8009_v1, %v8013_v34  ;;  %v12397_v39 = vcombine.high %v8010_v35, %v8014_v36  ;;  %v12394_v11 = vcombine.low %v8009_v1, %v8013_v34  ;;  %v12396_v45 = vcombine.low %v8010_v35, %v8014_v36  ;;  %v8000_v52 = vld [vmem:[%s17715_s24 + $0x178] sm:$0xff]  ;;  %v8003_v17 = vld [vmem:[%s17715_s24 + $0x190] sm:$0xff]  ;;  %v7950_v12 = vld [vmem:[%s17715_s24] sm:$0xff] }
 0xa06   : > { %8184 = vmatpush1.bf16.msra.mxu0 %v12378_v51  ;;  %8225 = vmatpush1.bf16.msra.mxu1 %v12380_v32  ;;  %v12385_v56 = vcombine.high %v7996_v50, %v8000_v52  ;;  %v8007_v57 = vld [vmem:[%s17715_s24 + $0x1b0] sm:$0xff]  ;;  %v8004_v59 = vld [vmem:[%s17715_s24 + $0x198] sm:$0xff]  ;;  %v12384_v62 = vcombine.low %v7996_v50, %v8000_v52  ;;  %v7954_v13 = vld [vmem:[%s17715_s24 + $0x20] sm:$0xff] }
 0xa07   : > { %8185 = vmatprep.subr.bf16.mxu0 %v12387_v58  ;;  %8226 = vmatprep.subr.bf16.mxu1 %v12389_v33  ;;  %v8008_v60 = vld [vmem:[%s17715_s24 + $0x1b8] sm:$0xff]  ;;  %v12391_v63 = vcombine.high %v8003_v17, %v8007_v57  ;;  %v8011_v2 = vld [vmem:[%s17715_s24 + $0x1d0] sm:$0xff]  ;;  %v12390_v6 = vcombine.low %v8003_v17, %v8007_v57  ;;  %v7951_v15 = vld [vmem:[%s17715_s24 + $0x8] sm:$0xff]  ;;  %v12407_v20 = vcombine.high %v7950_v12, %v7954_v13 }
 0xa08   : > { %v12393_v0 = vcombine.high %v8004_v59, %v8008_v60  ;;  %v8015_v3 = vld [vmem:[%s17715_s24 + $0x1f0] sm:$0xff]  ;;  %v8012_v4 = vld [vmem:[%s17715_s24 + $0x1d8] sm:$0xff]  ;;  %v12392_v7 = vcombine.low %v8004_v59, %v8008_v60  ;;  %v7955_v16 = vld [vmem:[%s17715_s24 + $0x28] sm:$0xff]  ;;  %v12406_v27 = vcombine.low %v7950_v12, %v7954_v13 }
 0xa09   : > { %v8016_v5 = vld [vmem:[%s17715_s24 + $0x1f8] sm:$0xff]  ;;  %v12399_v9 = vcombine.high %v8011_v2, %v8015_v3  ;;  %v12398_v18 = vcombine.low %v8011_v2, %v8015_v3  ;;  %v12409_v22 = vcombine.high %v7951_v15, %v7955_v16  ;;  %v7958_v23 = vld [vmem:[%s17715_s24 + $0x40] sm:$0xff]  ;;  %v7959_v25 = vld [vmem:[%s17715_s24 + $0x48] sm:$0xff]  ;;  %v12408_v29 = vcombine.low %v7951_v15, %v7955_v16 }
 0xa0a   : > { %8186 = vmatpush1.bf16.msra.mxu0 %v12386_v8  ;;  %8227 = vmatpush1.bf16.msra.mxu1 %v12388_v37  ;;  %v12401_v10 = vcombine.high %v8012_v4, %v8016_v5  ;;  %v12400_v19 = vcombine.low %v8012_v4, %v8016_v5  ;;  %v7962_v24 = vld [vmem:[%s17715_s24 + $0x60] sm:$0xff]  ;;  %v7963_v26 = vld [vmem:[%s17715_s24 + $0x68] sm:$0xff]  ;;  %v7952_v43 = vld [vmem:[%s17715_s24 + $0x10] sm:$0xff] }
 0xa0b   : > { %8187 = vmatprep.subr.bf16.mxu0 %v12395_v38  ;;  %8228 = vmatprep.subr.bf16.mxu1 %v12397_v39  ;;  %v12415_v30 = vcombine.high %v7958_v23, %v7962_v24  ;;  %v12417_v44 = vcombine.high %v7959_v25, %v7963_v26  ;;  %v7966_v31 = vld [vmem:[%s17715_s24 + $0x80] sm:$0xff]  ;;  %v7967_v32 = vld [vmem:[%s17715_s24 + $0x88] sm:$0xff]  ;;  %v12414_v33 = vcombine.low %v7958_v23, %v7962_v24  ;;  %v7948_v28 = vld [vmem:[#allocation2] sm:$0x3] }
 0xa0c   : > { %v7970_v51 = vld [vmem:[%s17715_s24 + $0xa0] sm:$0xff]  ;;  %v7971_v58 = vld [vmem:[%s17715_s24 + $0xa8] sm:$0xff]  ;;  %v12416_v1 = vcombine.low %v7959_v25, %v7963_v26  ;;  %v7960_v48 = vld [vmem:[%s17715_s24 + $0x50] sm:$0xff] }
 0xa0d   : > { %v12423_v34 = vcombine.high %v7966_v31, %v7970_v51  ;;  %v12425_v35 = vcombine.high %v7967_v32, %v7971_v58  ;;  %v7974_v36 = vld [vmem:[%s17715_s24 + $0xc0] sm:$0xff]  ;;  %v7975_v37 = vld [vmem:[%s17715_s24 + $0xc8] sm:$0xff]  ;;  %v12422_v39 = vcombine.low %v7966_v31, %v7970_v51  ;;  %v12424_v40 = vcombine.low %v7967_v32, %v7971_v58  ;;  %v7964_v49 = vld [vmem:[%s17715_s24 + $0x70] sm:$0xff] }
 0xa0e   : > { %8188 = vmatpush1.bf16.msra.mxu0 %v12394_v11  ;;  %8229 = vmatpush1.bf16.msra.mxu1 %v12396_v45  ;;  %v7978_v8 = vld [vmem:[%s17715_s24 + $0xe0] sm:$0xff]  ;;  %v7979_v38 = vld [vmem:[%s17715_s24 + $0xe8] sm:$0xff]  ;;  %v7956_v11 = vld [vmem:[%s17715_s24 + $0x30] sm:$0xff]  ;;  %v12419_v60 = vcombine.high %v7960_v48, %v7964_v49 }
 0xa0f   : > { %8263 = vmatprep.subr.bf16.mxu0 %v12375_v46  ;;  %8304 = vmatprep.subr.bf16.mxu1 %v12377_v47  ;;  %v12431_v41 = vcombine.high %v7974_v36, %v7978_v8  ;;  %v12433_v42 = vcombine.high %v7975_v37, %v7979_v38  ;;  %v7953_v45 = vld [vmem:[%s17715_s24 + $0x18] sm:$0xff]  ;;  %v12430_v47 = vcombine.low %v7974_v36, %v7978_v8  ;;  %v7968_v17 = vld [vmem:[%s17715_s24 + $0x90] sm:$0xff]  ;;  %v8675_v12 = vld [vmem:[%s17715_s24 + $0x200] sm:$0xff] }
 0xa10   : > { %v7957_v46 = vld [vmem:[%s17715_s24 + $0x38] sm:$0xff]  ;;  %v12411_v50 = vcombine.high %v7952_v43, %v7956_v11  ;;  %v7972_v57 = vld [vmem:[%s17715_s24 + $0xb0] sm:$0xff]  ;;  %v8679_v13 = vld [vmem:[%s17715_s24 + $0x220] sm:$0xff] }
 0xa11   : > { %12402 = vmatmul.mubr.msk.bf16.vlgmr.msra.gmra.mrb[0].mxu0 %vm8177_vm6, %v18705_v14  ;;  %12403 = vmatmul.mubr.msk.bf16.vlgmr.msra.gmra.mrb[0].mxu1 %vm8177_vm6, %v18705_v14  ;;  %v7961_v52 = vld [vmem:[%s17715_s24 + $0x58] sm:$0xff]  ;;  %v12412_v59 = vcombine.low %v7953_v45, %v7957_v46  ;;  %v7976_v2 = vld [vmem:[%s17715_s24 + $0xd0] sm:$0xff]  ;;  %v12427_v5 = vcombine.high %v7968_v17, %v7972_v57  ;;  %v8683_v23 = vld [vmem:[%s17715_s24 + $0x240] sm:$0xff]  ;;  %v12443_v26 = vcombine.high %v8675_v12, %v8679_v13 }
 0xa12   : > { %8264 = vmatpush1.bf16.msra.mxu0 %v12374_v53  ;;  %8305 = vmatpush1.bf16.msra.mxu1 %v12376_v54  ;;  %v7965_v53 = vld [vmem:[%s17715_s24 + $0x78] sm:$0xff]  ;;  %v12413_v54 = vcombine.high %v7953_v45, %v7957_v46  ;;  %v7980_v3 = vld [vmem:[%s17715_s24 + $0xf0] sm:$0xff]  ;;  %v8687_v24 = vld [vmem:[%s17715_s24 + $0x260] sm:$0xff] }
 0xa13   : > { %8265 = vmatprep.subr.bf16.mxu0 %v12383_v55  ;;  %8306 = vmatprep.subr.bf16.mxu1 %v12385_v56  ;;  %v18753_v55 = vpack.c.bf16 %v7948_v28, %v7948_v28  ;;  %v12410_v56 = vcombine.low %v7952_v43, %v7956_v11  ;;  %v12420_v4 = vcombine.low %v7961_v52, %v7965_v53  ;;  %v8691_v31 = vld [vmem:[%s17715_s24 + $0x280] sm:$0xff]  ;;  %v8677_v43 = vld [vmem:[%s17715_s24 + $0x210] sm:$0xff]  ;;  %v8678_v46 = vld [vmem:[%s17715_s24 + $0x218] sm:$0xff] }
 0xa14   : > { %8295 = vmatprep.mubr.bf16.mxu0 %v17149_v21  ;;  %8336 = vmatprep.mubr.bf16.mxu1 %v17149_v21  ;;  %v12435_v16 = vcombine.high %v7976_v2, %v7980_v3  ;;  %v8695_v51 = vld [vmem:[%s17715_s24 + $0x2a0] sm:$0xff]  ;;  %v12451_v58 = vcombine.high %v8683_v23, %v8687_v24  ;;  %v8681_v11 = vld [vmem:[%s17715_s24 + $0x230] sm:$0xff] }
 0xa15   : > { %v8699_v36 = vld [vmem:[%s17715_s24 + $0x2c0] sm:$0xff] }
 0xa16   : > { %8266 = vmatpush1.bf16.msra.mxu0 %v12382_v61  ;;  %8307 = vmatpush1.bf16.msra.mxu1 %v12384_v62  ;;  %v7969_v61 = vld [vmem:[%s17715_s24 + $0x98] sm:$0xff]  ;;  %v8703_v8 = vld [vmem:[%s17715_s24 + $0x2e0] sm:$0xff] }
 0xa17   : > { %8267 = vmatprep.subr.bf16.mxu0 %v12391_v63  ;;  %8308 = vmatprep.subr.bf16.mxu1 %v12393_v0  ;;  %v7973_v62 = vld [vmem:[%s17715_s24 + $0xb8] sm:$0xff]  ;;  %v12421_v63 = vcombine.high %v7961_v52, %v7965_v53  ;;  %v12418_v0 = vcombine.low %v7960_v48, %v7964_v49  ;;  %v12467_v45 = vcombine.high %v8699_v36, %v8703_v8  ;;  %v8673_v49 = vld [vmem:[#allocation2 + $0x4] sm:$0x3] }
 0xa18   : > { %v12428_v15 = vcombine.low %v7969_v61, %v7973_v62  ;;  %v8689_v52 = vld [vmem:[%s17715_s24 + $0x270] sm:$0xff] }
 0xa1a   : > { %8268 = vmatpush1.bf16.msra.mxu0 %v12390_v6  ;;  %8309 = vmatpush1.bf16.msra.mxu1 %v12392_v7  ;;  %v7977_v6 = vld [vmem:[%s17715_s24 + $0xd8] sm:$0xff] }
 0xa1b   : > { %8269 = vmatprep.subr.bf16.mxu0 %v12399_v9  ;;  %8310 = vmatprep.subr.bf16.mxu1 %v12401_v10  ;;  %v7981_v7 = vld [vmem:[%s17715_s24 + $0xf8] sm:$0xff]  ;;  %v12429_v9 = vcombine.high %v7969_v61, %v7973_v62  ;;  %v12426_v10 = vcombine.low %v7968_v17, %v7972_v57  ;;  %v18799_v57 = vpack.c.bf16 %v8673_v49, %v8673_v49  ;;  %v8697_v61 = vld [vmem:[%s17715_s24 + $0x2b0] sm:$0xff] }
 0xa1c   : > { %v12436_v25 = vcombine.low %v7977_v6, %v7981_v7  ;;  %v9048_v49 = vld [vmem:[%s17715_s24 + $0x318] sm:$0xff] }
 0xa1e   : > { %8270 = vmatpush1.bf16.msra.mxu0 %v12398_v18  ;;  %8311 = vmatpush1.bf16.msra.mxu1 %v12400_v19  ;;  %v8676_v18 = vld [vmem:[%s17715_s24 + $0x208] sm:$0xff] }
 0xa1f   : > { %8508 = vmatprep.subr.bf16.mxu0 %v12407_v20  ;;  %8549 = vmatprep.subr.bf16.mxu1 %v12409_v22  ;;  %v8680_v19 = vld [vmem:[%s17715_s24 + $0x228] sm:$0xff]  ;;  %v12437_v20 = vcombine.high %v7977_v6, %v7981_v7  ;;  %v12434_v22 = vcombine.low %v7976_v2, %v7980_v3  ;;  %v8698_v2 = vld [vmem:[%s17715_s24 + $0x2b8] sm:$0xff]  ;;  %v8705_v6 = vld [vmem:[%s17715_s24 + $0x2f0] sm:$0xff] }
 0xa20   : > { %v12444_v32 = vcombine.low %v8676_v18, %v8680_v19 }
 0xa21   : > { %12404 = vmatmul.mubr.msk.bf16.vlgmr.msra.gmra.mrb[4].mxu0 %vm8177_vm6, %v18705_v14  ;;  %12405 = vmatmul.mubr.msk.bf16.vlgmr.msra.gmra.mrb[4].mxu1 %vm8177_vm6, %v18705_v14  ;;  %v12432_v14 = vcombine.low %v7975_v37, %v7979_v38  ;;  %v12459_v38 = vcombine.high %v8691_v31, %v8695_v51 }
 0xa22   : > { %8509 = vmatpush1.bf16.msra.mxu0 %v12406_v27  ;;  %8550 = vmatpush1.bf16.msra.mxu1 %v12408_v29  ;;  %v8684_v27 = vld [vmem:[%s17715_s24 + $0x248] sm:$0xff] }
 0xa23   : > { %8510 = vmatprep.subr.bf16.mxu0 %v12415_v30  ;;  %8551 = vmatprep.subr.bf16.mxu1 %v12417_v44  ;;  %v8688_v29 = vld [vmem:[%s17715_s24 + $0x268] sm:$0xff]  ;;  %v12445_v30 = vcombine.high %v8676_v18, %v8680_v19  ;;  %v12442_v44 = vcombine.low %v8675_v12, %v8679_v13  ;;  %v8706_v12 = vld [vmem:[%s17715_s24 + $0x2f8] sm:$0xff]  ;;  %v9049_v18 = vld [vmem:[%s17715_s24 + $0x320] sm:$0xff] }
 0xa24   : > { %8540 = vmatprep.mubr.bf16.mxu0 %v17149_v21  ;;  %8581 = vmatprep.mubr.bf16.mxu1 %v17149_v21  ;;  %v12452_v37 = vcombine.low %v8684_v27, %v8688_v29 }
 0xa26   : > { %8511 = vmatpush1.bf16.msra.mxu0 %v12414_v33  ;;  %8552 = vmatpush1.bf16.msra.mxu1 %v12416_v1  ;;  %v8692_v33 = vld [vmem:[%s17715_s24 + $0x288] sm:$0xff] }
 0xa27   : > { %8512 = vmatprep.subr.bf16.mxu0 %v12423_v34  ;;  %8553 = vmatprep.subr.bf16.mxu1 %v12425_v35  ;;  %v8696_v1 = vld [vmem:[%s17715_s24 + $0x2a8] sm:$0xff]  ;;  %v12453_v34 = vcombine.high %v8684_v27, %v8688_v29  ;;  %v12450_v35 = vcombine.low %v8683_v23, %v8687_v24  ;;  %v9057_v27 = vld [vmem:[%s17715_s24 + $0x360] sm:$0xff] }
 0xa28   : > { %v12460_v28 = vcombine.low %v8692_v33, %v8696_v1  ;;  %v9050_v23 = vld [vmem:[%s17715_s24 + $0x328] sm:$0xff] }
 0xa2a   : > { %8513 = vmatpush1.bf16.msra.mxu0 %v12422_v39  ;;  %8554 = vmatpush1.bf16.msra.mxu1 %v12424_v40  ;;  %v8700_v39 = vld [vmem:[%s17715_s24 + $0x2c8] sm:$0xff] }
 0xa2b   : > { %8514 = vmatprep.subr.bf16.mxu0 %v12431_v41  ;;  %8555 = vmatprep.subr.bf16.mxu1 %v12433_v42  ;;  %v8704_v40 = vld [vmem:[%s17715_s24 + $0x2e8] sm:$0xff]  ;;  %v12461_v41 = vcombine.high %v8692_v33, %v8696_v1  ;;  %v12458_v42 = vcombine.low %v8691_v31, %v8695_v51  ;;  %v9065_v33 = vld [vmem:[%s17715_s24 + $0x3a0] sm:$0xff] }
 0xa2c   : > { %v12469_v48 = vcombine.high %v8700_v39, %v8704_v40  ;;  %v12468_v53 = vcombine.low %v8700_v39, %v8704_v40  ;;  %v9058_v31 = vld [vmem:[%s17715_s24 + $0x368] sm:$0xff]  ;;  %v9073_v39 = vld [vmem:[%s17715_s24 + $0x3e0] sm:$0xff] }
 0xa2e   : > { %8515 = vmatpush1.bf16.msra.mxu0 %v12430_v47  ;;  %8556 = vmatpush1.bf16.msra.mxu1 %v12432_v14  ;;  %v8682_v47 = vld [vmem:[%s17715_s24 + $0x238] sm:$0xff]  ;;  %v12466_v14 = vcombine.low %v8699_v36, %v8703_v8  ;;  %v9066_v36 = vld [vmem:[%s17715_s24 + $0x3a8] sm:$0xff] }
 0xa2f   : > { %8590 = vmatprep.subr.bf16.mxu0 %v12411_v50  ;;  %8631 = vmatprep.subr.bf16.mxu1 %v12413_v54  ;;  %v8685_v50 = vld [vmem:[%s17715_s24 + $0x250] sm:$0xff]  ;;  %v12447_v54 = vcombine.high %v8677_v43, %v8681_v11  ;;  %v12449_v17 = vcombine.high %v8678_v46, %v8682_v47  ;;  %v12448_v62 = vcombine.low %v8678_v46, %v8682_v47 }
 0xa30   : > { %v9051_v46 = vld [vmem:[%s17715_s24 + $0x330] sm:$0xff] }
 0xa31   : > { %12438 = vmatmul.mubr.msk.bf16.vlgmr.msra.gmra.mrb[8].mxu0 %vm8177_vm6, %v18753_v55  ;;  %12439 = vmatmul.mubr.msk.bf16.vlgmr.msra.gmra.mrb[8].mxu1 %vm8177_vm6, %v18753_v55 }
 0xa32   : > { %8591 = vmatpush1.bf16.msra.mxu0 %v12410_v56  ;;  %8632 = vmatpush1.bf16.msra.mxu1 %v12412_v59  ;;  %v8690_v56 = vld [vmem:[%s17715_s24 + $0x278] sm:$0xff]  ;;  %v12446_v59 = vcombine.low %v8677_v43, %v8681_v11  ;;  %v9074_v43 = vld [vmem:[%s17715_s24 + $0x3e8] sm:$0xff] }
 0xa33   : > { %8592 = vmatprep.subr.bf16.mxu0 %v12419_v60  ;;  %8633 = vmatprep.subr.bf16.mxu1 %v12421_v63  ;;  %v8693_v60 = vld [vmem:[%s17715_s24 + $0x290] sm:$0xff]  ;;  %v12455_v63 = vcombine.high %v8685_v50, %v8689_v52 }
 0xa34   : > { %8622 = vmatprep.mubr.bf16.mxu0 %v17149_v21  ;;  %8663 = vmatprep.mubr.bf16.mxu1 %v17149_v21 }
 0xa36   : > { %8593 = vmatpush1.bf16.msra.mxu0 %v12418_v0  ;;  %8634 = vmatpush1.bf16.msra.mxu1 %v12420_v4  ;;  %v8694_v0 = vld [vmem:[%s17715_s24 + $0x298] sm:$0xff]  ;;  %v12454_v4 = vcombine.low %v8685_v50, %v8689_v52  ;;  %v9043_v52 = vld [vmem:[#allocation2 + $0x6] sm:$0x3] }
 0xa37   : > { %8594 = vmatprep.subr.bf16.mxu0 %v12427_v5  ;;  %8635 = vmatprep.subr.bf16.mxu1 %v12429_v9  ;;  %v8701_v5 = vld [vmem:[%s17715_s24 + $0x2d0] sm:$0xff]  ;;  %v12463_v9 = vcombine.high %v8693_v60, %v8697_v61  ;;  %v12465_v13 = vcombine.high %v8694_v0, %v8698_v2  ;;  %v12464_v19 = vcombine.low %v8694_v0, %v8698_v2 }
 0xa38   : > { %v9067_v0 = vld [vmem:[%s17715_s24 + $0x3b0] sm:$0xff] }
 0xa3a   : > { %8595 = vmatpush1.bf16.msra.mxu0 %v12426_v10  ;;  %8636 = vmatpush1.bf16.msra.mxu1 %v12428_v15  ;;  %v8702_v10 = vld [vmem:[%s17715_s24 + $0x2d8] sm:$0xff]  ;;  %v12462_v15 = vcombine.low %v8693_v60, %v8697_v61  ;;  %v9044_v61 = vpack.c.bf16 %v9043_v52, %v9043_v52  ;;  %v16239_v52 = vld [vmem:[%s17728_s26 + $0x104] ss:$16 sps:$4 sm:$0xff]  }
 0xa3b   : > { %8596 = vmatprep.subr.bf16.mxu0 %v12435_v16  ;;  %8637 = vmatprep.subr.bf16.mxu1 %v12437_v20  ;;  %v9045_v16 = vld [vmem:[%s17715_s24 + $0x300] sm:$0xff]  ;;  %v12471_v20 = vcombine.high %v8701_v5, %v8705_v6  ;;  %v12473_v24 = vcombine.high %v8702_v10, %v8706_v12  ;;  %v12472_v29 = vcombine.low %v8702_v10, %v8706_v12  ;;  %v9075_v10 = vld [vmem:[%s17715_s24 + $0x3f0] sm:$0xff] }
 0xa3e   : > { %8597 = vmatpush1.bf16.msra.mxu0 %v12434_v22  ;;  %8638 = vmatpush1.bf16.msra.mxu1 %v12436_v25  ;;  %v9046_v22 = vld [vmem:[%s17715_s24 + $0x308] sm:$0xff]  ;;  %v12470_v25 = vcombine.low %v8701_v5, %v8705_v6  ;;  %v9068_v5 = vld [vmem:[%s17715_s24 + $0x3b8] sm:$0xff] }
 0xa3f   : > { %8870 = vmatprep.subr.bf16.mxu0 %v12443_v26  ;;  %8911 = vmatprep.subr.bf16.mxu1 %v12445_v30  ;;  %v9053_v26 = vld [vmem:[%s17715_s24 + $0x340] sm:$0xff]  ;;  %v12479_v30 = vcombine.high %v9045_v16, %v9049_v18  ;;  %v12481_v51 = vcombine.high %v9046_v22, %v9050_v23  ;;  %v12480_v1 = vcombine.low %v9046_v22, %v9050_v23 }
 0xa41   : > { %12440 = vmatmul.mubr.msk.bf16.vlgmr.msra.gmra.mrb[12].mxu0 %vm8177_vm6, %v18753_v55  ;;  %12441 = vmatmul.mubr.msk.bf16.vlgmr.msra.gmra.mrb[12].mxu1 %vm8177_vm6, %v18753_v55  ;;  %v8686_v55 = vld [vmem:[%s17715_s24 + $0x258] sm:$0xff] }
 0xa42   : > { %8871 = vmatpush1.bf16.msra.mxu0 %v12442_v44  ;;  %8912 = vmatpush1.bf16.msra.mxu1 %v12444_v32  ;;  %v12457_v3 = vcombine.high %v8686_v55, %v8690_v56  ;;  %v12456_v7 = vcombine.low %v8686_v55, %v8690_v56  ;;  %v9054_v44 = vld [vmem:[%s17715_s24 + $0x348] sm:$0xff]  ;;  %v12478_v32 = vcombine.low %v9045_v16, %v9049_v18  ;;  %v9059_v55 = vld [vmem:[%s17715_s24 + $0x370] sm:$0xff]  ;;  %v9076_v16 = vld [vmem:[%s17715_s24 + $0x3f8] sm:$0xff] }
 0xa43   : > { %8872 = vmatprep.subr.bf16.mxu0 %v12451_v58  ;;  %8913 = vmatprep.subr.bf16.mxu1 %v12453_v34  ;;  %v9061_v58 = vld [vmem:[%s17715_s24 + $0x380] sm:$0xff]  ;;  %v12487_v34 = vcombine.high %v9053_v26, %v9057_v27  ;;  %v12489_v8 = vcombine.high %v9054_v44, %v9058_v31  ;;  %v12488_v40 = vcombine.low %v9054_v44, %v9058_v31  ;;  %v16200_v44 = vld [vmem:[%s17728_s26 + $0x2c] ss:$16 sps:$4 sm:$0xff]  }
 0xa44   : > { %8902 = vmatprep.mubr.bf16.mxu0 %v17149_v21  ;;  %8943 = vmatprep.mubr.bf16.mxu1 %v17149_v21  ;;  %v16195_v31 = vld [vmem:[%s17728_s26 + $0x20] ss:$16 sps:$4 sm:$0xff]  }
 0xa46   : > { %8873 = vmatpush1.bf16.msra.mxu0 %v12450_v35  ;;  %8914 = vmatpush1.bf16.msra.mxu1 %v12452_v37  ;;  %v9062_v35 = vld [vmem:[%s17715_s24 + $0x388] sm:$0xff]  ;;  %v12486_v37 = vcombine.low %v9053_v26, %v9057_v27  ;;  %v16191_v26 = vld [vmem:[%s17728_s26 + $0x4] ss:$16 sps:$4 sm:$0xff]  }
 0xa47   : > { %8874 = vmatprep.subr.bf16.mxu0 %v12459_v38  ;;  %8915 = vmatprep.subr.bf16.mxu1 %v12461_v41  ;;  %v9069_v38 = vld [vmem:[%s17715_s24 + $0x3c0] sm:$0xff]  ;;  %v12495_v41 = vcombine.high %v9061_v58, %v9065_v33  ;;  %v12497_v11 = vcombine.high %v9062_v35, %v9066_v36  ;;  %v12496_v47 = vcombine.low %v9062_v35, %v9066_v36  ;;  %v16192_v27 = vld [vmem:[%s17728_s26 + $0x8] ss:$16 sps:$4 sm:$0xff]  }
 0xa48   : > { %v16207_v35 = vld [vmem:[%s17728_s26 + $0x60] ss:$16 sps:$4 sm:$0xff]   ;;  %v16210_v36 = vld [vmem:[%s17728_s26 + $0x68] ss:$16 sps:$4 sm:$0xff]  }
 0xa4a   : > { %8875 = vmatpush1.bf16.msra.mxu0 %v12458_v42  ;;  %8916 = vmatpush1.bf16.msra.mxu1 %v12460_v28  ;;  %v9070_v42 = vld [vmem:[%s17715_s24 + $0x3c8] sm:$0xff]  ;;  %v12494_v28 = vcombine.low %v9061_v58, %v9065_v33  ;;  %v16201_v33 = vld [vmem:[%s17728_s26 + $0x40] ss:$16 sps:$4 sm:$0xff]  }
 0xa4b   : > { %8876 = vmatprep.subr.bf16.mxu0 %v12467_v45  ;;  %8917 = vmatprep.subr.bf16.mxu1 %v12469_v48  ;;  %v9047_v45 = vld [vmem:[%s17715_s24 + $0x310] sm:$0xff]  ;;  %v12503_v48 = vcombine.high %v9069_v38, %v9073_v39  ;;  %v12505_v50 = vcombine.high %v9070_v42, %v9074_v43  ;;  %v12504_v56 = vcombine.low %v9070_v42, %v9074_v43  ;;  %v16206_v58 = vld [vmem:[%s17728_s26 + $0x4c] ss:$16 sps:$4 sm:$0xff]  }
 0xa4c   : > { %v16224_v42 = vld [vmem:[%s17728_s26 + $0xac] ss:$16 sps:$4 sm:$0xff]   ;;  %v16219_v43 = vld [vmem:[%s17728_s26 + $0xa0] ss:$16 sps:$4 sm:$0xff]  }
 0xa4e   : > { %8877 = vmatpush1.bf16.msra.mxu0 %v12466_v14  ;;  %8918 = vmatpush1.bf16.msra.mxu1 %v12468_v53  ;;  %v9052_v14 = vld [vmem:[%s17715_s24 + $0x338] sm:$0xff]  ;;  %v12502_v53 = vcombine.low %v9069_v38, %v9073_v39  ;;  %v16213_v39 = vld [vmem:[%s17728_s26 + $0x80] ss:$16 sps:$4 sm:$0xff]  }
 0xa4f   : > { %8952 = vmatprep.subr.bf16.mxu0 %v12447_v54  ;;  %8993 = vmatprep.subr.bf16.mxu1 %v12449_v17  ;;  %v9055_v54 = vld [vmem:[%s17715_s24 + $0x350] sm:$0xff]  ;;  %v12483_v17 = vcombine.high %v9047_v45, %v9051_v46  ;;  %v12485_v60 = vcombine.high %v9048_v49, %v9052_v14  ;;  %v12484_v2 = vcombine.low %v9048_v49, %v9052_v14  ;;  %v16218_v38 = vld [vmem:[%s17728_s26 + $0x8c] ss:$16 sps:$4 sm:$0xff]   ;;  %v16234_v14 = vld [vmem:[%s17728_s26 + $0xe8] ss:$16 sps:$4 sm:$0xff]  }
 0xa50   : > { %v16231_v49 = vld [vmem:[%s17728_s26 + $0xe0] ss:$16 sps:$4 sm:$0xff]  }
 0xa51   : > { %12474 = vmatmul.mubr.msk.bf16.vlgmr.msra.gmra.mrb[16].mxu0 %vm8177_vm6, %v18799_v57  ;;  %12475 = vmatmul.mubr.msk.bf16.vlgmr.msra.gmra.mrb[16].mxu1 %vm8177_vm6, %v18799_v57 }
 0xa52   : > { %8953 = vmatpush1.bf16.msra.mxu0 %v12446_v59  ;;  %8994 = vmatpush1.bf16.msra.mxu1 %v12448_v62  ;;  %v9060_v59 = vld [vmem:[%s17715_s24 + $0x378] sm:$0xff]  ;;  %v12482_v62 = vcombine.low %v9047_v45, %v9051_v46  ;;  %v16225_v46 = vld [vmem:[%s17728_s26 + $0xc0] ss:$16 sps:$4 sm:$0xff]  }
 0xa53   : > { %8954 = vmatprep.subr.bf16.mxu0 %v12455_v63  ;;  %8995 = vmatprep.subr.bf16.mxu1 %v12457_v3  ;;  %v9063_v63 = vld [vmem:[%s17715_s24 + $0x390] sm:$0xff]  ;;  %v12491_v3 = vcombine.high %v9055_v54, %v9059_v55  ;;  %v16230_v45 = vld [vmem:[%s17728_s26 + $0xcc] ss:$16 sps:$4 sm:$0xff]  }
 0xa54   : > { %8984 = vmatprep.mubr.bf16.mxu0 %v17149_v21  ;;  %9025 = vmatprep.mubr.bf16.mxu1 %v17149_v21 }
 0xa56   : > { %8955 = vmatpush1.bf16.msra.mxu0 %v12454_v4  ;;  %8996 = vmatpush1.bf16.msra.mxu1 %v12456_v7  ;;  %v9064_v4 = vld [vmem:[%s17715_s24 + $0x398] sm:$0xff]  ;;  %v12490_v7 = vcombine.low %v9055_v54, %v9059_v55  ;;  %v16237_v54 = vld [vmem:[%s17728_s26 + $0x100] ss:$16 sps:$4 sm:$0xff]  }
 0xa57   : > { %8956 = vmatprep.subr.bf16.mxu0 %v12463_v9  ;;  %8997 = vmatprep.subr.bf16.mxu1 %v12465_v13  ;;  %v9071_v9 = vld [vmem:[%s17715_s24 + $0x3d0] sm:$0xff]  ;;  %v12499_v13 = vcombine.high %v9063_v63, %v9067_v0  ;;  %v12501_v18 = vcombine.high %v9064_v4, %v9068_v5  ;;  %v16240_v55 = vld [vmem:[%s17728_s26 + $0x108] ss:$16 sps:$4 sm:$0xff]  }
 0xa58   : > { %v12507_v22 = vcombine.high %v9071_v9, %v9075_v10 }
 0xa5a   : > { %8957 = vmatpush1.bf16.msra.mxu0 %v12462_v15  ;;  %8998 = vmatpush1.bf16.msra.mxu1 %v12464_v19  ;;  %v9072_v15 = vld [vmem:[%s17715_s24 + $0x3d8] sm:$0xff]  ;;  %v12498_v19 = vcombine.low %v9063_v63, %v9067_v0  ;;  %v16257_v0 = vld [vmem:[%s17728_s26 + $0x164] ss:$16 sps:$4 sm:$0xff]  }
 0xa5b   : > { %8958 = vmatprep.subr.bf16.mxu0 %v12471_v20  ;;  %8999 = vmatprep.subr.bf16.mxu1 %v12473_v24  ;;  %v12500_v20 = vcombine.low %v9064_v4, %v9068_v5  ;;  %v12509_v23 = vcombine.high %v9072_v15, %v9076_v16  ;;  %v12506_v24 = vcombine.low %v9071_v9, %v9075_v10  ;;  %v16252_v63 = vld [vmem:[%s17728_s26 + $0x148] ss:$16 sps:$4 sm:$0xff]   ;;  %v16260_v4 = vld [vmem:[%s17728_s26 + $0x16c] ss:$16 sps:$4 sm:$0xff]   ;;  %v16263_v5 = vld [vmem:[%s17728_s26 + $0x184] ss:$16 sps:$4 sm:$0xff]  }
 0xa5c   : > { %v16264_v9 = vld [vmem:[%s17728_s26 + $0x188] ss:$16 sps:$4 sm:$0xff]   ;;  %v16269_v10 = vld [vmem:[%s17728_s26 + $0x1a4] ss:$16 sps:$4 sm:$0xff]  }
 0xa5e   : > { %8959 = vmatpush1.bf16.msra.mxu0 %v12470_v25  ;;  %9000 = vmatpush1.bf16.msra.mxu1 %v12472_v29  ;;  %v16189_v25 = vld [vmem:[%s17728_s26] ss:$16 sps:$4 sm:$0xff]   ;;  %v16194_v29 = vld [vmem:[%s17728_s26 + $0xc] ss:$16 sps:$4 sm:$0xff]  }
 0xa5f   : > { %9240 = vmatprep.subr.bf16.mxu0 %v12479_v30  ;;  %9281 = vmatprep.subr.bf16.mxu1 %v12481_v51  ;;  %v16197_v30 = vld [vmem:[%s17728_s26 + $0x24] ss:$16 sps:$4 sm:$0xff]   ;;  %v16198_v51 = vld [vmem:[%s17728_s26 + $0x28] ss:$16 sps:$4 sm:$0xff]  }
 0xa61   : > { %12476 = vmatmul.mubr.msk.bf16.vlgmr.msra.gmra.mrb[20].mxu0 %vm8177_vm6, %v18799_v57  ;;  %12477 = vmatmul.mubr.msk.bf16.vlgmr.msra.gmra.mrb[20].mxu1 %vm8177_vm6, %v18799_v57  ;;  %v9056_v57 = vld [vmem:[%s17715_s24 + $0x358] sm:$0xff] }
 0xa62   : > { %9241 = vmatpush1.bf16.msra.mxu0 %v12478_v32  ;;  %9282 = vmatpush1.bf16.msra.mxu1 %v12480_v1  ;;  %v12493_v6 = vcombine.high %v9056_v57, %v9060_v59  ;;  %v12492_v12 = vcombine.low %v9056_v57, %v9060_v59  ;;  %v16203_v32 = vld [vmem:[%s17728_s26 + $0x44] ss:$16 sps:$4 sm:$0xff]   ;;  %v16204_v1 = vld [vmem:[%s17728_s26 + $0x48] ss:$16 sps:$4 sm:$0xff]   ;;  %v16243_v57 = vld [vmem:[%s17728_s26 + $0x120] ss:$16 sps:$4 sm:$0xff]  }
 0xa63   : > { %9242 = vmatprep.subr.bf16.mxu0 %v12487_v34  ;;  %9283 = vmatprep.subr.bf16.mxu1 %v12489_v8  ;;  %v16209_v34 = vld [vmem:[%s17728_s26 + $0x64] ss:$16 sps:$4 sm:$0xff]   ;;  %v16212_v8 = vld [vmem:[%s17728_s26 + $0x6c] ss:$16 sps:$4 sm:$0xff]   ;;  %v16246_v59 = vld [vmem:[%s17728_s26 + $0x128] ss:$16 sps:$4 sm:$0xff]  }
 0xa64   : > { %9272 = vmatprep.mubr.bf16.mxu0 %v17149_v21  ;;  %9313 = vmatprep.mubr.bf16.mxu1 %v17149_v21 }
 0xa66   : > { %9243 = vmatpush1.bf16.msra.mxu0 %v12486_v37  ;;  %9284 = vmatpush1.bf16.msra.mxu1 %v12488_v40  ;;  %v16215_v37 = vld [vmem:[%s17728_s26 + $0x84] ss:$16 sps:$4 sm:$0xff]   ;;  %v16216_v40 = vld [vmem:[%s17728_s26 + $0x88] ss:$16 sps:$4 sm:$0xff]  }
 0xa67   : > { %9244 = vmatprep.subr.bf16.mxu0 %v12495_v41  ;;  %9285 = vmatprep.subr.bf16.mxu1 %v12497_v11  ;;  %v16221_v41 = vld [vmem:[%s17728_s26 + $0xa4] ss:$16 sps:$4 sm:$0xff]   ;;  %v16222_v11 = vld [vmem:[%s17728_s26 + $0xa8] ss:$16 sps:$4 sm:$0xff]  }
 0xa6a   : > { %9245 = vmatpush1.bf16.msra.mxu0 %v12494_v28  ;;  %9286 = vmatpush1.bf16.msra.mxu1 %v12496_v47  ;;  %v16227_v28 = vld [vmem:[%s17728_s26 + $0xc4] ss:$16 sps:$4 sm:$0xff]   ;;  %v16228_v47 = vld [vmem:[%s17728_s26 + $0xc8] ss:$16 sps:$4 sm:$0xff]  }
 0xa6b   : > { %9246 = vmatprep.subr.bf16.mxu0 %v12503_v48  ;;  %9287 = vmatprep.subr.bf16.mxu1 %v12505_v50  ;;  %v16233_v48 = vld [vmem:[%s17728_s26 + $0xe4] ss:$16 sps:$4 sm:$0xff]   ;;  %v16236_v50 = vld [vmem:[%s17728_s26 + $0xec] ss:$16 sps:$4 sm:$0xff]  }
 0xa6e   : > { %9247 = vmatpush1.bf16.msra.mxu0 %v12502_v53  ;;  %9288 = vmatpush1.bf16.msra.mxu1 %v12504_v56  ;;  %v16242_v53 = vld [vmem:[%s17728_s26 + $0x10c] ss:$16 sps:$4 sm:$0xff]   ;;  %v16245_v56 = vld [vmem:[%s17728_s26 + $0x124] ss:$16 sps:$4 sm:$0xff]  }
 0xa6f   : > { %9322 = vmatprep.subr.bf16.mxu0 %v12483_v17  ;;  %9363 = vmatprep.subr.bf16.mxu1 %v12485_v60  ;;  %v16248_v17 = vld [vmem:[%s17728_s26 + $0x12c] ss:$16 sps:$4 sm:$0xff]   ;;  %v16251_v60 = vld [vmem:[%s17728_s26 + $0x144] ss:$16 sps:$4 sm:$0xff]  }
 0xa71   : > { %12510 = vmatmul.mubr.msk.bf16.vlgmr.msra.gmra.mrb[24].mxu0 %vm8177_vm6, %v9044_v61  ;;  %12511 = vmatmul.mubr.msk.bf16.vlgmr.msra.gmra.mrb[24].mxu1 %vm8177_vm6, %v9044_v61 }
 0xa72   : > { %9323 = vmatpush1.bf16.msra.mxu0 %v12482_v62  ;;  %9364 = vmatpush1.bf16.msra.mxu1 %v12484_v2  ;;  %v16249_v62 = vld [vmem:[%s17728_s26 + $0x140] ss:$16 sps:$4 sm:$0xff]  }
 0xa73   : > { %9324 = vmatprep.subr.bf16.mxu0 %v12491_v3  ;;  %9365 = vmatprep.subr.bf16.mxu1 %v12493_v6  ;;  %v16255_v2 = vld [vmem:[%s17728_s26 + $0x160] ss:$16 sps:$4 sm:$0xff]   ;;  %v16258_v3 = vld [vmem:[%s17728_s26 + $0x168] ss:$16 sps:$4 sm:$0xff]   ;;  %v16266_v6 = vld [vmem:[%s17728_s26 + $0x18c] ss:$16 sps:$4 sm:$0xff]  }
 0xa74   : > { %9354 = vmatprep.mubr.bf16.mxu0 %v17149_v21  ;;  %9395 = vmatprep.mubr.bf16.mxu1 %v17149_v21  ;;  %v12508_v21 = vcombine.low %v9072_v15, %v9076_v16  ;;  %v16270_v15 = vld [vmem:[%s17728_s26 + $0x1a8] ss:$16 sps:$4 sm:$0xff]   ;;  %v16275_v16 = vld [vmem:[%s17728_s26 + $0x1c4] ss:$16 sps:$4 sm:$0xff]  }
 0xa76   : > { %9325 = vmatpush1.bf16.msra.mxu0 %v12490_v7  ;;  %9366 = vmatpush1.bf16.msra.mxu1 %v12492_v12  ;;  %v16261_v7 = vld [vmem:[%s17728_s26 + $0x180] ss:$16 sps:$4 sm:$0xff]   ;;  %v16272_v12 = vld [vmem:[%s17728_s26 + $0x1ac] ss:$16 sps:$4 sm:$0xff]  }
 0xa77   : > { %9326 = vmatprep.subr.bf16.mxu0 %v12499_v13  ;;  %9367 = vmatprep.subr.bf16.mxu1 %v12501_v18  ;;  %v16267_v13 = vld [vmem:[%s17728_s26 + $0x1a0] ss:$16 sps:$4 sm:$0xff]  }
 0xa78   : > { %v16273_v18 = vld [vmem:[%s17728_s26 + $0x1c0] ss:$16 sps:$4 sm:$0xff]  }
 0xa7a   : > { %9327 = vmatpush1.bf16.msra.mxu0 %v12498_v19  ;;  %9368 = vmatpush1.bf16.msra.mxu1 %v12500_v20  ;;  %v16276_v19 = vld [vmem:[%s17728_s26 + $0x1c8] ss:$16 sps:$4 sm:$0xff]   ;;  %v16278_v20 = vld [vmem:[%s17728_s26 + $0x1cc] ss:$16 sps:$4 sm:$0xff]  }
 0xa7b   : > { %9328 = vmatprep.subr.bf16.mxu0 %v12507_v22  ;;  %9369 = vmatprep.subr.bf16.mxu1 %v12509_v23  ;;  %v16281_v22 = vld [vmem:[%s17728_s26 + $0x1e4] ss:$16 sps:$4 sm:$0xff]   ;;  %v16284_v23 = vld [vmem:[%s17728_s26 + $0x1ec] ss:$16 sps:$4 sm:$0xff]  }
 0xa7e   : > { %9329 = vmatpush1.bf16.msra.mxu0 %v12506_v24  ;;  %9370 = vmatpush1.bf16.msra.mxu1 %v12508_v21  ;;  %v16279_v24 = vld [vmem:[%s17728_s26 + $0x1e0] ss:$16 sps:$4 sm:$0xff]   ;;  %v16282_v21 = vld [vmem:[%s17728_s26 + $0x1e8] ss:$16 sps:$4 sm:$0xff]  }
 0xa7f   : > { %11015 = vmatprep.subr.bf16.mxu0 %v16191_v26  ;;  %11179 = vmatprep.subr.bf16.mxu1 %v16194_v29  ;;  %v16290_v26 = vld [vmem:[%s17728_s26 + $0x20c] ss:$16 sps:$4 sm:$0xff]  }
 0xa81   : > { %12512 = vmatmul.mubr.msk.bf16.vlgmr.msra.gmra.mrb[28].mxu0 %vm8177_vm6, %v9044_v61  ;;  %12513 = vmatmul.mubr.msk.bf16.vlgmr.msra.gmra.mrb[28].mxu1 %vm8177_vm6, %v9044_v61  ;;  %v16254_v61 = vld [vmem:[%s17728_s26 + $0x14c] ss:$16 sps:$4 sm:$0xff]  }
 0xa82   : > { %11016 = vmatpush1.bf16.msra.mxu0 %v16189_v25  ;;  %11180 = vmatpush1.bf16.msra.mxu1 %v16192_v27  ;;  %v16287_v25 = vld [vmem:[%s17728_s26 + $0x204] ss:$16 sps:$4 sm:$0xff]  }
 0xa83   : > { %11017 = vmatprep.subr.bf16.mxu0 %v16197_v30  ;;  %11181 = vmatprep.subr.bf16.mxu1 %v16200_v44 }
 0xa86   : > { %11018 = vmatpush1.bf16.msra.mxu0 %v16195_v31  ;;  %11182 = vmatpush1.bf16.msra.mxu1 %v16198_v51 }
 0xa87   : > { %11019 = vmatprep.subr.bf16.mxu0 %v16203_v32  ;;  %11183 = vmatprep.subr.bf16.mxu1 %v16206_v58 }
 0xa8a   : > { %11020 = vmatpush1.bf16.msra.mxu0 %v16201_v33  ;;  %11184 = vmatpush1.bf16.msra.mxu1 %v16204_v1 }
 0xa8b   : > { %11021 = vmatprep.subr.bf16.mxu0 %v16209_v34  ;;  %11185 = vmatprep.subr.bf16.mxu1 %v16212_v8 }
 0xa8e   : > { %11022 = vmatpush1.bf16.msra.mxu0 %v16207_v35  ;;  %11186 = vmatpush1.bf16.msra.mxu1 %v16210_v36 }
 0xa8f   : > { %11023 = vmatprep.subr.bf16.mxu0 %v16215_v37  ;;  %11187 = vmatprep.subr.bf16.mxu1 %v16218_v38 }
 0xa92   : > { %11024 = vmatpush1.bf16.msra.mxu0 %v16213_v39  ;;  %11188 = vmatpush1.bf16.msra.mxu1 %v16216_v40 }
 0xa93   : > { %11025 = vmatprep.subr.bf16.mxu0 %v16221_v41  ;;  %11189 = vmatprep.subr.bf16.mxu1 %v16224_v42 }
 0xa96   : > { %11026 = vmatpush1.bf16.msra.mxu0 %v16219_v43  ;;  %11190 = vmatpush1.bf16.msra.mxu1 %v16222_v11 }
 0xa97   : > { %11027 = vmatprep.subr.bf16.mxu0 %v16227_v28  ;;  %11191 = vmatprep.subr.bf16.mxu1 %v16230_v45 }
 0xa9a   : > { %11028 = vmatpush1.bf16.msra.mxu0 %v16225_v46  ;;  %11192 = vmatpush1.bf16.msra.mxu1 %v16228_v47 }
 0xa9b   : > { %11029 = vmatprep.subr.bf16.mxu0 %v16233_v48  ;;  %11193 = vmatprep.subr.bf16.mxu1 %v16236_v50 }
 0xa9e   : > { %11030 = vmatpush1.bf16.msra.mxu0 %v16231_v49  ;;  %11194 = vmatpush1.bf16.msra.mxu1 %v16234_v14 }
 0xa9f   : > { %11031 = vmatprep.subr.bf16.mxu0 %v16239_v52  ;;  %11195 = vmatprep.subr.bf16.mxu1 %v16242_v53 }
 0xaa2   : > { %11032 = vmatpush1.bf16.msra.mxu0 %v16237_v54  ;;  %11196 = vmatpush1.bf16.msra.mxu1 %v16240_v55 }
 0xaa3   : > { %11033 = vmatprep.subr.bf16.mxu0 %v16245_v56  ;;  %11197 = vmatprep.subr.bf16.mxu1 %v16248_v17 }
 0xaa6   : > { %11034 = vmatpush1.bf16.msra.mxu0 %v16243_v57  ;;  %11198 = vmatpush1.bf16.msra.mxu1 %v16246_v59 }
 0xaa7   : > { %11035 = vmatprep.subr.bf16.mxu0 %v16251_v60  ;;  %11199 = vmatprep.subr.bf16.mxu1 %v16254_v61 }
 0xaaa   : > { %11036 = vmatpush1.bf16.msra.mxu0 %v16249_v62  ;;  %11200 = vmatpush1.bf16.msra.mxu1 %v16252_v63 }
 0xaab   : > { %11037 = vmatprep.subr.bf16.mxu0 %v16257_v0  ;;  %11201 = vmatprep.subr.bf16.mxu1 %v16260_v4 }
 0xaae   : > { %11038 = vmatpush1.bf16.msra.mxu0 %v16255_v2  ;;  %11202 = vmatpush1.bf16.msra.mxu1 %v16258_v3 }
 0xaaf   : > { %11039 = vmatprep.subr.bf16.mxu0 %v16263_v5  ;;  %11203 = vmatprep.subr.bf16.mxu1 %v16266_v6 }
 0xab2   : > { %11040 = vmatpush1.bf16.msra.mxu0 %v16261_v7  ;;  %11204 = vmatpush1.bf16.msra.mxu1 %v16264_v9 }
 0xab3   : > { %11041 = vmatprep.subr.bf16.mxu0 %v16269_v10  ;;  %11205 = vmatprep.subr.bf16.mxu1 %v16272_v12 }
 0xab6   : > { %11042 = vmatpush1.bf16.msra.mxu0 %v16267_v13  ;;  %11206 = vmatpush1.bf16.msra.mxu1 %v16270_v15 }
 0xab7   : > { %11043 = vmatprep.subr.bf16.mxu0 %v16275_v16  ;;  %11207 = vmatprep.subr.bf16.mxu1 %v16278_v20 }
 0xaba   : > { %11044 = vmatpush1.bf16.msra.mxu0 %v16273_v18  ;;  %11208 = vmatpush1.bf16.msra.mxu1 %v16276_v19 }
 0xabb   : > { %11045 = vmatprep.subr.bf16.mxu0 %v16281_v22  ;;  %11209 = vmatprep.subr.bf16.mxu1 %v16284_v23 }
 0xabe   : > { %11046 = vmatpush1.bf16.msra.mxu0 %v16279_v24  ;;  %11210 = vmatpush1.bf16.msra.mxu1 %v16282_v21 }
 0xabf   : > { %11056 = vmatprep.subr.bf16.mxu0 %v16287_v25  ;;  %11220 = vmatprep.subr.bf16.mxu1 %v16290_v26  ;;  %v9414_v26 = vlaneseq }
 0xae4   : > { %v8215_v27 = vpop.f32.mrb[0].mxu0  ;;  %v8256_v30 = vpop.f32.mrb[0].mxu1 }
 0xae5   : > { %v8217_v29 = vpop.f32.mrb[1].mxu0  ;;  %v8258_v31 = vpop.f32.mrb[1].mxu1 }
 0xae6   : > { %v8219_v44 = vpop.f32.mrb[2].mxu0  ;;  %v8260_v32 = vpop.f32.mrb[2].mxu1 }
 0xae7   : > { %v8220_v51 = vpop.f32.mrb[3].mxu0  ;;  %v8261_v58 = vpop.f32.mrb[3].mxu1  ;;  %v18937_v44 = vld [vmem:[%s17722_s29] sm:$0xff] }
 0xaf4   : > { %v8297_v33 = vpop.f32.mrb[4].mxu0  ;;  %v8338_v34 = vpop.f32.mrb[4].mxu1 }
 0xaf5   : > { %v8299_v1 = vpop.f32.mrb[5].mxu0  ;;  %v8340_v36 = vpop.f32.mrb[5].mxu1 }
 0xaf6   : > { %v8301_v35 = vpop.f32.mrb[6].mxu0  ;;  %v8342_v37 = vpop.f32.mrb[6].mxu1 }
 0xaf7   : > { %v8302_v8 = vpop.f32.mrb[7].mxu0  ;;  %v8343_v38 = vpop.f32.mrb[7].mxu1 }
 0xb04   : > { %v8542_v39 = vpop.f32.mrb[8].mxu0  ;;  %v8583_v42 = vpop.f32.mrb[8].mxu1 }
 0xb05   : > { %v8543_v40 = vadd.f32 %v8542_v39, %v8215_v27  ;;  %v8544_v41 = vpop.f32.mrb[9].mxu0  ;;  %v8584_v28 = vadd.f32 %v8583_v42, %v8256_v30  ;;  %v8585_v45 = vpop.f32.mrb[9].mxu1 }
 0xb06   : > { %v8545_v43 = vadd.f32 %v8544_v41, %v8217_v29  ;;  %v8546_v11 = vpop.f32.mrb[10].mxu0  ;;  %v8586_v47 = vadd.f32 %v8585_v45, %v8258_v31  ;;  %v8587_v48 = vpop.f32.mrb[10].mxu1  ;;  %v18933_v29 = vshrl.u32 %v9414_v26, 7 }
 0xb07   : > { %v8547_v46 = vpop.f32.mrb[11].mxu0  ;;  %v8588_v49 = vpop.f32.mrb[11].mxu1 }
 0xb08   : > { %v9416_v30 = vsub.s32 0, %v18933_v29  ;;  %v9424_v31 = vsub.s32 2, %v18933_v29  ;;  %v9420_v51 = vsub.s32 1, %v18933_v29  ;;  %v9428_v32 = vsub.s32 3, %v18933_v29 }
 0xb0a   : > { %v9417_v58 = vrot.slane %v18937_v44, %v9416_v30  ;;  %v9429_v37 = vrot.slane %v18937_v44, %v9428_v32 }
 0xb14   : > { %v8624_v14 = vpop.f32.mrb[12].mxu0  ;;  %v8665_v53 = vpop.f32.mrb[12].mxu1 }
 0xb15   : > { %v8625_v50 = vadd.f32 %v8624_v14, %v8297_v33  ;;  %v8626_v52 = vpop.f32.mrb[13].mxu0  ;;  %v8666_v56 = vadd.f32 %v8665_v53, %v8338_v34  ;;  %v8667_v17 = vpop.f32.mrb[13].mxu1  ;;  %v9421_v34 = vrot.slane %v18937_v44, %v9420_v51  ;;  %v16285_v53 = vld [vmem:[%s17728_s26 + $0x200] ss:$16 sps:$4 sm:$0xff]  }
 0xb16   : > { %v8627_v54 = vadd.f32 %v8626_v52, %v8299_v1  ;;  %v8628_v55 = vpop.f32.mrb[14].mxu0  ;;  %v8668_v59 = vadd.f32 %v8667_v17, %v8340_v36  ;;  %v8669_v60 = vpop.f32.mrb[14].mxu1  ;;  %v9425_v1 = vrot.slane %v18937_v44, %v9424_v31  ;;  %v16296_v17 = vld [vmem:[%s17728_s26 + $0x22c] ss:$16 sps:$4 sm:$0xff]  }
 0xb17   : > { %v8629_v57 = vpop.f32.mrb[15].mxu0  ;;  %v8670_v61 = vpop.f32.mrb[15].mxu1  ;;  %v16291_v60 = vld [vmem:[%s17728_s26 + $0x220] ss:$16 sps:$4 sm:$0xff]  }
 0xb18   : > { %v16294_v61 = vld [vmem:[%s17728_s26 + $0x228] ss:$16 sps:$4 sm:$0xff]  }
 0xb24   : > { %v8904_v62 = vpop.f32.mrb[16].mxu0  ;;  %v8945_v2 = vpop.f32.mrb[16].mxu1 }
 0xb25   : > { %v9034_v63 = vadd.f32 %v8904_v62, %v8543_v40  ;;  %v8906_v0 = vpop.f32.mrb[17].mxu0  ;;  %v9036_v5 = vadd.f32 %v8945_v2, %v8584_v28  ;;  %v8947_v6 = vpop.f32.mrb[17].mxu1  ;;  %v9440_v62 = vsub.s32 6, %v18933_v29  ;;  %v16299_v2 = vld [vmem:[%s17728_s26 + $0x244] ss:$16 sps:$4 sm:$0xff]  }
 0xb26   : > { %v9035_v3 = vadd.f32 %v8906_v0, %v8545_v43  ;;  %v8908_v4 = vpop.f32.mrb[18].mxu0  ;;  %v9037_v9 = vadd.f32 %v8947_v6, %v8586_v47  ;;  %v8949_v10 = vpop.f32.mrb[18].mxu1  ;;  %v9444_v0 = vsub.s32 7, %v18933_v29 }
 0xb27   : > { %v8909_v7 = vpop.f32.mrb[19].mxu0  ;;  %v8950_v12 = vpop.f32.mrb[19].mxu1  ;;  %v9441_v6 = vrot.slane %v18937_v44, %v9440_v62  ;;  %v16300_v10 = vld [vmem:[%s17728_s26 + $0x248] ss:$16 sps:$4 sm:$0xff]  }
 0xb28   : > { %v16348_v62 = vld [vmem:[%s17728_s26 + $0x348] ss:$16 sps:$4 sm:$0xff]  }
 0xb34   : > { %v8986_v13 = vpop.f32.mrb[20].mxu0  ;;  %v9027_v18 = vpop.f32.mrb[20].mxu1 }
 0xb35   : > { %v18925_v15 = vadd.f32 %v8986_v13, %v8625_v50  ;;  %v8988_v16 = vpop.f32.mrb[21].mxu0  ;;  %v18929_v22 = vadd.f32 %v9027_v18, %v8666_v56  ;;  %v9029_v23 = vpop.f32.mrb[21].mxu1  ;;  %v16293_v56 = vld [vmem:[%s17728_s26 + $0x224] ss:$16 sps:$4 sm:$0xff]   ;;  %v9445_v18 = vrot.slane %v18937_v44, %v9444_v0  ;;  %v16356_v0 = vld [vmem:[%s17728_s26 + $0x36c] ss:$16 sps:$4 sm:$0xff]  }
 0xb36   : > { %v18927_v19 = vadd.f32 %v8988_v16, %v8627_v54  ;;  %v8990_v20 = vpop.f32.mrb[22].mxu0  ;;  %v18931_v21 = vadd.f32 %v9029_v23, %v8668_v59  ;;  %v9031_v25 = vpop.f32.mrb[22].mxu1  ;;  %v16288_v54 = vld [vmem:[%s17728_s26 + $0x208] ss:$16 sps:$4 sm:$0xff]   ;;  %v9432_v59 = vsub.s32 4, %v18933_v29 }
 0xb37   : > { %v8991_v24 = vpop.f32.mrb[23].mxu0  ;;  %v9032_v27 = vpop.f32.mrb[23].mxu1  ;;  %v16305_v20 = vld [vmem:[%s17728_s26 + $0x264] ss:$16 sps:$4 sm:$0xff]   ;;  %v16308_v23 = vld [vmem:[%s17728_s26 + $0x26c] ss:$16 sps:$4 sm:$0xff]  }
 0xb38   : > { %v9433_v4 = vrot.slane %v18937_v44, %v9432_v59  ;;  %v16347_v59 = vld [vmem:[%s17728_s26 + $0x344] ss:$16 sps:$4 sm:$0xff]  }
 0xb44   : > { %v9274_v33 = vpop.f32.mrb[24].mxu0  ;;  %v9315_v36 = vpop.f32.mrb[24].mxu1 }
 0xb45   : > { %v9404_v35 = vadd.f32 %v9274_v33, %v9034_v63  ;;  %v9276_v8 = vpop.f32.mrb[25].mxu0  ;;  %v9406_v38 = vadd.f32 %v9315_v36, %v9036_v5  ;;  %v9317_v40 = vpop.f32.mrb[25].mxu1  ;;  %v9436_v63 = vsub.s32 5, %v18933_v29 }
 0xb46   : > { %v9405_v39 = vadd.f32 %v9276_v8, %v9035_v3  ;;  %v9278_v41 = vpop.f32.mrb[26].mxu0  ;;  %v9407_v43 = vadd.f32 %v9317_v40, %v9037_v9  ;;  %v9319_v28 = vpop.f32.mrb[26].mxu1  ;;  %v16302_v3 = vld [vmem:[%s17728_s26 + $0x24c] ss:$16 sps:$4 sm:$0xff]   ;;  %v16297_v9 = vld [vmem:[%s17728_s26 + $0x240] ss:$16 sps:$4 sm:$0xff]  }
 0xb47   : > { %v9454_v42 = vadd.f32 %v9417_v58, %v9404_v35  ;;  %v9279_v11 = vpop.f32.mrb[27].mxu0  ;;  %v18954_v45 = vadd.f32 %v9425_v1, %v9406_v38  ;;  %v9320_v47 = vpop.f32.mrb[27].mxu1  ;;  %v9437_v7 = vrot.slane %v18937_v44, %v9436_v63  ;;  %v16314_v8 = vld [vmem:[%s17728_s26 + $0x28c] ss:$16 sps:$4 sm:$0xff]   ;;  %v16312_v38 = vld [vmem:[%s17728_s26 + $0x288] ss:$16 sps:$4 sm:$0xff]  }
 0xb48   : > { %v9455_v46 = vadd.f32 %v9421_v34, %v9405_v39  ;;  %v9457_v49 = vadd.f32 %v9429_v37, %v9407_v43  ;;  %v16309_v37 = vld [vmem:[%s17728_s26 + $0x280] ss:$16 sps:$4 sm:$0xff]   ;;  %v16317_v39 = vld [vmem:[%s17728_s26 + $0x2a4] ss:$16 sps:$4 sm:$0xff]   ;;  %v16320_v40 = vld [vmem:[%s17728_s26 + $0x2ac] ss:$16 sps:$4 sm:$0xff]  }
 0xb49   : > { %v9462_v48 = vmax.f32 %v9454_v42, 0.0  ;;  %v16315_v41 = vld [vmem:[%s17728_s26 + $0x2a0] ss:$16 sps:$4 sm:$0xff]   ;;  %v16318_v42 = vld [vmem:[%s17728_s26 + $0x2a8] ss:$16 sps:$4 sm:$0xff]  }
 0xb4a   : > { %v9463_v14 = vmax.f32 %v9455_v46, 0.0  ;;  %v9465_v50 = vmax.f32 %v9457_v49, 0.0  ;;  %v16323_v43 = vld [vmem:[%s17728_s26 + $0x2c4] ss:$16 sps:$4 sm:$0xff]   ;;  %v16326_v11 = vld [vmem:[%s17728_s26 + $0x2cc] ss:$16 sps:$4 sm:$0xff]  }
 0xb4b   : > { %v9471_v55 = vpack.c.bf16 %v9462_v48, %v9462_v48  ;;  %v16321_v28 = vld [vmem:[%s17728_s26 + $0x2c0] ss:$16 sps:$4 sm:$0xff]   ;;  %v16324_v46 = vld [vmem:[%s17728_s26 + $0x2c8] ss:$16 sps:$4 sm:$0xff]   ;;  %v16329_v47 = vld [vmem:[%s17728_s26 + $0x2e4] ss:$16 sps:$4 sm:$0xff]  }
 0xb4c   : > { %v9472_v52 = vpack.c.bf16 %v9463_v14, %v9463_v14  ;;  %v9474_v57 = vpack.c.bf16 %v9465_v50, %v9465_v50  ;;  %v16332_v48 = vld [vmem:[%s17728_s26 + $0x2ec] ss:$16 sps:$4 sm:$0xff]   ;;  %v16327_v49 = vld [vmem:[%s17728_s26 + $0x2e0] ss:$16 sps:$4 sm:$0xff]   ;;  %v16330_v14 = vld [vmem:[%s17728_s26 + $0x2e8] ss:$16 sps:$4 sm:$0xff]  }
 0xb4d   : > { %v16335_v50 = vld [vmem:[%s17728_s26 + $0x304] ss:$16 sps:$4 sm:$0xff]  }
 0xb4e   : > { %11047 = vmatprep.mubr.bf16.mxu0 %v9472_v52  ;;  %11211 = vmatprep.mubr.bf16.mxu1 %v9472_v52  ;;  %v16338_v52 = vld [vmem:[%s17728_s26 + $0x30c] ss:$16 sps:$4 sm:$0xff]   ;;  %v16353_v63 = vld [vmem:[%s17728_s26 + $0x364] ss:$16 sps:$4 sm:$0xff]  }
 0xb4f   : > { %11048 = vmatmul.mubr.bf16.vlgmr.msra.gmra.mrb[32].mxu0 %v9471_v55  ;;  %11212 = vmatmul.mubr.bf16.vlgmr.msra.gmra.mrb[32].mxu1 %v9471_v55  ;;  %v16341_v55 = vld [vmem:[%s17728_s26 + $0x324] ss:$16 sps:$4 sm:$0xff]  }
 0xb50   : > { %11057 = vmatpush1.bf16.msra.mxu0 %v16285_v53  ;;  %11221 = vmatpush1.bf16.msra.mxu1 %v16288_v54  ;;  %v16333_v53 = vld [vmem:[%s17728_s26 + $0x300] ss:$16 sps:$4 sm:$0xff]   ;;  %v16336_v54 = vld [vmem:[%s17728_s26 + $0x308] ss:$16 sps:$4 sm:$0xff]  }
 0xb51   : > { %11088 = vmatprep.mubr.bf16.mxu0 %v9474_v57  ;;  %11252 = vmatprep.mubr.bf16.mxu1 %v9474_v57  ;;  %v16342_v57 = vld [vmem:[%s17728_s26 + $0x328] ss:$16 sps:$4 sm:$0xff]  }
 0xb52   : > { %11058 = vmatprep.subr.bf16.mxu0 %v16293_v56  ;;  %11222 = vmatprep.subr.bf16.mxu1 %v16296_v17  ;;  %v16344_v56 = vld [vmem:[%s17728_s26 + $0x32c] ss:$16 sps:$4 sm:$0xff]   ;;  %v16339_v17 = vld [vmem:[%s17728_s26 + $0x320] ss:$16 sps:$4 sm:$0xff]  }
 0xb54   : > { %11059 = vmatpush1.bf16.msra.mxu0 %v16291_v60  ;;  %11223 = vmatpush1.bf16.msra.mxu1 %v16294_v61  ;;  %v9356_v5 = vpop.f32.mrb[28].mxu0  ;;  %v9397_v13 = vpop.f32.mrb[28].mxu1  ;;  %v16350_v60 = vld [vmem:[%s17728_s26 + $0x34c] ss:$16 sps:$4 sm:$0xff]   ;;  %v16345_v61 = vld [vmem:[%s17728_s26 + $0x340] ss:$16 sps:$4 sm:$0xff]  }
 0xb55   : > { %v9408_v12 = vadd.f32 %v9356_v5, %v18925_v15  ;;  %v9358_v16 = vpop.f32.mrb[29].mxu0  ;;  %11060 = vmatprep.subr.bf16.mxu0 %v16299_v2  ;;  %11224 = vmatprep.subr.bf16.mxu1 %v16302_v3  ;;  %v9410_v24 = vadd.f32 %v9397_v13, %v18929_v22  ;;  %v9399_v26 = vpop.f32.mrb[29].mxu1  ;;  %v16306_v22 = vld [vmem:[%s17728_s26 + $0x268] ss:$16 sps:$4 sm:$0xff]   ;;  %v16351_v2 = vld [vmem:[%s17728_s26 + $0x360] ss:$16 sps:$4 sm:$0xff]  }
 0xb56   : > { %v9409_v25 = vadd.f32 %v9358_v16, %v18927_v19  ;;  %v9360_v27 = vpop.f32.mrb[30].mxu0  ;;  %v9411_v15 = vadd.f32 %v9399_v26, %v18931_v21  ;;  %v9401_v44 = vpop.f32.mrb[30].mxu1  ;;  %v16303_v19 = vld [vmem:[%s17728_s26 + $0x260] ss:$16 sps:$4 sm:$0xff]   ;;  %v16311_v21 = vld [vmem:[%s17728_s26 + $0x284] ss:$16 sps:$4 sm:$0xff]  }
 0xb57   : > { %v18979_v58 = vadd.f32 %v9433_v4, %v9408_v12  ;;  %v9361_v33 = vpop.f32.mrb[31].mxu0  ;;  %v18982_v1 = vadd.f32 %v9441_v6, %v9410_v24  ;;  %v9402_v35 = vpop.f32.mrb[31].mxu1  ;;  %v16354_v3 = vld [vmem:[%s17728_s26 + $0x368] ss:$16 sps:$4 sm:$0xff]   ;;  %v16359_v4 = vld [vmem:[%s17728_s26 + $0x384] ss:$16 sps:$4 sm:$0xff]  }
 0xb58   : > { %v18984_v34 = vadd.f32 %v9437_v7, %v9409_v25  ;;  %11061 = vmatpush1.bf16.msra.mxu0 %v16297_v9  ;;  %11225 = vmatpush1.bf16.msra.mxu1 %v16300_v10  ;;  %v18988_v36 = vadd.f32 %v9445_v18, %v9411_v15  ;;  %v16362_v5 = vld [vmem:[%s17728_s26 + $0x38c] ss:$16 sps:$4 sm:$0xff]   ;;  %v16357_v6 = vld [vmem:[%s17728_s26 + $0x380] ss:$16 sps:$4 sm:$0xff]   ;;  %v16360_v7 = vld [vmem:[%s17728_s26 + $0x388] ss:$16 sps:$4 sm:$0xff]  }
 0xb59   : > { %11062 = vmatprep.subr.bf16.mxu0 %v16305_v20  ;;  %11226 = vmatprep.subr.bf16.mxu1 %v16308_v23  ;;  %v16365_v9 = vld [vmem:[%s17728_s26 + $0x3a4] ss:$16 sps:$4 sm:$0xff]   ;;  %v16368_v10 = vld [vmem:[%s17728_s26 + $0x3ac] ss:$16 sps:$4 sm:$0xff]   ;;  %v16363_v12 = vld [vmem:[%s17728_s26 + $0x3a0] ss:$16 sps:$4 sm:$0xff]  }
 0xb5a   : > { %v16366_v13 = vld [vmem:[%s17728_s26 + $0x3a8] ss:$16 sps:$4 sm:$0xff]   ;;  %v16371_v16 = vld [vmem:[%s17728_s26 + $0x3c4] ss:$16 sps:$4 sm:$0xff]   ;;  %v16374_v18 = vld [vmem:[%s17728_s26 + $0x3cc] ss:$16 sps:$4 sm:$0xff]  }
 0xb5b   : > { %v16369_v20 = vld [vmem:[%s17728_s26 + $0x3c0] ss:$16 sps:$4 sm:$0xff]   ;;  %v16372_v23 = vld [vmem:[%s17728_s26 + $0x3c8] ss:$16 sps:$4 sm:$0xff]   ;;  %v16377_v24 = vld [vmem:[%s17728_s26 + $0x3e4] ss:$16 sps:$4 sm:$0xff]  }
 0xb5c   : > { %11063 = vmatpush1.bf16.msra.mxu0 %v16303_v19  ;;  %11227 = vmatpush1.bf16.msra.mxu1 %v16306_v22  ;;  %v16380_v25 = vld [vmem:[%s17728_s26 + $0x3ec] ss:$16 sps:$4 sm:$0xff]   ;;  %v16375_v26 = vld [vmem:[%s17728_s26 + $0x3e0] ss:$16 sps:$4 sm:$0xff]   ;;  %v16378_v27 = vld [vmem:[%s17728_s26 + $0x3e8] ss:$16 sps:$4 sm:$0xff]  }
 0xb5d   : > { %11064 = vmatprep.subr.bf16.mxu0 %v16311_v21  ;;  %11228 = vmatprep.subr.bf16.mxu1 %v16314_v8  ;;  %v9464_v15 = vmax.f32 %v18954_v45, 0.0  ;;  %v16383_v33 = vld [vmem:[%s17728_s26 + $0x404] ss:$16 sps:$4 sm:$0xff]   ;;  %v16386_v44 = vld [vmem:[%s17728_s26 + $0x40c] ss:$16 sps:$4 sm:$0xff]   ;;  %v9467_v19 = vmax.f32 %v18984_v34, 0.0 }
 0xb5e   : > { %v16381_v22 = vld [vmem:[%s17728_s26 + $0x400] ss:$16 sps:$4 sm:$0xff]   ;;  %v16384_v21 = vld [vmem:[%s17728_s26 + $0x408] ss:$16 sps:$4 sm:$0xff]   ;;  %v16389_v45 = vld [vmem:[%s17728_s26 + $0x424] ss:$16 sps:$4 sm:$0xff]  }
 0xb5f   : > { %v9473_v35 = vpack.c.bf16 %v9464_v15, %v9464_v15  ;;  %v9476_v8 = vpack.c.bf16 %v9467_v19, %v9467_v19  ;;  %v16387_v34 = vld [vmem:[%s17728_s26 + $0x420] ss:$16 sps:$4 sm:$0xff]   ;;  %v16461_v15 = vld [vmem:[%s17728_s26 + $0x5a4] ss:$16 sps:$4 sm:$0xff]   ;;  %v16462_v19 = vld [vmem:[%s17728_s26 + $0x5a8] ss:$16 sps:$4 sm:$0xff]  }
 0xb60   : > { %11065 = vmatpush1.bf16.msra.mxu0 %v16309_v37  ;;  %11229 = vmatpush1.bf16.msra.mxu1 %v16312_v38  ;;  %v16392_v37 = vld [vmem:[%s17728_s26 + $0x42c] ss:$16 sps:$4 sm:$0xff]   ;;  %v16390_v38 = vld [vmem:[%s17728_s26 + $0x428] ss:$16 sps:$4 sm:$0xff]  }
 0xb61   : > { %11066 = vmatprep.subr.bf16.mxu0 %v16317_v39  ;;  %11230 = vmatprep.subr.bf16.mxu1 %v16320_v40  ;;  %v16395_v39 = vld [vmem:[%s17728_s26 + $0x444] ss:$16 sps:$4 sm:$0xff]   ;;  %v16398_v40 = vld [vmem:[%s17728_s26 + $0x44c] ss:$16 sps:$4 sm:$0xff]  }
 0xb64   : > { %11067 = vmatpush1.bf16.msra.mxu0 %v16315_v41  ;;  %11231 = vmatpush1.bf16.msra.mxu1 %v16318_v42  ;;  %v16393_v41 = vld [vmem:[%s17728_s26 + $0x440] ss:$16 sps:$4 sm:$0xff]   ;;  %v16396_v42 = vld [vmem:[%s17728_s26 + $0x448] ss:$16 sps:$4 sm:$0xff]  }
 0xb65   : > { %11068 = vmatprep.subr.bf16.mxu0 %v16323_v43  ;;  %11232 = vmatprep.subr.bf16.mxu1 %v16326_v11  ;;  %v16401_v43 = vld [vmem:[%s17728_s26 + $0x464] ss:$16 sps:$4 sm:$0xff]   ;;  %v16404_v11 = vld [vmem:[%s17728_s26 + $0x46c] ss:$16 sps:$4 sm:$0xff]  }
 0xb68   : > { %11069 = vmatpush1.bf16.msra.mxu0 %v16321_v28  ;;  %11233 = vmatpush1.bf16.msra.mxu1 %v16324_v46  ;;  %v16399_v28 = vld [vmem:[%s17728_s26 + $0x460] ss:$16 sps:$4 sm:$0xff]   ;;  %v16402_v46 = vld [vmem:[%s17728_s26 + $0x468] ss:$16 sps:$4 sm:$0xff]  }
 0xb69   : > { %11070 = vmatprep.subr.bf16.mxu0 %v16329_v47  ;;  %11234 = vmatprep.subr.bf16.mxu1 %v16332_v48  ;;  %v16407_v47 = vld [vmem:[%s17728_s26 + $0x484] ss:$16 sps:$4 sm:$0xff]   ;;  %v16410_v48 = vld [vmem:[%s17728_s26 + $0x48c] ss:$16 sps:$4 sm:$0xff]  }
 0xb6c   : > { %11071 = vmatpush1.bf16.msra.mxu0 %v16327_v49  ;;  %11235 = vmatpush1.bf16.msra.mxu1 %v16330_v14  ;;  %v16405_v49 = vld [vmem:[%s17728_s26 + $0x480] ss:$16 sps:$4 sm:$0xff]   ;;  %v16408_v14 = vld [vmem:[%s17728_s26 + $0x488] ss:$16 sps:$4 sm:$0xff]  }
 0xb6d   : > { %11072 = vmatprep.subr.bf16.mxu0 %v16335_v50  ;;  %11236 = vmatprep.subr.bf16.mxu1 %v16338_v52  ;;  %v16413_v50 = vld [vmem:[%s17728_s26 + $0x4a4] ss:$16 sps:$4 sm:$0xff]   ;;  %v16416_v52 = vld [vmem:[%s17728_s26 + $0x4ac] ss:$16 sps:$4 sm:$0xff]  }
 0xb70   : > { %11073 = vmatpush1.bf16.msra.mxu0 %v16333_v53  ;;  %11237 = vmatpush1.bf16.msra.mxu1 %v16336_v54  ;;  %v16411_v53 = vld [vmem:[%s17728_s26 + $0x4a0] ss:$16 sps:$4 sm:$0xff]   ;;  %v16414_v54 = vld [vmem:[%s17728_s26 + $0x4a8] ss:$16 sps:$4 sm:$0xff]  }
 0xb71   : > { %11074 = vmatprep.subr.bf16.mxu0 %v16341_v55  ;;  %11238 = vmatprep.subr.bf16.mxu1 %v16344_v56  ;;  %v16419_v55 = vld [vmem:[%s17728_s26 + $0x4c4] ss:$16 sps:$4 sm:$0xff]   ;;  %v16422_v56 = vld [vmem:[%s17728_s26 + $0x4cc] ss:$16 sps:$4 sm:$0xff]  }
 0xb74   : > { %11075 = vmatpush1.bf16.msra.mxu0 %v16339_v17  ;;  %11239 = vmatpush1.bf16.msra.mxu1 %v16342_v57  ;;  %v16417_v17 = vld [vmem:[%s17728_s26 + $0x4c0] ss:$16 sps:$4 sm:$0xff]   ;;  %v16420_v57 = vld [vmem:[%s17728_s26 + $0x4c8] ss:$16 sps:$4 sm:$0xff]  }
 0xb75   : > { %11076 = vmatprep.subr.bf16.mxu0 %v16347_v59  ;;  %11240 = vmatprep.subr.bf16.mxu1 %v16350_v60  ;;  %v16425_v59 = vld [vmem:[%s17728_s26 + $0x4e4] ss:$16 sps:$4 sm:$0xff]   ;;  %v16428_v60 = vld [vmem:[%s17728_s26 + $0x4ec] ss:$16 sps:$4 sm:$0xff]  }
 0xb78   : > { %11077 = vmatpush1.bf16.msra.mxu0 %v16345_v61  ;;  %11241 = vmatpush1.bf16.msra.mxu1 %v16348_v62  ;;  %v16423_v61 = vld [vmem:[%s17728_s26 + $0x4e0] ss:$16 sps:$4 sm:$0xff]   ;;  %v16426_v62 = vld [vmem:[%s17728_s26 + $0x4e8] ss:$16 sps:$4 sm:$0xff]  }
 0xb79   : > { %11078 = vmatprep.subr.bf16.mxu0 %v16353_v63  ;;  %11242 = vmatprep.subr.bf16.mxu1 %v16356_v0  ;;  %v16431_v63 = vld [vmem:[%s17728_s26 + $0x504] ss:$16 sps:$4 sm:$0xff]   ;;  %v16434_v0 = vld [vmem:[%s17728_s26 + $0x50c] ss:$16 sps:$4 sm:$0xff]  }
 0xb7c   : > { %11079 = vmatpush1.bf16.msra.mxu0 %v16351_v2  ;;  %11243 = vmatpush1.bf16.msra.mxu1 %v16354_v3  ;;  %v16429_v2 = vld [vmem:[%s17728_s26 + $0x500] ss:$16 sps:$4 sm:$0xff]   ;;  %v16432_v3 = vld [vmem:[%s17728_s26 + $0x508] ss:$16 sps:$4 sm:$0xff]  }
 0xb7d   : > { %11080 = vmatprep.subr.bf16.mxu0 %v16359_v4  ;;  %11244 = vmatprep.subr.bf16.mxu1 %v16362_v5  ;;  %v16437_v4 = vld [vmem:[%s17728_s26 + $0x524] ss:$16 sps:$4 sm:$0xff]   ;;  %v16440_v5 = vld [vmem:[%s17728_s26 + $0x52c] ss:$16 sps:$4 sm:$0xff]  }
 0xb80   : > { %11081 = vmatpush1.bf16.msra.mxu0 %v16357_v6  ;;  %11245 = vmatpush1.bf16.msra.mxu1 %v16360_v7  ;;  %v16435_v6 = vld [vmem:[%s17728_s26 + $0x520] ss:$16 sps:$4 sm:$0xff]   ;;  %v16438_v7 = vld [vmem:[%s17728_s26 + $0x528] ss:$16 sps:$4 sm:$0xff]  }
 0xb81   : > { %11082 = vmatprep.subr.bf16.mxu0 %v16365_v9  ;;  %11246 = vmatprep.subr.bf16.mxu1 %v16368_v10  ;;  %v16443_v9 = vld [vmem:[%s17728_s26 + $0x544] ss:$16 sps:$4 sm:$0xff]   ;;  %v16446_v10 = vld [vmem:[%s17728_s26 + $0x54c] ss:$16 sps:$4 sm:$0xff]  }
 0xb84   : > { %11083 = vmatpush1.bf16.msra.mxu0 %v16363_v12  ;;  %11247 = vmatpush1.bf16.msra.mxu1 %v16366_v13  ;;  %v16441_v12 = vld [vmem:[%s17728_s26 + $0x540] ss:$16 sps:$4 sm:$0xff]   ;;  %v16444_v13 = vld [vmem:[%s17728_s26 + $0x548] ss:$16 sps:$4 sm:$0xff]  }
 0xb85   : > { %11084 = vmatprep.subr.bf16.mxu0 %v16371_v16  ;;  %11248 = vmatprep.subr.bf16.mxu1 %v16374_v18  ;;  %v16449_v16 = vld [vmem:[%s17728_s26 + $0x564] ss:$16 sps:$4 sm:$0xff]   ;;  %v16452_v18 = vld [vmem:[%s17728_s26 + $0x56c] ss:$16 sps:$4 sm:$0xff]  }
 0xb88   : > { %11085 = vmatpush1.bf16.msra.mxu0 %v16369_v20  ;;  %11249 = vmatpush1.bf16.msra.mxu1 %v16372_v23  ;;  %v16447_v20 = vld [vmem:[%s17728_s26 + $0x560] ss:$16 sps:$4 sm:$0xff]   ;;  %v16450_v23 = vld [vmem:[%s17728_s26 + $0x568] ss:$16 sps:$4 sm:$0xff]  }
 0xb89   : > { %11086 = vmatprep.subr.bf16.mxu0 %v16377_v24  ;;  %11250 = vmatprep.subr.bf16.mxu1 %v16380_v25  ;;  %v16455_v24 = vld [vmem:[%s17728_s26 + $0x584] ss:$16 sps:$4 sm:$0xff]   ;;  %v16458_v25 = vld [vmem:[%s17728_s26 + $0x58c] ss:$16 sps:$4 sm:$0xff]  }
 0xb8c   : > { %11087 = vmatpush1.bf16.msra.mxu0 %v16375_v26  ;;  %11251 = vmatpush1.bf16.msra.mxu1 %v16378_v27  ;;  %v16453_v26 = vld [vmem:[%s17728_s26 + $0x580] ss:$16 sps:$4 sm:$0xff]   ;;  %v16456_v27 = vld [vmem:[%s17728_s26 + $0x588] ss:$16 sps:$4 sm:$0xff]  }
 0xb8d   : > { %11097 = vmatprep.subr.bf16.mxu0 %v16383_v33  ;;  %11261 = vmatprep.subr.bf16.mxu1 %v16386_v44  ;;  %v16464_v33 = vld [vmem:[%s17728_s26 + $0x5ac] ss:$16 sps:$4 sm:$0xff]   ;;  %v16459_v44 = vld [vmem:[%s17728_s26 + $0x5a0] ss:$16 sps:$4 sm:$0xff]  }
 0xb8f   : > { %11089 = vmatmul.mubr.bf16.vlgmr.msra.gmra.mrb[32].mxu0 %v9473_v35  ;;  %11253 = vmatmul.mubr.bf16.vlgmr.msra.gmra.mrb[32].mxu1 %v9473_v35  ;;  %v16470_v35 = vld [vmem:[%s17728_s26 + $0x5cc] ss:$16 sps:$4 sm:$0xff]  }
 0xb90   : > { %11098 = vmatpush1.bf16.msra.mxu0 %v16381_v22  ;;  %11129 = vmatprep.mubr.bf16.mxu0 %v9476_v8  ;;  %v16467_v22 = vld [vmem:[%s17728_s26 + $0x5c4] ss:$16 sps:$4 sm:$0xff]  }
 0xb91   : > { %11262 = vmatpush1.bf16.msra.mxu1 %v16384_v21  ;;  %11293 = vmatprep.mubr.bf16.mxu1 %v9476_v8  ;;  %v16465_v21 = vld [vmem:[%s17728_s26 + $0x5c0] ss:$16 sps:$4 sm:$0xff]   ;;  %v16468_v8 = vld [vmem:[%s17728_s26 + $0x5c8] ss:$16 sps:$4 sm:$0xff]  }
 0xb92   : > { %11099 = vmatprep.subr.bf16.mxu0 %v16389_v45  ;;  %11263 = vmatprep.subr.bf16.mxu1 %v16392_v37  ;;  %v16473_v45 = vld [vmem:[%s17728_s26 + $0x5e4] ss:$16 sps:$4 sm:$0xff]   ;;  %v16476_v37 = vld [vmem:[%s17728_s26 + $0x5ec] ss:$16 sps:$4 sm:$0xff]  }
 0xb94   : > { %11100 = vmatpush1.bf16.msra.mxu0 %v16387_v34  ;;  %v16471_v34 = vld [vmem:[%s17728_s26 + $0x5e0] ss:$16 sps:$4 sm:$0xff]  }
 0xb95   : > { %11264 = vmatpush1.bf16.msra.mxu1 %v16390_v38  ;;  %11101 = vmatprep.subr.bf16.mxu0 %v16395_v39  ;;  %v9466_v38 = vmax.f32 %v18979_v58, 0.0  ;;  %v16474_v39 = vld [vmem:[%s17728_s26 + $0x5e8] ss:$16 sps:$4 sm:$0xff]   ;;  %v16485_v58 = vld [vmem:[%s17728_s26 + $0x624] ss:$16 sps:$4 sm:$0xff]  }
 0xb96   : > { %11265 = vmatprep.subr.bf16.mxu1 %v16398_v40  ;;  %v16479_v40 = vld [vmem:[%s17728_s26 + $0x604] ss:$16 sps:$4 sm:$0xff]  }
 0xb98   : > { %11102 = vmatpush1.bf16.msra.mxu0 %v16393_v41  ;;  %v16482_v41 = vld [vmem:[%s17728_s26 + $0x60c] ss:$16 sps:$4 sm:$0xff]  }
 0xb99   : > { %11266 = vmatpush1.bf16.msra.mxu1 %v16396_v42  ;;  %11103 = vmatprep.subr.bf16.mxu0 %v16401_v43  ;;  %v9469_v42 = vmax.f32 %v18988_v36, 0.0  ;;  %v16477_v43 = vld [vmem:[%s17728_s26 + $0x600] ss:$16 sps:$4 sm:$0xff]  }
 0xb9a   : > { %11267 = vmatprep.subr.bf16.mxu1 %v16404_v11  ;;  %v9475_v11 = vpack.c.bf16 %v9466_v38, %v9466_v38  ;;  %v16483_v36 = vld [vmem:[%s17728_s26 + $0x620] ss:$16 sps:$4 sm:$0xff]   ;;  %v16560_v38 = vld [vmem:[%s17728_s26 + $0x7ac] ss:$16 sps:$4 sm:$0xff]  }
 0xb9c   : > { %11104 = vmatpush1.bf16.msra.mxu0 %v16399_v28  ;;  %v16480_v28 = vld [vmem:[%s17728_s26 + $0x608] ss:$16 sps:$4 sm:$0xff]  }
 0xb9d   : > { %11268 = vmatpush1.bf16.msra.mxu1 %v16402_v46  ;;  %11105 = vmatprep.subr.bf16.mxu0 %v16407_v47  ;;  %v9478_v46 = vpack.c.bf16 %v9469_v42, %v9469_v42  ;;  %v16488_v47 = vld [vmem:[%s17728_s26 + $0x62c] ss:$16 sps:$4 sm:$0xff]  }
 0xb9e   : > { %11269 = vmatprep.subr.bf16.mxu1 %v16410_v48  ;;  %v16486_v48 = vld [vmem:[%s17728_s26 + $0x628] ss:$16 sps:$4 sm:$0xff]   ;;  %v16566_v42 = vld [vmem:[%s17728_s26 + $0x7cc] ss:$16 sps:$4 sm:$0xff]  }
 0xba0   : > { %11106 = vmatpush1.bf16.msra.mxu0 %v16405_v49  ;;  %v16491_v49 = vld [vmem:[%s17728_s26 + $0x644] ss:$16 sps:$4 sm:$0xff]  }
 0xba1   : > { %11270 = vmatpush1.bf16.msra.mxu1 %v16408_v14  ;;  %11107 = vmatprep.subr.bf16.mxu0 %v16413_v50  ;;  %v16494_v14 = vld [vmem:[%s17728_s26 + $0x64c] ss:$16 sps:$4 sm:$0xff]   ;;  %v16489_v50 = vld [vmem:[%s17728_s26 + $0x640] ss:$16 sps:$4 sm:$0xff]  }
 0xba2   : > { %11271 = vmatprep.subr.bf16.mxu1 %v16416_v52  ;;  %v16492_v52 = vld [vmem:[%s17728_s26 + $0x648] ss:$16 sps:$4 sm:$0xff]  }
 0xba4   : > { %11108 = vmatpush1.bf16.msra.mxu0 %v16411_v53  ;;  %v16497_v53 = vld [vmem:[%s17728_s26 + $0x664] ss:$16 sps:$4 sm:$0xff]  }
 0xba5   : > { %11272 = vmatpush1.bf16.msra.mxu1 %v16414_v54  ;;  %11109 = vmatprep.subr.bf16.mxu0 %v16419_v55  ;;  %v16500_v54 = vld [vmem:[%s17728_s26 + $0x66c] ss:$16 sps:$4 sm:$0xff]   ;;  %v16495_v55 = vld [vmem:[%s17728_s26 + $0x660] ss:$16 sps:$4 sm:$0xff]  }
 0xba6   : > { %11273 = vmatprep.subr.bf16.mxu1 %v16422_v56  ;;  %v16498_v56 = vld [vmem:[%s17728_s26 + $0x668] ss:$16 sps:$4 sm:$0xff]  }
 0xba8   : > { %11110 = vmatpush1.bf16.msra.mxu0 %v16417_v17  ;;  %v16503_v17 = vld [vmem:[%s17728_s26 + $0x684] ss:$16 sps:$4 sm:$0xff]  }
 0xba9   : > { %11274 = vmatpush1.bf16.msra.mxu1 %v16420_v57  ;;  %11111 = vmatprep.subr.bf16.mxu0 %v16425_v59  ;;  %v16506_v57 = vld [vmem:[%s17728_s26 + $0x68c] ss:$16 sps:$4 sm:$0xff]   ;;  %v16501_v59 = vld [vmem:[%s17728_s26 + $0x680] ss:$16 sps:$4 sm:$0xff]  }
 0xbaa   : > { %11275 = vmatprep.subr.bf16.mxu1 %v16428_v60  ;;  %v16504_v60 = vld [vmem:[%s17728_s26 + $0x688] ss:$16 sps:$4 sm:$0xff]  }
 0xbac   : > { %11112 = vmatpush1.bf16.msra.mxu0 %v16423_v61  ;;  %v16509_v61 = vld [vmem:[%s17728_s26 + $0x6a4] ss:$16 sps:$4 sm:$0xff]  }
 0xbad   : > { %11276 = vmatpush1.bf16.msra.mxu1 %v16426_v62  ;;  %11113 = vmatprep.subr.bf16.mxu0 %v16431_v63  ;;  %v16512_v62 = vld [vmem:[%s17728_s26 + $0x6ac] ss:$16 sps:$4 sm:$0xff]   ;;  %v16507_v63 = vld [vmem:[%s17728_s26 + $0x6a0] ss:$16 sps:$4 sm:$0xff]  }
 0xbae   : > { %11277 = vmatprep.subr.bf16.mxu1 %v16434_v0  ;;  %v16510_v0 = vld [vmem:[%s17728_s26 + $0x6a8] ss:$16 sps:$4 sm:$0xff]  }
 0xbb0   : > { %11114 = vmatpush1.bf16.msra.mxu0 %v16429_v2  ;;  %v16515_v2 = vld [vmem:[%s17728_s26 + $0x6c4] ss:$16 sps:$4 sm:$0xff]  }
 0xbb1   : > { %11278 = vmatpush1.bf16.msra.mxu1 %v16432_v3  ;;  %11115 = vmatprep.subr.bf16.mxu0 %v16437_v4  ;;  %v16518_v3 = vld [vmem:[%s17728_s26 + $0x6cc] ss:$16 sps:$4 sm:$0xff]   ;;  %v16513_v4 = vld [vmem:[%s17728_s26 + $0x6c0] ss:$16 sps:$4 sm:$0xff]  }
 0xbb2   : > { %11279 = vmatprep.subr.bf16.mxu1 %v16440_v5  ;;  %v16516_v5 = vld [vmem:[%s17728_s26 + $0x6c8] ss:$16 sps:$4 sm:$0xff]  }
 0xbb4   : > { %11116 = vmatpush1.bf16.msra.mxu0 %v16435_v6  ;;  %v16521_v6 = vld [vmem:[%s17728_s26 + $0x6e4] ss:$16 sps:$4 sm:$0xff]  }
 0xbb5   : > { %11280 = vmatpush1.bf16.msra.mxu1 %v16438_v7  ;;  %11117 = vmatprep.subr.bf16.mxu0 %v16443_v9  ;;  %v16524_v7 = vld [vmem:[%s17728_s26 + $0x6ec] ss:$16 sps:$4 sm:$0xff]   ;;  %v16519_v9 = vld [vmem:[%s17728_s26 + $0x6e0] ss:$16 sps:$4 sm:$0xff]  }
 0xbb6   : > { %11281 = vmatprep.subr.bf16.mxu1 %v16446_v10  ;;  %v16522_v10 = vld [vmem:[%s17728_s26 + $0x6e8] ss:$16 sps:$4 sm:$0xff]  }
 0xbb8   : > { %11118 = vmatpush1.bf16.msra.mxu0 %v16441_v12  ;;  %v16527_v12 = vld [vmem:[%s17728_s26 + $0x704] ss:$16 sps:$4 sm:$0xff]  }
 0xbb9   : > { %11282 = vmatpush1.bf16.msra.mxu1 %v16444_v13  ;;  %11119 = vmatprep.subr.bf16.mxu0 %v16449_v16  ;;  %v16530_v13 = vld [vmem:[%s17728_s26 + $0x70c] ss:$16 sps:$4 sm:$0xff]   ;;  %v16525_v16 = vld [vmem:[%s17728_s26 + $0x700] ss:$16 sps:$4 sm:$0xff]  }
 0xbba   : > { %11283 = vmatprep.subr.bf16.mxu1 %v16452_v18  ;;  %v16528_v18 = vld [vmem:[%s17728_s26 + $0x708] ss:$16 sps:$4 sm:$0xff]  }
 0xbbc   : > { %11120 = vmatpush1.bf16.msra.mxu0 %v16447_v20  ;;  %v16533_v20 = vld [vmem:[%s17728_s26 + $0x724] ss:$16 sps:$4 sm:$0xff]  }
 0xbbd   : > { %11284 = vmatpush1.bf16.msra.mxu1 %v16450_v23  ;;  %11121 = vmatprep.subr.bf16.mxu0 %v16455_v24  ;;  %v16536_v23 = vld [vmem:[%s17728_s26 + $0x72c] ss:$16 sps:$4 sm:$0xff]   ;;  %v16531_v24 = vld [vmem:[%s17728_s26 + $0x720] ss:$16 sps:$4 sm:$0xff]  }
 0xbbe   : > { %11285 = vmatprep.subr.bf16.mxu1 %v16458_v25  ;;  %v16534_v25 = vld [vmem:[%s17728_s26 + $0x728] ss:$16 sps:$4 sm:$0xff]  }
 0xbc0   : > { %11122 = vmatpush1.bf16.msra.mxu0 %v16453_v26  ;;  %v16539_v26 = vld [vmem:[%s17728_s26 + $0x744] ss:$16 sps:$4 sm:$0xff]  }
 0xbc1   : > { %11286 = vmatpush1.bf16.msra.mxu1 %v16456_v27  ;;  %11123 = vmatprep.subr.bf16.mxu0 %v16461_v15  ;;  %v16542_v27 = vld [vmem:[%s17728_s26 + $0x74c] ss:$16 sps:$4 sm:$0xff]   ;;  %v16537_v15 = vld [vmem:[%s17728_s26 + $0x740] ss:$16 sps:$4 sm:$0xff]  }
 0xbc2   : > { %11287 = vmatprep.subr.bf16.mxu1 %v16464_v33  ;;  %v16540_v33 = vld [vmem:[%s17728_s26 + $0x748] ss:$16 sps:$4 sm:$0xff]  }
 0xbc4   : > { %11124 = vmatpush1.bf16.msra.mxu0 %v16459_v44  ;;  %v16545_v44 = vld [vmem:[%s17728_s26 + $0x764] ss:$16 sps:$4 sm:$0xff]  }
 0xbc5   : > { %11288 = vmatpush1.bf16.msra.mxu1 %v16462_v19  ;;  %11125 = vmatprep.subr.bf16.mxu0 %v16467_v22  ;;  %v16548_v19 = vld [vmem:[%s17728_s26 + $0x76c] ss:$16 sps:$4 sm:$0xff]   ;;  %v16543_v22 = vld [vmem:[%s17728_s26 + $0x760] ss:$16 sps:$4 sm:$0xff]  }
 0xbc6   : > { %11289 = vmatprep.subr.bf16.mxu1 %v16470_v35  ;;  %v16546_v35 = vld [vmem:[%s17728_s26 + $0x768] ss:$16 sps:$4 sm:$0xff]  }
 0xbc8   : > { %11126 = vmatpush1.bf16.msra.mxu0 %v16465_v21  ;;  %v16551_v21 = vld [vmem:[%s17728_s26 + $0x784] ss:$16 sps:$4 sm:$0xff]  }
 0xbc9   : > { %11290 = vmatpush1.bf16.msra.mxu1 %v16468_v8  ;;  %11127 = vmatprep.subr.bf16.mxu0 %v16473_v45  ;;  %v16554_v8 = vld [vmem:[%s17728_s26 + $0x78c] ss:$16 sps:$4 sm:$0xff]   ;;  %v16549_v45 = vld [vmem:[%s17728_s26 + $0x780] ss:$16 sps:$4 sm:$0xff]  }
 0xbca   : > { %11291 = vmatprep.subr.bf16.mxu1 %v16476_v37  ;;  %v16552_v37 = vld [vmem:[%s17728_s26 + $0x788] ss:$16 sps:$4 sm:$0xff]  }
 0xbcc   : > { %11128 = vmatpush1.bf16.msra.mxu0 %v16471_v34  ;;  %v16557_v34 = vld [vmem:[%s17728_s26 + $0x7a4] ss:$16 sps:$4 sm:$0xff]  }
 0xbcd   : > { %11292 = vmatpush1.bf16.msra.mxu1 %v16474_v39  ;;  %11138 = vmatprep.subr.bf16.mxu0 %v16479_v40  ;;  %v16555_v39 = vld [vmem:[%s17728_s26 + $0x7a0] ss:$16 sps:$4 sm:$0xff]   ;;  %v16558_v40 = vld [vmem:[%s17728_s26 + $0x7a8] ss:$16 sps:$4 sm:$0xff]  }
 0xbce   : > { %11302 = vmatprep.subr.bf16.mxu1 %v16482_v41  ;;  %v16563_v41 = vld [vmem:[%s17728_s26 + $0x7c4] ss:$16 sps:$4 sm:$0xff]  }
 0xbcf   : > { %11130 = vmatmul.mubr.bf16.vlgmr.msra.gmra.mrb[32].mxu0 %v9475_v11 }
 0xbd0   : > { %11294 = vmatmul.mubr.bf16.vlgmr.msra.gmra.mrb[32].mxu1 %v9475_v11  ;;  %11139 = vmatpush1.bf16.msra.mxu0 %v16477_v43  ;;  %v16561_v43 = vld [vmem:[%s17728_s26 + $0x7c0] ss:$16 sps:$4 sm:$0xff]   ;;  %v16564_v11 = vld [vmem:[%s17728_s26 + $0x7c8] ss:$16 sps:$4 sm:$0xff]  }
 0xbd1   : > { %11170 = vmatprep.mubr.bf16.mxu0 %v9478_v46  ;;  %11303 = vmatpush1.bf16.msra.mxu1 %v16480_v28  ;;  %v16569_v28 = vld [vmem:[%s17728_s26 + $0x7e4] ss:$16 sps:$4 sm:$0xff]  }
 0xbd2   : > { %11334 = vmatprep.mubr.bf16.mxu1 %v9478_v46  ;;  %11140 = vmatprep.subr.bf16.mxu0 %v16485_v58  ;;  %v16572_v58 = vld [vmem:[%s17728_s26 + $0x7ec] ss:$16 sps:$4 sm:$0xff]   ;;  %v16567_v46 = vld [vmem:[%s17728_s26 + $0x7e0] ss:$16 sps:$4 sm:$0xff]  }
 0xbd3   : > { %11304 = vmatprep.subr.bf16.mxu1 %v16488_v47  ;;  %v9468_v47 = vmax.f32 %v18982_v1, 0.0 }
 0xbd4   : > { %11141 = vmatpush1.bf16.msra.mxu0 %v16483_v36  ;;  %v16570_v36 = vld [vmem:[%s17728_s26 + $0x7e8] ss:$16 sps:$4 sm:$0xff]  }
 0xbd5   : > { %11305 = vmatpush1.bf16.msra.mxu1 %v16486_v48  ;;  %11142 = vmatprep.subr.bf16.mxu0 %v16491_v49  ;;  %v9477_v48 = vpack.c.bf16 %v9468_v47, %v9468_v47  ;;  %v17150_v49 = vmov 1983009808  }
 0xbd6   : > { %11306 = vmatprep.subr.bf16.mxu1 %v16494_v14  ;;  %v11350_v14 = vunpack.c.l.s4 %v17150_v49  ;;  %v11626_v49 = vld [vmem:[#allocation25 + $0xa0] sm:$0xff] (!%p12770_p10) }
 0xbd8   : > { %11143 = vmatpush1.bf16.msra.mxu0 %v16489_v50  ;;  %v11351_v50 = vunpack.c.0.s8 %v11350_v14  ;;  %v11627_v14 = vld [vmem:[#allocation25 + $0xa8] sm:$0xff] (!%p12770_p10) }
 0xbd9   : > { %11307 = vmatpush1.bf16.msra.mxu1 %v16492_v52  ;;  %11144 = vmatprep.subr.bf16.mxu0 %v16497_v53 }
 0xbda   : > { %11308 = vmatprep.subr.bf16.mxu1 %v16500_v54  ;;  %v19172_v53 = vsub.s32 %v11351_v50, %v18933_v29 }
 0xbdc   : > { %11145 = vmatpush1.bf16.msra.mxu0 %v16495_v55 }
 0xbdd   : > { %11309 = vmatpush1.bf16.msra.mxu1 %v16498_v56  ;;  %11146 = vmatprep.subr.bf16.mxu0 %v16503_v17 }
 0xbde   : > { %11310 = vmatprep.subr.bf16.mxu1 %v16506_v57 }
 0xbe0   : > { %11147 = vmatpush1.bf16.msra.mxu0 %v16501_v59 }
 0xbe1   : > { %11311 = vmatpush1.bf16.msra.mxu1 %v16504_v60  ;;  %11148 = vmatprep.subr.bf16.mxu0 %v16509_v61 }
 0xbe2   : > { %11312 = vmatprep.subr.bf16.mxu1 %v16512_v62 }
 0xbe4   : > { %11149 = vmatpush1.bf16.msra.mxu0 %v16507_v63 }
 0xbe5   : > { %11313 = vmatpush1.bf16.msra.mxu1 %v16510_v0  ;;  %11150 = vmatprep.subr.bf16.mxu0 %v16515_v2  ;;  %v9470_v0 = vld [vmem:[#allocation3] sm:$0xff] }
 0xbe6   : > { %11314 = vmatprep.subr.bf16.mxu1 %v16518_v3 }
 0xbe8   : > { %11151 = vmatpush1.bf16.msra.mxu0 %v16513_v4  ;;  %v11373_v4 = vld [vmem:[#allocation22 + $0x8] sm:$0xff] (!%p12770_p10) }
 0xbe9   : > { %11315 = vmatpush1.bf16.msra.mxu1 %v16516_v5  ;;  %11152 = vmatprep.subr.bf16.mxu0 %v16521_v6  ;;  %v11377_v5 = vld [vmem:[#allocation22 + $0x28] sm:$0xff] (!%p12770_p10)  ;;  %v11375_v6 = vld [vmem:[#allocation22 + $0x18] sm:$0xff] (!%p12770_p10) }
 0xbea   : > { %11316 = vmatprep.subr.bf16.mxu1 %v16524_v7  ;;  %v15703_v7 = vpack.c.bf16 (!%p12770_p10), %v11377_v5, %v11373_v4  ;;  %v11612_v5 = vld [vmem:[#allocation25 + $0x30] sm:$0xff] (!%p12770_p10) }
 0xbec   : > { %11153 = vmatpush1.bf16.msra.mxu0 %v16519_v9  ;;  %v11379_v9 = vld [vmem:[#allocation22 + $0x38] sm:$0xff] (!%p12770_p10) }
 0xbed   : > { %11317 = vmatpush1.bf16.msra.mxu1 %v16522_v10  ;;  %11154 = vmatprep.subr.bf16.mxu0 %v16527_v12  ;;  %v11372_v10 = vld [vmem:[#allocation22] sm:$0xff] (!%p12770_p10) }
 0xbee   : > { %11318 = vmatprep.subr.bf16.mxu1 %v16530_v13  ;;  %v11376_v12 = vld [vmem:[#allocation22 + $0x20] sm:$0xff] (!%p12770_p10)  ;;  %v17151_v13 = vmov (!%p12770_p10), 0.0  }
 0xbf0   : > { %11155 = vmatpush1.bf16.msra.mxu0 %v16525_v16  ;;  %v15707_v16 = vpack.c.bf16 (!%p12770_p10), %v11379_v9, %v11375_v6  ;;  %v11613_v6 = vld [vmem:[#allocation25 + $0x38] sm:$0xff] (!%p12770_p10) }
 0xbf1   : > { %11319 = vmatpush1.bf16.msra.mxu1 %v16528_v18  ;;  %11156 = vmatprep.subr.bf16.mxu0 %v16533_v20  ;;  %v15705_v18 = vpack.c.bf16 (!%p12770_p10), %v11376_v12, %v11372_v10  ;;  %v11374_v20 = vld [vmem:[#allocation22 + $0x10] sm:$0xff] (!%p12770_p10)  ;;  %v15725_v9 = vpack.c.bf16 (!%p12770_p10), %v11613_v6, %v11612_v5  ;;  %v11645_v12 = vld [vmem:[#allocation25 + $0x138] sm:$0xff] (!%p12770_p10) }
 0xbf2   : > { %11320 = vmatprep.subr.bf16.mxu1 %v16536_v23  ;;  %v11378_v23 = vld [vmem:[#allocation22 + $0x30] sm:$0xff] (!%p12770_p10) }
 0xbf3   : > { %v11644_v10 = vld [vmem:[#allocation25 + $0x130] sm:$0xff] (!%p12770_p10) }
 0xbf4   : > { %11157 = vmatpush1.bf16.msra.mxu0 %v16531_v24  ;;  %v11381_v24 = vld [vmem:[#allocation22 + $0x48] sm:$0xf] (!%p12770_p10) }
 0xbf5   : > { %11321 = vmatpush1.bf16.msra.mxu1 %v16534_v25  ;;  %11158 = vmatprep.subr.bf16.mxu0 %v16539_v26  ;;  %v15709_v25 = vpack.c.bf16 (!%p12770_p10), %v11378_v23, %v11374_v20  ;;  %v11383_v26 = vld [vmem:[#allocation22 + $0x58] sm:$0xf] (!%p12770_p10)  ;;  %v11614_v23 = vld [vmem:[#allocation25 + $0x40] sm:$0xff] (!%p12770_p10) }
 0xbf6   : > { %11322 = vmatprep.subr.bf16.mxu1 %v16542_v27  ;;  %v11380_v27 = vld [vmem:[#allocation22 + $0x40] sm:$0xf] (!%p12770_p10) }
 0xbf8   : > { %11159 = vmatpush1.bf16.msra.mxu0 %v16537_v15  ;;  %v11382_v15 = vld [vmem:[#allocation22 + $0x50] sm:$0xf] (!%p12770_p10) }
 0xbf9   : > { %11323 = vmatpush1.bf16.msra.mxu1 %v16540_v33  ;;  %11160 = vmatprep.subr.bf16.mxu0 %v16545_v44  ;;  %v11371_v33 = vld [vmem:[#allocation21] sm:$0x3] (!%p12770_p10)  ;;  %v11622_v44 = vld [vmem:[#allocation25 + $0x80] sm:$0xff] (!%p12770_p10) }
 0xbfa   : > { %11324 = vmatprep.subr.bf16.mxu1 %v16548_v19  ;;  %v11623_v19 = vld [vmem:[#allocation25 + $0x88] sm:$0xff] (!%p12770_p10) }
 0xbfc   : > { %11161 = vmatpush1.bf16.msra.mxu0 %v16543_v22  ;;  %v11606_v22 = vld [vmem:[#allocation25] sm:$0xff] (!%p12770_p10) }
 0xbfd   : > { %11325 = vmatpush1.bf16.msra.mxu1 %v16546_v35  ;;  %11162 = vmatprep.subr.bf16.mxu0 %v16551_v21  ;;  %v11607_v35 = vld [vmem:[#allocation25 + $0x8] sm:$0xff] (!%p12770_p10)  ;;  %v11654_v21 = vld [vmem:[#allocation25 + $0x180] sm:$0xff] (!%p12770_p10) }
 0xbfe   : > { %11326 = vmatprep.subr.bf16.mxu1 %v16554_v8  ;;  %v15711_v8 = vpack.c.bf16 (!%p12770_p10), %v11623_v19, %v11622_v44  ;;  %v11647_v44 = vld [vmem:[#allocation25 + $0x148] sm:$0xff] (!%p12770_p10) }
 0xc00   : > { %11163 = vmatpush1.bf16.msra.mxu0 %v16549_v45  ;;  %v11655_v45 = vld [vmem:[#allocation25 + $0x188] sm:$0xff] (!%p12770_p10) }
 0xc01   : > { %11327 = vmatpush1.bf16.msra.mxu1 %v16552_v37  ;;  %11164 = vmatprep.subr.bf16.mxu0 %v16557_v34  ;;  %v11638_v37 = vld [vmem:[#allocation25 + $0x100] sm:$0xff] (!%p12770_p10)  ;;  %v11639_v34 = vld [vmem:[#allocation25 + $0x108] sm:$0xff] (!%p12770_p10) }
 0xc02   : > { %11328 = vmatprep.subr.bf16.mxu1 %v16560_v38  ;;  %v15713_v38 = vpack.c.bf16 (!%p12770_p10), %v11607_v35, %v11606_v22  ;;  %v11632_v22 = vld [vmem:[#allocation25 + $0xd0] sm:$0xff] (!%p12770_p10)  ;;  %v11633_v35 = vld [vmem:[#allocation25 + $0xd8] sm:$0xff] (!%p12770_p10) }
 0xc04   : > { %11165 = vmatpush1.bf16.msra.mxu0 %v16555_v39  ;;  %v15743_v39 = vpack.c.bf16 (!%p12770_p10), %v11655_v45, %v11654_v21  ;;  %v15731_v21 = vpack.c.bf16 (!%p12770_p10), %v11633_v35, %v11632_v22  ;;  %v11617_v45 = vld [vmem:[#allocation25 + $0x58] sm:$0xff] (!%p12770_p10) }
 0xc05   : > { %11329 = vmatpush1.bf16.msra.mxu1 %v16558_v40  ;;  %11166 = vmatprep.subr.bf16.mxu0 %v16563_v41  ;;  %v11624_v40 = vld [vmem:[#allocation25 + $0x90] sm:$0xff] (!%p12770_p10)  ;;  %v11625_v41 = vld [vmem:[#allocation25 + $0x98] sm:$0xff] (!%p12770_p10) }
 0xc06   : > { %11330 = vmatprep.subr.bf16.mxu1 %v16566_v42  ;;  %v11608_v42 = vld [vmem:[#allocation25 + $0x10] sm:$0xff] (!%p12770_p10) }
 0xc08   : > { %11167 = vmatpush1.bf16.msra.mxu0 %v16561_v43  ;;  %v15745_v43 = vpack.c.bf16 (!%p12770_p10), %v11639_v34, %v11638_v37  ;;  %v11664_v34 = vld [vmem:[#allocation25 + $0x1d0] sm:$0xff] (!%p12770_p10) }
 0xc09   : > { %11331 = vmatpush1.bf16.msra.mxu1 %v16564_v11  ;;  %11168 = vmatprep.subr.bf16.mxu0 %v16569_v28  ;;  %v15715_v11 = vpack.c.bf16 (!%p12770_p10), %v11625_v41, %v11624_v40  ;;  %v11609_v28 = vld [vmem:[#allocation25 + $0x18] sm:$0xff] (!%p12770_p10)  ;;  %v11648_v40 = vld [vmem:[#allocation25 + $0x150] sm:$0xff] (!%p12770_p10) }
 0xc0a   : > { %11332 = vmatprep.subr.bf16.mxu1 %v16572_v58  ;;  %v11656_v58 = vld [vmem:[#allocation25 + $0x190] sm:$0xff] (!%p12770_p10)  ;;  %v15717_v50 = vpack.c.bf16 (!%p12770_p10), %v11609_v28, %v11608_v42  ;;  %v11649_v41 = vld [vmem:[#allocation25 + $0x158] sm:$0xff] (!%p12770_p10) }
 0xc0b   : > { %v15765_v42 = vpack.c.bf16 (!%p12770_p10), %v11649_v41, %v11648_v40 }
 0xc0c   : > { %11169 = vmatpush1.bf16.msra.mxu0 %v16567_v46  ;;  %v11657_v46 = vld [vmem:[#allocation25 + $0x198] sm:$0xff] (!%p12770_p10) }
 0xc0d   : > { %11333 = vmatpush1.bf16.msra.mxu1 %v16570_v36  ;;  %15704 = vmatprep.subr.bf16.mxu0 (!%p12770_p10), %v15703_v7  ;;  %v15747_v47 = vpack.c.bf16 (!%p12770_p10), %v11657_v46, %v11656_v58  ;;  %v11640_v36 = vld [vmem:[#allocation25 + $0x110] sm:$0xff] (!%p12770_p10)  ;;  %v11618_v58 = vld [vmem:[#allocation25 + $0x60] sm:$0xff] (!%p12770_p10)  ;;  %v11619_v46 = vld [vmem:[#allocation25 + $0x68] sm:$0xff] (!%p12770_p10) }
 0xc0e   : > { %15708 = vmatprep.subr.bf16.mxu1 (!%p12770_p10), %v15707_v16  ;;  %v11630_v16 = vld [vmem:[#allocation25 + $0xc0] sm:$0xff] (!%p12770_p10) }
 0xc0f   : > { %11171 = vmatmul.mubr.bf16.vlgmr.msra.gmra.mrb[32].mxu0 %v9477_v48 }
 0xc10   : > { %11335 = vmatmul.mubr.bf16.vlgmr.msra.gmra.mrb[32].mxu1 %v9477_v48  ;;  %11465 = vmatprep.mubr.f32.mxu0 (!%p12770_p10), %v17151_v13  ;;  %v11641_v48 = vld [vmem:[#allocation25 + $0x118] sm:$0xff] (!%p12770_p10) }
 0xc11   : > { %11536 = vmatprep.mubr.f32.mxu1 (!%p12770_p10), %v17151_v13  ;;  %15706 = vmatpush1.bf16.msra.mxu0 (!%p12770_p10), %v15705_v18  ;;  %v15757_v13 = vpack.c.bf16 (!%p12770_p10), %v11645_v12, %v11644_v10  ;;  %v11631_v18 = vld [vmem:[#allocation25 + $0xc8] sm:$0xff] (!%p12770_p10) }
 0xc12   : > { %15710 = vmatpush1.bf16.msra.mxu1 (!%p12770_p10), %v15709_v25  ;;  %12771 = vmatprep.subr.msk.mxu0 (!%p12770_p10), %vm11388_vm7, %v11381_v24  ;;  %v15727_v20 = vpack.c.bf16 (!%p12770_p10), %v11631_v18, %v11630_v16  ;;  %v11615_v24 = vld [vmem:[#allocation25 + $0x48] sm:$0xff] (!%p12770_p10) }
 0xc13   : > { %12774 = vmatprep.subr.msk.mxu1 (!%p12770_p10), %vm11388_vm7, %v11383_v26  ;;  %v15729_v25 = vpack.c.bf16 (!%p12770_p10), %v11615_v24, %v11614_v23  ;;  %v11662_v26 = vld [vmem:[#allocation25 + $0x1c0] sm:$0xff] (!%p12770_p10) }
 0xc15   : > { %12772 = vmatpush1.msk.msra.mxu0 (!%p12770_p10), %vm11388_vm7, %v11380_v27  ;;  %v11663_v27 = vld [vmem:[#allocation25 + $0x1c8] sm:$0xff] (!%p12770_p10) }
 0xc16   : > { %12775 = vmatpush1.msk.msra.mxu1 (!%p12770_p10), %vm11388_vm7, %v11382_v15  ;;  %15712 = vmatprep.subr.bf16.mxu0 (!%p12770_p10), %v15711_v8  ;;  %v15759_v15 = vpack.c.bf16 (!%p12770_p10), %v11663_v27, %v11662_v26  ;;  %v11616_v8 = vld [vmem:[#allocation25 + $0x50] sm:$0xff] (!%p12770_p10) }
 0xc17   : > { %12773 = vmatmul.mubr.msk.f32.vlgmr.msra.gmra.mrb[0].mxu0 (!%p12770_p10), %vm11384_vm8, %v11371_v33  ;;  %15744 = vmatprep.subr.bf16.mxu1 (!%p12770_p10), %v15743_v39  ;;  %v15733_v37 = vpack.c.bf16 (!%p12770_p10), %v11617_v45, %v11616_v8 }
 0xc18   : > { %12776 = vmatmul.mubr.msk.f32.vlgmr.msra.gmra.mrb[0].mxu1 (!%p12770_p10), %vm11384_vm8, %v11371_v33  ;;  %15714 = vmatpush3.bf16.msra.mxu0 (!%p12770_p10), %v15713_v38  ;;  %v11646_v33 = vld [vmem:[#allocation25 + $0x140] sm:$0xff] (!%p12770_p10)  ;;  %v11665_v38 = vld [vmem:[#allocation25 + $0x1d8] sm:$0xff] (!%p12770_p10) }
 0xc19   : > { %15746 = vmatpush3.bf16.msra.mxu1 (!%p12770_p10), %v15745_v43  ;;  %15716 = vmatprep.subr.bf16.mxu0 (!%p12770_p10), %v15715_v11  ;;  %v15761_v19 = vpack.c.bf16 (!%p12770_p10), %v11647_v44, %v11646_v33  ;;  %v15763_v39 = vpack.c.bf16 (!%p12770_p10), %v11665_v38, %v11664_v34  ;;  %v11634_v43 = vld [vmem:[#allocation25 + $0xe0] sm:$0xff] (!%p12770_p10)  ;;  %v11635_v11 = vld [vmem:[#allocation25 + $0xe8] sm:$0xff] (!%p12770_p10) }
 0xc1a   : > { %15748 = vmatprep.subr.bf16.mxu1 (!%p12770_p10), %v15747_v47  ;;  %v15735_v28 = vpack.c.bf16 (!%p12770_p10), %v11635_v11, %v11634_v43  ;;  %v15737_v47 = vpack.c.bf16 (!%p12770_p10), %v11619_v46, %v11618_v58 }
 0xc1c   : > { %15718 = vmatpush3.bf16.msra.mxu0 (!%p12770_p10), %v15717_v50  ;;  %v11651_v50 = vld [vmem:[#allocation25 + $0x168] sm:$0xff] (!%p12770_p10) }
 0xce2   : > { %v11172_v52 = vpop.f32.mrb[32].mxu0 }
 0xce3   : > { %v11336_v54 = vpop.f32.mrb[32].mxu1  ;;  %v11174_v55 = vpop.f32.mrb[33].mxu0 }
 0xce4   : > { %v11347_v56 = vcombine.low %v11172_v52, %v11174_v55  ;;  %v11338_v1 = vpop.f32.mrb[33].mxu1  ;;  %v11176_v17 = vpop.f32.mrb[34].mxu0  ;;  %v11658_v52 = vld [vmem:[#allocation25 + $0x1a0] sm:$0xff] (!%p12770_p10)  ;;  %v15749_v55 = vpack.c.bf16 (!%p12770_p10), %v11641_v48, %v11640_v36  ;;  %v11667_v48 = vld [vmem:[#allocation25 + $0x1e8] sm:$0xff] (!%p12770_p10) }
 0xce5   : > { %v11348_v57 = vcombine.low %v11336_v54, %v11338_v1  ;;  %v11340_v59 = vpop.f32.mrb[34].mxu1  ;;  %v11177_v60 = vpop.f32.mrb[35].mxu0  ;;  %v11659_v54 = vld [vmem:[#allocation25 + $0x1a8] sm:$0xff] (!%p12770_p10)  ;;  %v11610_v1 = vld [vmem:[#allocation25 + $0x20] sm:$0xff] (!%p12770_p10) }
 0xce6   : > { %v11355_v61 = vrot.slane %v11347_v56, %v19172_v53  ;;  %v11341_v62 = vpop.f32.mrb[35].mxu1  ;;  %v15719_v56 = vpack.c.bf16 (!%p12770_p10), %v11627_v14, %v11626_v49  ;;  %v11611_v17 = vld [vmem:[#allocation25 + $0x28] sm:$0xff] (!%p12770_p10)  ;;  %v15751_v59 = vpack.c.bf16 (!%p12770_p10), %v11659_v54, %v11658_v52  ;;  %15750 = vmatpush3.bf16.msra.mxu1 (!%p12770_p10), %v15749_v55  ;;  %v11666_v36 = vld [vmem:[#allocation25 + $0x1e0] sm:$0xff] (!%p12770_p10)  ;;  %v11636_v54 = vld [vmem:[#allocation25 + $0xf0] sm:$0xff] (!%p12770_p10) }
 0xce7   : > { %v11362_v63 = vrot.slane %v11348_v57, %v19172_v53  ;;  %11370 = sbr.rel (%p12770_p10) target bundleno = 3552 (0xde0), region = 164  ;;  %v11642_v57 = vld [vmem:[#allocation25 + $0x120] sm:$0xff] (!%p12770_p10)  ;;  %v11643_v60 = vld [vmem:[#allocation25 + $0x128] sm:$0xff] (!%p12770_p10)  ;;  %v11629_v62 = vld [vmem:[#allocation25 + $0xb8] sm:$0xff] (!%p12770_p10)  ;;  %v15767_v49 = vpack.c.bf16 (!%p12770_p10), %v11667_v48, %v11666_v36 }
 0xce8   : > { %15720 = vmatprep.subr.bf16.mxu0 (!%p12770_p10), %v15719_v56  ;;  %15752 = vmatprep.subr.bf16.mxu1 (!%p12770_p10), %v15751_v59  ;;  %v11650_v14 = vld [vmem:[#allocation25 + $0x160] sm:$0xff] (!%p12770_p10)  ;;  %v11637_v55 = vld [vmem:[#allocation25 + $0xf8] sm:$0xff] (!%p12770_p10)  ;;  %v11668_v59 = vld [vmem:[#allocation25 + $0x1f0] sm:$0xff] (!%p12770_p10) }
 0xce9   : > { %v11363_v2 = vcombine.low %v11355_v61, %v11362_v63  ;;  %v11628_v61 = vld [vmem:[#allocation25 + $0xb0] sm:$0xff] (!%p12770_p10)  ;;  %v15769_v52 = vpack.c.bf16 (!%p12770_p10), %v11651_v50, %v11650_v14  ;;  %v15739_v56 = vpack.c.bf16 (!%p12770_p10), %v11637_v55, %v11636_v54 }
 0xcea   : > { %v11660_v63 = vld [vmem:[#allocation25 + $0x1b0] sm:$0xff] (!%p12770_p10)  ;;  %v15723_v4 = vpack.c.bf16 (!%p12770_p10), %v11629_v62, %v11628_v61 }
 0xceb   : > { %v11365_v3 = vadd.f32 %v11363_v2, %v9470_v0  ;;  %v11661_v0 = vld [vmem:[#allocation25 + $0x1b8] sm:$0xff] (!%p12770_p10)  ;;  %v15721_v2 = vpack.c.bf16 (!%p12770_p10), %v11611_v17, %v11610_v1  ;;  %v11620_v1 = vld [vmem:[#allocation25 + $0x70] sm:$0xff] (!%p12770_p10)  ;;  %v11538_v16 = vpop.f32.mrb[0].mxu1 (!%p12770_p10) }
 0xcec   : > { %v15755_v7 = vpack.c.bf16 (!%p12770_p10), %v11661_v0, %v11660_v63  ;;  %v11621_v17 = vld [vmem:[#allocation25 + $0x78] sm:$0xff] (!%p12770_p10)  ;;  %v11652_v62 = vld [vmem:[#allocation25 + $0x170] sm:$0xff] (!%p12770_p10)  ;;  %v11540_v23 = vpop.f32.mrb[1].mxu1 (!%p12770_p10) }
 0xced   : > { %11366 = vst [vmem:[#allocation3] sm:$0xff] %v11365_v3  ;;  %v15753_v3 = vpack.c.bf16 (!%p12770_p10), %v11643_v60, %v11642_v57  ;;  %15722 = vmatpush3.bf16.msra.mxu0 (!%p12770_p10), %v15721_v2  ;;  %v15741_v57 = vpack.c.bf16 (!%p12770_p10), %v11621_v17, %v11620_v1  ;;  %v11669_v60 = vld [vmem:[#allocation25 + $0x1f8] sm:$0xff] (!%p12770_p10) }
 0xcee   : > { %15724 = vmatprep.subr.bf16.mxu0 %v15723_v4  ;;  %v15771_v61 = vpack.c.bf16 %v11669_v60, %v11668_v59  ;;  %v11653_v63 = vld [vmem:[#allocation25 + $0x178] sm:$0xff] }
 0xcef   : > { %15754 = vmatpush3.bf16.msra.mxu1 %v15753_v3  ;;  %v15773_v0 = vpack.c.bf16 %v11653_v63, %v11652_v62  ;;  %v11544_v2 = vld [vmem:[#allocation24] sm:$0xf] }
 0xcf0   : > { %15756 = vmatprep.subr.bf16.mxu1 %v15755_v7  ;;  %v11549_v3 = vrot.slane %v11544_v2, %v9416_v30  ;;  %v11553_v4 = vrot.slane %v11544_v2, %v9420_v51  ;;  %v11557_v5 = vrot.slane %v11544_v2, %v9424_v31  ;;  %v11561_v6 = vrot.slane %v11544_v2, %v9428_v32 }
 0xcf1   : > { %15726 = vmatpush3.bf16.msra.mxu0 %v15725_v9  ;;  %v11586_v51 = vcombine.low %v11538_v16, %v11540_v23 }
 0xcf2   : > { %15728 = vmatprep.subr.bf16.mxu0 %v15727_v20  ;;  %v11562_v7 = vcombine.low %v11549_v3, %v11553_v4  ;;  %v11563_v9 = vcombine.low %v11557_v5, %v11561_v6 }
 0xcf3   : > { %15758 = vmatpush3.bf16.msra.mxu1 %v15757_v13  ;;  %v11467_v13 = vpop.f32.mrb[0].mxu0  ;;  %v11600_v29 = vrot.slane %v11586_v51, %v19172_v53 }
 0xcf4   : > { %15760 = vmatprep.subr.bf16.mxu1 %v15759_v15  ;;  %v11570_v10 = vrot.slane %v11562_v7, %v19172_v53  ;;  %v11577_v12 = vrot.slane %v11563_v9, %v19172_v53  ;;  %v11469_v18 = vpop.f32.mrb[1].mxu0  ;;  %v11543_v24 = vld [vmem:[#allocation3] sm:$0xff] }
 0xcf5   : > { %15730 = vmatpush3.bf16.msra.mxu0 %v15729_v25  ;;  %v11585_v30 = vcombine.low %v11467_v13, %v11469_v18 }
 0xcf6   : > { %15732 = vmatprep.subr.bf16.mxu0 %v15731_v21  ;;  %v11578_v20 = vcombine.low %v11570_v10, %v11577_v12  ;;  %v12777_v21 = vld [vmem:[#allocation27] ss:$0 sm:$0xff] }
 0xcf7   : > { %15762 = vmatpush3.bf16.msra.mxu1 %v15761_v19  ;;  %v11593_v25 = vrot.slane %v11585_v30, %v19172_v53 }
 0xcf8   : > { %15764 = vmatprep.subr.bf16.mxu1 %v15763_v39  ;;  %v11580_v31 = vadd.f32 %v11578_v20, %v11543_v24 }
 0xcf9   : > { %15734 = vmatpush3.bf16.msra.mxu0 %v15733_v37  ;;  %v11601_v32 = vcombine.low %v11593_v25, %v11600_v29 }
 0xcfa   : > { %15736 = vmatprep.subr.bf16.mxu0 %v15735_v28 }
 0xcfb   : > { %15766 = vmatpush3.bf16.msra.mxu1 %v15765_v42  ;;  %v11603_v26 = vadd.f32 %v11601_v32, %v11580_v31 }
 0xcfc   : > { %15768 = vmatprep.subr.bf16.mxu1 %v15767_v49 }
 0xcfd   : > { %15738 = vmatpush3.bf16.msra.mxu0 %v15737_v47  ;;  %v11604_v27 = vmax.f32 %v11603_v26, 0.0 }
 0xcfe   : > { %15740 = vmatprep.subr.bf16.mxu0 %v15739_v56 }
 0xcff   : > { %15770 = vmatpush3.bf16.msra.mxu1 %v15769_v52  ;;  %11605 = vst [vmem:[#allocation28] sm:$0xff] %v11604_v27  ;;  %v11685_v15 = vrot.slane %v11604_v27, %v19172_v53  ;;  %v11678_v33 = vcombine.high %v11604_v27, %v11604_v27 }
 0xd00   : > { %15772 = vmatprep.subr.bf16.mxu1 %v15771_v61 }
 0xd01   : > { %15742 = vmatpush3.bf16.msra.mxu0 %v15741_v57  ;;  %v11693_v44 = vcombine.high %v11685_v15, %v11685_v15  ;;  %v11692_v19 = vrot.slane %v11678_v33, %v19172_v53 }
 0xd03   : > { %15774 = vmatpush3.bf16.msra.mxu1 %v15773_v0  ;;  %11763 = vmatprep.mubr.f32.mxu0 %v11693_v44  ;;  %v11694_v22 = vcombine.high %v11692_v19, %v11692_v19 }
 0xd04   : > { %11764 = vmatmul.mubr.f32.vlgmr.msra.gmra.mrb[2].mxu0 %v11685_v15 }
 0xd05   : > { %11833 = vmatprep.mubr.f32.mxu1 %v11694_v22 }
 0xd06   : > { %11834 = vmatmul.mubr.f32.vlgmr.msra.gmra.mrb[2].mxu1 %v11692_v19 }
 0xdd7   : > { %v13595_v35 = vpop.f32.mrb[2].mxu0 }
 0xdd8   : > { %v13596_v8 = vpop.f32.mrb[3].mxu0 }
 0xdd9   : > { %v13597_v45 = vadd.f32 %v13596_v8, %v13595_v35  ;;  %v13630_v37 = vpop.f32.mrb[2].mxu1 }
 0xdda   : > { %v13631_v34 = vpop.f32.mrb[3].mxu1 }
 0xddb   : > { %v11766_v38 = vadd.f32 %v13597_v45, %v12777_v21  ;;  %v13632_v39 = vadd.f32 %v13631_v34, %v13630_v37 }
 0xddd   : > { %v11836_v40 = vadd.f32 %v13632_v39, %v11766_v38 }
 0xddf   : > { %11839 = vst [vmem:[#allocation29] sm:$0x3] %v11836_v40 }
 0xde0 PF: > { %p16093_p7 = scmp.eq.s32.totalorder %s17280_s3, 3  ;;  %s17152_s24 = smov [#allocation28]  }
 0xde1   : > { %s11847_s29 = sshll.u32 %s17152_s24, 4  ;;  %s17153_s26 = smov [#allocation29]   ;;  %s11848_s29 = int_to_ptr.vmem [resolvable:$true] %s11847_s29 }
 0xde2   : > { %s11858_s8 = sshll.u32 %s17153_s26, 4  ;;  %s16999_s7 = scalar_lea.vmem %s11848_s29, 128  ;;  %s11859_s8 = int_to_ptr.vmem [resolvable:$true] %s11858_s8 }
 0xde3   : > { %p17000_p5 = scmp.ne.s32.totalorder %s11848_s29, %s16999_s7  ;;  %p17006_p11 = scmp.lt.s32.totalorder %s11848_s29, %s11848_s29 }
 0xde4   : > { %p17007_p8 = scmp.lt.s32.totalorder %s16999_s7, %s16999_s7 }
 0xde5   : > { %p17001_p9 = pnand %p17000_p5, %p16093_p7 }
 0xde6   : > { %p17008_p6 = por %p17007_p8, %p17006_p11 }
 0xde7   : > { %p17002_p3 = pneg %p17001_p9 }
 0xde9   : > { %p17009_p1 = pnand %p17008_p6, %p17002_p3 }
 0xdeb   : > { %17012 = shalt.err (!%p17009_p1)
}
 0xdec   : > { %s19371_s10 = sld [smem:[#allocation57_spill]] }
 0xdf2   : > { %s17013_s5 = scalar_lea.hbm %s19371_s10, 128 }
 0xdf3   : > { %p17014_p2 = scmp.ne.s32.totalorder %s19371_s10, %s17013_s5  ;;  %p17019_p0 = scmp.lt.u32.totalorder %s17013_s5, %s19371_s10 }
 0xdf5   : > { %p17015_p4 = pnand %p17014_p2, %p16093_p7 }
 0xdf7   : > { %p17016_p12 = pneg %p17015_p4 }
 0xdf9   : > { %p17021_p13 = pnand %p17019_p0, %p17016_p12 }
 0xdfb   : > { %17024 = shalt.err (!%p17021_p13)
}
 0xdfc   : > { %16014 = dma.vmem_to_hbm [thread:$0]  (%p16093_p7), %s11848_s29, 128, %s19371_s10, [#allocation6]  }
 0xdfd   : > { %s17025_s13 = scalar_lea.vmem %s11859_s8, 32  ;;  %p17032_p3 = scmp.lt.s32.totalorder %s11859_s8, %s11859_s8 }
 0xdfe   : > { %p17026_p10 = scmp.ne.s32.totalorder %s11859_s8, %s17025_s13  ;;  %p17033_p11 = scmp.lt.s32.totalorder %s17025_s13, %s17025_s13 }
 0xe00   : > { %p17027_p5 = pnand %p17026_p10, %p16093_p7  ;;  %p17034_p8 = por %p17033_p11, %p17032_p3 }
 0xe02   : > { %p17028_p9 = pneg %p17027_p5 }
 0xe04   : > { %p17035_p6 = pnand %p17034_p8, %p17028_p9 }
 0xe06   : > { %17038 = shalt.err (!%p17035_p6)
}
 0xe07   : > { %s19372_s7 = sld [smem:[#allocation58_spill]] }
 0xe0d   : > { %s17039_s1 = scalar_lea.hbm %s19372_s7, 32 }
 0xe0e   : > { %p17040_p1 = scmp.ne.s32.totalorder %s19372_s7, %s17039_s1  ;;  %p17045_p12 = scmp.lt.u32.totalorder %s17039_s1, %s19372_s7 }
 0xe10   : > { %p17041_p2 = pnand %p17040_p1, %p16093_p7 }
 0xe12   : > { %p17042_p4 = pneg %p17041_p2 }
 0xe14   : > { %p17047_p0 = pnand %p17045_p12, %p17042_p4 }
 0xe16   : > { %17050 = shalt.err (!%p17047_p0)
}
 0xe17   : > { %16016 = dma.vmem_to_hbm [thread:$0]  (%p16093_p7), %s11859_s8, 32, %s19372_s7, [#allocation30]  }
 0xe18   : > { %17100 = dma.done.wait (%p16093_p7), [#allocation6], 128  }
 0xe19   : > { %17102 = vsyncadd (%p16093_p7), [#allocation6], 4294967168 }
 0xe1a   : > { %17104 = dma.done.wait (%p16093_p7), [#allocation30], 32  }
 0xe1b   : > { %17106 = vsyncadd (%p16093_p7), [#allocation30], 4294967264 }
 0xe1c PF: > { %s19373_s30 = sld [smem:[#allocation42_spill]]  ;;  %p42_p13 = scmp.ge.s32.totalorder %s17439_s18, 6  }
 0xe1d   : > { %s19374_s1 = smov %s17113_s22  ;;  %s19375_s22 = smov %s17117_s23 }
 0xe1e   : > { %s19377_s24 = smov %s17439_s18  ;;  %44 = sbr.rel (!%p42_p13) target bundleno = 30 (0x1e), region = 261 }
 0xe22   : > { %s19376_s23 = smov %s19373_s30 }
 0xe25   :  { %11875 = vsyncpa [#allocation5], 1 }
 0xe26   :  { %11877 = vsyncpa [#allocation5 + $0x1], 1 }
 0xe27   :  { %11878 = vsyncpa [#allocation8], 1 }
 0xe28   :  { %11880 = vsyncpa [#allocation8 + $0x1], 1 }
 0xe29   :  { %11881 = vsyncpa [#allocation11], 1 }
 0xe2a   :  { %11882 = vsyncpa [#allocation14], 1 }
 0xe2b   :  { %11883 = vsyncpa [#allocation17], 1 }
 0xe2c   :  { %11884 = vsyncpa [#allocation20], 1 }
 0xe2d   :  { %11885 = vsyncpa [#allocation23], 1 }
 0xe2e   :  { %11886 = vsyncpa [#allocation26], 1 }
 0xe2f   :  { %11887 = vsyncpa [#allocation6], 1 }
 0xe30   :  { %11889 = vsyncpa [#allocation6 + $0x1], 1 }
 0xe31   :  { %11890 = vsyncpa [#allocation30], 1 }

</bundles_post_ra>
